<compile_context>
chip_gen: v7x
topology: tpu7x:2x2x1
jax: 0.10.0
libtpu: 0.0.40
codegen_flags: <defaults>
</compile_context>

<pallas_src>
import math
import numpy as np

import jax
import jax.numpy as jnp
from jax.experimental import pallas as pl
from jax.experimental.pallas import tpu as pltpu


# ----------------------------------------------------------------------------
# Config (small shapes consistent with the PyTorch module)
# ----------------------------------------------------------------------------
CFG = dict(
    HIDDEN_SIZE=32,
    FF_SIZE=64,
    MULTI_HEAD=4,
    DROPOUT_R=0.0,
    LAYER=2,
    ORDERS=[0, 1],
    IMG_SCALE=4,          # => image sequence length Sx = 16
    ROUTING="soft",
    POOLING="avg",
    BINARIZE=False,
    TAU_MAX=10.0,
)
LN_EPS = 1e-6
NEG_INF = -1e9


# ----------------------------------------------------------------------------
# In-kernel helpers (traced inside the fused kernels)
# ----------------------------------------------------------------------------
def _layer_norm(x, g, b):
    """openvqa LayerNorm: unbiased std (ddof=1), eps added to std."""
    d = x.shape[-1]
    mean = jnp.mean(x, axis=-1, keepdims=True)
    c = x - mean
    var = jnp.sum(c * c, axis=-1, keepdims=True) / (d - 1)
    std = jnp.sqrt(var)
    return g * c / (std + LN_EPS) + b


def _softmax_rows(s):
    s = s - jnp.max(s, axis=-1, keepdims=True)
    e = jnp.exp(s)
    return e * pl.reciprocal(jnp.sum(e, axis=-1, keepdims=True), approx=True)


def _mh_attention(q_in, kv_in, bias, wq, bq, wk, bk, wv, bv, wm, bm, H, scale):
    """Multi-head attention with the merge linear folded in.

    q_in: (Sq, D) value, kv_in: (Sk, D) value, bias: (1, Sk) additive mask.
    wq/wk/wv: (H, D, Dh) refs, bq/bk/bv: (H, 1, Dh) refs, wm: (H, Dh, D) ref,
    bm: (1, D) value.  Returns (Sq, D).
    """
    acc = None
    for h in range(H):  # static unroll (H = 4)
        qh = jnp.dot(q_in, wq[h], preferred_element_type=jnp.float32) + bq[h]
        kh = jnp.dot(kv_in, wk[h], preferred_element_type=jnp.float32) + bk[h]
        vh = jnp.dot(kv_in, wv[h], preferred_element_type=jnp.float32) + bv[h]
        s = jax.lax.dot_general(
            qh, kh, (((1,), (1,)), ((), ())), preferred_element_type=jnp.float32
        ) * scale + bias
        p = _softmax_rows(s)
        oh = jnp.dot(
            jnp.dot(p, vh, preferred_element_type=jnp.float32),
            wm[h], preferred_element_type=jnp.float32)
        acc = oh if acc is None else acc + oh
    return acc + bm


def _full_spec(shape):
    zeros = (0,) * len(shape)
    return pl.BlockSpec(shape, lambda b, _z=zeros: _z)


# ----------------------------------------------------------------------------
# Fused encoder layer: MHAtt -> +res -> LN -> FFN -> +res -> LN
# ----------------------------------------------------------------------------
def encoder_layer_pallas(y, ybias, p, H):
    B, Sy, D = y.shape
    Dh = D // H
    scale = 1.0 / math.sqrt(Dh)
    m, f = p["mhatt"], p["ffn"]

    args = [
        y, ybias,
        m["wq"], m["bq"], m["wk"], m["bk"], m["wv"], m["bv"], m["wm"], m["bm"],
        p["norm1"]["g"], p["norm1"]["b"],
        f["w1"], f["b1"], f["w2"], f["b2"],
        p["norm2"]["g"], p["norm2"]["b"],
    ]

    def kernel(y_ref, yb_ref,
               wq, bq, wk, bk, wv, bv, wm, bm,
               g1, gb1, w1, fb1, w2, fb2, g2, gb2,
               o_ref):
        yy = y_ref[...]                       # (Sy, D)
        bias = yb_ref[...]                    # (1, Sy) additive mask
        att = _mh_attention(yy, yy, bias, wq, bq, wk, bk, wv, bv, wm, bm[...],
                            H, scale)
        y1 = _layer_norm(yy + att, g1[...], gb1[...])
        hid = jnp.maximum(
            jnp.dot(y1, w1[...], preferred_element_type=jnp.float32) + fb1[...], 0.0)
        ffo = jnp.dot(hid, w2[...], preferred_element_type=jnp.float32) + fb2[...]
        o_ref[...] = _layer_norm(y1 + ffo, g2[...], gb2[...])

    in_specs = [
        pl.BlockSpec((None, Sy, D), lambda b: (b, 0, 0)),
        pl.BlockSpec((None, 1, Sy), lambda b: (b, 0, 0)),
    ] + [_full_spec(a.shape) for a in args[2:]]

    return pl.pallas_call(
        kernel,
        out_shape=jax.ShapeDtypeStruct((B, Sy, D), jnp.float32),
        grid=(B,),
        in_specs=in_specs,
        out_specs=pl.BlockSpec((None, Sy, D), lambda b: (b, 0, 0)),
        compiler_params=pltpu.CompilerParams(dimension_semantics=("parallel",)),
    )(*args)


# ----------------------------------------------------------------------------
# Fused TRAR decoder layer:
#   SARoutingBlock -> +res -> LN -> cross MHAtt -> +res -> LN -> FFN -> +res -> LN
# ----------------------------------------------------------------------------
def trar_layer_pallas(x, y, alphas, xbias, ybias, p, H):
    B, Sx, D = x.shape
    Sy = y.shape[1]
    L = xbias.shape[1]
    Dh = D // H
    scale = 1.0 / math.sqrt(Dh)
    m1, m2, f = p["mhatt1"], p["mhatt2"], p["ffn"]

    args = [
        alphas, x, y, xbias, ybias,
        m1["wq"], m1["bq"], m1["wk"], m1["bk"], m1["wv"], m1["bv"], m1["wm"], m1["bm"],
        m2["wq"], m2["bq"], m2["wk"], m2["bk"], m2["wv"], m2["bv"], m2["wm"], m2["bm"],
        p["norm1"]["g"], p["norm1"]["b"],
        p["norm2"]["g"], p["norm2"]["b"],
        f["w1"], f["b1"], f["w2"], f["b2"],
        p["norm3"]["g"], p["norm3"]["b"],
    ]

    def kernel(a_ref, x_ref, y_ref, xb_ref, yb_ref,
               wq1, bq1, wk1, bk1, wv1, bv1, wm1, bm1,
               wq2, bq2, wk2, bk2, wv2, bv2, wm2, bm2,
               g1, gb1, g2, gb2, w1, fb1, w2, fb2, g3, gb3,
               o_ref):
        bidx = pl.program_id(0)
        xx = x_ref[...]                                  # (Sx, D)
        yy = y_ref[...]                                  # (Sy, D)
        ybias_v = yb_ref[...]                            # (1, Sy)
        xbiases = [xb_ref[l] for l in range(L)]          # L x (Sx, Sx) additive
        alpha = [a_ref[bidx, l] for l in range(L)]       # routing scalars (SMEM)

        # --- SARoutingBlock self-attention (routing-weighted softmax mix) ---
        acc = None
        for h in range(H):  # static unroll
            qh = jnp.dot(xx, wq1[h], preferred_element_type=jnp.float32) + bq1[h]
            kh = jnp.dot(xx, wk1[h], preferred_element_type=jnp.float32) + bk1[h]
            vh = jnp.dot(xx, wv1[h], preferred_element_type=jnp.float32) + bv1[h]
            s = jax.lax.dot_general(
                qh, kh, (((1,), (1,)), ((), ())),
                preferred_element_type=jnp.float32) * scale          # (Sx, Sx)
            # Shared per-row stabilizer (bias <= 0 so it is a valid upper bound).
            row_max = jnp.max(s, axis=-1, keepdims=True)
            att = None
            for l in range(L):  # static unroll over routing branches
                e = jnp.exp(s + xbiases[l] - row_max)
                pmap = e * pl.reciprocal(
                    jnp.sum(e, axis=-1, keepdims=True), approx=True)
                term = alpha[l] * pmap
                att = term if att is None else att + term
            oh = jnp.dot(
                jnp.dot(att, vh, preferred_element_type=jnp.float32),
                wm1[h], preferred_element_type=jnp.float32)
            acc = oh if acc is None else acc + oh
        att1 = acc + bm1[...]
        x1 = _layer_norm(xx + att1, g1[...], gb1[...])

        # --- cross attention over encoder output y ---
        att2 = _mh_attention(x1, yy, ybias_v, wq2, bq2, wk2, bk2, wv2, bv2,
                             wm2, bm2[...], H, scale)
        x2 = _layer_norm(x1 + att2, g2[...], gb2[...])

        # --- FFN ---
        hid = jnp.maximum(
            jnp.dot(x2, w1[...], preferred_element_type=jnp.float32) + fb1[...], 0.0)
        ffo = jnp.dot(hid, w2[...], preferred_element_type=jnp.float32) + fb2[...]
        o_ref[...] = _layer_norm(x2 + ffo, g3[...], gb3[...])

    in_specs = [
        pl.BlockSpec(memory_space=pltpu.MemorySpace.SMEM),        # alphas (B, L)
        pl.BlockSpec((None, Sx, D), lambda b: (b, 0, 0)),
        pl.BlockSpec((None, Sy, D), lambda b: (b, 0, 0)),
        pl.BlockSpec((None, L, Sx, Sx), lambda b: (b, 0, 0, 0)),
        pl.BlockSpec((None, 1, Sy), lambda b: (b, 0, 0)),
    ] + [_full_spec(a.shape) for a in args[5:]]

    return pl.pallas_call(
        kernel,
        out_shape=jax.ShapeDtypeStruct((B, Sx, D), jnp.float32),
        grid=(B,),
        in_specs=in_specs,
        out_specs=pl.BlockSpec((None, Sx, D), lambda b: (b, 0, 0)),
        compiler_params=pltpu.CompilerParams(dimension_semantics=("parallel",)),
    )(*args)


# ----------------------------------------------------------------------------
# Plain-JAX glue: masks (precomputed additive biases), routing MLP, forward
# ----------------------------------------------------------------------------
def get_img_masks(scale, order):
    """numpy port of getImgMasks: True == masked (outside local window)."""
    assert order < scale
    rows = []
    for i in range(scale):
        for j in range(scale):
            m = np.ones((scale, scale), np.float32)
            for xx in range(i - order, i + order + 1):
                for yy in range(j - order, j + order + 1):
                    if 0 <= xx < scale and 0 <= yy < scale:
                        m[xx, yy] = 0
            rows.append(m.reshape(-1))
    return np.asarray(rows, dtype=np.float32).astype(bool)


def build_bias_y(y_mask):
    """(B,1,1,Sy) bool -> (B,1,Sy) f32 additive bias (0 / -1e9). Layer-invariant."""
    return jnp.where(y_mask[:, 0], NEG_INF, 0.0).astype(jnp.float32)


def build_bias_x(x_mask, cfg, B):
    """Port of getMasks as additive biases: (B, L, Sx, Sx) f32. Layer-invariant."""
    Sx = cfg["IMG_SCALE"] ** 2
    per_order = []
    for order in cfg["ORDERS"]:
        if order == 0:
            m = jnp.broadcast_to(x_mask, (B, 1, Sx, Sx))
        else:
            img = jnp.asarray(get_img_masks(cfg["IMG_SCALE"], order))   # (Sx,Sx)
            m = jnp.logical_or(x_mask, img)                             # (B,1,Sx,Sx)
        per_order.append(m[:, 0])                                       # (B,Sx,Sx)
    masks = jnp.stack(per_order, axis=1)                                # (B,L,Sx,Sx)
    return jnp.where(masks, NEG_INF, 0.0).astype(jnp.float32)


def routing_alphas(x, p):
    """SoftRoutingBlock with POOLING='avg': tiny MLP kept in plain JAX."""
    pooled = jnp.mean(x, axis=1)                                # (B, D)
    h = jnp.maximum(pooled @ p["rt_w1"], 0.0)                   # Linear(no bias)+ReLU
    logits = h @ p["rt_w2"] + p["rt_b2"]                        # (B, L)
    return jax.nn.softmax(logits, axis=-1)


def trar_ed_forward(params, y, x, y_mask, x_mask, cfg):
    B = x.shape[0]
    H = cfg["MULTI_HEAD"]
    ybias = build_bias_y(y_mask)
    xbias = build_bias_x(x_mask, cfg, B)
    for p in params["enc"]:
        y = encoder_layer_pallas(y, ybias, p, H)
    for p in params["dec"]:
        alphas = routing_alphas(x, p["mhatt1"])     # soft routing (BINARIZE=False)
        x = trar_layer_pallas(x, y, alphas, xbias, ybias, p, H)
    return y, x


# ----------------------------------------------------------------------------
# Deterministic parameter initialization (pre-split per-head layout)
# ----------------------------------------------------------------------------
def init_params(key, cfg):
    D = cfg["HIDDEN_SIZE"]
    FF = cfg["FF_SIZE"]
    H = cfg["MULTI_HEAD"]
    Dh = D // H
    L = len(cfg["ORDERS"])
    red = 2
    keys = iter(jax.random.split(key, 512))

    def dense(din, dout):
        w = jax.random.normal(next(keys), (din, dout), jnp.float32) * 0.05
        b = jnp.zeros((1, dout), jnp.float32)
        return w, b

    def mhatt_p():
        # Equivalent to nn.Linear(D, D) for q/k/v/merge (y = x @ W + b) with the
        # weights pre-split per head so the fused kernel indexes head h statically.
        p = {}
        for name in ("q", "k", "v"):
            w, b = dense(D, D)
            p["w" + name] = w.reshape(D, H, Dh).transpose(1, 0, 2)   # (H, D, Dh)
            p["b" + name] = b.reshape(H, 1, Dh)                      # (H, 1, Dh)
        wm, bm = dense(D, D)
        p["wm"] = wm.reshape(H, Dh, D)                               # (H, Dh, D)
        p["bm"] = bm                                                 # (1, D)
        return p

    def ffn_p():
        w1, b1 = dense(D, FF)
        w2, b2 = dense(FF, D)
        return {"w1": w1, "b1": b1, "w2": w2, "b2": b2}

    def ln_p():
        return {"g": jnp.ones((1, D), jnp.float32), "b": jnp.zeros((1, D), jnp.float32)}

    def sar_p():
        p = mhatt_p()
        p["rt_w1"] = jax.random.normal(next(keys), (D, D // red), jnp.float32) * 0.05
        p["rt_w2"] = jax.random.normal(next(keys), (D // red, L), jnp.float32) * 0.05
        p["rt_b2"] = jnp.zeros((1, L), jnp.float32)
        return p

    enc = [
        {"mhatt": mhatt_p(), "ffn": ffn_p(), "norm1": ln_p(), "norm2": ln_p()}
        for _ in range(cfg["LAYER"])
    ]
    dec = [
        {"mhatt1": sar_p(), "mhatt2": mhatt_p(), "ffn": ffn_p(),
         "norm1": ln_p(), "norm2": ln_p(), "norm3": ln_p()}
        for _ in range(cfg["LAYER"])
    ]
    return {"enc": enc, "dec": dec}


# ----------------------------------------------------------------------------
# Main
# ----------------------------------------------------------------------------
if __name__ == "__main__":
    key = jax.random.PRNGKey(0)
    ky, kx, kp = jax.random.split(key, 3)

    B = 2
    D = CFG["HIDDEN_SIZE"]
    Sy = 8
    Sx = CFG["IMG_SCALE"] ** 2  # 16

    y = jax.random.normal(ky, (B, Sy, D), jnp.float32)
    x = jax.random.normal(kx, (B, Sx, D), jnp.float32)

    # language padding mask: True == masked
    y_pad = jnp.array([[False] * 6 + [True] * 2, [False] * 7 + [True]], dtype=bool)
    y_mask = y_pad[:, None, None, :]                 # (B, 1, 1, Sy)
    x_mask = jnp.zeros((B, 1, 1, Sx), dtype=bool)    # image grid: no padding

    params = init_params(kp, CFG)

    @jax.jit
    def run(params, y, x, y_mask, x_mask):
        return trar_ed_forward(params, y, x, y_mask, x_mask, CFG)

    y_out, x_out = run(params, y, x, y_mask, x_mask)
    jax.block_until_ready((y_out, x_out))

    assert y_out.shape == (B, Sy, D), y_out.shape
    assert x_out.shape == (B, Sx, D), x_out.shape
    assert bool(jnp.all(jnp.isfinite(y_out))) and bool(jnp.all(jnp.isfinite(x_out)))

    print("KERNEL_OK")
</pallas_src>

<mosaic_0001>
module attributes {stable_mosaic.version = 11 : i64} {
  func.func @kernel(%arg0: i32, %arg1: memref<1x8x32xf32, #tpu.memory_space<vmem>>, %arg2: memref<1x1x8xf32, #tpu.memory_space<vmem>>, %arg3: memref<4x32x8xf32, #tpu.memory_space<vmem>>, %arg4: memref<4x1x8xf32, #tpu.memory_space<vmem>>, %arg5: memref<4x32x8xf32, #tpu.memory_space<vmem>>, %arg6: memref<4x1x8xf32, #tpu.memory_space<vmem>>, %arg7: memref<4x32x8xf32, #tpu.memory_space<vmem>>, %arg8: memref<4x1x8xf32, #tpu.memory_space<vmem>>, %arg9: memref<4x8x32xf32, #tpu.memory_space<vmem>>, %arg10: memref<1x32xf32, #tpu.memory_space<vmem>>, %arg11: memref<1x32xf32, #tpu.memory_space<vmem>>, %arg12: memref<1x32xf32, #tpu.memory_space<vmem>>, %arg13: memref<32x64xf32, #tpu.memory_space<vmem>>, %arg14: memref<1x64xf32, #tpu.memory_space<vmem>>, %arg15: memref<64x32xf32, #tpu.memory_space<vmem>>, %arg16: memref<1x32xf32, #tpu.memory_space<vmem>>, %arg17: memref<1x32xf32, #tpu.memory_space<vmem>>, %arg18: memref<1x32xf32, #tpu.memory_space<vmem>>, %arg19: memref<1x8x32xf32, #tpu.memory_space<vmem>>) attributes {dimension_semantics = [#tpu.dimension_semantics<parallel>], iteration_bounds = array<i64: 2>, scalar_prefetch = 0 : i64, scratch_operands = 0 : i64, tpu.core_type = #tpu.core_type<tc>, window_params = [{transform_indices = @transform_0, window_bounds = array<i64: 1, 8, 32>}, {transform_indices = @transform_1, window_bounds = array<i64: 1, 1, 8>}, {pipeline_mode = #tpu.pipeline_mode<synchronous>, transform_indices = @transform_2, window_bounds = array<i64: 4, 32, 8>}, {pipeline_mode = #tpu.pipeline_mode<synchronous>, transform_indices = @transform_3, window_bounds = array<i64: 4, 1, 8>}, {pipeline_mode = #tpu.pipeline_mode<synchronous>, transform_indices = @transform_4, window_bounds = array<i64: 4, 32, 8>}, {pipeline_mode = #tpu.pipeline_mode<synchronous>, transform_indices = @transform_5, window_bounds = array<i64: 4, 1, 8>}, {pipeline_mode = #tpu.pipeline_mode<synchronous>, transform_indices = @transform_6, window_bounds = array<i64: 4, 32, 8>}, {pipeline_mode = #tpu.pipeline_mode<synchronous>, transform_indices = @transform_7, window_bounds = array<i64: 4, 1, 8>}, {pipeline_mode = #tpu.pipeline_mode<synchronous>, transform_indices = @transform_8, window_bounds = array<i64: 4, 8, 32>}, {pipeline_mode = #tpu.pipeline_mode<synchronous>, transform_indices = @transform_9, window_bounds = array<i64: 1, 32>}, {pipeline_mode = #tpu.pipeline_mode<synchronous>, transform_indices = @transform_10, window_bounds = array<i64: 1, 32>}, {pipeline_mode = #tpu.pipeline_mode<synchronous>, transform_indices = @transform_11, window_bounds = array<i64: 1, 32>}, {pipeline_mode = #tpu.pipeline_mode<synchronous>, transform_indices = @transform_12, window_bounds = array<i64: 32, 64>}, {pipeline_mode = #tpu.pipeline_mode<synchronous>, transform_indices = @transform_13, window_bounds = array<i64: 1, 64>}, {pipeline_mode = #tpu.pipeline_mode<synchronous>, transform_indices = @transform_14, window_bounds = array<i64: 64, 32>}, {pipeline_mode = #tpu.pipeline_mode<synchronous>, transform_indices = @transform_15, window_bounds = array<i64: 1, 32>}, {pipeline_mode = #tpu.pipeline_mode<synchronous>, transform_indices = @transform_16, window_bounds = array<i64: 1, 32>}, {pipeline_mode = #tpu.pipeline_mode<synchronous>, transform_indices = @transform_17, window_bounds = array<i64: 1, 32>}, {transform_indices = @transform_18, window_bounds = array<i64: 1, 8, 32>}]} {
    %c0 = arith.constant 0 : index
    %c0_0 = arith.constant 0 : index
    %c0_1 = arith.constant 0 : index
    %0 = vector.load %arg1[%c0, %c0_0, %c0_1] : memref<1x8x32xf32, #tpu.memory_space<vmem>>, vector<1x8x32xf32>
    %1 = vector.shape_cast %0 : vector<1x8x32xf32> to vector<8x32xf32>
    %c0_2 = arith.constant 0 : index
    %c0_3 = arith.constant 0 : index
    %c0_4 = arith.constant 0 : index
    %2 = vector.load %arg2[%c0_2, %c0_3, %c0_4] : memref<1x1x8xf32, #tpu.memory_space<vmem>>, vector<1x1x8xf32>
    %3 = vector.shape_cast %2 : vector<1x1x8xf32> to vector<1x8xf32>
    %c0_5 = arith.constant 0 : index
    %c0_6 = arith.constant 0 : index
    %4 = vector.load %arg10[%c0_5, %c0_6] : memref<1x32xf32, #tpu.memory_space<vmem>>, vector<1x32xf32>
    %c0_7 = arith.constant 0 : index
    %c0_8 = arith.constant 0 : index
    %c0_9 = arith.constant 0 : index
    %5 = vector.load %arg3[%c0_7, %c0_8, %c0_9] : memref<4x32x8xf32, #tpu.memory_space<vmem>>, vector<1x32x8xf32>
    %6 = vector.shape_cast %5 : vector<1x32x8xf32> to vector<32x8xf32>
    %cst = arith.constant dense<0.000000e+00> : vector<8x8xf32>
    %7 = tpu.matmul %1, %6, %cst {dimension_numbers = #tpu.dot_dimension_numbers<[1], [0], [0], [1], [0, 0, 1, 1], [], []>} : vector<8x32xf32>, vector<32x8xf32>, vector<8x8xf32> -> vector<8x8xf32>
    %c0_10 = arith.constant 0 : index
    %c0_11 = arith.constant 0 : index
    %c0_12 = arith.constant 0 : index
    %8 = vector.load %arg4[%c0_10, %c0_11, %c0_12] : memref<4x1x8xf32, #tpu.memory_space<vmem>>, vector<1x1x8xf32>
    %9 = vector.shape_cast %8 : vector<1x1x8xf32> to vector<1x8xf32>
    %10 = vector.broadcast %9 : vector<1x8xf32> to vector<8x8xf32>
    %11 = arith.addf %7, %10 : vector<8x8xf32>
    %c0_13 = arith.constant 0 : index
    %c0_14 = arith.constant 0 : index
    %c0_15 = arith.constant 0 : index
    %12 = vector.load %arg5[%c0_13, %c0_14, %c0_15] : memref<4x32x8xf32, #tpu.memory_space<vmem>>, vector<1x32x8xf32>
    %13 = vector.shape_cast %12 : vector<1x32x8xf32> to vector<32x8xf32>
    %cst_16 = arith.constant dense<0.000000e+00> : vector<8x8xf32>
    %14 = tpu.matmul %1, %13, %cst_16 {dimension_numbers = #tpu.dot_dimension_numbers<[1], [0], [0], [1], [0, 0, 1, 1], [], []>} : vector<8x32xf32>, vector<32x8xf32>, vector<8x8xf32> -> vector<8x8xf32>
    %c0_17 = arith.constant 0 : index
    %c0_18 = arith.constant 0 : index
    %c0_19 = arith.constant 0 : index
    %15 = vector.load %arg6[%c0_17, %c0_18, %c0_19] : memref<4x1x8xf32, #tpu.memory_space<vmem>>, vector<1x1x8xf32>
    %16 = vector.shape_cast %15 : vector<1x1x8xf32> to vector<1x8xf32>
    %17 = vector.broadcast %16 : vector<1x8xf32> to vector<8x8xf32>
    %18 = arith.addf %14, %17 : vector<8x8xf32>
    %c0_20 = arith.constant 0 : index
    %c0_21 = arith.constant 0 : index
    %c0_22 = arith.constant 0 : index
    %19 = vector.load %arg7[%c0_20, %c0_21, %c0_22] : memref<4x32x8xf32, #tpu.memory_space<vmem>>, vector<1x32x8xf32>
    %20 = vector.shape_cast %19 : vector<1x32x8xf32> to vector<32x8xf32>
    %cst_23 = arith.constant dense<0.000000e+00> : vector<8x8xf32>
    %21 = tpu.matmul %1, %20, %cst_23 {dimension_numbers = #tpu.dot_dimension_numbers<[1], [0], [0], [1], [0, 0, 1, 1], [], []>} : vector<8x32xf32>, vector<32x8xf32>, vector<8x8xf32> -> vector<8x8xf32>
    %c0_24 = arith.constant 0 : index
    %c0_25 = arith.constant 0 : index
    %c0_26 = arith.constant 0 : index
    %22 = vector.load %arg8[%c0_24, %c0_25, %c0_26] : memref<4x1x8xf32, #tpu.memory_space<vmem>>, vector<1x1x8xf32>
    %23 = vector.shape_cast %22 : vector<1x1x8xf32> to vector<1x8xf32>
    %24 = vector.broadcast %23 : vector<1x8xf32> to vector<8x8xf32>
    %25 = arith.addf %21, %24 : vector<8x8xf32>
    %cst_27 = arith.constant dense<0.000000e+00> : vector<8x8xf32>
    %26 = tpu.matmul %11, %18, %cst_27 {dimension_numbers = #tpu.dot_dimension_numbers<[1], [1], [0], [0], [0, 0, 1, 0], [], []>} : vector<8x8xf32>, vector<8x8xf32>, vector<8x8xf32> -> vector<8x8xf32>
    %cst_28 = arith.constant 0.353553385 : f32
    %27 = vector.broadcast %cst_28 : f32 to vector<8x8xf32>
    %28 = arith.mulf %26, %27 : vector<8x8xf32>
    %29 = vector.broadcast %3 : vector<1x8xf32> to vector<8x8xf32>
    %30 = arith.addf %28, %29 : vector<8x8xf32>
    %cst_29 = arith.constant dense<0xFF800000> : vector<8xf32>
    %31 = vector.multi_reduction <maximumf>, %30, %cst_29 [1] : vector<8x8xf32> to vector<8xf32>
    %32 = vector.shape_cast %31 : vector<8xf32> to vector<8x1xf32>
    %33 = vector.broadcast %32 : vector<8x1xf32> to vector<8x8xf32>
    %34 = arith.subf %30, %33 : vector<8x8xf32>
    %35 = math.exp %34 : vector<8x8xf32>
    %cst_30 = arith.constant dense<0.000000e+00> : vector<8xf32>
    %36 = vector.multi_reduction <add>, %35, %cst_30 [1] : vector<8x8xf32> to vector<8xf32>
    %37 = vector.shape_cast %36 : vector<8xf32> to vector<8x1xf32>
    %38 = tpu.reciprocal %37 {approx = true} : vector<8x1xf32> -> vector<8x1xf32>
    %39 = vector.broadcast %38 : vector<8x1xf32> to vector<8x8xf32>
    %40 = arith.mulf %35, %39 : vector<8x8xf32>
    %cst_31 = arith.constant dense<0.000000e+00> : vector<8x8xf32>
    %41 = tpu.matmul %40, %25, %cst_31 {dimension_numbers = #tpu.dot_dimension_numbers<[1], [0], [0], [1], [0, 0, 1, 1], [], []>} : vector<8x8xf32>, vector<8x8xf32>, vector<8x8xf32> -> vector<8x8xf32>
    %c0_32 = arith.constant 0 : index
    %c0_33 = arith.constant 0 : index
    %c0_34 = arith.constant 0 : index
    %42 = vector.load %arg9[%c0_32, %c0_33, %c0_34] : memref<4x8x32xf32, #tpu.memory_space<vmem>>, vector<1x8x32xf32>
    %43 = vector.shape_cast %42 : vector<1x8x32xf32> to vector<8x32xf32>
    %cst_35 = arith.constant dense<0.000000e+00> : vector<8x32xf32>
    %44 = tpu.matmul %41, %43, %cst_35 {dimension_numbers = #tpu.dot_dimension_numbers<[1], [0], [0], [1], [0, 0, 1, 1], [], []>} : vector<8x8xf32>, vector<8x32xf32>, vector<8x32xf32> -> vector<8x32xf32>
    %c1 = arith.constant 1 : index
    %c0_36 = arith.constant 0 : index
    %c0_37 = arith.constant 0 : index
    %45 = vector.load %arg3[%c1, %c0_36, %c0_37] : memref<4x32x8xf32, #tpu.memory_space<vmem>>, vector<1x32x8xf32>
    %46 = vector.shape_cast %45 : vector<1x32x8xf32> to vector<32x8xf32>
    %cst_38 = arith.constant dense<0.000000e+00> : vector<8x8xf32>
    %47 = tpu.matmul %1, %46, %cst_38 {dimension_numbers = #tpu.dot_dimension_numbers<[1], [0], [0], [1], [0, 0, 1, 1], [], []>} : vector<8x32xf32>, vector<32x8xf32>, vector<8x8xf32> -> vector<8x8xf32>
    %c1_39 = arith.constant 1 : index
    %c0_40 = arith.constant 0 : index
    %c0_41 = arith.constant 0 : index
    %48 = vector.load %arg4[%c1_39, %c0_40, %c0_41] : memref<4x1x8xf32, #tpu.memory_space<vmem>>, vector<1x1x8xf32>
    %49 = vector.shape_cast %48 : vector<1x1x8xf32> to vector<1x8xf32>
    %50 = vector.broadcast %49 : vector<1x8xf32> to vector<8x8xf32>
    %51 = arith.addf %47, %50 : vector<8x8xf32>
    %c1_42 = arith.constant 1 : index
    %c0_43 = arith.constant 0 : index
    %c0_44 = arith.constant 0 : index
    %52 = vector.load %arg5[%c1_42, %c0_43, %c0_44] : memref<4x32x8xf32, #tpu.memory_space<vmem>>, vector<1x32x8xf32>
    %53 = vector.shape_cast %52 : vector<1x32x8xf32> to vector<32x8xf32>
    %cst_45 = arith.constant dense<0.000000e+00> : vector<8x8xf32>
    %54 = tpu.matmul %1, %53, %cst_45 {dimension_numbers = #tpu.dot_dimension_numbers<[1], [0], [0], [1], [0, 0, 1, 1], [], []>} : vector<8x32xf32>, vector<32x8xf32>, vector<8x8xf32> -> vector<8x8xf32>
    %c1_46 = arith.constant 1 : index
    %c0_47 = arith.constant 0 : index
    %c0_48 = arith.constant 0 : index
    %55 = vector.load %arg6[%c1_46, %c0_47, %c0_48] : memref<4x1x8xf32, #tpu.memory_space<vmem>>, vector<1x1x8xf32>
    %56 = vector.shape_cast %55 : vector<1x1x8xf32> to vector<1x8xf32>
    %57 = vector.broadcast %56 : vector<1x8xf32> to vector<8x8xf32>
    %58 = arith.addf %54, %57 : vector<8x8xf32>
    %c1_49 = arith.constant 1 : index
    %c0_50 = arith.constant 0 : index
    %c0_51 = arith.constant 0 : index
    %59 = vector.load %arg7[%c1_49, %c0_50, %c0_51] : memref<4x32x8xf32, #tpu.memory_space<vmem>>, vector<1x32x8xf32>
    %60 = vector.shape_cast %59 : vector<1x32x8xf32> to vector<32x8xf32>
    %cst_52 = arith.constant dense<0.000000e+00> : vector<8x8xf32>
    %61 = tpu.matmul %1, %60, %cst_52 {dimension_numbers = #tpu.dot_dimension_numbers<[1], [0], [0], [1], [0, 0, 1, 1], [], []>} : vector<8x32xf32>, vector<32x8xf32>, vector<8x8xf32> -> vector<8x8xf32>
    %c1_53 = arith.constant 1 : index
    %c0_54 = arith.constant 0 : index
    %c0_55 = arith.constant 0 : index
    %62 = vector.load %arg8[%c1_53, %c0_54, %c0_55] : memref<4x1x8xf32, #tpu.memory_space<vmem>>, vector<1x1x8xf32>
    %63 = vector.shape_cast %62 : vector<1x1x8xf32> to vector<1x8xf32>
    %64 = vector.broadcast %63 : vector<1x8xf32> to vector<8x8xf32>
    %65 = arith.addf %61, %64 : vector<8x8xf32>
    %cst_56 = arith.constant dense<0.000000e+00> : vector<8x8xf32>
    %66 = tpu.matmul %51, %58, %cst_56 {dimension_numbers = #tpu.dot_dimension_numbers<[1], [1], [0], [0], [0, 0, 1, 0], [], []>} : vector<8x8xf32>, vector<8x8xf32>, vector<8x8xf32> -> vector<8x8xf32>
    %cst_57 = arith.constant 0.353553385 : f32
    %67 = vector.broadcast %cst_57 : f32 to vector<8x8xf32>
    %68 = arith.mulf %66, %67 : vector<8x8xf32>
    %69 = vector.broadcast %3 : vector<1x8xf32> to vector<8x8xf32>
    %70 = arith.addf %68, %69 : vector<8x8xf32>
    %cst_58 = arith.constant dense<0xFF800000> : vector<8xf32>
    %71 = vector.multi_reduction <maximumf>, %70, %cst_58 [1] : vector<8x8xf32> to vector<8xf32>
    %72 = vector.shape_cast %71 : vector<8xf32> to vector<8x1xf32>
    %73 = vector.broadcast %72 : vector<8x1xf32> to vector<8x8xf32>
    %74 = arith.subf %70, %73 : vector<8x8xf32>
    %75 = math.exp %74 : vector<8x8xf32>
    %cst_59 = arith.constant dense<0.000000e+00> : vector<8xf32>
    %76 = vector.multi_reduction <add>, %75, %cst_59 [1] : vector<8x8xf32> to vector<8xf32>
    %77 = vector.shape_cast %76 : vector<8xf32> to vector<8x1xf32>
    %78 = tpu.reciprocal %77 {approx = true} : vector<8x1xf32> -> vector<8x1xf32>
    %79 = vector.broadcast %78 : vector<8x1xf32> to vector<8x8xf32>
    %80 = arith.mulf %75, %79 : vector<8x8xf32>
    %cst_60 = arith.constant dense<0.000000e+00> : vector<8x8xf32>
    %81 = tpu.matmul %80, %65, %cst_60 {dimension_numbers = #tpu.dot_dimension_numbers<[1], [0], [0], [1], [0, 0, 1, 1], [], []>} : vector<8x8xf32>, vector<8x8xf32>, vector<8x8xf32> -> vector<8x8xf32>
    %c1_61 = arith.constant 1 : index
    %c0_62 = arith.constant 0 : index
    %c0_63 = arith.constant 0 : index
    %82 = vector.load %arg9[%c1_61, %c0_62, %c0_63] : memref<4x8x32xf32, #tpu.memory_space<vmem>>, vector<1x8x32xf32>
    %83 = vector.shape_cast %82 : vector<1x8x32xf32> to vector<8x32xf32>
    %cst_64 = arith.constant dense<0.000000e+00> : vector<8x32xf32>
    %84 = tpu.matmul %81, %83, %cst_64 {dimension_numbers = #tpu.dot_dimension_numbers<[1], [0], [0], [1], [0, 0, 1, 1], [], []>} : vector<8x8xf32>, vector<8x32xf32>, vector<8x32xf32> -> vector<8x32xf32>
    %85 = arith.addf %44, %84 : vector<8x32xf32>
    %c2 = arith.constant 2 : index
    %c0_65 = arith.constant 0 : index
    %c0_66 = arith.constant 0 : index
    %86 = vector.load %arg3[%c2, %c0_65, %c0_66] : memref<4x32x8xf32, #tpu.memory_space<vmem>>, vector<1x32x8xf32>
    %87 = vector.shape_cast %86 : vector<1x32x8xf32> to vector<32x8xf32>
    %cst_67 = arith.constant dense<0.000000e+00> : vector<8x8xf32>
    %88 = tpu.matmul %1, %87, %cst_67 {dimension_numbers = #tpu.dot_dimension_numbers<[1], [0], [0], [1], [0, 0, 1, 1], [], []>} : vector<8x32xf32>, vector<32x8xf32>, vector<8x8xf32> -> vector<8x8xf32>
    %c2_68 = arith.constant 2 : index
    %c0_69 = arith.constant 0 : index
    %c0_70 = arith.constant 0 : index
    %89 = vector.load %arg4[%c2_68, %c0_69, %c0_70] : memref<4x1x8xf32, #tpu.memory_space<vmem>>, vector<1x1x8xf32>
    %90 = vector.shape_cast %89 : vector<1x1x8xf32> to vector<1x8xf32>
    %91 = vector.broadcast %90 : vector<1x8xf32> to vector<8x8xf32>
    %92 = arith.addf %88, %91 : vector<8x8xf32>
    %c2_71 = arith.constant 2 : index
    %c0_72 = arith.constant 0 : index
    %c0_73 = arith.constant 0 : index
    %93 = vector.load %arg5[%c2_71, %c0_72, %c0_73] : memref<4x32x8xf32, #tpu.memory_space<vmem>>, vector<1x32x8xf32>
    %94 = vector.shape_cast %93 : vector<1x32x8xf32> to vector<32x8xf32>
    %cst_74 = arith.constant dense<0.000000e+00> : vector<8x8xf32>
    %95 = tpu.matmul %1, %94, %cst_74 {dimension_numbers = #tpu.dot_dimension_numbers<[1], [0], [0], [1], [0, 0, 1, 1], [], []>} : vector<8x32xf32>, vector<32x8xf32>, vector<8x8xf32> -> vector<8x8xf32>
    %c2_75 = arith.constant 2 : index
    %c0_76 = arith.constant 0 : index
    %c0_77 = arith.constant 0 : index
    %96 = vector.load %arg6[%c2_75, %c0_76, %c0_77] : memref<4x1x8xf32, #tpu.memory_space<vmem>>, vector<1x1x8xf32>
    %97 = vector.shape_cast %96 : vector<1x1x8xf32> to vector<1x8xf32>
    %98 = vector.broadcast %97 : vector<1x8xf32> to vector<8x8xf32>
    %99 = arith.addf %95, %98 : vector<8x8xf32>
    %c2_78 = arith.constant 2 : index
    %c0_79 = arith.constant 0 : index
    %c0_80 = arith.constant 0 : index
    %100 = vector.load %arg7[%c2_78, %c0_79, %c0_80] : memref<4x32x8xf32, #tpu.memory_space<vmem>>, vector<1x32x8xf32>
    %101 = vector.shape_cast %100 : vector<1x32x8xf32> to vector<32x8xf32>
    %cst_81 = arith.constant dense<0.000000e+00> : vector<8x8xf32>
    %102 = tpu.matmul %1, %101, %cst_81 {dimension_numbers = #tpu.dot_dimension_numbers<[1], [0], [0], [1], [0, 0, 1, 1], [], []>} : vector<8x32xf32>, vector<32x8xf32>, vector<8x8xf32> -> vector<8x8xf32>
    %c2_82 = arith.constant 2 : index
    %c0_83 = arith.constant 0 : index
    %c0_84 = arith.constant 0 : index
    %103 = vector.load %arg8[%c2_82, %c0_83, %c0_84] : memref<4x1x8xf32, #tpu.memory_space<vmem>>, vector<1x1x8xf32>
    %104 = vector.shape_cast %103 : vector<1x1x8xf32> to vector<1x8xf32>
    %105 = vector.broadcast %104 : vector<1x8xf32> to vector<8x8xf32>
    %106 = arith.addf %102, %105 : vector<8x8xf32>
    %cst_85 = arith.constant dense<0.000000e+00> : vector<8x8xf32>
    %107 = tpu.matmul %92, %99, %cst_85 {dimension_numbers = #tpu.dot_dimension_numbers<[1], [1], [0], [0], [0, 0, 1, 0], [], []>} : vector<8x8xf32>, vector<8x8xf32>, vector<8x8xf32> -> vector<8x8xf32>
    %cst_86 = arith.constant 0.353553385 : f32
    %108 = vector.broadcast %cst_86 : f32 to vector<8x8xf32>
    %109 = arith.mulf %107, %108 : vector<8x8xf32>
    %110 = vector.broadcast %3 : vector<1x8xf32> to vector<8x8xf32>
    %111 = arith.addf %109, %110 : vector<8x8xf32>
    %cst_87 = arith.constant dense<0xFF800000> : vector<8xf32>
    %112 = vector.multi_reduction <maximumf>, %111, %cst_87 [1] : vector<8x8xf32> to vector<8xf32>
    %113 = vector.shape_cast %112 : vector<8xf32> to vector<8x1xf32>
    %114 = vector.broadcast %113 : vector<8x1xf32> to vector<8x8xf32>
    %115 = arith.subf %111, %114 : vector<8x8xf32>
    %116 = math.exp %115 : vector<8x8xf32>
    %cst_88 = arith.constant dense<0.000000e+00> : vector<8xf32>
    %117 = vector.multi_reduction <add>, %116, %cst_88 [1] : vector<8x8xf32> to vector<8xf32>
    %118 = vector.shape_cast %117 : vector<8xf32> to vector<8x1xf32>
    %119 = tpu.reciprocal %118 {approx = true} : vector<8x1xf32> -> vector<8x1xf32>
    %120 = vector.broadcast %119 : vector<8x1xf32> to vector<8x8xf32>
    %121 = arith.mulf %116, %120 : vector<8x8xf32>
    %cst_89 = arith.constant dense<0.000000e+00> : vector<8x8xf32>
    %122 = tpu.matmul %121, %106, %cst_89 {dimension_numbers = #tpu.dot_dimension_numbers<[1], [0], [0], [1], [0, 0, 1, 1], [], []>} : vector<8x8xf32>, vector<8x8xf32>, vector<8x8xf32> -> vector<8x8xf32>
    %c2_90 = arith.constant 2 : index
    %c0_91 = arith.constant 0 : index
    %c0_92 = arith.constant 0 : index
    %123 = vector.load %arg9[%c2_90, %c0_91, %c0_92] : memref<4x8x32xf32, #tpu.memory_space<vmem>>, vector<1x8x32xf32>
    %124 = vector.shape_cast %123 : vector<1x8x32xf32> to vector<8x32xf32>
    %cst_93 = arith.constant dense<0.000000e+00> : vector<8x32xf32>
    %125 = tpu.matmul %122, %124, %cst_93 {dimension_numbers = #tpu.dot_dimension_numbers<[1], [0], [0], [1], [0, 0, 1, 1], [], []>} : vector<8x8xf32>, vector<8x32xf32>, vector<8x32xf32> -> vector<8x32xf32>
    %126 = arith.addf %85, %125 : vector<8x32xf32>
    %c3 = arith.constant 3 : index
    %c0_94 = arith.constant 0 : index
    %c0_95 = arith.constant 0 : index
    %127 = vector.load %arg3[%c3, %c0_94, %c0_95] : memref<4x32x8xf32, #tpu.memory_space<vmem>>, vector<1x32x8xf32>
    %128 = vector.shape_cast %127 : vector<1x32x8xf32> to vector<32x8xf32>
    %cst_96 = arith.constant dense<0.000000e+00> : vector<8x8xf32>
    %129 = tpu.matmul %1, %128, %cst_96 {dimension_numbers = #tpu.dot_dimension_numbers<[1], [0], [0], [1], [0, 0, 1, 1], [], []>} : vector<8x32xf32>, vector<32x8xf32>, vector<8x8xf32> -> vector<8x8xf32>
    %c3_97 = arith.constant 3 : index
    %c0_98 = arith.constant 0 : index
    %c0_99 = arith.constant 0 : index
    %130 = vector.load %arg4[%c3_97, %c0_98, %c0_99] : memref<4x1x8xf32, #tpu.memory_space<vmem>>, vector<1x1x8xf32>
    %131 = vector.shape_cast %130 : vector<1x1x8xf32> to vector<1x8xf32>
    %132 = vector.broadcast %131 : vector<1x8xf32> to vector<8x8xf32>
    %133 = arith.addf %129, %132 : vector<8x8xf32>
    %c3_100 = arith.constant 3 : index
    %c0_101 = arith.constant 0 : index
    %c0_102 = arith.constant 0 : index
    %134 = vector.load %arg5[%c3_100, %c0_101, %c0_102] : memref<4x32x8xf32, #tpu.memory_space<vmem>>, vector<1x32x8xf32>
    %135 = vector.shape_cast %134 : vector<1x32x8xf32> to vector<32x8xf32>
    %cst_103 = arith.constant dense<0.000000e+00> : vector<8x8xf32>
    %136 = tpu.matmul %1, %135, %cst_103 {dimension_numbers = #tpu.dot_dimension_numbers<[1], [0], [0], [1], [0, 0, 1, 1], [], []>} : vector<8x32xf32>, vector<32x8xf32>, vector<8x8xf32> -> vector<8x8xf32>
    %c3_104 = arith.constant 3 : index
    %c0_105 = arith.constant 0 : index
    %c0_106 = arith.constant 0 : index
    %137 = vector.load %arg6[%c3_104, %c0_105, %c0_106] : memref<4x1x8xf32, #tpu.memory_space<vmem>>, vector<1x1x8xf32>
    %138 = vector.shape_cast %137 : vector<1x1x8xf32> to vector<1x8xf32>
    %139 = vector.broadcast %138 : vector<1x8xf32> to vector<8x8xf32>
    %140 = arith.addf %136, %139 : vector<8x8xf32>
    %c3_107 = arith.constant 3 : index
    %c0_108 = arith.constant 0 : index
    %c0_109 = arith.constant 0 : index
    %141 = vector.load %arg7[%c3_107, %c0_108, %c0_109] : memref<4x32x8xf32, #tpu.memory_space<vmem>>, vector<1x32x8xf32>
    %142 = vector.shape_cast %141 : vector<1x32x8xf32> to vector<32x8xf32>
    %cst_110 = arith.constant dense<0.000000e+00> : vector<8x8xf32>
    %143 = tpu.matmul %1, %142, %cst_110 {dimension_numbers = #tpu.dot_dimension_numbers<[1], [0], [0], [1], [0, 0, 1, 1], [], []>} : vector<8x32xf32>, vector<32x8xf32>, vector<8x8xf32> -> vector<8x8xf32>
    %c3_111 = arith.constant 3 : index
    %c0_112 = arith.constant 0 : index
    %c0_113 = arith.constant 0 : index
    %144 = vector.load %arg8[%c3_111, %c0_112, %c0_113] : memref<4x1x8xf32, #tpu.memory_space<vmem>>, vector<1x1x8xf32>
    %145 = vector.shape_cast %144 : vector<1x1x8xf32> to vector<1x8xf32>
    %146 = vector.broadcast %145 : vector<1x8xf32> to vector<8x8xf32>
    %147 = arith.addf %143, %146 : vector<8x8xf32>
    %cst_114 = arith.constant dense<0.000000e+00> : vector<8x8xf32>
    %148 = tpu.matmul %133, %140, %cst_114 {dimension_numbers = #tpu.dot_dimension_numbers<[1], [1], [0], [0], [0, 0, 1, 0], [], []>} : vector<8x8xf32>, vector<8x8xf32>, vector<8x8xf32> -> vector<8x8xf32>
    %cst_115 = arith.constant 0.353553385 : f32
    %149 = vector.broadcast %cst_115 : f32 to vector<8x8xf32>
    %150 = arith.mulf %148, %149 : vector<8x8xf32>
    %151 = vector.broadcast %3 : vector<1x8xf32> to vector<8x8xf32>
    %152 = arith.addf %150, %151 : vector<8x8xf32>
    %cst_116 = arith.constant dense<0xFF800000> : vector<8xf32>
    %153 = vector.multi_reduction <maximumf>, %152, %cst_116 [1] : vector<8x8xf32> to vector<8xf32>
    %154 = vector.shape_cast %153 : vector<8xf32> to vector<8x1xf32>
    %155 = vector.broadcast %154 : vector<8x1xf32> to vector<8x8xf32>
    %156 = arith.subf %152, %155 : vector<8x8xf32>
    %157 = math.exp %156 : vector<8x8xf32>
    %cst_117 = arith.constant dense<0.000000e+00> : vector<8xf32>
    %158 = vector.multi_reduction <add>, %157, %cst_117 [1] : vector<8x8xf32> to vector<8xf32>
    %159 = vector.shape_cast %158 : vector<8xf32> to vector<8x1xf32>
    %160 = tpu.reciprocal %159 {approx = true} : vector<8x1xf32> -> vector<8x1xf32>
    %161 = vector.broadcast %160 : vector<8x1xf32> to vector<8x8xf32>
    %162 = arith.mulf %157, %161 : vector<8x8xf32>
    %cst_118 = arith.constant dense<0.000000e+00> : vector<8x8xf32>
    %163 = tpu.matmul %162, %147, %cst_118 {dimension_numbers = #tpu.dot_dimension_numbers<[1], [0], [0], [1], [0, 0, 1, 1], [], []>} : vector<8x8xf32>, vector<8x8xf32>, vector<8x8xf32> -> vector<8x8xf32>
    %c3_119 = arith.constant 3 : index
    %c0_120 = arith.constant 0 : index
    %c0_121 = arith.constant 0 : index
    %164 = vector.load %arg9[%c3_119, %c0_120, %c0_121] : memref<4x8x32xf32, #tpu.memory_space<vmem>>, vector<1x8x32xf32>
    %165 = vector.shape_cast %164 : vector<1x8x32xf32> to vector<8x32xf32>
    %cst_122 = arith.constant dense<0.000000e+00> : vector<8x32xf32>
    %166 = tpu.matmul %163, %165, %cst_122 {dimension_numbers = #tpu.dot_dimension_numbers<[1], [0], [0], [1], [0, 0, 1, 1], [], []>} : vector<8x8xf32>, vector<8x32xf32>, vector<8x32xf32> -> vector<8x32xf32>
    %167 = arith.addf %126, %166 : vector<8x32xf32>
    %168 = vector.broadcast %4 : vector<1x32xf32> to vector<8x32xf32>
    %169 = arith.addf %167, %168 : vector<8x32xf32>
    %170 = arith.addf %1, %169 : vector<8x32xf32>
    %c0_123 = arith.constant 0 : index
    %c0_124 = arith.constant 0 : index
    %171 = vector.load %arg11[%c0_123, %c0_124] : memref<1x32xf32, #tpu.memory_space<vmem>>, vector<1x32xf32>
    %c0_125 = arith.constant 0 : index
    %c0_126 = arith.constant 0 : index
    %172 = vector.load %arg12[%c0_125, %c0_126] : memref<1x32xf32, #tpu.memory_space<vmem>>, vector<1x32xf32>
    %cst_127 = arith.constant dense<0.000000e+00> : vector<8xf32>
    %173 = vector.multi_reduction <add>, %170, %cst_127 [1] : vector<8x32xf32> to vector<8xf32>
    %174 = vector.shape_cast %173 : vector<8xf32> to vector<8x1xf32>
    %cst_128 = arith.constant 3.200000e+01 : f32
    %175 = vector.broadcast %cst_128 : f32 to vector<8x1xf32>
    %176 = arith.divf %174, %175 : vector<8x1xf32>
    %177 = vector.broadcast %176 : vector<8x1xf32> to vector<8x32xf32>
    %178 = arith.subf %170, %177 : vector<8x32xf32>
    %179 = arith.mulf %178, %178 : vector<8x32xf32>
    %cst_129 = arith.constant dense<0.000000e+00> : vector<8xf32>
    %180 = vector.multi_reduction <add>, %179, %cst_129 [1] : vector<8x32xf32> to vector<8xf32>
    %181 = vector.shape_cast %180 : vector<8xf32> to vector<8x1xf32>
    %cst_130 = arith.constant 3.100000e+01 : f32
    %182 = vector.broadcast %cst_130 : f32 to vector<8x1xf32>
    %183 = arith.divf %181, %182 : vector<8x1xf32>
    %184 = math.sqrt %183 : vector<8x1xf32>
    %185 = vector.broadcast %171 : vector<1x32xf32> to vector<8x32xf32>
    %186 = arith.mulf %185, %178 : vector<8x32xf32>
    %cst_131 = arith.constant 9.99999997E-7 : f32
    %187 = vector.broadcast %cst_131 : f32 to vector<8x1xf32>
    %188 = arith.addf %184, %187 : vector<8x1xf32>
    %189 = vector.broadcast %188 : vector<8x1xf32> to vector<8x32xf32>
    %190 = arith.divf %186, %189 : vector<8x32xf32>
    %191 = vector.broadcast %172 : vector<1x32xf32> to vector<8x32xf32>
    %192 = arith.addf %190, %191 : vector<8x32xf32>
    %c0_132 = arith.constant 0 : index
    %c0_133 = arith.constant 0 : index
    %193 = vector.load %arg13[%c0_132, %c0_133] : memref<32x64xf32, #tpu.memory_space<vmem>>, vector<32x64xf32>
    %cst_134 = arith.constant dense<0.000000e+00> : vector<8x64xf32>
    %194 = tpu.matmul %192, %193, %cst_134 {dimension_numbers = #tpu.dot_dimension_numbers<[1], [0], [0], [1], [0, 0, 1, 1], [], []>} : vector<8x32xf32>, vector<32x64xf32>, vector<8x64xf32> -> vector<8x64xf32>
    %c0_135 = arith.constant 0 : index
    %c0_136 = arith.constant 0 : index
    %195 = vector.load %arg14[%c0_135, %c0_136] : memref<1x64xf32, #tpu.memory_space<vmem>>, vector<1x64xf32>
    %196 = vector.broadcast %195 : vector<1x64xf32> to vector<8x64xf32>
    %197 = arith.addf %194, %196 : vector<8x64xf32>
    %cst_137 = arith.constant 0.000000e+00 : f32
    %198 = vector.broadcast %cst_137 : f32 to vector<8x64xf32>
    %199 = arith.maximumf %197, %198 : vector<8x64xf32>
    %c0_138 = arith.constant 0 : index
    %c0_139 = arith.constant 0 : index
    %200 = vector.load %arg15[%c0_138, %c0_139] : memref<64x32xf32, #tpu.memory_space<vmem>>, vector<64x32xf32>
    %cst_140 = arith.constant dense<0.000000e+00> : vector<8x32xf32>
    %201 = tpu.matmul %199, %200, %cst_140 {dimension_numbers = #tpu.dot_dimension_numbers<[1], [0], [0], [1], [0, 0, 1, 1], [], []>} : vector<8x64xf32>, vector<64x32xf32>, vector<8x32xf32> -> vector<8x32xf32>
    %c0_141 = arith.constant 0 : index
    %c0_142 = arith.constant 0 : index
    %202 = vector.load %arg16[%c0_141, %c0_142] : memref<1x32xf32, #tpu.memory_space<vmem>>, vector<1x32xf32>
    %203 = vector.broadcast %202 : vector<1x32xf32> to vector<8x32xf32>
    %204 = arith.addf %201, %203 : vector<8x32xf32>
    %205 = arith.addf %192, %204 : vector<8x32xf32>
    %c0_143 = arith.constant 0 : index
    %c0_144 = arith.constant 0 : index
    %206 = vector.load %arg17[%c0_143, %c0_144] : memref<1x32xf32, #tpu.memory_space<vmem>>, vector<1x32xf32>
    %c0_145 = arith.constant 0 : index
    %c0_146 = arith.constant 0 : index
    %207 = vector.load %arg18[%c0_145, %c0_146] : memref<1x32xf32, #tpu.memory_space<vmem>>, vector<1x32xf32>
    %cst_147 = arith.constant dense<0.000000e+00> : vector<8xf32>
    %208 = vector.multi_reduction <add>, %205, %cst_147 [1] : vector<8x32xf32> to vector<8xf32>
    %209 = vector.shape_cast %208 : vector<8xf32> to vector<8x1xf32>
    %cst_148 = arith.constant 3.200000e+01 : f32
    %210 = vector.broadcast %cst_148 : f32 to vector<8x1xf32>
    %211 = arith.divf %209, %210 : vector<8x1xf32>
    %212 = vector.broadcast %211 : vector<8x1xf32> to vector<8x32xf32>
    %213 = arith.subf %205, %212 : vector<8x32xf32>
    %214 = arith.mulf %213, %213 : vector<8x32xf32>
    %cst_149 = arith.constant dense<0.000000e+00> : vector<8xf32>
    %215 = vector.multi_reduction <add>, %214, %cst_149 [1] : vector<8x32xf32> to vector<8xf32>
    %216 = vector.shape_cast %215 : vector<8xf32> to vector<8x1xf32>
    %cst_150 = arith.constant 3.100000e+01 : f32
    %217 = vector.broadcast %cst_150 : f32 to vector<8x1xf32>
    %218 = arith.divf %216, %217 : vector<8x1xf32>
    %219 = math.sqrt %218 : vector<8x1xf32>
    %220 = vector.broadcast %206 : vector<1x32xf32> to vector<8x32xf32>
    %221 = arith.mulf %220, %213 : vector<8x32xf32>
    %cst_151 = arith.constant 9.99999997E-7 : f32
    %222 = vector.broadcast %cst_151 : f32 to vector<8x1xf32>
    %223 = arith.addf %219, %222 : vector<8x1xf32>
    %224 = vector.broadcast %223 : vector<8x1xf32> to vector<8x32xf32>
    %225 = arith.divf %221, %224 : vector<8x32xf32>
    %226 = vector.broadcast %207 : vector<1x32xf32> to vector<8x32xf32>
    %227 = arith.addf %225, %226 : vector<8x32xf32>
    %c0_152 = arith.constant 0 : index
    %c0_153 = arith.constant 0 : index
    %c0_154 = arith.constant 0 : index
    %228 = vector.load %arg19[%c0_152, %c0_153, %c0_154] : memref<1x8x32xf32, #tpu.memory_space<vmem>>, vector<1x8x32xf32>
    %229 = vector.shape_cast %228 : vector<1x8x32xf32> to vector<8x32xf32>
    %230 = vector.shape_cast %227 : vector<8x32xf32> to vector<1x8x32xf32>
    tpu.vector_store %arg19[%c0_152, %c0_153, %c0_154], %230 {strides = array<i32>} : memref<1x8x32xf32, #tpu.memory_space<vmem>>, vector<1x8x32xf32>,
    return
  }
  func.func @transform_0(%arg0: i32) -> (i32, i32, i32) {
    %c0_i32 = arith.constant 0 : i32
    %c0_i32_0 = arith.constant 0 : i32
    %c0_i32_1 = arith.constant 0 : i32
    return %arg0, %c0_i32, %c0_i32_0 : i32, i32, i32
  }
  func.func @transform_1(%arg0: i32) -> (i32, i32, i32) {
    %c0_i32 = arith.constant 0 : i32
    %c0_i32_0 = arith.constant 0 : i32
    %c0_i32_1 = arith.constant 0 : i32
    return %arg0, %c0_i32, %c0_i32_0 : i32, i32, i32
  }
  func.func @transform_2(%arg0: i32) -> (i32, i32, i32) {
    %c0_i32 = arith.constant 0 : i32
    %c0_i32_0 = arith.constant 0 : i32
    %c0_i32_1 = arith.constant 0 : i32
    %c0_i32_2 = arith.constant 0 : i32
    return %c0_i32, %c0_i32_0, %c0_i32_1 : i32, i32, i32
  }
  func.func @transform_3(%arg0: i32) -> (i32, i32, i32) {
    %c0_i32 = arith.constant 0 : i32
    %c0_i32_0 = arith.constant 0 : i32
    %c0_i32_1 = arith.constant 0 : i32
    %c0_i32_2 = arith.constant 0 : i32
    return %c0_i32, %c0_i32_0, %c0_i32_1 : i32, i32, i32
  }
  func.func @transform_4(%arg0: i32) -> (i32, i32, i32) {
    %c0_i32 = arith.constant 0 : i32
    %c0_i32_0 = arith.constant 0 : i32
    %c0_i32_1 = arith.constant 0 : i32
    %c0_i32_2 = arith.constant 0 : i32
    return %c0_i32, %c0_i32_0, %c0_i32_1 : i32, i32, i32
  }
  func.func @transform_5(%arg0: i32) -> (i32, i32, i32) {
    %c0_i32 = arith.constant 0 : i32
    %c0_i32_0 = arith.constant 0 : i32
    %c0_i32_1 = arith.constant 0 : i32
    %c0_i32_2 = arith.constant 0 : i32
    return %c0_i32, %c0_i32_0, %c0_i32_1 : i32, i32, i32
  }
  func.func @transform_6(%arg0: i32) -> (i32, i32, i32) {
    %c0_i32 = arith.constant 0 : i32
    %c0_i32_0 = arith.constant 0 : i32
    %c0_i32_1 = arith.constant 0 : i32
    %c0_i32_2 = arith.constant 0 : i32
    return %c0_i32, %c0_i32_0, %c0_i32_1 : i32, i32, i32
  }
  func.func @transform_7(%arg0: i32) -> (i32, i32, i32) {
    %c0_i32 = arith.constant 0 : i32
    %c0_i32_0 = arith.constant 0 : i32
    %c0_i32_1 = arith.constant 0 : i32
    %c0_i32_2 = arith.constant 0 : i32
    return %c0_i32, %c0_i32_0, %c0_i32_1 : i32, i32, i32
  }
  func.func @transform_8(%arg0: i32) -> (i32, i32, i32) {
    %c0_i32 = arith.constant 0 : i32
    %c0_i32_0 = arith.constant 0 : i32
    %c0_i32_1 = arith.constant 0 : i32
    %c0_i32_2 = arith.constant 0 : i32
    return %c0_i32, %c0_i32_0, %c0_i32_1 : i32, i32, i32
  }
  func.func @transform_9(%arg0: i32) -> (i32, i32) {
    %c0_i32 = arith.constant 0 : i32
    %c0_i32_0 = arith.constant 0 : i32
    %c0_i32_1 = arith.constant 0 : i32
    return %c0_i32, %c0_i32_0 : i32, i32
  }
  func.func @transform_10(%arg0: i32) -> (i32, i32) {
    %c0_i32 = arith.constant 0 : i32
    %c0_i32_0 = arith.constant 0 : i32
    %c0_i32_1 = arith.constant 0 : i32
    return %c0_i32, %c0_i32_0 : i32, i32
  }
  func.func @transform_11(%arg0: i32) -> (i32, i32) {
    %c0_i32 = arith.constant 0 : i32
    %c0_i32_0 = arith.constant 0 : i32
    %c0_i32_1 = arith.constant 0 : i32
    return %c0_i32, %c0_i32_0 : i32, i32
  }
  func.func @transform_12(%arg0: i32) -> (i32, i32) {
    %c0_i32 = arith.constant 0 : i32
    %c0_i32_0 = arith.constant 0 : i32
    %c0_i32_1 = arith.constant 0 : i32
    return %c0_i32, %c0_i32_0 : i32, i32
  }
  func.func @transform_13(%arg0: i32) -> (i32, i32) {
    %c0_i32 = arith.constant 0 : i32
    %c0_i32_0 = arith.constant 0 : i32
    %c0_i32_1 = arith.constant 0 : i32
    return %c0_i32, %c0_i32_0 : i32, i32
  }
  func.func @transform_14(%arg0: i32) -> (i32, i32) {
    %c0_i32 = arith.constant 0 : i32
    %c0_i32_0 = arith.constant 0 : i32
    %c0_i32_1 = arith.constant 0 : i32
    return %c0_i32, %c0_i32_0 : i32, i32
  }
  func.func @transform_15(%arg0: i32) -> (i32, i32) {
    %c0_i32 = arith.constant 0 : i32
    %c0_i32_0 = arith.constant 0 : i32
    %c0_i32_1 = arith.constant 0 : i32
    return %c0_i32, %c0_i32_0 : i32, i32
  }
  func.func @transform_16(%arg0: i32) -> (i32, i32) {
    %c0_i32 = arith.constant 0 : i32
    %c0_i32_0 = arith.constant 0 : i32
    %c0_i32_1 = arith.constant 0 : i32
    return %c0_i32, %c0_i32_0 : i32, i32
  }
  func.func @transform_17(%arg0: i32) -> (i32, i32) {
    %c0_i32 = arith.constant 0 : i32
    %c0_i32_0 = arith.constant 0 : i32
    %c0_i32_1 = arith.constant 0 : i32
    return %c0_i32, %c0_i32_0 : i32, i32
  }
  func.func @transform_18(%arg0: i32) -> (i32, i32, i32) {
    %c0_i32 = arith.constant 0 : i32
    %c0_i32_0 = arith.constant 0 : i32
    %c0_i32_1 = arith.constant 0 : i32
    return %arg0, %c0_i32, %c0_i32_0 : i32, i32, i32
  }
}

module attributes {stable_mosaic.version = 11 : i64} {
  func.func @kernel(%arg0: i32, %arg1: memref<2x2xf32, #tpu.memory_space<smem>>, %arg2: memref<1x16x32xf32, #tpu.memory_space<vmem>>, %arg3: memref<1x8x32xf32, #tpu.memory_space<vmem>>, %arg4: memref<1x2x16x16xf32, #tpu.memory_space<vmem>>, %arg5: memref<1x1x8xf32, #tpu.memory_space<vmem>>, %arg6: memref<4x32x8xf32, #tpu.memory_space<vmem>>, %arg7: memref<4x1x8xf32, #tpu.memory_space<vmem>>, %arg8: memref<4x32x8xf32, #tpu.memory_space<vmem>>, %arg9: memref<4x1x8xf32, #tpu.memory_space<vmem>>, %arg10: memref<4x32x8xf32, #tpu.memory_space<vmem>>, %arg11: memref<4x1x8xf32, #tpu.memory_space<vmem>>, %arg12: memref<4x8x32xf32, #tpu.memory_space<vmem>>, %arg13: memref<1x32xf32, #tpu.memory_space<vmem>>, %arg14: memref<4x32x8xf32, #tpu.memory_space<vmem>>, %arg15: memref<4x1x8xf32, #tpu.memory_space<vmem>>, %arg16: memref<4x32x8xf32, #tpu.memory_space<vmem>>, %arg17: memref<4x1x8xf32, #tpu.memory_space<vmem>>, %arg18: memref<4x32x8xf32, #tpu.memory_space<vmem>>, %arg19: memref<4x1x8xf32, #tpu.memory_space<vmem>>, %arg20: memref<4x8x32xf32, #tpu.memory_space<vmem>>, %arg21: memref<1x32xf32, #tpu.memory_space<vmem>>, %arg22: memref<1x32xf32, #tpu.memory_space<vmem>>, %arg23: memref<1x32xf32, #tpu.memory_space<vmem>>, %arg24: memref<1x32xf32, #tpu.memory_space<vmem>>, %arg25: memref<1x32xf32, #tpu.memory_space<vmem>>, %arg26: memref<32x64xf32, #tpu.memory_space<vmem>>, %arg27: memref<1x64xf32, #tpu.memory_space<vmem>>, %arg28: memref<64x32xf32, #tpu.memory_space<vmem>>, %arg29: memref<1x32xf32, #tpu.memory_space<vmem>>, %arg30: memref<1x32xf32, #tpu.memory_space<vmem>>, %arg31: memref<1x32xf32, #tpu.memory_space<vmem>>, %arg32: memref<1x16x32xf32, #tpu.memory_space<vmem>>) attributes {dimension_semantics = [#tpu.dimension_semantics<parallel>], iteration_bounds = array<i64: 2>, scalar_prefetch = 0 : i64, scratch_operands = 0 : i64, tpu.core_type = #tpu.core_type<tc>, window_params = [{transform_indices = @transform_0, window_bounds = array<i64: 2, 2>}, {transform_indices = @transform_1, window_bounds = array<i64: 1, 16, 32>}, {transform_indices = @transform_2, window_bounds = array<i64: 1, 8, 32>}, {transform_indices = @transform_3, window_bounds = array<i64: 1, 2, 16, 16>}, {transform_indices = @transform_4, window_bounds = array<i64: 1, 1, 8>}, {pipeline_mode = #tpu.pipeline_mode<synchronous>, transform_indices = @transform_5, window_bounds = array<i64: 4, 32, 8>}, {pipeline_mode = #tpu.pipeline_mode<synchronous>, transform_indices = @transform_6, window_bounds = array<i64: 4, 1, 8>}, {pipeline_mode = #tpu.pipeline_mode<synchronous>, transform_indices = @transform_7, window_bounds = array<i64: 4, 32, 8>}, {pipeline_mode = #tpu.pipeline_mode<synchronous>, transform_indices = @transform_8, window_bounds = array<i64: 4, 1, 8>}, {pipeline_mode = #tpu.pipeline_mode<synchronous>, transform_indices = @transform_9, window_bounds = array<i64: 4, 32, 8>}, {pipeline_mode = #tpu.pipeline_mode<synchronous>, transform_indices = @transform_10, window_bounds = array<i64: 4, 1, 8>}, {pipeline_mode = #tpu.pipeline_mode<synchronous>, transform_indices = @transform_11, window_bounds = array<i64: 4, 8, 32>}, {pipeline_mode = #tpu.pipeline_mode<synchronous>, transform_indices = @transform_12, window_bounds = array<i64: 1, 32>}, {pipeline_mode = #tpu.pipeline_mode<synchronous>, transform_indices = @transform_13, window_bounds = array<i64: 4, 32, 8>}, {pipeline_mode = #tpu.pipeline_mode<synchronous>, transform_indices = @transform_14, window_bounds = array<i64: 4, 1, 8>}, {pipeline_mode = #tpu.pipeline_mode<synchronous>, transform_indices = @transform_15, window_bounds = array<i64: 4, 32, 8>}, {pipeline_mode = #tpu.pipeline_mode<synchronous>, transform_indices = @transform_16, window_bounds = array<i64: 4, 1, 8>}, {pipeline_mode = #tpu.pipeline_mode<synchronous>, transform_indices = @transform_17, window_bounds = array<i64: 4, 32, 8>}, {pipeline_mode = #tpu.pipeline_mode<synchronous>, transform_indices = @transform_18, window_bounds = array<i64: 4, 1, 8>}, {pipeline_mode = #tpu.pipeline_mode<synchronous>, transform_indices = @transform_19, window_bounds = array<i64: 4, 8, 32>}, {pipeline_mode = #tpu.pipeline_mode<synchronous>, transform_indices = @transform_20, window_bounds = array<i64: 1, 32>}, {pipeline_mode = #tpu.pipeline_mode<synchronous>, transform_indices = @transform_21, window_bounds = array<i64: 1, 32>}, {pipeline_mode = #tpu.pipeline_mode<synchronous>, transform_indices = @transform_22, window_bounds = array<i64: 1, 32>}, {pipeline_mode = #tpu.pipeline_mode<synchronous>, transform_indices = @transform_23, window_bounds = array<i64: 1, 32>}, {pipeline_mode = #tpu.pipeline_mode<synchronous>, transform_indices = @transform_24, window_bounds = array<i64: 1, 32>}, {pipeline_mode = #tpu.pipeline_mode<synchronous>, transform_indices = @transform_25, window_bounds = array<i64: 32, 64>}, {pipeline_mode = #tpu.pipeline_mode<synchronous>, transform_indices = @transform_26, window_bounds = array<i64: 1, 64>}, {pipeline_mode = #tpu.pipeline_mode<synchronous>, transform_indices = @transform_27, window_bounds = array<i64: 64, 32>}, {pipeline_mode = #tpu.pipeline_mode<synchronous>, transform_indices = @transform_28, window_bounds = array<i64: 1, 32>}, {pipeline_mode = #tpu.pipeline_mode<synchronous>, transform_indices = @transform_29, window_bounds = array<i64: 1, 32>}, {pipeline_mode = #tpu.pipeline_mode<synchronous>, transform_indices = @transform_30, window_bounds = array<i64: 1, 32>}, {transform_indices = @transform_31, window_bounds = array<i64: 1, 16, 32>}]} {
    %c0 = arith.constant 0 : index
    %c0_0 = arith.constant 0 : index
    %c0_1 = arith.constant 0 : index
    %0 = vector.load %arg2[%c0, %c0_0, %c0_1] : memref<1x16x32xf32, #tpu.memory_space<vmem>>, vector<1x16x32xf32>
    %1 = vector.shape_cast %0 : vector<1x16x32xf32> to vector<16x32xf32>
    %c0_2 = arith.constant 0 : index
    %c0_3 = arith.constant 0 : index
    %c0_4 = arith.constant 0 : index
    %2 = vector.load %arg3[%c0_2, %c0_3, %c0_4] : memref<1x8x32xf32, #tpu.memory_space<vmem>>, vector<1x8x32xf32>
    %3 = vector.shape_cast %2 : vector<1x8x32xf32> to vector<8x32xf32>
    %c0_5 = arith.constant 0 : index
    %c0_6 = arith.constant 0 : index
    %c0_7 = arith.constant 0 : index
    %4 = vector.load %arg5[%c0_5, %c0_6, %c0_7] : memref<1x1x8xf32, #tpu.memory_space<vmem>>, vector<1x1x8xf32>
    %5 = vector.shape_cast %4 : vector<1x1x8xf32> to vector<1x8xf32>
    %c0_8 = arith.constant 0 : index
    %c0_9 = arith.constant 0 : index
    %c0_10 = arith.constant 0 : index
    %c0_11 = arith.constant 0 : index
    %6 = vector.load %arg4[%c0_8, %c0_9, %c0_10, %c0_11] : memref<1x2x16x16xf32, #tpu.memory_space<vmem>>, vector<1x1x16x16xf32>
    %7 = vector.shape_cast %6 : vector<1x1x16x16xf32> to vector<16x16xf32>
    %c0_12 = arith.constant 0 : index
    %c1 = arith.constant 1 : index
    %c0_13 = arith.constant 0 : index
    %c0_14 = arith.constant 0 : index
    %8 = vector.load %arg4[%c0_12, %c1, %c0_13, %c0_14] : memref<1x2x16x16xf32, #tpu.memory_space<vmem>>, vector<1x1x16x16xf32>
    %9 = vector.shape_cast %8 : vector<1x1x16x16xf32> to vector<16x16xf32>
    %10 = arith.index_cast %arg0 : i32 to index
    %c0_15 = arith.constant 0 : index
    %11 = memref.load %arg1[%10, %c0_15] : memref<2x2xf32, #tpu.memory_space<smem>>
    %12 = arith.index_cast %arg0 : i32 to index
    %c1_16 = arith.constant 1 : index
    %13 = memref.load %arg1[%12, %c1_16] : memref<2x2xf32, #tpu.memory_space<smem>>
    %c0_17 = arith.constant 0 : index
    %c0_18 = arith.constant 0 : index
    %c0_19 = arith.constant 0 : index
    %14 = vector.load %arg6[%c0_17, %c0_18, %c0_19] : memref<4x32x8xf32, #tpu.memory_space<vmem>>, vector<1x32x8xf32>
    %15 = vector.shape_cast %14 : vector<1x32x8xf32> to vector<32x8xf32>
    %cst = arith.constant dense<0.000000e+00> : vector<16x8xf32>
    %16 = tpu.matmul %1, %15, %cst {dimension_numbers = #tpu.dot_dimension_numbers<[1], [0], [0], [1], [0, 0, 1, 1], [], []>} : vector<16x32xf32>, vector<32x8xf32>, vector<16x8xf32> -> vector<16x8xf32>
    %c0_20 = arith.constant 0 : index
    %c0_21 = arith.constant 0 : index
    %c0_22 = arith.constant 0 : index
    %17 = vector.load %arg7[%c0_20, %c0_21, %c0_22] : memref<4x1x8xf32, #tpu.memory_space<vmem>>, vector<1x1x8xf32>
    %18 = vector.shape_cast %17 : vector<1x1x8xf32> to vector<1x8xf32>
    %19 = vector.broadcast %18 : vector<1x8xf32> to vector<16x8xf32>
    %20 = arith.addf %16, %19 : vector<16x8xf32>
    %c0_23 = arith.constant 0 : index
    %c0_24 = arith.constant 0 : index
    %c0_25 = arith.constant 0 : index
    %21 = vector.load %arg8[%c0_23, %c0_24, %c0_25] : memref<4x32x8xf32, #tpu.memory_space<vmem>>, vector<1x32x8xf32>
    %22 = vector.shape_cast %21 : vector<1x32x8xf32> to vector<32x8xf32>
    %cst_26 = arith.constant dense<0.000000e+00> : vector<16x8xf32>
    %23 = tpu.matmul %1, %22, %cst_26 {dimension_numbers = #tpu.dot_dimension_numbers<[1], [0], [0], [1], [0, 0, 1, 1], [], []>} : vector<16x32xf32>, vector<32x8xf32>, vector<16x8xf32> -> vector<16x8xf32>
    %c0_27 = arith.constant 0 : index
    %c0_28 = arith.constant 0 : index
    %c0_29 = arith.constant 0 : index
    %24 = vector.load %arg9[%c0_27, %c0_28, %c0_29] : memref<4x1x8xf32, #tpu.memory_space<vmem>>, vector<1x1x8xf32>
    %25 = vector.shape_cast %24 : vector<1x1x8xf32> to vector<1x8xf32>
    %26 = vector.broadcast %25 : vector<1x8xf32> to vector<16x8xf32>
    %27 = arith.addf %23, %26 : vector<16x8xf32>
    %c0_30 = arith.constant 0 : index
    %c0_31 = arith.constant 0 : index
    %c0_32 = arith.constant 0 : index
    %28 = vector.load %arg10[%c0_30, %c0_31, %c0_32] : memref<4x32x8xf32, #tpu.memory_space<vmem>>, vector<1x32x8xf32>
    %29 = vector.shape_cast %28 : vector<1x32x8xf32> to vector<32x8xf32>
    %cst_33 = arith.constant dense<0.000000e+00> : vector<16x8xf32>
    %30 = tpu.matmul %1, %29, %cst_33 {dimension_numbers = #tpu.dot_dimension_numbers<[1], [0], [0], [1], [0, 0, 1, 1], [], []>} : vector<16x32xf32>, vector<32x8xf32>, vector<16x8xf32> -> vector<16x8xf32>
    %c0_34 = arith.constant 0 : index
    %c0_35 = arith.constant 0 : index
    %c0_36 = arith.constant 0 : index
    %31 = vector.load %arg11[%c0_34, %c0_35, %c0_36] : memref<4x1x8xf32, #tpu.memory_space<vmem>>, vector<1x1x8xf32>
    %32 = vector.shape_cast %31 : vector<1x1x8xf32> to vector<1x8xf32>
    %33 = vector.broadcast %32 : vector<1x8xf32> to vector<16x8xf32>
    %34 = arith.addf %30, %33 : vector<16x8xf32>
    %cst_37 = arith.constant dense<0.000000e+00> : vector<16x16xf32>
    %35 = tpu.matmul %20, %27, %cst_37 {dimension_numbers = #tpu.dot_dimension_numbers<[1], [1], [0], [0], [0, 0, 1, 0], [], []>} : vector<16x8xf32>, vector<16x8xf32>, vector<16x16xf32> -> vector<16x16xf32>
    %cst_38 = arith.constant 0.353553385 : f32
    %36 = vector.broadcast %cst_38 : f32 to vector<16x16xf32>
    %37 = arith.mulf %35, %36 : vector<16x16xf32>
    %cst_39 = arith.constant dense<0xFF800000> : vector<16xf32>
    %38 = vector.multi_reduction <maximumf>, %37, %cst_39 [1] : vector<16x16xf32> to vector<16xf32>
    %39 = vector.shape_cast %38 : vector<16xf32> to vector<16x1xf32>
    %40 = arith.addf %37, %7 : vector<16x16xf32>
    %41 = vector.broadcast %39 : vector<16x1xf32> to vector<16x16xf32>
    %42 = arith.subf %40, %41 : vector<16x16xf32>
    %43 = math.exp %42 : vector<16x16xf32>
    %cst_40 = arith.constant dense<0.000000e+00> : vector<16xf32>
    %44 = vector.multi_reduction <add>, %43, %cst_40 [1] : vector<16x16xf32> to vector<16xf32>
    %45 = vector.shape_cast %44 : vector<16xf32> to vector<16x1xf32>
    %46 = tpu.reciprocal %45 {approx = true} : vector<16x1xf32> -> vector<16x1xf32>
    %47 = vector.broadcast %46 : vector<16x1xf32> to vector<16x16xf32>
    %48 = arith.mulf %43, %47 : vector<16x16xf32>
    %49 = vector.broadcast %11 : f32 to vector<16x16xf32>
    %50 = arith.mulf %49, %48 : vector<16x16xf32>
    %51 = arith.addf %37, %9 : vector<16x16xf32>
    %52 = vector.broadcast %39 : vector<16x1xf32> to vector<16x16xf32>
    %53 = arith.subf %51, %52 : vector<16x16xf32>
    %54 = math.exp %53 : vector<16x16xf32>
    %cst_41 = arith.constant dense<0.000000e+00> : vector<16xf32>
    %55 = vector.multi_reduction <add>, %54, %cst_41 [1] : vector<16x16xf32> to vector<16xf32>
    %56 = vector.shape_cast %55 : vector<16xf32> to vector<16x1xf32>
    %57 = tpu.reciprocal %56 {approx = true} : vector<16x1xf32> -> vector<16x1xf32>
    %58 = vector.broadcast %57 : vector<16x1xf32> to vector<16x16xf32>
    %59 = arith.mulf %54, %58 : vector<16x16xf32>
    %60 = vector.broadcast %13 : f32 to vector<16x16xf32>
    %61 = arith.mulf %60, %59 : vector<16x16xf32>
    %62 = arith.addf %50, %61 : vector<16x16xf32>
    %cst_42 = arith.constant dense<0.000000e+00> : vector<16x8xf32>
    %63 = tpu.matmul %62, %34, %cst_42 {dimension_numbers = #tpu.dot_dimension_numbers<[1], [0], [0], [1], [0, 0, 1, 1], [], []>} : vector<16x16xf32>, vector<16x8xf32>, vector<16x8xf32> -> vector<16x8xf32>
    %c0_43 = arith.constant 0 : index
    %c0_44 = arith.constant 0 : index
    %c0_45 = arith.constant 0 : index
    %64 = vector.load %arg12[%c0_43, %c0_44, %c0_45] : memref<4x8x32xf32, #tpu.memory_space<vmem>>, vector<1x8x32xf32>
    %65 = vector.shape_cast %64 : vector<1x8x32xf32> to vector<8x32xf32>
    %cst_46 = arith.constant dense<0.000000e+00> : vector<16x32xf32>
    %66 = tpu.matmul %63, %65, %cst_46 {dimension_numbers = #tpu.dot_dimension_numbers<[1], [0], [0], [1], [0, 0, 1, 1], [], []>} : vector<16x8xf32>, vector<8x32xf32>, vector<16x32xf32> -> vector<16x32xf32>
    %c1_47 = arith.constant 1 : index
    %c0_48 = arith.constant 0 : index
    %c0_49 = arith.constant 0 : index
    %67 = vector.load %arg6[%c1_47, %c0_48, %c0_49] : memref<4x32x8xf32, #tpu.memory_space<vmem>>, vector<1x32x8xf32>
    %68 = vector.shape_cast %67 : vector<1x32x8xf32> to vector<32x8xf32>
    %cst_50 = arith.constant dense<0.000000e+00> : vector<16x8xf32>
    %69 = tpu.matmul %1, %68, %cst_50 {dimension_numbers = #tpu.dot_dimension_numbers<[1], [0], [0], [1], [0, 0, 1, 1], [], []>} : vector<16x32xf32>, vector<32x8xf32>, vector<16x8xf32> -> vector<16x8xf32>
    %c1_51 = arith.constant 1 : index
    %c0_52 = arith.constant 0 : index
    %c0_53 = arith.constant 0 : index
    %70 = vector.load %arg7[%c1_51, %c0_52, %c0_53] : memref<4x1x8xf32, #tpu.memory_space<vmem>>, vector<1x1x8xf32>
    %71 = vector.shape_cast %70 : vector<1x1x8xf32> to vector<1x8xf32>
    %72 = vector.broadcast %71 : vector<1x8xf32> to vector<16x8xf32>
    %73 = arith.addf %69, %72 : vector<16x8xf32>
    %c1_54 = arith.constant 1 : index
    %c0_55 = arith.constant 0 : index
    %c0_56 = arith.constant 0 : index
    %74 = vector.load %arg8[%c1_54, %c0_55, %c0_56] : memref<4x32x8xf32, #tpu.memory_space<vmem>>, vector<1x32x8xf32>
    %75 = vector.shape_cast %74 : vector<1x32x8xf32> to vector<32x8xf32>
    %cst_57 = arith.constant dense<0.000000e+00> : vector<16x8xf32>
    %76 = tpu.matmul %1, %75, %cst_57 {dimension_numbers = #tpu.dot_dimension_numbers<[1], [0], [0], [1], [0, 0, 1, 1], [], []>} : vector<16x32xf32>, vector<32x8xf32>, vector<16x8xf32> -> vector<16x8xf32>
    %c1_58 = arith.constant 1 : index
    %c0_59 = arith.constant 0 : index
    %c0_60 = arith.constant 0 : index
    %77 = vector.load %arg9[%c1_58, %c0_59, %c0_60] : memref<4x1x8xf32, #tpu.memory_space<vmem>>, vector<1x1x8xf32>
    %78 = vector.shape_cast %77 : vector<1x1x8xf32> to vector<1x8xf32>
    %79 = vector.broadcast %78 : vector<1x8xf32> to vector<16x8xf32>
    %80 = arith.addf %76, %79 : vector<16x8xf32>
    %c1_61 = arith.constant 1 : index
    %c0_62 = arith.constant 0 : index
    %c0_63 = arith.constant 0 : index
    %81 = vector.load %arg10[%c1_61, %c0_62, %c0_63] : memref<4x32x8xf32, #tpu.memory_space<vmem>>, vector<1x32x8xf32>
    %82 = vector.shape_cast %81 : vector<1x32x8xf32> to vector<32x8xf32>
    %cst_64 = arith.constant dense<0.000000e+00> : vector<16x8xf32>
    %83 = tpu.matmul %1, %82, %cst_64 {dimension_numbers = #tpu.dot_dimension_numbers<[1], [0], [0], [1], [0, 0, 1, 1], [], []>} : vector<16x32xf32>, vector<32x8xf32>, vector<16x8xf32> -> vector<16x8xf32>
    %c1_65 = arith.constant 1 : index
    %c0_66 = arith.constant 0 : index
    %c0_67 = arith.constant 0 : index
    %84 = vector.load %arg11[%c1_65, %c0_66, %c0_67] : memref<4x1x8xf32, #tpu.memory_space<vmem>>, vector<1x1x8xf32>
    %85 = vector.shape_cast %84 : vector<1x1x8xf32> to vector<1x8xf32>
    %86 = vector.broadcast %85 : vector<1x8xf32> to vector<16x8xf32>
    %87 = arith.addf %83, %86 : vector<16x8xf32>
    %cst_68 = arith.constant dense<0.000000e+00> : vector<16x16xf32>
    %88 = tpu.matmul %73, %80, %cst_68 {dimension_numbers = #tpu.dot_dimension_numbers<[1], [1], [0], [0], [0, 0, 1, 0], [], []>} : vector<16x8xf32>, vector<16x8xf32>, vector<16x16xf32> -> vector<16x16xf32>
    %cst_69 = arith.constant 0.353553385 : f32
    %89 = vector.broadcast %cst_69 : f32 to vector<16x16xf32>
    %90 = arith.mulf %88, %89 : vector<16x16xf32>
    %cst_70 = arith.constant dense<0xFF800000> : vector<16xf32>
    %91 = vector.multi_reduction <maximumf>, %90, %cst_70 [1] : vector<16x16xf32> to vector<16xf32>
    %92 = vector.shape_cast %91 : vector<16xf32> to vector<16x1xf32>
    %93 = arith.addf %90, %7 : vector<16x16xf32>
    %94 = vector.broadcast %92 : vector<16x1xf32> to vector<16x16xf32>
    %95 = arith.subf %93, %94 : vector<16x16xf32>
    %96 = math.exp %95 : vector<16x16xf32>
    %cst_71 = arith.constant dense<0.000000e+00> : vector<16xf32>
    %97 = vector.multi_reduction <add>, %96, %cst_71 [1] : vector<16x16xf32> to vector<16xf32>
    %98 = vector.shape_cast %97 : vector<16xf32> to vector<16x1xf32>
    %99 = tpu.reciprocal %98 {approx = true} : vector<16x1xf32> -> vector<16x1xf32>
    %100 = vector.broadcast %99 : vector<16x1xf32> to vector<16x16xf32>
    %101 = arith.mulf %96, %100 : vector<16x16xf32>
    %102 = vector.broadcast %11 : f32 to vector<16x16xf32>
    %103 = arith.mulf %102, %101 : vector<16x16xf32>
    %104 = arith.addf %90, %9 : vector<16x16xf32>
    %105 = vector.broadcast %92 : vector<16x1xf32> to vector<16x16xf32>
    %106 = arith.subf %104, %105 : vector<16x16xf32>
    %107 = math.exp %106 : vector<16x16xf32>
    %cst_72 = arith.constant dense<0.000000e+00> : vector<16xf32>
    %108 = vector.multi_reduction <add>, %107, %cst_72 [1] : vector<16x16xf32> to vector<16xf32>
    %109 = vector.shape_cast %108 : vector<16xf32> to vector<16x1xf32>
    %110 = tpu.reciprocal %109 {approx = true} : vector<16x1xf32> -> vector<16x1xf32>
    %111 = vector.broadcast %110 : vector<16x1xf32> to vector<16x16xf32>
    %112 = arith.mulf %107, %111 : vector<16x16xf32>
    %113 = vector.broadcast %13 : f32 to vector<16x16xf32>
    %114 = arith.mulf %113, %112 : vector<16x16xf32>
    %115 = arith.addf %103, %114 : vector<16x16xf32>
    %cst_73 = arith.constant dense<0.000000e+00> : vector<16x8xf32>
    %116 = tpu.matmul %115, %87, %cst_73 {dimension_numbers = #tpu.dot_dimension_numbers<[1], [0], [0], [1], [0, 0, 1, 1], [], []>} : vector<16x16xf32>, vector<16x8xf32>, vector<16x8xf32> -> vector<16x8xf32>
    %c1_74 = arith.constant 1 : index
    %c0_75 = arith.constant 0 : index
    %c0_76 = arith.constant 0 : index
    %117 = vector.load %arg12[%c1_74, %c0_75, %c0_76] : memref<4x8x32xf32, #tpu.memory_space<vmem>>, vector<1x8x32xf32>
    %118 = vector.shape_cast %117 : vector<1x8x32xf32> to vector<8x32xf32>
    %cst_77 = arith.constant dense<0.000000e+00> : vector<16x32xf32>
    %119 = tpu.matmul %116, %118, %cst_77 {dimension_numbers = #tpu.dot_dimension_numbers<[1], [0], [0], [1], [0, 0, 1, 1], [], []>} : vector<16x8xf32>, vector<8x32xf32>, vector<16x32xf32> -> vector<16x32xf32>
    %120 = arith.addf %66, %119 : vector<16x32xf32>
    %c2 = arith.constant 2 : index
    %c0_78 = arith.constant 0 : index
    %c0_79 = arith.constant 0 : index
    %121 = vector.load %arg6[%c2, %c0_78, %c0_79] : memref<4x32x8xf32, #tpu.memory_space<vmem>>, vector<1x32x8xf32>
    %122 = vector.shape_cast %121 : vector<1x32x8xf32> to vector<32x8xf32>
    %cst_80 = arith.constant dense<0.000000e+00> : vector<16x8xf32>
    %123 = tpu.matmul %1, %122, %cst_80 {dimension_numbers = #tpu.dot_dimension_numbers<[1], [0], [0], [1], [0, 0, 1, 1], [], []>} : vector<16x32xf32>, vector<32x8xf32>, vector<16x8xf32> -> vector<16x8xf32>
    %c2_81 = arith.constant 2 : index
    %c0_82 = arith.constant 0 : index
    %c0_83 = arith.constant 0 : index
    %124 = vector.load %arg7[%c2_81, %c0_82, %c0_83] : memref<4x1x8xf32, #tpu.memory_space<vmem>>, vector<1x1x8xf32>
    %125 = vector.shape_cast %124 : vector<1x1x8xf32> to vector<1x8xf32>
    %126 = vector.broadcast %125 : vector<1x8xf32> to vector<16x8xf32>
    %127 = arith.addf %123, %126 : vector<16x8xf32>
    %c2_84 = arith.constant 2 : index
    %c0_85 = arith.constant 0 : index
    %c0_86 = arith.constant 0 : index
    %128 = vector.load %arg8[%c2_84, %c0_85, %c0_86] : memref<4x32x8xf32, #tpu.memory_space<vmem>>, vector<1x32x8xf32>
    %129 = vector.shape_cast %128 : vector<1x32x8xf32> to vector<32x8xf32>
    %cst_87 = arith.constant dense<0.000000e+00> : vector<16x8xf32>
    %130 = tpu.matmul %1, %129, %cst_87 {dimension_numbers = #tpu.dot_dimension_numbers<[1], [0], [0], [1], [0, 0, 1, 1], [], []>} : vector<16x32xf32>, vector<32x8xf32>, vector<16x8xf32> -> vector<16x8xf32>
    %c2_88 = arith.constant 2 : index
    %c0_89 = arith.constant 0 : index
    %c0_90 = arith.constant 0 : index
    %131 = vector.load %arg9[%c2_88, %c0_89, %c0_90] : memref<4x1x8xf32, #tpu.memory_space<vmem>>, vector<1x1x8xf32>
    %132 = vector.shape_cast %131 : vector<1x1x8xf32> to vector<1x8xf32>
    %133 = vector.broadcast %132 : vector<1x8xf32> to vector<16x8xf32>
    %134 = arith.addf %130, %133 : vector<16x8xf32>
    %c2_91 = arith.constant 2 : index
    %c0_92 = arith.constant 0 : index
    %c0_93 = arith.constant 0 : index
    %135 = vector.load %arg10[%c2_91, %c0_92, %c0_93] : memref<4x32x8xf32, #tpu.memory_space<vmem>>, vector<1x32x8xf32>
    %136 = vector.shape_cast %135 : vector<1x32x8xf32> to vector<32x8xf32>
    %cst_94 = arith.constant dense<0.000000e+00> : vector<16x8xf32>
    %137 = tpu.matmul %1, %136, %cst_94 {dimension_numbers = #tpu.dot_dimension_numbers<[1], [0], [0], [1], [0, 0, 1, 1], [], []>} : vector<16x32xf32>, vector<32x8xf32>, vector<16x8xf32> -> vector<16x8xf32>
    %c2_95 = arith.constant 2 : index
    %c0_96 = arith.constant 0 : index
    %c0_97 = arith.constant 0 : index
    %138 = vector.load %arg11[%c2_95, %c0_96, %c0_97] : memref<4x1x8xf32, #tpu.memory_space<vmem>>, vector<1x1x8xf32>
    %139 = vector.shape_cast %138 : vector<1x1x8xf32> to vector<1x8xf32>
    %140 = vector.broadcast %139 : vector<1x8xf32> to vector<16x8xf32>
    %141 = arith.addf %137, %140 : vector<16x8xf32>
    %cst_98 = arith.constant dense<0.000000e+00> : vector<16x16xf32>
    %142 = tpu.matmul %127, %134, %cst_98 {dimension_numbers = #tpu.dot_dimension_numbers<[1], [1], [0], [0], [0, 0, 1, 0], [], []>} : vector<16x8xf32>, vector<16x8xf32>, vector<16x16xf32> -> vector<16x16xf32>
    %cst_99 = arith.constant 0.353553385 : f32
    %143 = vector.broadcast %cst_99 : f32 to vector<16x16xf32>
    %144 = arith.mulf %142, %143 : vector<16x16xf32>
    %cst_100 = arith.constant dense<0xFF800000> : vector<16xf32>
    %145 = vector.multi_reduction <maximumf>, %144, %cst_100 [1] : vector<16x16xf32> to vector<16xf32>
    %146 = vector.shape_cast %145 : vector<16xf32> to vector<16x1xf32>
    %147 = arith.addf %144, %7 : vector<16x16xf32>
    %148 = vector.broadcast %146 : vector<16x1xf32> to vector<16x16xf32>
    %149 = arith.subf %147, %148 : vector<16x16xf32>
    %150 = math.exp %149 : vector<16x16xf32>
    %cst_101 = arith.constant dense<0.000000e+00> : vector<16xf32>
    %151 = vector.multi_reduction <add>, %150, %cst_101 [1] : vector<16x16xf32> to vector<16xf32>
    %152 = vector.shape_cast %151 : vector<16xf32> to vector<16x1xf32>
    %153 = tpu.reciprocal %152 {approx = true} : vector<16x1xf32> -> vector<16x1xf32>
    %154 = vector.broadcast %153 : vector<16x1xf32> to vector<16x16xf32>
    %155 = arith.mulf %150, %154 : vector<16x16xf32>
    %156 = vector.broadcast %11 : f32 to vector<16x16xf32>
    %157 = arith.mulf %156, %155 : vector<16x16xf32>
    %158 = arith.addf %144, %9 : vector<16x16xf32>
    %159 = vector.broadcast %146 : vector<16x1xf32> to vector<16x16xf32>
    %160 = arith.subf %158, %159 : vector<16x16xf32>
    %161 = math.exp %160 : vector<16x16xf32>
    %cst_102 = arith.constant dense<0.000000e+00> : vector<16xf32>
    %162 = vector.multi_reduction <add>, %161, %cst_102 [1] : vector<16x16xf32> to vector<16xf32>
    %163 = vector.shape_cast %162 : vector<16xf32> to vector<16x1xf32>
    %164 = tpu.reciprocal %163 {approx = true} : vector<16x1xf32> -> vector<16x1xf32>
    %165 = vector.broadcast %164 : vector<16x1xf32> to vector<16x16xf32>
    %166 = arith.mulf %161, %165 : vector<16x16xf32>
    %167 = vector.broadcast %13 : f32 to vector<16x16xf32>
    %168 = arith.mulf %167, %166 : vector<16x16xf32>
    %169 = arith.addf %157, %168 : vector<16x16xf32>
    %cst_103 = arith.constant dense<0.000000e+00> : vector<16x8xf32>
    %170 = tpu.matmul %169, %141, %cst_103 {dimension_numbers = #tpu.dot_dimension_numbers<[1], [0], [0], [1], [0, 0, 1, 1], [], []>} : vector<16x16xf32>, vector<16x8xf32>, vector<16x8xf32> -> vector<16x8xf32>
    %c2_104 = arith.constant 2 : index
    %c0_105 = arith.constant 0 : index
    %c0_106 = arith.constant 0 : index
    %171 = vector.load %arg12[%c2_104, %c0_105, %c0_106] : memref<4x8x32xf32, #tpu.memory_space<vmem>>, vector<1x8x32xf32>
    %172 = vector.shape_cast %171 : vector<1x8x32xf32> to vector<8x32xf32>
    %cst_107 = arith.constant dense<0.000000e+00> : vector<16x32xf32>
    %173 = tpu.matmul %170, %172, %cst_107 {dimension_numbers = #tpu.dot_dimension_numbers<[1], [0], [0], [1], [0, 0, 1, 1], [], []>} : vector<16x8xf32>, vector<8x32xf32>, vector<16x32xf32> -> vector<16x32xf32>
    %174 = arith.addf %120, %173 : vector<16x32xf32>
    %c3 = arith.constant 3 : index
    %c0_108 = arith.constant 0 : index
    %c0_109 = arith.constant 0 : index
    %175 = vector.load %arg6[%c3, %c0_108, %c0_109] : memref<4x32x8xf32, #tpu.memory_space<vmem>>, vector<1x32x8xf32>
    %176 = vector.shape_cast %175 : vector<1x32x8xf32> to vector<32x8xf32>
    %cst_110 = arith.constant dense<0.000000e+00> : vector<16x8xf32>
    %177 = tpu.matmul %1, %176, %cst_110 {dimension_numbers = #tpu.dot_dimension_numbers<[1], [0], [0], [1], [0, 0, 1, 1], [], []>} : vector<16x32xf32>, vector<32x8xf32>, vector<16x8xf32> -> vector<16x8xf32>
    %c3_111 = arith.constant 3 : index
    %c0_112 = arith.constant 0 : index
    %c0_113 = arith.constant 0 : index
    %178 = vector.load %arg7[%c3_111, %c0_112, %c0_113] : memref<4x1x8xf32, #tpu.memory_space<vmem>>, vector<1x1x8xf32>
    %179 = vector.shape_cast %178 : vector<1x1x8xf32> to vector<1x8xf32>
    %180 = vector.broadcast %179 : vector<1x8xf32> to vector<16x8xf32>
    %181 = arith.addf %177, %180 : vector<16x8xf32>
    %c3_114 = arith.constant 3 : index
    %c0_115 = arith.constant 0 : index
    %c0_116 = arith.constant 0 : index
    %182 = vector.load %arg8[%c3_114, %c0_115, %c0_116] : memref<4x32x8xf32, #tpu.memory_space<vmem>>, vector<1x32x8xf32>
    %183 = vector.shape_cast %182 : vector<1x32x8xf32> to vector<32x8xf32>
    %cst_117 = arith.constant dense<0.000000e+00> : vector<16x8xf32>
    %184 = tpu.matmul %1, %183, %cst_117 {dimension_numbers = #tpu.dot_dimension_numbers<[1], [0], [0], [1], [0, 0, 1, 1], [], []>} : vector<16x32xf32>, vector<32x8xf32>, vector<16x8xf32> -> vector<16x8xf32>
    %c3_118 = arith.constant 3 : index
    %c0_119 = arith.constant 0 : index
    %c0_120 = arith.constant 0 : index
    %185 = vector.load %arg9[%c3_118, %c0_119, %c0_120] : memref<4x1x8xf32, #tpu.memory_space<vmem>>, vector<1x1x8xf32>
    %186 = vector.shape_cast %185 : vector<1x1x8xf32> to vector<1x8xf32>
    %187 = vector.broadcast %186 : vector<1x8xf32> to vector<16x8xf32>
    %188 = arith.addf %184, %187 : vector<16x8xf32>
    %c3_121 = arith.constant 3 : index
    %c0_122 = arith.constant 0 : index
    %c0_123 = arith.constant 0 : index
    %189 = vector.load %arg10[%c3_121, %c0_122, %c0_123] : memref<4x32x8xf32, #tpu.memory_space<vmem>>, vector<1x32x8xf32>
    %190 = vector.shape_cast %189 : vector<1x32x8xf32> to vector<32x8xf32>
    %cst_124 = arith.constant dense<0.000000e+00> : vector<16x8xf32>
    %191 = tpu.matmul %1, %190, %cst_124 {dimension_numbers = #tpu.dot_dimension_numbers<[1], [0], [0], [1], [0, 0, 1, 1], [], []>} : vector<16x32xf32>, vector<32x8xf32>, vector<16x8xf32> -> vector<16x8xf32>
    %c3_125 = arith.constant 3 : index
    %c0_126 = arith.constant 0 : index
    %c0_127 = arith.constant 0 : index
    %192 = vector.load %arg11[%c3_125, %c0_126, %c0_127] : memref<4x1x8xf32, #tpu.memory_space<vmem>>, vector<1x1x8xf32>
    %193 = vector.shape_cast %192 : vector<1x1x8xf32> to vector<1x8xf32>
    %194 = vector.broadcast %193 : vector<1x8xf32> to vector<16x8xf32>
    %195 = arith.addf %191, %194 : vector<16x8xf32>
    %cst_128 = arith.constant dense<0.000000e+00> : vector<16x16xf32>
    %196 = tpu.matmul %181, %188, %cst_128 {dimension_numbers = #tpu.dot_dimension_numbers<[1], [1], [0], [0], [0, 0, 1, 0], [], []>} : vector<16x8xf32>, vector<16x8xf32>, vector<16x16xf32> -> vector<16x16xf32>
    %cst_129 = arith.constant 0.353553385 : f32
    %197 = vector.broadcast %cst_129 : f32 to vector<16x16xf32>
    %198 = arith.mulf %196, %197 : vector<16x16xf32>
    %cst_130 = arith.constant dense<0xFF800000> : vector<16xf32>
    %199 = vector.multi_reduction <maximumf>, %198, %cst_130 [1] : vector<16x16xf32> to vector<16xf32>
    %200 = vector.shape_cast %199 : vector<16xf32> to vector<16x1xf32>
    %201 = arith.addf %198, %7 : vector<16x16xf32>
    %202 = vector.broadcast %200 : vector<16x1xf32> to vector<16x16xf32>
    %203 = arith.subf %201, %202 : vector<16x16xf32>
    %204 = math.exp %203 : vector<16x16xf32>
    %cst_131 = arith.constant dense<0.000000e+00> : vector<16xf32>
    %205 = vector.multi_reduction <add>, %204, %cst_131 [1] : vector<16x16xf32> to vector<16xf32>
    %206 = vector.shape_cast %205 : vector<16xf32> to vector<16x1xf32>
    %207 = tpu.reciprocal %206 {approx = true} : vector<16x1xf32> -> vector<16x1xf32>
    %208 = vector.broadcast %207 : vector<16x1xf32> to vector<16x16xf32>
    %209 = arith.mulf %204, %208 : vector<16x16xf32>
    %210 = vector.broadcast %11 : f32 to vector<16x16xf32>
    %211 = arith.mulf %210, %209 : vector<16x16xf32>
    %212 = arith.addf %198, %9 : vector<16x16xf32>
    %213 = vector.broadcast %200 : vector<16x1xf32> to vector<16x16xf32>
    %214 = arith.subf %212, %213 : vector<16x16xf32>
    %215 = math.exp %214 : vector<16x16xf32>
    %cst_132 = arith.constant dense<0.000000e+00> : vector<16xf32>
    %216 = vector.multi_reduction <add>, %215, %cst_132 [1] : vector<16x16xf32> to vector<16xf32>
    %217 = vector.shape_cast %216 : vector<16xf32> to vector<16x1xf32>
    %218 = tpu.reciprocal %217 {approx = true} : vector<16x1xf32> -> vector<16x1xf32>
    %219 = vector.broadcast %218 : vector<16x1xf32> to vector<16x16xf32>
    %220 = arith.mulf %215, %219 : vector<16x16xf32>
    %221 = vector.broadcast %13 : f32 to vector<16x16xf32>
    %222 = arith.mulf %221, %220 : vector<16x16xf32>
    %223 = arith.addf %211, %222 : vector<16x16xf32>
    %cst_133 = arith.constant dense<0.000000e+00> : vector<16x8xf32>
    %224 = tpu.matmul %223, %195, %cst_133 {dimension_numbers = #tpu.dot_dimension_numbers<[1], [0], [0], [1], [0, 0, 1, 1], [], []>} : vector<16x16xf32>, vector<16x8xf32>, vector<16x8xf32> -> vector<16x8xf32>
    %c3_134 = arith.constant 3 : index
    %c0_135 = arith.constant 0 : index
    %c0_136 = arith.constant 0 : index
    %225 = vector.load %arg12[%c3_134, %c0_135, %c0_136] : memref<4x8x32xf32, #tpu.memory_space<vmem>>, vector<1x8x32xf32>
    %226 = vector.shape_cast %225 : vector<1x8x32xf32> to vector<8x32xf32>
    %cst_137 = arith.constant dense<0.000000e+00> : vector<16x32xf32>
    %227 = tpu.matmul %224, %226, %cst_137 {dimension_numbers = #tpu.dot_dimension_numbers<[1], [0], [0], [1], [0, 0, 1, 1], [], []>} : vector<16x8xf32>, vector<8x32xf32>, vector<16x32xf32> -> vector<16x32xf32>
    %228 = arith.addf %174, %227 : vector<16x32xf32>
    %c0_138 = arith.constant 0 : index
    %c0_139 = arith.constant 0 : index
    %229 = vector.load %arg13[%c0_138, %c0_139] : memref<1x32xf32, #tpu.memory_space<vmem>>, vector<1x32xf32>
    %230 = vector.broadcast %229 : vector<1x32xf32> to vector<16x32xf32>
    %231 = arith.addf %228, %230 : vector<16x32xf32>
    %232 = arith.addf %1, %231 : vector<16x32xf32>
    %c0_140 = arith.constant 0 : index
    %c0_141 = arith.constant 0 : index
    %233 = vector.load %arg22[%c0_140, %c0_141] : memref<1x32xf32, #tpu.memory_space<vmem>>, vector<1x32xf32>
    %c0_142 = arith.constant 0 : index
    %c0_143 = arith.constant 0 : index
    %234 = vector.load %arg23[%c0_142, %c0_143] : memref<1x32xf32, #tpu.memory_space<vmem>>, vector<1x32xf32>
    %cst_144 = arith.constant dense<0.000000e+00> : vector<16xf32>
    %235 = vector.multi_reduction <add>, %232, %cst_144 [1] : vector<16x32xf32> to vector<16xf32>
    %236 = vector.shape_cast %235 : vector<16xf32> to vector<16x1xf32>
    %cst_145 = arith.constant 3.200000e+01 : f32
    %237 = vector.broadcast %cst_145 : f32 to vector<16x1xf32>
    %238 = arith.divf %236, %237 : vector<16x1xf32>
    %239 = vector.broadcast %238 : vector<16x1xf32> to vector<16x32xf32>
    %240 = arith.subf %232, %239 : vector<16x32xf32>
    %241 = arith.mulf %240, %240 : vector<16x32xf32>
    %cst_146 = arith.constant dense<0.000000e+00> : vector<16xf32>
    %242 = vector.multi_reduction <add>, %241, %cst_146 [1] : vector<16x32xf32> to vector<16xf32>
    %243 = vector.shape_cast %242 : vector<16xf32> to vector<16x1xf32>
    %cst_147 = arith.constant 3.100000e+01 : f32
    %244 = vector.broadcast %cst_147 : f32 to vector<16x1xf32>
    %245 = arith.divf %243, %244 : vector<16x1xf32>
    %246 = math.sqrt %245 : vector<16x1xf32>
    %247 = vector.broadcast %233 : vector<1x32xf32> to vector<16x32xf32>
    %248 = arith.mulf %247, %240 : vector<16x32xf32>
    %cst_148 = arith.constant 9.99999997E-7 : f32
    %249 = vector.broadcast %cst_148 : f32 to vector<16x1xf32>
    %250 = arith.addf %246, %249 : vector<16x1xf32>
    %251 = vector.broadcast %250 : vector<16x1xf32> to vector<16x32xf32>
    %252 = arith.divf %248, %251 : vector<16x32xf32>
    %253 = vector.broadcast %234 : vector<1x32xf32> to vector<16x32xf32>
    %254 = arith.addf %252, %253 : vector<16x32xf32>
    %c0_149 = arith.constant 0 : index
    %c0_150 = arith.constant 0 : index
    %255 = vector.load %arg21[%c0_149, %c0_150] : memref<1x32xf32, #tpu.memory_space<vmem>>, vector<1x32xf32>
    %c0_151 = arith.constant 0 : index
    %c0_152 = arith.constant 0 : index
    %c0_153 = arith.constant 0 : index
    %256 = vector.load %arg14[%c0_151, %c0_152, %c0_153] : memref<4x32x8xf32, #tpu.memory_space<vmem>>, vector<1x32x8xf32>
    %257 = vector.shape_cast %256 : vector<1x32x8xf32> to vector<32x8xf32>
    %cst_154 = arith.constant dense<0.000000e+00> : vector<16x8xf32>
    %258 = tpu.matmul %254, %257, %cst_154 {dimension_numbers = #tpu.dot_dimension_numbers<[1], [0], [0], [1], [0, 0, 1, 1], [], []>} : vector<16x32xf32>, vector<32x8xf32>, vector<16x8xf32> -> vector<16x8xf32>
    %c0_155 = arith.constant 0 : index
    %c0_156 = arith.constant 0 : index
    %c0_157 = arith.constant 0 : index
    %259 = vector.load %arg15[%c0_155, %c0_156, %c0_157] : memref<4x1x8xf32, #tpu.memory_space<vmem>>, vector<1x1x8xf32>
    %260 = vector.shape_cast %259 : vector<1x1x8xf32> to vector<1x8xf32>
    %261 = vector.broadcast %260 : vector<1x8xf32> to vector<16x8xf32>
    %262 = arith.addf %258, %261 : vector<16x8xf32>
    %c0_158 = arith.constant 0 : index
    %c0_159 = arith.constant 0 : index
    %c0_160 = arith.constant 0 : index
    %263 = vector.load %arg16[%c0_158, %c0_159, %c0_160] : memref<4x32x8xf32, #tpu.memory_space<vmem>>, vector<1x32x8xf32>
    %264 = vector.shape_cast %263 : vector<1x32x8xf32> to vector<32x8xf32>
    %cst_161 = arith.constant dense<0.000000e+00> : vector<8x8xf32>
    %265 = tpu.matmul %3, %264, %cst_161 {dimension_numbers = #tpu.dot_dimension_numbers<[1], [0], [0], [1], [0, 0, 1, 1], [], []>} : vector<8x32xf32>, vector<32x8xf32>, vector<8x8xf32> -> vector<8x8xf32>
    %c0_162 = arith.constant 0 : index
    %c0_163 = arith.constant 0 : index
    %c0_164 = arith.constant 0 : index
    %266 = vector.load %arg17[%c0_162, %c0_163, %c0_164] : memref<4x1x8xf32, #tpu.memory_space<vmem>>, vector<1x1x8xf32>
    %267 = vector.shape_cast %266 : vector<1x1x8xf32> to vector<1x8xf32>
    %268 = vector.broadcast %267 : vector<1x8xf32> to vector<8x8xf32>
    %269 = arith.addf %265, %268 : vector<8x8xf32>
    %c0_165 = arith.constant 0 : index
    %c0_166 = arith.constant 0 : index
    %c0_167 = arith.constant 0 : index
    %270 = vector.load %arg18[%c0_165, %c0_166, %c0_167] : memref<4x32x8xf32, #tpu.memory_space<vmem>>, vector<1x32x8xf32>
    %271 = vector.shape_cast %270 : vector<1x32x8xf32> to vector<32x8xf32>
    %cst_168 = arith.constant dense<0.000000e+00> : vector<8x8xf32>
    %272 = tpu.matmul %3, %271, %cst_168 {dimension_numbers = #tpu.dot_dimension_numbers<[1], [0], [0], [1], [0, 0, 1, 1], [], []>} : vector<8x32xf32>, vector<32x8xf32>, vector<8x8xf32> -> vector<8x8xf32>
    %c0_169 = arith.constant 0 : index
    %c0_170 = arith.constant 0 : index
    %c0_171 = arith.constant 0 : index
    %273 = vector.load %arg19[%c0_169, %c0_170, %c0_171] : memref<4x1x8xf32, #tpu.memory_space<vmem>>, vector<1x1x8xf32>
    %274 = vector.shape_cast %273 : vector<1x1x8xf32> to vector<1x8xf32>
    %275 = vector.broadcast %274 : vector<1x8xf32> to vector<8x8xf32>
    %276 = arith.addf %272, %275 : vector<8x8xf32>
    %cst_172 = arith.constant dense<0.000000e+00> : vector<16x8xf32>
    %277 = tpu.matmul %262, %269, %cst_172 {dimension_numbers = #tpu.dot_dimension_numbers<[1], [1], [0], [0], [0, 0, 1, 0], [], []>} : vector<16x8xf32>, vector<8x8xf32>, vector<16x8xf32> -> vector<16x8xf32>
    %cst_173 = arith.constant 0.353553385 : f32
    %278 = vector.broadcast %cst_173 : f32 to vector<16x8xf32>
    %279 = arith.mulf %277, %278 : vector<16x8xf32>
    %280 = vector.broadcast %5 : vector<1x8xf32> to vector<16x8xf32>
    %281 = arith.addf %279, %280 : vector<16x8xf32>
    %cst_174 = arith.constant dense<0xFF800000> : vector<16xf32>
    %282 = vector.multi_reduction <maximumf>, %281, %cst_174 [1] : vector<16x8xf32> to vector<16xf32>
    %283 = vector.shape_cast %282 : vector<16xf32> to vector<16x1xf32>
    %284 = vector.broadcast %283 : vector<16x1xf32> to vector<16x8xf32>
    %285 = arith.subf %281, %284 : vector<16x8xf32>
    %286 = math.exp %285 : vector<16x8xf32>
    %cst_175 = arith.constant dense<0.000000e+00> : vector<16xf32>
    %287 = vector.multi_reduction <add>, %286, %cst_175 [1] : vector<16x8xf32> to vector<16xf32>
    %288 = vector.shape_cast %287 : vector<16xf32> to vector<16x1xf32>
    %289 = tpu.reciprocal %288 {approx = true} : vector<16x1xf32> -> vector<16x1xf32>
    %290 = vector.broadcast %289 : vector<16x1xf32> to vector<16x8xf32>
    %291 = arith.mulf %286, %290 : vector<16x8xf32>
    %cst_176 = arith.constant dense<0.000000e+00> : vector<16x8xf32>
    %292 = tpu.matmul %291, %276, %cst_176 {dimension_numbers = #tpu.dot_dimension_numbers<[1], [0], [0], [1], [0, 0, 1, 1], [], []>} : vector<16x8xf32>, vector<8x8xf32>, vector<16x8xf32> -> vector<16x8xf32>
    %c0_177 = arith.constant 0 : index
    %c0_178 = arith.constant 0 : index
    %c0_179 = arith.constant 0 : index
    %293 = vector.load %arg20[%c0_177, %c0_178, %c0_179] : memref<4x8x32xf32, #tpu.memory_space<vmem>>, vector<1x8x32xf32>
    %294 = vector.shape_cast %293 : vector<1x8x32xf32> to vector<8x32xf32>
    %cst_180 = arith.constant dense<0.000000e+00> : vector<16x32xf32>
    %295 = tpu.matmul %292, %294, %cst_180 {dimension_numbers = #tpu.dot_dimension_numbers<[1], [0], [0], [1], [0, 0, 1, 1], [], []>} : vector<16x8xf32>, vector<8x32xf32>, vector<16x32xf32> -> vector<16x32xf32>
    %c1_181 = arith.constant 1 : index
    %c0_182 = arith.constant 0 : index
    %c0_183 = arith.constant 0 : index
    %296 = vector.load %arg14[%c1_181, %c0_182, %c0_183] : memref<4x32x8xf32, #tpu.memory_space<vmem>>, vector<1x32x8xf32>
    %297 = vector.shape_cast %296 : vector<1x32x8xf32> to vector<32x8xf32>
    %cst_184 = arith.constant dense<0.000000e+00> : vector<16x8xf32>
    %298 = tpu.matmul %254, %297, %cst_184 {dimension_numbers = #tpu.dot_dimension_numbers<[1], [0], [0], [1], [0, 0, 1, 1], [], []>} : vector<16x32xf32>, vector<32x8xf32>, vector<16x8xf32> -> vector<16x8xf32>
    %c1_185 = arith.constant 1 : index
    %c0_186 = arith.constant 0 : index
    %c0_187 = arith.constant 0 : index
    %299 = vector.load %arg15[%c1_185, %c0_186, %c0_187] : memref<4x1x8xf32, #tpu.memory_space<vmem>>, vector<1x1x8xf32>
    %300 = vector.shape_cast %299 : vector<1x1x8xf32> to vector<1x8xf32>
    %301 = vector.broadcast %300 : vector<1x8xf32> to vector<16x8xf32>
    %302 = arith.addf %298, %301 : vector<16x8xf32>
    %c1_188 = arith.constant 1 : index
    %c0_189 = arith.constant 0 : index
    %c0_190 = arith.constant 0 : index
    %303 = vector.load %arg16[%c1_188, %c0_189, %c0_190] : memref<4x32x8xf32, #tpu.memory_space<vmem>>, vector<1x32x8xf32>
    %304 = vector.shape_cast %303 : vector<1x32x8xf32> to vector<32x8xf32>
    %cst_191 = arith.constant dense<0.000000e+00> : vector<8x8xf32>
    %305 = tpu.matmul %3, %304, %cst_191 {dimension_numbers = #tpu.dot_dimension_numbers<[1], [0], [0], [1], [0, 0, 1, 1], [], []>} : vector<8x32xf32>, vector<32x8xf32>, vector<8x8xf32> -> vector<8x8xf32>
    %c1_192 = arith.constant 1 : index
    %c0_193 = arith.constant 0 : index
    %c0_194 = arith.constant 0 : index
    %306 = vector.load %arg17[%c1_192, %c0_193, %c0_194] : memref<4x1x8xf32, #tpu.memory_space<vmem>>, vector<1x1x8xf32>
    %307 = vector.shape_cast %306 : vector<1x1x8xf32> to vector<1x8xf32>
    %308 = vector.broadcast %307 : vector<1x8xf32> to vector<8x8xf32>
    %309 = arith.addf %305, %308 : vector<8x8xf32>
    %c1_195 = arith.constant 1 : index
    %c0_196 = arith.constant 0 : index
    %c0_197 = arith.constant 0 : index
    %310 = vector.load %arg18[%c1_195, %c0_196, %c0_197] : memref<4x32x8xf32, #tpu.memory_space<vmem>>, vector<1x32x8xf32>
    %311 = vector.shape_cast %310 : vector<1x32x8xf32> to vector<32x8xf32>
    %cst_198 = arith.constant dense<0.000000e+00> : vector<8x8xf32>
    %312 = tpu.matmul %3, %311, %cst_198 {dimension_numbers = #tpu.dot_dimension_numbers<[1], [0], [0], [1], [0, 0, 1, 1], [], []>} : vector<8x32xf32>, vector<32x8xf32>, vector<8x8xf32> -> vector<8x8xf32>
    %c1_199 = arith.constant 1 : index
    %c0_200 = arith.constant 0 : index
    %c0_201 = arith.constant 0 : index
    %313 = vector.load %arg19[%c1_199, %c0_200, %c0_201] : memref<4x1x8xf32, #tpu.memory_space<vmem>>, vector<1x1x8xf32>
    %314 = vector.shape_cast %313 : vector<1x1x8xf32> to vector<1x8xf32>
    %315 = vector.broadcast %314 : vector<1x8xf32> to vector<8x8xf32>
    %316 = arith.addf %312, %315 : vector<8x8xf32>
    %cst_202 = arith.constant dense<0.000000e+00> : vector<16x8xf32>
    %317 = tpu.matmul %302, %309, %cst_202 {dimension_numbers = #tpu.dot_dimension_numbers<[1], [1], [0], [0], [0, 0, 1, 0], [], []>} : vector<16x8xf32>, vector<8x8xf32>, vector<16x8xf32> -> vector<16x8xf32>
    %cst_203 = arith.constant 0.353553385 : f32
    %318 = vector.broadcast %cst_203 : f32 to vector<16x8xf32>
    %319 = arith.mulf %317, %318 : vector<16x8xf32>
    %320 = vector.broadcast %5 : vector<1x8xf32> to vector<16x8xf32>
    %321 = arith.addf %319, %320 : vector<16x8xf32>
    %cst_204 = arith.constant dense<0xFF800000> : vector<16xf32>
    %322 = vector.multi_reduction <maximumf>, %321, %cst_204 [1] : vector<16x8xf32> to vector<16xf32>
    %323 = vector.shape_cast %322 : vector<16xf32> to vector<16x1xf32>
    %324 = vector.broadcast %323 : vector<16x1xf32> to vector<16x8xf32>
    %325 = arith.subf %321, %324 : vector<16x8xf32>
    %326 = math.exp %325 : vector<16x8xf32>
    %cst_205 = arith.constant dense<0.000000e+00> : vector<16xf32>
    %327 = vector.multi_reduction <add>, %326, %cst_205 [1] : vector<16x8xf32> to vector<16xf32>
    %328 = vector.shape_cast %327 : vector<16xf32> to vector<16x1xf32>
    %329 = tpu.reciprocal %328 {approx = true} : vector<16x1xf32> -> vector<16x1xf32>
    %330 = vector.broadcast %329 : vector<16x1xf32> to vector<16x8xf32>
    %331 = arith.mulf %326, %330 : vector<16x8xf32>
    %cst_206 = arith.constant dense<0.000000e+00> : vector<16x8xf32>
    %332 = tpu.matmul %331, %316, %cst_206 {dimension_numbers = #tpu.dot_dimension_numbers<[1], [0], [0], [1], [0, 0, 1, 1], [], []>} : vector<16x8xf32>, vector<8x8xf32>, vector<16x8xf32> -> vector<16x8xf32>
    %c1_207 = arith.constant 1 : index
    %c0_208 = arith.constant 0 : index
    %c0_209 = arith.constant 0 : index
    %333 = vector.load %arg20[%c1_207, %c0_208, %c0_209] : memref<4x8x32xf32, #tpu.memory_space<vmem>>, vector<1x8x32xf32>
    %334 = vector.shape_cast %333 : vector<1x8x32xf32> to vector<8x32xf32>
    %cst_210 = arith.constant dense<0.000000e+00> : vector<16x32xf32>
    %335 = tpu.matmul %332, %334, %cst_210 {dimension_numbers = #tpu.dot_dimension_numbers<[1], [0], [0], [1], [0, 0, 1, 1], [], []>} : vector<16x8xf32>, vector<8x32xf32>, vector<16x32xf32> -> vector<16x32xf32>
    %336 = arith.addf %295, %335 : vector<16x32xf32>
    %c2_211 = arith.constant 2 : index
    %c0_212 = arith.constant 0 : index
    %c0_213 = arith.constant 0 : index
    %337 = vector.load %arg14[%c2_211, %c0_212, %c0_213] : memref<4x32x8xf32, #tpu.memory_space<vmem>>, vector<1x32x8xf32>
    %338 = vector.shape_cast %337 : vector<1x32x8xf32> to vector<32x8xf32>
    %cst_214 = arith.constant dense<0.000000e+00> : vector<16x8xf32>
    %339 = tpu.matmul %254, %338, %cst_214 {dimension_numbers = #tpu.dot_dimension_numbers<[1], [0], [0], [1], [0, 0, 1, 1], [], []>} : vector<16x32xf32>, vector<32x8xf32>, vector<16x8xf32> -> vector<16x8xf32>
    %c2_215 = arith.constant 2 : index
    %c0_216 = arith.constant 0 : index
    %c0_217 = arith.constant 0 : index
    %340 = vector.load %arg15[%c2_215, %c0_216, %c0_217] : memref<4x1x8xf32, #tpu.memory_space<vmem>>, vector<1x1x8xf32>
    %341 = vector.shape_cast %340 : vector<1x1x8xf32> to vector<1x8xf32>
    %342 = vector.broadcast %341 : vector<1x8xf32> to vector<16x8xf32>
    %343 = arith.addf %339, %342 : vector<16x8xf32>
    %c2_218 = arith.constant 2 : index
    %c0_219 = arith.constant 0 : index
    %c0_220 = arith.constant 0 : index
    %344 = vector.load %arg16[%c2_218, %c0_219, %c0_220] : memref<4x32x8xf32, #tpu.memory_space<vmem>>, vector<1x32x8xf32>
    %345 = vector.shape_cast %344 : vector<1x32x8xf32> to vector<32x8xf32>
    %cst_221 = arith.constant dense<0.000000e+00> : vector<8x8xf32>
    %346 = tpu.matmul %3, %345, %cst_221 {dimension_numbers = #tpu.dot_dimension_numbers<[1], [0], [0], [1], [0, 0, 1, 1], [], []>} : vector<8x32xf32>, vector<32x8xf32>, vector<8x8xf32> -> vector<8x8xf32>
    %c2_222 = arith.constant 2 : index
    %c0_223 = arith.constant 0 : index
    %c0_224 = arith.constant 0 : index
    %347 = vector.load %arg17[%c2_222, %c0_223, %c0_224] : memref<4x1x8xf32, #tpu.memory_space<vmem>>, vector<1x1x8xf32>
    %348 = vector.shape_cast %347 : vector<1x1x8xf32> to vector<1x8xf32>
    %349 = vector.broadcast %348 : vector<1x8xf32> to vector<8x8xf32>
    %350 = arith.addf %346, %349 : vector<8x8xf32>
    %c2_225 = arith.constant 2 : index
    %c0_226 = arith.constant 0 : index
    %c0_227 = arith.constant 0 : index
    %351 = vector.load %arg18[%c2_225, %c0_226, %c0_227] : memref<4x32x8xf32, #tpu.memory_space<vmem>>, vector<1x32x8xf32>
    %352 = vector.shape_cast %351 : vector<1x32x8xf32> to vector<32x8xf32>
    %cst_228 = arith.constant dense<0.000000e+00> : vector<8x8xf32>
    %353 = tpu.matmul %3, %352, %cst_228 {dimension_numbers = #tpu.dot_dimension_numbers<[1], [0], [0], [1], [0, 0, 1, 1], [], []>} : vector<8x32xf32>, vector<32x8xf32>, vector<8x8xf32> -> vector<8x8xf32>
    %c2_229 = arith.constant 2 : index
    %c0_230 = arith.constant 0 : index
    %c0_231 = arith.constant 0 : index
    %354 = vector.load %arg19[%c2_229, %c0_230, %c0_231] : memref<4x1x8xf32, #tpu.memory_space<vmem>>, vector<1x1x8xf32>
    %355 = vector.shape_cast %354 : vector<1x1x8xf32> to vector<1x8xf32>
    %356 = vector.broadcast %355 : vector<1x8xf32> to vector<8x8xf32>
    %357 = arith.addf %353, %356 : vector<8x8xf32>
    %cst_232 = arith.constant dense<0.000000e+00> : vector<16x8xf32>
    %358 = tpu.matmul %343, %350, %cst_232 {dimension_numbers = #tpu.dot_dimension_numbers<[1], [1], [0], [0], [0, 0, 1, 0], [], []>} : vector<16x8xf32>, vector<8x8xf32>, vector<16x8xf32> -> vector<16x8xf32>
    %cst_233 = arith.constant 0.353553385 : f32
    %359 = vector.broadcast %cst_233 : f32 to vector<16x8xf32>
    %360 = arith.mulf %358, %359 : vector<16x8xf32>
    %361 = vector.broadcast %5 : vector<1x8xf32> to vector<16x8xf32>
    %362 = arith.addf %360, %361 : vector<16x8xf32>
    %cst_234 = arith.constant dense<0xFF800000> : vector<16xf32>
    %363 = vector.multi_reduction <maximumf>, %362, %cst_234 [1] : vector<16x8xf32> to vector<16xf32>
    %364 = vector.shape_cast %363 : vector<16xf32> to vector<16x1xf32>
    %365 = vector.broadcast %364 : vector<16x1xf32> to vector<16x8xf32>
    %366 = arith.subf %362, %365 : vector<16x8xf32>
    %367 = math.exp %366 : vector<16x8xf32>
    %cst_235 = arith.constant dense<0.000000e+00> : vector<16xf32>
    %368 = vector.multi_reduction <add>, %367, %cst_235 [1] : vector<16x8xf32> to vector<16xf32>
    %369 = vector.shape_cast %368 : vector<16xf32> to vector<16x1xf32>
    %370 = tpu.reciprocal %369 {approx = true} : vector<16x1xf32> -> vector<16x1xf32>
    %371 = vector.broadcast %370 : vector<16x1xf32> to vector<16x8xf32>
    %372 = arith.mulf %367, %371 : vector<16x8xf32>
    %cst_236 = arith.constant dense<0.000000e+00> : vector<16x8xf32>
    %373 = tpu.matmul %372, %357, %cst_236 {dimension_numbers = #tpu.dot_dimension_numbers<[1], [0], [0], [1], [0, 0, 1, 1], [], []>} : vector<16x8xf32>, vector<8x8xf32>, vector<16x8xf32> -> vector<16x8xf32>
    %c2_237 = arith.constant 2 : index
    %c0_238 = arith.constant 0 : index
    %c0_239 = arith.constant 0 : index
    %374 = vector.load %arg20[%c2_237, %c0_238, %c0_239] : memref<4x8x32xf32, #tpu.memory_space<vmem>>, vector<1x8x32xf32>
    %375 = vector.shape_cast %374 : vector<1x8x32xf32> to vector<8x32xf32>
    %cst_240 = arith.constant dense<0.000000e+00> : vector<16x32xf32>
    %376 = tpu.matmul %373, %375, %cst_240 {dimension_numbers = #tpu.dot_dimension_numbers<[1], [0], [0], [1], [0, 0, 1, 1], [], []>} : vector<16x8xf32>, vector<8x32xf32>, vector<16x32xf32> -> vector<16x32xf32>
    %377 = arith.addf %336, %376 : vector<16x32xf32>
    %c3_241 = arith.constant 3 : index
    %c0_242 = arith.constant 0 : index
    %c0_243 = arith.constant 0 : index
    %378 = vector.load %arg14[%c3_241, %c0_242, %c0_243] : memref<4x32x8xf32, #tpu.memory_space<vmem>>, vector<1x32x8xf32>
    %379 = vector.shape_cast %378 : vector<1x32x8xf32> to vector<32x8xf32>
    %cst_244 = arith.constant dense<0.000000e+00> : vector<16x8xf32>
    %380 = tpu.matmul %254, %379, %cst_244 {dimension_numbers = #tpu.dot_dimension_numbers<[1], [0], [0], [1], [0, 0, 1, 1], [], []>} : vector<16x32xf32>, vector<32x8xf32>, vector<16x8xf32> -> vector<16x8xf32>
    %c3_245 = arith.constant 3 : index
    %c0_246 = arith.constant 0 : index
    %c0_247 = arith.constant 0 : index
    %381 = vector.load %arg15[%c3_245, %c0_246, %c0_247] : memref<4x1x8xf32, #tpu.memory_space<vmem>>, vector<1x1x8xf32>
    %382 = vector.shape_cast %381 : vector<1x1x8xf32> to vector<1x8xf32>
    %383 = vector.broadcast %382 : vector<1x8xf32> to vector<16x8xf32>
    %384 = arith.addf %380, %383 : vector<16x8xf32>
    %c3_248 = arith.constant 3 : index
    %c0_249 = arith.constant 0 : index
    %c0_250 = arith.constant 0 : index
    %385 = vector.load %arg16[%c3_248, %c0_249, %c0_250] : memref<4x32x8xf32, #tpu.memory_space<vmem>>, vector<1x32x8xf32>
    %386 = vector.shape_cast %385 : vector<1x32x8xf32> to vector<32x8xf32>
    %cst_251 = arith.constant dense<0.000000e+00> : vector<8x8xf32>
    %387 = tpu.matmul %3, %386, %cst_251 {dimension_numbers = #tpu.dot_dimension_numbers<[1], [0], [0], [1], [0, 0, 1, 1], [], []>} : vector<8x32xf32>, vector<32x8xf32>, vector<8x8xf32> -> vector<8x8xf32>
    %c3_252 = arith.constant 3 : index
    %c0_253 = arith.constant 0 : index
    %c0_254 = arith.constant 0 : index
    %388 = vector.load %arg17[%c3_252, %c0_253, %c0_254] : memref<4x1x8xf32, #tpu.memory_space<vmem>>, vector<1x1x8xf32>
    %389 = vector.shape_cast %388 : vector<1x1x8xf32> to vector<1x8xf32>
    %390 = vector.broadcast %389 : vector<1x8xf32> to vector<8x8xf32>
    %391 = arith.addf %387, %390 : vector<8x8xf32>
    %c3_255 = arith.constant 3 : index
    %c0_256 = arith.constant 0 : index
    %c0_257 = arith.constant 0 : index
    %392 = vector.load %arg18[%c3_255, %c0_256, %c0_257] : memref<4x32x8xf32, #tpu.memory_space<vmem>>, vector<1x32x8xf32>
    %393 = vector.shape_cast %392 : vector<1x32x8xf32> to vector<32x8xf32>
    %cst_258 = arith.constant dense<0.000000e+00> : vector<8x8xf32>
    %394 = tpu.matmul %3, %393, %cst_258 {dimension_numbers = #tpu.dot_dimension_numbers<[1], [0], [0], [1], [0, 0, 1, 1], [], []>} : vector<8x32xf32>, vector<32x8xf32>, vector<8x8xf32> -> vector<8x8xf32>
    %c3_259 = arith.constant 3 : index
    %c0_260 = arith.constant 0 : index
    %c0_261 = arith.constant 0 : index
    %395 = vector.load %arg19[%c3_259, %c0_260, %c0_261] : memref<4x1x8xf32, #tpu.memory_space<vmem>>, vector<1x1x8xf32>
    %396 = vector.shape_cast %395 : vector<1x1x8xf32> to vector<1x8xf32>
    %397 = vector.broadcast %396 : vector<1x8xf32> to vector<8x8xf32>
    %398 = arith.addf %394, %397 : vector<8x8xf32>
    %cst_262 = arith.constant dense<0.000000e+00> : vector<16x8xf32>
    %399 = tpu.matmul %384, %391, %cst_262 {dimension_numbers = #tpu.dot_dimension_numbers<[1], [1], [0], [0], [0, 0, 1, 0], [], []>} : vector<16x8xf32>, vector<8x8xf32>, vector<16x8xf32> -> vector<16x8xf32>
    %cst_263 = arith.constant 0.353553385 : f32
    %400 = vector.broadcast %cst_263 : f32 to vector<16x8xf32>
    %401 = arith.mulf %399, %400 : vector<16x8xf32>
    %402 = vector.broadcast %5 : vector<1x8xf32> to vector<16x8xf32>
    %403 = arith.addf %401, %402 : vector<16x8xf32>
    %cst_264 = arith.constant dense<0xFF800000> : vector<16xf32>
    %404 = vector.multi_reduction <maximumf>, %403, %cst_264 [1] : vector<16x8xf32> to vector<16xf32>
    %405 = vector.shape_cast %404 : vector<16xf32> to vector<16x1xf32>
    %406 = vector.broadcast %405 : vector<16x1xf32> to vector<16x8xf32>
    %407 = arith.subf %403, %406 : vector<16x8xf32>
    %408 = math.exp %407 : vector<16x8xf32>
    %cst_265 = arith.constant dense<0.000000e+00> : vector<16xf32>
    %409 = vector.multi_reduction <add>, %408, %cst_265 [1] : vector<16x8xf32> to vector<16xf32>
    %410 = vector.shape_cast %409 : vector<16xf32> to vector<16x1xf32>
    %411 = tpu.reciprocal %410 {approx = true} : vector<16x1xf32> -> vector<16x1xf32>
    %412 = vector.broadcast %411 : vector<16x1xf32> to vector<16x8xf32>
    %413 = arith.mulf %408, %412 : vector<16x8xf32>
    %cst_266 = arith.constant dense<0.000000e+00> : vector<16x8xf32>
    %414 = tpu.matmul %413, %398, %cst_266 {dimension_numbers = #tpu.dot_dimension_numbers<[1], [0], [0], [1], [0, 0, 1, 1], [], []>} : vector<16x8xf32>, vector<8x8xf32>, vector<16x8xf32> -> vector<16x8xf32>
    %c3_267 = arith.constant 3 : index
    %c0_268 = arith.constant 0 : index
    %c0_269 = arith.constant 0 : index
    %415 = vector.load %arg20[%c3_267, %c0_268, %c0_269] : memref<4x8x32xf32, #tpu.memory_space<vmem>>, vector<1x8x32xf32>
    %416 = vector.shape_cast %415 : vector<1x8x32xf32> to vector<8x32xf32>
    %cst_270 = arith.constant dense<0.000000e+00> : vector<16x32xf32>
    %417 = tpu.matmul %414, %416, %cst_270 {dimension_numbers = #tpu.dot_dimension_numbers<[1], [0], [0], [1], [0, 0, 1, 1], [], []>} : vector<16x8xf32>, vector<8x32xf32>, vector<16x32xf32> -> vector<16x32xf32>
    %418 = arith.addf %377, %417 : vector<16x32xf32>
    %419 = vector.broadcast %255 : vector<1x32xf32> to vector<16x32xf32>
    %420 = arith.addf %418, %419 : vector<16x32xf32>
    %421 = arith.addf %254, %420 : vector<16x32xf32>
    %c0_271 = arith.constant 0 : index
    %c0_272 = arith.constant 0 : index
    %422 = vector.load %arg24[%c0_271, %c0_272] : memref<1x32xf32, #tpu.memory_space<vmem>>, vector<1x32xf32>
    %c0_273 = arith.constant 0 : index
    %c0_274 = arith.constant 0 : index
    %423 = vector.load %arg25[%c0_273, %c0_274] : memref<1x32xf32, #tpu.memory_space<vmem>>, vector<1x32xf32>
    %cst_275 = arith.constant dense<0.000000e+00> : vector<16xf32>
    %424 = vector.multi_reduction <add>, %421, %cst_275 [1] : vector<16x32xf32> to vector<16xf32>
    %425 = vector.shape_cast %424 : vector<16xf32> to vector<16x1xf32>
    %cst_276 = arith.constant 3.200000e+01 : f32
    %426 = vector.broadcast %cst_276 : f32 to vector<16x1xf32>
    %427 = arith.divf %425, %426 : vector<16x1xf32>
    %428 = vector.broadcast %427 : vector<16x1xf32> to vector<16x32xf32>
    %429 = arith.subf %421, %428 : vector<16x32xf32>
    %430 = arith.mulf %429, %429 : vector<16x32xf32>
    %cst_277 = arith.constant dense<0.000000e+00> : vector<16xf32>
    %431 = vector.multi_reduction <add>, %430, %cst_277 [1] : vector<16x32xf32> to vector<16xf32>
    %432 = vector.shape_cast %431 : vector<16xf32> to vector<16x1xf32>
    %cst_278 = arith.constant 3.100000e+01 : f32
    %433 = vector.broadcast %cst_278 : f32 to vector<16x1xf32>
    %434 = arith.divf %432, %433 : vector<16x1xf32>
    %435 = math.sqrt %434 : vector<16x1xf32>
    %436 = vector.broadcast %422 : vector<1x32xf32> to vector<16x32xf32>
    %437 = arith.mulf %436, %429 : vector<16x32xf32>
    %cst_279 = arith.constant 9.99999997E-7 : f32
    %438 = vector.broadcast %cst_279 : f32 to vector<16x1xf32>
    %439 = arith.addf %435, %438 : vector<16x1xf32>
    %440 = vector.broadcast %439 : vector<16x1xf32> to vector<16x32xf32>
    %441 = arith.divf %437, %440 : vector<16x32xf32>
    %442 = vector.broadcast %423 : vector<1x32xf32> to vector<16x32xf32>
    %443 = arith.addf %441, %442 : vector<16x32xf32>
    %c0_280 = arith.constant 0 : index
    %c0_281 = arith.constant 0 : index
    %444 = vector.load %arg26[%c0_280, %c0_281] : memref<32x64xf32, #tpu.memory_space<vmem>>, vector<32x64xf32>
    %cst_282 = arith.constant dense<0.000000e+00> : vector<16x64xf32>
    %445 = tpu.matmul %443, %444, %cst_282 {dimension_numbers = #tpu.dot_dimension_numbers<[1], [0], [0], [1], [0, 0, 1, 1], [], []>} : vector<16x32xf32>, vector<32x64xf32>, vector<16x64xf32> -> vector<16x64xf32>
    %c0_283 = arith.constant 0 : index
    %c0_284 = arith.constant 0 : index
    %446 = vector.load %arg27[%c0_283, %c0_284] : memref<1x64xf32, #tpu.memory_space<vmem>>, vector<1x64xf32>
    %447 = vector.broadcast %446 : vector<1x64xf32> to vector<16x64xf32>
    %448 = arith.addf %445, %447 : vector<16x64xf32>
    %cst_285 = arith.constant 0.000000e+00 : f32
    %449 = vector.broadcast %cst_285 : f32 to vector<16x64xf32>
    %450 = arith.maximumf %448, %449 : vector<16x64xf32>
    %c0_286 = arith.constant 0 : index
    %c0_287 = arith.constant 0 : index
    %451 = vector.load %arg28[%c0_286, %c0_287] : memref<64x32xf32, #tpu.memory_space<vmem>>, vector<64x32xf32>
    %cst_288 = arith.constant dense<0.000000e+00> : vector<16x32xf32>
    %452 = tpu.matmul %450, %451, %cst_288 {dimension_numbers = #tpu.dot_dimension_numbers<[1], [0], [0], [1], [0, 0, 1, 1], [], []>} : vector<16x64xf32>, vector<64x32xf32>, vector<16x32xf32> -> vector<16x32xf32>
    %c0_289 = arith.constant 0 : index
    %c0_290 = arith.constant 0 : index
    %453 = vector.load %arg29[%c0_289, %c0_290] : memref<1x32xf32, #tpu.memory_space<vmem>>, vector<1x32xf32>
    %454 = vector.broadcast %453 : vector<1x32xf32> to vector<16x32xf32>
    %455 = arith.addf %452, %454 : vector<16x32xf32>
    %456 = arith.addf %443, %455 : vector<16x32xf32>
    %c0_291 = arith.constant 0 : index
    %c0_292 = arith.constant 0 : index
    %457 = vector.load %arg30[%c0_291, %c0_292] : memref<1x32xf32, #tpu.memory_space<vmem>>, vector<1x32xf32>
    %c0_293 = arith.constant 0 : index
    %c0_294 = arith.constant 0 : index
    %458 = vector.load %arg31[%c0_293, %c0_294] : memref<1x32xf32, #tpu.memory_space<vmem>>, vector<1x32xf32>
    %cst_295 = arith.constant dense<0.000000e+00> : vector<16xf32>
    %459 = vector.multi_reduction <add>, %456, %cst_295 [1] : vector<16x32xf32> to vector<16xf32>
    %460 = vector.shape_cast %459 : vector<16xf32> to vector<16x1xf32>
    %cst_296 = arith.constant 3.200000e+01 : f32
    %461 = vector.broadcast %cst_296 : f32 to vector<16x1xf32>
    %462 = arith.divf %460, %461 : vector<16x1xf32>
    %463 = vector.broadcast %462 : vector<16x1xf32> to vector<16x32xf32>
    %464 = arith.subf %456, %463 : vector<16x32xf32>
    %465 = arith.mulf %464, %464 : vector<16x32xf32>
    %cst_297 = arith.constant dense<0.000000e+00> : vector<16xf32>
    %466 = vector.multi_reduction <add>, %465, %cst_297 [1] : vector<16x32xf32> to vector<16xf32>
    %467 = vector.shape_cast %466 : vector<16xf32> to vector<16x1xf32>
    %cst_298 = arith.constant 3.100000e+01 : f32
    %468 = vector.broadcast %cst_298 : f32 to vector<16x1xf32>
    %469 = arith.divf %467, %468 : vector<16x1xf32>
    %470 = math.sqrt %469 : vector<16x1xf32>
    %471 = vector.broadcast %457 : vector<1x32xf32> to vector<16x32xf32>
    %472 = arith.mulf %471, %464 : vector<16x32xf32>
    %cst_299 = arith.constant 9.99999997E-7 : f32
    %473 = vector.broadcast %cst_299 : f32 to vector<16x1xf32>
    %474 = arith.addf %470, %473 : vector<16x1xf32>
    %475 = vector.broadcast %474 : vector<16x1xf32> to vector<16x32xf32>
    %476 = arith.divf %472, %475 : vector<16x32xf32>
    %477 = vector.broadcast %458 : vector<1x32xf32> to vector<16x32xf32>
    %478 = arith.addf %476, %477 : vector<16x32xf32>
    %c0_300 = arith.constant 0 : index
    %c0_301 = arith.constant 0 : index
    %c0_302 = arith.constant 0 : index
    %479 = vector.load %arg32[%c0_300, %c0_301, %c0_302] : memref<1x16x32xf32, #tpu.memory_space<vmem>>, vector<1x16x32xf32>
    %480 = vector.shape_cast %479 : vector<1x16x32xf32> to vector<16x32xf32>
    %481 = vector.shape_cast %478 : vector<16x32xf32> to vector<1x16x32xf32>
    tpu.vector_store %arg32[%c0_300, %c0_301, %c0_302], %481 {strides = array<i32>} : memref<1x16x32xf32, #tpu.memory_space<vmem>>, vector<1x16x32xf32>,
    return
  }
  func.func @transform_0(%arg0: i32) -> (i32, i32) {
    %c0_i32 = arith.constant 0 : i32
    %c0_i32_0 = arith.constant 0 : i32
    %c0_i32_1 = arith.constant 0 : i32
    return %c0_i32, %c0_i32_0 : i32, i32
  }
  func.func @transform_1(%arg0: i32) -> (i32, i32, i32) {
    %c0_i32 = arith.constant 0 : i32
    %c0_i32_0 = arith.constant 0 : i32
    %c0_i32_1 = arith.constant 0 : i32
    return %arg0, %c0_i32, %c0_i32_0 : i32, i32, i32
  }
  func.func @transform_2(%arg0: i32) -> (i32, i32, i32) {
    %c0_i32 = arith.constant 0 : i32
    %c0_i32_0 = arith.constant 0 : i32
    %c0_i32_1 = arith.constant 0 : i32
    return %arg0, %c0_i32, %c0_i32_0 : i32, i32, i32
  }
  func.func @transform_3(%arg0: i32) -> (i32, i32, i32, i32) {
    %c0_i32 = arith.constant 0 : i32
    %c0_i32_0 = arith.constant 0 : i32
    %c0_i32_1 = arith.constant 0 : i32
    %c0_i32_2 = arith.constant 0 : i32
    return %arg0, %c0_i32, %c0_i32_0, %c0_i32_1 : i32, i32, i32, i32
  }
  func.func @transform_4(%arg0: i32) -> (i32, i32, i32) {
    %c0_i32 = arith.constant 0 : i32
    %c0_i32_0 = arith.constant 0 : i32
    %c0_i32_1 = arith.constant 0 : i32
    return %arg0, %c0_i32, %c0_i32_0 : i32, i32, i32
  }
  func.func @transform_5(%arg0: i32) -> (i32, i32, i32) {
    %c0_i32 = arith.constant 0 : i32
    %c0_i32_0 = arith.constant 0 : i32
    %c0_i32_1 = arith.constant 0 : i32
    %c0_i32_2 = arith.constant 0 : i32
    return %c0_i32, %c0_i32_0, %c0_i32_1 : i32, i32, i32
  }
  func.func @transform_6(%arg0: i32) -> (i32, i32, i32) {
    %c0_i32 = arith.constant 0 : i32
    %c0_i32_0 = arith.constant 0 : i32
    %c0_i32_1 = arith.constant 0 : i32
    %c0_i32_2 = arith.constant 0 : i32
    return %c0_i32, %c0_i32_0, %c0_i32_1 : i32, i32, i32
  }
  func.func @transform_7(%arg0: i32) -> (i32, i32, i32) {
    %c0_i32 = arith.constant 0 : i32
    %c0_i32_0 = arith.constant 0 : i32
    %c0_i32_1 = arith.constant 0 : i32
    %c0_i32_2 = arith.constant 0 : i32
    return %c0_i32, %c0_i32_0, %c0_i32_1 : i32, i32, i32
  }
  func.func @transform_8(%arg0: i32) -> (i32, i32, i32) {
    %c0_i32 = arith.constant 0 : i32
    %c0_i32_0 = arith.constant 0 : i32
    %c0_i32_1 = arith.constant 0 : i32
    %c0_i32_2 = arith.constant 0 : i32
    return %c0_i32, %c0_i32_0, %c0_i32_1 : i32, i32, i32
  }
  func.func @transform_9(%arg0: i32) -> (i32, i32, i32) {
    %c0_i32 = arith.constant 0 : i32
    %c0_i32_0 = arith.constant 0 : i32
    %c0_i32_1 = arith.constant 0 : i32
    %c0_i32_2 = arith.constant 0 : i32
    return %c0_i32, %c0_i32_0, %c0_i32_1 : i32, i32, i32
  }
  func.func @transform_10(%arg0: i32) -> (i32, i32, i32) {
    %c0_i32 = arith.constant 0 : i32
    %c0_i32_0 = arith.constant 0 : i32
    %c0_i32_1 = arith.constant 0 : i32
    %c0_i32_2 = arith.constant 0 : i32
    return %c0_i32, %c0_i32_0, %c0_i32_1 : i32, i32, i32
  }
  func.func @transform_11(%arg0: i32) -> (i32, i32, i32) {
    %c0_i32 = arith.constant 0 : i32
    %c0_i32_0 = arith.constant 0 : i32
    %c0_i32_1 = arith.constant 0 : i32
    %c0_i32_2 = arith.constant 0 : i32
    return %c0_i32, %c0_i32_0, %c0_i32_1 : i32, i32, i32
  }
  func.func @transform_12(%arg0: i32) -> (i32, i32) {
    %c0_i32 = arith.constant 0 : i32
    %c0_i32_0 = arith.constant 0 : i32
    %c0_i32_1 = arith.constant 0 : i32
    return %c0_i32, %c0_i32_0 : i32, i32
  }
  func.func @transform_13(%arg0: i32) -> (i32, i32, i32) {
    %c0_i32 = arith.constant 0 : i32
    %c0_i32_0 = arith.constant 0 : i32
    %c0_i32_1 = arith.constant 0 : i32
    %c0_i32_2 = arith.constant 0 : i32
    return %c0_i32, %c0_i32_0, %c0_i32_1 : i32, i32, i32
  }
  func.func @transform_14(%arg0: i32) -> (i32, i32, i32) {
    %c0_i32 = arith.constant 0 : i32
    %c0_i32_0 = arith.constant 0 : i32
    %c0_i32_1 = arith.constant 0 : i32
    %c0_i32_2 = arith.constant 0 : i32
    return %c0_i32, %c0_i32_0, %c0_i32_1 : i32, i32, i32
  }
  func.func @transform_15(%arg0: i32) -> (i32, i32, i32) {
    %c0_i32 = arith.constant 0 : i32
    %c0_i32_0 = arith.constant 0 : i32
    %c0_i32_1 = arith.constant 0 : i32
    %c0_i32_2 = arith.constant 0 : i32
    return %c0_i32, %c0_i32_0, %c0_i32_1 : i32, i32, i32
  }
  func.func @transform_16(%arg0: i32) -> (i32, i32, i32) {
    %c0_i32 = arith.constant 0 : i32
    %c0_i32_0 = arith.constant 0 : i32
    %c0_i32_1 = arith.constant 0 : i32
    %c0_i32_2 = arith.constant 0 : i32
    return %c0_i32, %c0_i32_0, %c0_i32_1 : i32, i32, i32
  }
  func.func @transform_17(%arg0: i32) -> (i32, i32, i32) {
    %c0_i32 = arith.constant 0 : i32
    %c0_i32_0 = arith.constant 0 : i32
    %c0_i32_1 = arith.constant 0 : i32
    %c0_i32_2 = arith.constant 0 : i32
    return %c0_i32, %c0_i32_0, %c0_i32_1 : i32, i32, i32
  }
  func.func @transform_18(%arg0: i32) -> (i32, i32, i32) {
    %c0_i32 = arith.constant 0 : i32
    %c0_i32_0 = arith.constant 0 : i32
    %c0_i32_1 = arith.constant 0 : i32
    %c0_i32_2 = arith.constant 0 : i32
    return %c0_i32, %c0_i32_0, %c0_i32_1 : i32, i32, i32
  }
  func.func @transform_19(%arg0: i32) -> (i32, i32, i32) {
    %c0_i32 = arith.constant 0 : i32
    %c0_i32_0 = arith.constant 0 : i32
    %c0_i32_1 = arith.constant 0 : i32
    %c0_i32_2 = arith.constant 0 : i32
    return %c0_i32, %c0_i32_0, %c0_i32_1 : i32, i32, i32
  }
  func.func @transform_20(%arg0: i32) -> (i32, i32) {
    %c0_i32 = arith.constant 0 : i32
    %c0_i32_0 = arith.constant 0 : i32
    %c0_i32_1 = arith.constant 0 : i32
    return %c0_i32, %c0_i32_0 : i32, i32
  }
  func.func @transform_21(%arg0: i32) -> (i32, i32) {
    %c0_i32 = arith.constant 0 : i32
    %c0_i32_0 = arith.constant 0 : i32
    %c0_i32_1 = arith.constant 0 : i32
    return %c0_i32, %c0_i32_0 : i32, i32
  }
  func.func @transform_22(%arg0: i32) -> (i32, i32) {
    %c0_i32 = arith.constant 0 : i32
    %c0_i32_0 = arith.constant 0 : i32
    %c0_i32_1 = arith.constant 0 : i32
    return %c0_i32, %c0_i32_0 : i32, i32
  }
  func.func @transform_23(%arg0: i32) -> (i32, i32) {
    %c0_i32 = arith.constant 0 : i32
    %c0_i32_0 = arith.constant 0 : i32
    %c0_i32_1 = arith.constant 0 : i32
    return %c0_i32, %c0_i32_0 : i32, i32
  }
  func.func @transform_24(%arg0: i32) -> (i32, i32) {
    %c0_i32 = arith.constant 0 : i32
    %c0_i32_0 = arith.constant 0 : i32
    %c0_i32_1 = arith.constant 0 : i32
    return %c0_i32, %c0_i32_0 : i32, i32
  }
  func.func @transform_25(%arg0: i32) -> (i32, i32) {
    %c0_i32 = arith.constant 0 : i32
    %c0_i32_0 = arith.constant 0 : i32
    %c0_i32_1 = arith.constant 0 : i32
    return %c0_i32, %c0_i32_0 : i32, i32
  }
  func.func @transform_26(%arg0: i32) -> (i32, i32) {
    %c0_i32 = arith.constant 0 : i32
    %c0_i32_0 = arith.constant 0 : i32
    %c0_i32_1 = arith.constant 0 : i32
    return %c0_i32, %c0_i32_0 : i32, i32
  }
  func.func @transform_27(%arg0: i32) -> (i32, i32) {
    %c0_i32 = arith.constant 0 : i32
    %c0_i32_0 = arith.constant 0 : i32
    %c0_i32_1 = arith.constant 0 : i32
    return %c0_i32, %c0_i32_0 : i32, i32
  }
  func.func @transform_28(%arg0: i32) -> (i32, i32) {
    %c0_i32 = arith.constant 0 : i32
    %c0_i32_0 = arith.constant 0 : i32
    %c0_i32_1 = arith.constant 0 : i32
    return %c0_i32, %c0_i32_0 : i32, i32
  }
  func.func @transform_29(%arg0: i32) -> (i32, i32) {
    %c0_i32 = arith.constant 0 : i32
    %c0_i32_0 = arith.constant 0 : i32
    %c0_i32_1 = arith.constant 0 : i32
    return %c0_i32, %c0_i32_0 : i32, i32
  }
  func.func @transform_30(%arg0: i32) -> (i32, i32) {
    %c0_i32 = arith.constant 0 : i32
    %c0_i32_0 = arith.constant 0 : i32
    %c0_i32_1 = arith.constant 0 : i32
    return %c0_i32, %c0_i32_0 : i32, i32
  }
  func.func @transform_31(%arg0: i32) -> (i32, i32, i32) {
    %c0_i32 = arith.constant 0 : i32
    %c0_i32_0 = arith.constant 0 : i32
    %c0_i32_1 = arith.constant 0 : i32
    return %arg0, %c0_i32, %c0_i32_0 : i32, i32, i32
  }
}

module attributes {stable_mosaic.version = 11 : i64} {
  func.func @kernel(%arg0: i32, %arg1: memref<2x2xf32, #tpu.memory_space<smem>>, %arg2: memref<1x16x32xf32, #tpu.memory_space<vmem>>, %arg3: memref<1x8x32xf32, #tpu.memory_space<vmem>>, %arg4: memref<1x2x16x16xf32, #tpu.memory_space<vmem>>, %arg5: memref<1x1x8xf32, #tpu.memory_space<vmem>>, %arg6: memref<4x32x8xf32, #tpu.memory_space<vmem>>, %arg7: memref<4x1x8xf32, #tpu.memory_space<vmem>>, %arg8: memref<4x32x8xf32, #tpu.memory_space<vmem>>, %arg9: memref<4x1x8xf32, #tpu.memory_space<vmem>>, %arg10: memref<4x32x8xf32, #tpu.memory_space<vmem>>, %arg11: memref<4x1x8xf32, #tpu.memory_space<vmem>>, %arg12: memref<4x8x32xf32, #tpu.memory_space<vmem>>, %arg13: memref<1x32xf32, #tpu.memory_space<vmem>>, %arg14: memref<4x32x8xf32, #tpu.memory_space<vmem>>, %arg15: memref<4x1x8xf32, #tpu.memory_space<vmem>>, %arg16: memref<4x32x8xf32, #tpu.memory_space<vmem>>, %arg17: memref<4x1x8xf32, #tpu.memory_space<vmem>>, %arg18: memref<4x32x8xf32, #tpu.memory_space<vmem>>, %arg19: memref<4x1x8xf32, #tpu.memory_space<vmem>>, %arg20: memref<4x8x32xf32, #tpu.memory_space<vmem>>, %arg21: memref<1x32xf32, #tpu.memory_space<vmem>>, %arg22: memref<1x32xf32, #tpu.memory_space<vmem>>, %arg23: memref<1x32xf32, #tpu.memory_space<vmem>>, %arg24: memref<1x32xf32, #tpu.memory_space<vmem>>, %arg25: memref<1x32xf32, #tpu.memory_space<vmem>>, %arg26: memref<32x64xf32, #tpu.memory_space<vmem>>, %arg27: memref<1x64xf32, #tpu.memory_space<vmem>>, %arg28: memref<64x32xf32, #tpu.memory_space<vmem>>, %arg29: memref<1x32xf32, #tpu.memory_space<vmem>>, %arg30: memref<1x32xf32, #tpu.memory_space<vmem>>, %arg31: memref<1x32xf32, #tpu.memory_space<vmem>>, %arg32: memref<1x16x32xf32, #tpu.memory_space<vmem>>) attributes {dimension_semantics = [#tpu.dimension_semantics<parallel>], iteration_bounds = array<i64: 2>, scalar_prefetch = 0 : i64, scratch_operands = 0 : i64, tpu.core_type = #tpu.core_type<tc>, window_params = [{transform_indices = @transform_0, window_bounds = array<i64: 2, 2>}, {transform_indices = @transform_1, window_bounds = array<i64: 1, 16, 32>}, {transform_indices = @transform_2, window_bounds = array<i64: 1, 8, 32>}, {transform_indices = @transform_3, window_bounds = array<i64: 1, 2, 16, 16>}, {transform_indices = @transform_4, window_bounds = array<i64: 1, 1, 8>}, {pipeline_mode = #tpu.pipeline_mode<synchronous>, transform_indices = @transform_5, window_bounds = array<i64: 4, 32, 8>}, {pipeline_mode = #tpu.pipeline_mode<synchronous>, transform_indices = @transform_6, window_bounds = array<i64: 4, 1, 8>}, {pipeline_mode = #tpu.pipeline_mode<synchronous>, transform_indices = @transform_7, window_bounds = array<i64: 4, 32, 8>}, {pipeline_mode = #tpu.pipeline_mode<synchronous>, transform_indices = @transform_8, window_bounds = array<i64: 4, 1, 8>}, {pipeline_mode = #tpu.pipeline_mode<synchronous>, transform_indices = @transform_9, window_bounds = array<i64: 4, 32, 8>}, {pipeline_mode = #tpu.pipeline_mode<synchronous>, transform_indices = @transform_10, window_bounds = array<i64: 4, 1, 8>}, {pipeline_mode = #tpu.pipeline_mode<synchronous>, transform_indices = @transform_11, window_bounds = array<i64: 4, 8, 32>}, {pipeline_mode = #tpu.pipeline_mode<synchronous>, transform_indices = @transform_12, window_bounds = array<i64: 1, 32>}, {pipeline_mode = #tpu.pipeline_mode<synchronous>, transform_indices = @transform_13, window_bounds = array<i64: 4, 32, 8>}, {pipeline_mode = #tpu.pipeline_mode<synchronous>, transform_indices = @transform_14, window_bounds = array<i64: 4, 1, 8>}, {pipeline_mode = #tpu.pipeline_mode<synchronous>, transform_indices = @transform_15, window_bounds = array<i64: 4, 32, 8>}, {pipeline_mode = #tpu.pipeline_mode<synchronous>, transform_indices = @transform_16, window_bounds = array<i64: 4, 1, 8>}, {pipeline_mode = #tpu.pipeline_mode<synchronous>, transform_indices = @transform_17, window_bounds = array<i64: 4, 32, 8>}, {pipeline_mode = #tpu.pipeline_mode<synchronous>, transform_indices = @transform_18, window_bounds = array<i64: 4, 1, 8>}, {pipeline_mode = #tpu.pipeline_mode<synchronous>, transform_indices = @transform_19, window_bounds = array<i64: 4, 8, 32>}, {pipeline_mode = #tpu.pipeline_mode<synchronous>, transform_indices = @transform_20, window_bounds = array<i64: 1, 32>}, {pipeline_mode = #tpu.pipeline_mode<synchronous>, transform_indices = @transform_21, window_bounds = array<i64: 1, 32>}, {pipeline_mode = #tpu.pipeline_mode<synchronous>, transform_indices = @transform_22, window_bounds = array<i64: 1, 32>}, {pipeline_mode = #tpu.pipeline_mode<synchronous>, transform_indices = @transform_23, window_bounds = array<i64: 1, 32>}, {pipeline_mode = #tpu.pipeline_mode<synchronous>, transform_indices = @transform_24, window_bounds = array<i64: 1, 32>}, {pipeline_mode = #tpu.pipeline_mode<synchronous>, transform_indices = @transform_25, window_bounds = array<i64: 32, 64>}, {pipeline_mode = #tpu.pipeline_mode<synchronous>, transform_indices = @transform_26, window_bounds = array<i64: 1, 64>}, {pipeline_mode = #tpu.pipeline_mode<synchronous>, transform_indices = @transform_27, window_bounds = array<i64: 64, 32>}, {pipeline_mode = #tpu.pipeline_mode<synchronous>, transform_indices = @transform_28, window_bounds = array<i64: 1, 32>}, {pipeline_mode = #tpu.pipeline_mode<synchronous>, transform_indices = @transform_29, window_bounds = array<i64: 1, 32>}, {pipeline_mode = #tpu.pipeline_mode<synchronous>, transform_indices = @transform_30, window_bounds = array<i64: 1, 32>}, {transform_indices = @transform_31, window_bounds = array<i64: 1, 16, 32>}]} {
    %c0 = arith.constant 0 : index
    %c0_0 = arith.constant 0 : index
    %c0_1 = arith.constant 0 : index
    %0 = vector.load %arg2[%c0, %c0_0, %c0_1] : memref<1x16x32xf32, #tpu.memory_space<vmem>>, vector<1x16x32xf32>
    %1 = vector.shape_cast %0 : vector<1x16x32xf32> to vector<16x32xf32>
    %c0_2 = arith.constant 0 : index
    %c0_3 = arith.constant 0 : index
    %c0_4 = arith.constant 0 : index
    %2 = vector.load %arg3[%c0_2, %c0_3, %c0_4] : memref<1x8x32xf32, #tpu.memory_space<vmem>>, vector<1x8x32xf32>
    %3 = vector.shape_cast %2 : vector<1x8x32xf32> to vector<8x32xf32>
    %c0_5 = arith.constant 0 : index
    %c0_6 = arith.constant 0 : index
    %c0_7 = arith.constant 0 : index
    %4 = vector.load %arg5[%c0_5, %c0_6, %c0_7] : memref<1x1x8xf32, #tpu.memory_space<vmem>>, vector<1x1x8xf32>
    %5 = vector.shape_cast %4 : vector<1x1x8xf32> to vector<1x8xf32>
    %c0_8 = arith.constant 0 : index
    %c0_9 = arith.constant 0 : index
    %c0_10 = arith.constant 0 : index
    %c0_11 = arith.constant 0 : index
    %6 = vector.load %arg4[%c0_8, %c0_9, %c0_10, %c0_11] : memref<1x2x16x16xf32, #tpu.memory_space<vmem>>, vector<1x1x16x16xf32>
    %7 = vector.shape_cast %6 : vector<1x1x16x16xf32> to vector<16x16xf32>
    %c0_12 = arith.constant 0 : index
    %c1 = arith.constant 1 : index
    %c0_13 = arith.constant 0 : index
    %c0_14 = arith.constant 0 : index
    %8 = vector.load %arg4[%c0_12, %c1, %c0_13, %c0_14] : memref<1x2x16x16xf32, #tpu.memory_space<vmem>>, vector<1x1x16x16xf32>
    %9 = vector.shape_cast %8 : vector<1x1x16x16xf32> to vector<16x16xf32>
    %10 = arith.index_cast %arg0 : i32 to index
    %c0_15 = arith.constant 0 : index
    %11 = memref.load %arg1[%10, %c0_15] : memref<2x2xf32, #tpu.memory_space<smem>>
    %12 = arith.index_cast %arg0 : i32 to index
    %c1_16 = arith.constant 1 : index
    %13 = memref.load %arg1[%12, %c1_16] : memref<2x2xf32, #tpu.memory_space<smem>>
    %c0_17 = arith.constant 0 : index
    %c0_18 = arith.constant 0 : index
    %c0_19 = arith.constant 0 : index
    %14 = vector.load %arg6[%c0_17, %c0_18, %c0_19] : memref<4x32x8xf32, #tpu.memory_space<vmem>>, vector<1x32x8xf32>
    %15 = vector.shape_cast %14 : vector<1x32x8xf32> to vector<32x8xf32>
    %cst = arith.constant dense<0.000000e+00> : vector<16x8xf32>
    %16 = tpu.matmul %1, %15, %cst {dimension_numbers = #tpu.dot_dimension_numbers<[1], [0], [0], [1], [0, 0, 1, 1], [], []>} : vector<16x32xf32>, vector<32x8xf32>, vector<16x8xf32> -> vector<16x8xf32>
    %c0_20 = arith.constant 0 : index
    %c0_21 = arith.constant 0 : index
    %c0_22 = arith.constant 0 : index
    %17 = vector.load %arg7[%c0_20, %c0_21, %c0_22] : memref<4x1x8xf32, #tpu.memory_space<vmem>>, vector<1x1x8xf32>
    %18 = vector.shape_cast %17 : vector<1x1x8xf32> to vector<1x8xf32>
    %19 = vector.broadcast %18 : vector<1x8xf32> to vector<16x8xf32>
    %20 = arith.addf %16, %19 : vector<16x8xf32>
    %c0_23 = arith.constant 0 : index
    %c0_24 = arith.constant 0 : index
    %c0_25 = arith.constant 0 : index
    %21 = vector.load %arg8[%c0_23, %c0_24, %c0_25] : memref<4x32x8xf32, #tpu.memory_space<vmem>>, vector<1x32x8xf32>
    %22 = vector.shape_cast %21 : vector<1x32x8xf32> to vector<32x8xf32>
    %cst_26 = arith.constant dense<0.000000e+00> : vector<16x8xf32>
    %23 = tpu.matmul %1, %22, %cst_26 {dimension_numbers = #tpu.dot_dimension_numbers<[1], [0], [0], [1], [0, 0, 1, 1], [], []>} : vector<16x32xf32>, vector<32x8xf32>, vector<16x8xf32> -> vector<16x8xf32>
    %c0_27 = arith.constant 0 : index
    %c0_28 = arith.constant 0 : index
    %c0_29 = arith.constant 0 : index
    %24 = vector.load %arg9[%c0_27, %c0_28, %c0_29] : memref<4x1x8xf32, #tpu.memory_space<vmem>>, vector<1x1x8xf32>
    %25 = vector.shape_cast %24 : vector<1x1x8xf32> to vector<1x8xf32>
    %26 = vector.broadcast %25 : vector<1x8xf32> to vector<16x8xf32>
    %27 = arith.addf %23, %26 : vector<16x8xf32>
    %c0_30 = arith.constant 0 : index
    %c0_31 = arith.constant 0 : index
    %c0_32 = arith.constant 0 : index
    %28 = vector.load %arg10[%c0_30, %c0_31, %c0_32] : memref<4x32x8xf32, #tpu.memory_space<vmem>>, vector<1x32x8xf32>
    %29 = vector.shape_cast %28 : vector<1x32x8xf32> to vector<32x8xf32>
    %cst_33 = arith.constant dense<0.000000e+00> : vector<16x8xf32>
    %30 = tpu.matmul %1, %29, %cst_33 {dimension_numbers = #tpu.dot_dimension_numbers<[1], [0], [0], [1], [0, 0, 1, 1], [], []>} : vector<16x32xf32>, vector<32x8xf32>, vector<16x8xf32> -> vector<16x8xf32>
    %c0_34 = arith.constant 0 : index
    %c0_35 = arith.constant 0 : index
    %c0_36 = arith.constant 0 : index
    %31 = vector.load %arg11[%c0_34, %c0_35, %c0_36] : memref<4x1x8xf32, #tpu.memory_space<vmem>>, vector<1x1x8xf32>
    %32 = vector.shape_cast %31 : vector<1x1x8xf32> to vector<1x8xf32>
    %33 = vector.broadcast %32 : vector<1x8xf32> to vector<16x8xf32>
    %34 = arith.addf %30, %33 : vector<16x8xf32>
    %cst_37 = arith.constant dense<0.000000e+00> : vector<16x16xf32>
    %35 = tpu.matmul %20, %27, %cst_37 {dimension_numbers = #tpu.dot_dimension_numbers<[1], [1], [0], [0], [0, 0, 1, 0], [], []>} : vector<16x8xf32>, vector<16x8xf32>, vector<16x16xf32> -> vector<16x16xf32>
    %cst_38 = arith.constant 0.353553385 : f32
    %36 = vector.broadcast %cst_38 : f32 to vector<16x16xf32>
    %37 = arith.mulf %35, %36 : vector<16x16xf32>
    %cst_39 = arith.constant dense<0xFF800000> : vector<16xf32>
    %38 = vector.multi_reduction <maximumf>, %37, %cst_39 [1] : vector<16x16xf32> to vector<16xf32>
    %39 = vector.shape_cast %38 : vector<16xf32> to vector<16x1xf32>
    %40 = arith.addf %37, %7 : vector<16x16xf32>
    %41 = vector.broadcast %39 : vector<16x1xf32> to vector<16x16xf32>
    %42 = arith.subf %40, %41 : vector<16x16xf32>
    %43 = math.exp %42 : vector<16x16xf32>
    %cst_40 = arith.constant dense<0.000000e+00> : vector<16xf32>
    %44 = vector.multi_reduction <add>, %43, %cst_40 [1] : vector<16x16xf32> to vector<16xf32>
    %45 = vector.shape_cast %44 : vector<16xf32> to vector<16x1xf32>
    %46 = tpu.reciprocal %45 {approx = true} : vector<16x1xf32> -> vector<16x1xf32>
    %47 = vector.broadcast %46 : vector<16x1xf32> to vector<16x16xf32>
    %48 = arith.mulf %43, %47 : vector<16x16xf32>
    %49 = vector.broadcast %11 : f32 to vector<16x16xf32>
    %50 = arith.mulf %49, %48 : vector<16x16xf32>
    %51 = arith.addf %37, %9 : vector<16x16xf32>
    %52 = vector.broadcast %39 : vector<16x1xf32> to vector<16x16xf32>
    %53 = arith.subf %51, %52 : vector<16x16xf32>
    %54 = math.exp %53 : vector<16x16xf32>
    %cst_41 = arith.constant dense<0.000000e+00> : vector<16xf32>
    %55 = vector.multi_reduction <add>, %54, %cst_41 [1] : vector<16x16xf32> to vector<16xf32>
    %56 = vector.shape_cast %55 : vector<16xf32> to vector<16x1xf32>
    %57 = tpu.reciprocal %56 {approx = true} : vector<16x1xf32> -> vector<16x1xf32>
    %58 = vector.broadcast %57 : vector<16x1xf32> to vector<16x16xf32>
    %59 = arith.mulf %54, %58 : vector<16x16xf32>
    %60 = vector.broadcast %13 : f32 to vector<16x16xf32>
    %61 = arith.mulf %60, %59 : vector<16x16xf32>
    %62 = arith.addf %50, %61 : vector<16x16xf32>
    %cst_42 = arith.constant dense<0.000000e+00> : vector<16x8xf32>
    %63 = tpu.matmul %62, %34, %cst_42 {dimension_numbers = #tpu.dot_dimension_numbers<[1], [0], [0], [1], [0, 0, 1, 1], [], []>} : vector<16x16xf32>, vector<16x8xf32>, vector<16x8xf32> -> vector<16x8xf32>
    %c0_43 = arith.constant 0 : index
    %c0_44 = arith.constant 0 : index
    %c0_45 = arith.constant 0 : index
    %64 = vector.load %arg12[%c0_43, %c0_44, %c0_45] : memref<4x8x32xf32, #tpu.memory_space<vmem>>, vector<1x8x32xf32>
    %65 = vector.shape_cast %64 : vector<1x8x32xf32> to vector<8x32xf32>
    %cst_46 = arith.constant dense<0.000000e+00> : vector<16x32xf32>
    %66 = tpu.matmul %63, %65, %cst_46 {dimension_numbers = #tpu.dot_dimension_numbers<[1], [0], [0], [1], [0, 0, 1, 1], [], []>} : vector<16x8xf32>, vector<8x32xf32>, vector<16x32xf32> -> vector<16x32xf32>
    %c1_47 = arith.constant 1 : index
    %c0_48 = arith.constant 0 : index
    %c0_49 = arith.constant 0 : index
    %67 = vector.load %arg6[%c1_47, %c0_48, %c0_49] : memref<4x32x8xf32, #tpu.memory_space<vmem>>, vector<1x32x8xf32>
    %68 = vector.shape_cast %67 : vector<1x32x8xf32> to vector<32x8xf32>
    %cst_50 = arith.constant dense<0.000000e+00> : vector<16x8xf32>
    %69 = tpu.matmul %1, %68, %cst_50 {dimension_numbers = #tpu.dot_dimension_numbers<[1], [0], [0], [1], [0, 0, 1, 1], [], []>} : vector<16x32xf32>, vector<32x8xf32>, vector<16x8xf32> -> vector<16x8xf32>
    %c1_51 = arith.constant 1 : index
    %c0_52 = arith.constant 0 : index
    %c0_53 = arith.constant 0 : index
    %70 = vector.load %arg7[%c1_51, %c0_52, %c0_53] : memref<4x1x8xf32, #tpu.memory_space<vmem>>, vector<1x1x8xf32>
    %71 = vector.shape_cast %70 : vector<1x1x8xf32> to vector<1x8xf32>
    %72 = vector.broadcast %71 : vector<1x8xf32> to vector<16x8xf32>
    %73 = arith.addf %69, %72 : vector<16x8xf32>
    %c1_54 = arith.constant 1 : index
    %c0_55 = arith.constant 0 : index
    %c0_56 = arith.constant 0 : index
    %74 = vector.load %arg8[%c1_54, %c0_55, %c0_56] : memref<4x32x8xf32, #tpu.memory_space<vmem>>, vector<1x32x8xf32>
    %75 = vector.shape_cast %74 : vector<1x32x8xf32> to vector<32x8xf32>
    %cst_57 = arith.constant dense<0.000000e+00> : vector<16x8xf32>
    %76 = tpu.matmul %1, %75, %cst_57 {dimension_numbers = #tpu.dot_dimension_numbers<[1], [0], [0], [1], [0, 0, 1, 1], [], []>} : vector<16x32xf32>, vector<32x8xf32>, vector<16x8xf32> -> vector<16x8xf32>
    %c1_58 = arith.constant 1 : index
    %c0_59 = arith.constant 0 : index
    %c0_60 = arith.constant 0 : index
    %77 = vector.load %arg9[%c1_58, %c0_59, %c0_60] : memref<4x1x8xf32, #tpu.memory_space<vmem>>, vector<1x1x8xf32>
    %78 = vector.shape_cast %77 : vector<1x1x8xf32> to vector<1x8xf32>
    %79 = vector.broadcast %78 : vector<1x8xf32> to vector<16x8xf32>
    %80 = arith.addf %76, %79 : vector<16x8xf32>
    %c1_61 = arith.constant 1 : index
    %c0_62 = arith.constant 0 : index
    %c0_63 = arith.constant 0 : index
    %81 = vector.load %arg10[%c1_61, %c0_62, %c0_63] : memref<4x32x8xf32, #tpu.memory_space<vmem>>, vector<1x32x8xf32>
    %82 = vector.shape_cast %81 : vector<1x32x8xf32> to vector<32x8xf32>
    %cst_64 = arith.constant dense<0.000000e+00> : vector<16x8xf32>
    %83 = tpu.matmul %1, %82, %cst_64 {dimension_numbers = #tpu.dot_dimension_numbers<[1], [0], [0], [1], [0, 0, 1, 1], [], []>} : vector<16x32xf32>, vector<32x8xf32>, vector<16x8xf32> -> vector<16x8xf32>
    %c1_65 = arith.constant 1 : index
    %c0_66 = arith.constant 0 : index
    %c0_67 = arith.constant 0 : index
    %84 = vector.load %arg11[%c1_65, %c0_66, %c0_67] : memref<4x1x8xf32, #tpu.memory_space<vmem>>, vector<1x1x8xf32>
    %85 = vector.shape_cast %84 : vector<1x1x8xf32> to vector<1x8xf32>
    %86 = vector.broadcast %85 : vector<1x8xf32> to vector<16x8xf32>
    %87 = arith.addf %83, %86 : vector<16x8xf32>
    %cst_68 = arith.constant dense<0.000000e+00> : vector<16x16xf32>
    %88 = tpu.matmul %73, %80, %cst_68 {dimension_numbers = #tpu.dot_dimension_numbers<[1], [1], [0], [0], [0, 0, 1, 0], [], []>} : vector<16x8xf32>, vector<16x8xf32>, vector<16x16xf32> -> vector<16x16xf32>
    %cst_69 = arith.constant 0.353553385 : f32
    %89 = vector.broadcast %cst_69 : f32 to vector<16x16xf32>
    %90 = arith.mulf %88, %89 : vector<16x16xf32>
    %cst_70 = arith.constant dense<0xFF800000> : vector<16xf32>
    %91 = vector.multi_reduction <maximumf>, %90, %cst_70 [1] : vector<16x16xf32> to vector<16xf32>
    %92 = vector.shape_cast %91 : vector<16xf32> to vector<16x1xf32>
    %93 = arith.addf %90, %7 : vector<16x16xf32>
    %94 = vector.broadcast %92 : vector<16x1xf32> to vector<16x16xf32>
    %95 = arith.subf %93, %94 : vector<16x16xf32>
    %96 = math.exp %95 : vector<16x16xf32>
    %cst_71 = arith.constant dense<0.000000e+00> : vector<16xf32>
    %97 = vector.multi_reduction <add>, %96, %cst_71 [1] : vector<16x16xf32> to vector<16xf32>
    %98 = vector.shape_cast %97 : vector<16xf32> to vector<16x1xf32>
    %99 = tpu.reciprocal %98 {approx = true} : vector<16x1xf32> -> vector<16x1xf32>
    %100 = vector.broadcast %99 : vector<16x1xf32> to vector<16x16xf32>
    %101 = arith.mulf %96, %100 : vector<16x16xf32>
    %102 = vector.broadcast %11 : f32 to vector<16x16xf32>
    %103 = arith.mulf %102, %101 : vector<16x16xf32>
    %104 = arith.addf %90, %9 : vector<16x16xf32>
    %105 = vector.broadcast %92 : vector<16x1xf32> to vector<16x16xf32>
    %106 = arith.subf %104, %105 : vector<16x16xf32>
    %107 = math.exp %106 : vector<16x16xf32>
    %cst_72 = arith.constant dense<0.000000e+00> : vector<16xf32>
    %108 = vector.multi_reduction <add>, %107, %cst_72 [1] : vector<16x16xf32> to vector<16xf32>
    %109 = vector.shape_cast %108 : vector<16xf32> to vector<16x1xf32>
    %110 = tpu.reciprocal %109 {approx = true} : vector<16x1xf32> -> vector<16x1xf32>
    %111 = vector.broadcast %110 : vector<16x1xf32> to vector<16x16xf32>
    %112 = arith.mulf %107, %111 : vector<16x16xf32>
    %113 = vector.broadcast %13 : f32 to vector<16x16xf32>
    %114 = arith.mulf %113, %112 : vector<16x16xf32>
    %115 = arith.addf %103, %114 : vector<16x16xf32>
    %cst_73 = arith.constant dense<0.000000e+00> : vector<16x8xf32>
    %116 = tpu.matmul %115, %87, %cst_73 {dimension_numbers = #tpu.dot_dimension_numbers<[1], [0], [0], [1], [0, 0, 1, 1], [], []>} : vector<16x16xf32>, vector<16x8xf32>, vector<16x8xf32> -> vector<16x8xf32>
    %c1_74 = arith.constant 1 : index
    %c0_75 = arith.constant 0 : index
    %c0_76 = arith.constant 0 : index
    %117 = vector.load %arg12[%c1_74, %c0_75, %c0_76] : memref<4x8x32xf32, #tpu.memory_space<vmem>>, vector<1x8x32xf32>
    %118 = vector.shape_cast %117 : vector<1x8x32xf32> to vector<8x32xf32>
    %cst_77 = arith.constant dense<0.000000e+00> : vector<16x32xf32>
    %119 = tpu.matmul %116, %118, %cst_77 {dimension_numbers = #tpu.dot_dimension_numbers<[1], [0], [0], [1], [0, 0, 1, 1], [], []>} : vector<16x8xf32>, vector<8x32xf32>, vector<16x32xf32> -> vector<16x32xf32>
    %120 = arith.addf %66, %119 : vector<16x32xf32>
    %c2 = arith.constant 2 : index
    %c0_78 = arith.constant 0 : index
    %c0_79 = arith.constant 0 : index
    %121 = vector.load %arg6[%c2, %c0_78, %c0_79] : memref<4x32x8xf32, #tpu.memory_space<vmem>>, vector<1x32x8xf32>
    %122 = vector.shape_cast %121 : vector<1x32x8xf32> to vector<32x8xf32>
    %cst_80 = arith.constant dense<0.000000e+00> : vector<16x8xf32>
    %123 = tpu.matmul %1, %122, %cst_80 {dimension_numbers = #tpu.dot_dimension_numbers<[1], [0], [0], [1], [0, 0, 1, 1], [], []>} : vector<16x32xf32>, vector<32x8xf32>, vector<16x8xf32> -> vector<16x8xf32>
    %c2_81 = arith.constant 2 : index
    %c0_82 = arith.constant 0 : index
    %c0_83 = arith.constant 0 : index
    %124 = vector.load %arg7[%c2_81, %c0_82, %c0_83] : memref<4x1x8xf32, #tpu.memory_space<vmem>>, vector<1x1x8xf32>
    %125 = vector.shape_cast %124 : vector<1x1x8xf32> to vector<1x8xf32>
    %126 = vector.broadcast %125 : vector<1x8xf32> to vector<16x8xf32>
    %127 = arith.addf %123, %126 : vector<16x8xf32>
    %c2_84 = arith.constant 2 : index
    %c0_85 = arith.constant 0 : index
    %c0_86 = arith.constant 0 : index
    %128 = vector.load %arg8[%c2_84, %c0_85, %c0_86] : memref<4x32x8xf32, #tpu.memory_space<vmem>>, vector<1x32x8xf32>
    %129 = vector.shape_cast %128 : vector<1x32x8xf32> to vector<32x8xf32>
    %cst_87 = arith.constant dense<0.000000e+00> : vector<16x8xf32>
    %130 = tpu.matmul %1, %129, %cst_87 {dimension_numbers = #tpu.dot_dimension_numbers<[1], [0], [0], [1], [0, 0, 1, 1], [], []>} : vector<16x32xf32>, vector<32x8xf32>, vector<16x8xf32> -> vector<16x8xf32>
    %c2_88 = arith.constant 2 : index
    %c0_89 = arith.constant 0 : index
    %c0_90 = arith.constant 0 : index
    %131 = vector.load %arg9[%c2_88, %c0_89, %c0_90] : memref<4x1x8xf32, #tpu.memory_space<vmem>>, vector<1x1x8xf32>
    %132 = vector.shape_cast %131 : vector<1x1x8xf32> to vector<1x8xf32>
    %133 = vector.broadcast %132 : vector<1x8xf32> to vector<16x8xf32>
    %134 = arith.addf %130, %133 : vector<16x8xf32>
    %c2_91 = arith.constant 2 : index
    %c0_92 = arith.constant 0 : index
    %c0_93 = arith.constant 0 : index
    %135 = vector.load %arg10[%c2_91, %c0_92, %c0_93] : memref<4x32x8xf32, #tpu.memory_space<vmem>>, vector<1x32x8xf32>
    %136 = vector.shape_cast %135 : vector<1x32x8xf32> to vector<32x8xf32>
    %cst_94 = arith.constant dense<0.000000e+00> : vector<16x8xf32>
    %137 = tpu.matmul %1, %136, %cst_94 {dimension_numbers = #tpu.dot_dimension_numbers<[1], [0], [0], [1], [0, 0, 1, 1], [], []>} : vector<16x32xf32>, vector<32x8xf32>, vector<16x8xf32> -> vector<16x8xf32>
    %c2_95 = arith.constant 2 : index
    %c0_96 = arith.constant 0 : index
    %c0_97 = arith.constant 0 : index
    %138 = vector.load %arg11[%c2_95, %c0_96, %c0_97] : memref<4x1x8xf32, #tpu.memory_space<vmem>>, vector<1x1x8xf32>
    %139 = vector.shape_cast %138 : vector<1x1x8xf32> to vector<1x8xf32>
    %140 = vector.broadcast %139 : vector<1x8xf32> to vector<16x8xf32>
    %141 = arith.addf %137, %140 : vector<16x8xf32>
    %cst_98 = arith.constant dense<0.000000e+00> : vector<16x16xf32>
    %142 = tpu.matmul %127, %134, %cst_98 {dimension_numbers = #tpu.dot_dimension_numbers<[1], [1], [0], [0], [0, 0, 1, 0], [], []>} : vector<16x8xf32>, vector<16x8xf32>, vector<16x16xf32> -> vector<16x16xf32>
    %cst_99 = arith.constant 0.353553385 : f32
    %143 = vector.broadcast %cst_99 : f32 to vector<16x16xf32>
    %144 = arith.mulf %142, %143 : vector<16x16xf32>
    %cst_100 = arith.constant dense<0xFF800000> : vector<16xf32>
    %145 = vector.multi_reduction <maximumf>, %144, %cst_100 [1] : vector<16x16xf32> to vector<16xf32>
    %146 = vector.shape_cast %145 : vector<16xf32> to vector<16x1xf32>
    %147 = arith.addf %144, %7 : vector<16x16xf32>
    %148 = vector.broadcast %146 : vector<16x1xf32> to vector<16x16xf32>
    %149 = arith.subf %147, %148 : vector<16x16xf32>
    %150 = math.exp %149 : vector<16x16xf32>
    %cst_101 = arith.constant dense<0.000000e+00> : vector<16xf32>
    %151 = vector.multi_reduction <add>, %150, %cst_101 [1] : vector<16x16xf32> to vector<16xf32>
    %152 = vector.shape_cast %151 : vector<16xf32> to vector<16x1xf32>
    %153 = tpu.reciprocal %152 {approx = true} : vector<16x1xf32> -> vector<16x1xf32>
    %154 = vector.broadcast %153 : vector<16x1xf32> to vector<16x16xf32>
    %155 = arith.mulf %150, %154 : vector<16x16xf32>
    %156 = vector.broadcast %11 : f32 to vector<16x16xf32>
    %157 = arith.mulf %156, %155 : vector<16x16xf32>
    %158 = arith.addf %144, %9 : vector<16x16xf32>
    %159 = vector.broadcast %146 : vector<16x1xf32> to vector<16x16xf32>
    %160 = arith.subf %158, %159 : vector<16x16xf32>
    %161 = math.exp %160 : vector<16x16xf32>
    %cst_102 = arith.constant dense<0.000000e+00> : vector<16xf32>
    %162 = vector.multi_reduction <add>, %161, %cst_102 [1] : vector<16x16xf32> to vector<16xf32>
    %163 = vector.shape_cast %162 : vector<16xf32> to vector<16x1xf32>
    %164 = tpu.reciprocal %163 {approx = true} : vector<16x1xf32> -> vector<16x1xf32>
    %165 = vector.broadcast %164 : vector<16x1xf32> to vector<16x16xf32>
    %166 = arith.mulf %161, %165 : vector<16x16xf32>
    %167 = vector.broadcast %13 : f32 to vector<16x16xf32>
    %168 = arith.mulf %167, %166 : vector<16x16xf32>
    %169 = arith.addf %157, %168 : vector<16x16xf32>
    %cst_103 = arith.constant dense<0.000000e+00> : vector<16x8xf32>
    %170 = tpu.matmul %169, %141, %cst_103 {dimension_numbers = #tpu.dot_dimension_numbers<[1], [0], [0], [1], [0, 0, 1, 1], [], []>} : vector<16x16xf32>, vector<16x8xf32>, vector<16x8xf32> -> vector<16x8xf32>
    %c2_104 = arith.constant 2 : index
    %c0_105 = arith.constant 0 : index
    %c0_106 = arith.constant 0 : index
    %171 = vector.load %arg12[%c2_104, %c0_105, %c0_106] : memref<4x8x32xf32, #tpu.memory_space<vmem>>, vector<1x8x32xf32>
    %172 = vector.shape_cast %171 : vector<1x8x32xf32> to vector<8x32xf32>
    %cst_107 = arith.constant dense<0.000000e+00> : vector<16x32xf32>
    %173 = tpu.matmul %170, %172, %cst_107 {dimension_numbers = #tpu.dot_dimension_numbers<[1], [0], [0], [1], [0, 0, 1, 1], [], []>} : vector<16x8xf32>, vector<8x32xf32>, vector<16x32xf32> -> vector<16x32xf32>
    %174 = arith.addf %120, %173 : vector<16x32xf32>
    %c3 = arith.constant 3 : index
    %c0_108 = arith.constant 0 : index
    %c0_109 = arith.constant 0 : index
    %175 = vector.load %arg6[%c3, %c0_108, %c0_109] : memref<4x32x8xf32, #tpu.memory_space<vmem>>, vector<1x32x8xf32>
    %176 = vector.shape_cast %175 : vector<1x32x8xf32> to vector<32x8xf32>
    %cst_110 = arith.constant dense<0.000000e+00> : vector<16x8xf32>
    %177 = tpu.matmul %1, %176, %cst_110 {dimension_numbers = #tpu.dot_dimension_numbers<[1], [0], [0], [1], [0, 0, 1, 1], [], []>} : vector<16x32xf32>, vector<32x8xf32>, vector<16x8xf32> -> vector<16x8xf32>
    %c3_111 = arith.constant 3 : index
    %c0_112 = arith.constant 0 : index
    %c0_113 = arith.constant 0 : index
    %178 = vector.load %arg7[%c3_111, %c0_112, %c0_113] : memref<4x1x8xf32, #tpu.memory_space<vmem>>, vector<1x1x8xf32>
    %179 = vector.shape_cast %178 : vector<1x1x8xf32> to vector<1x8xf32>
    %180 = vector.broadcast %179 : vector<1x8xf32> to vector<16x8xf32>
    %181 = arith.addf %177, %180 : vector<16x8xf32>
    %c3_114 = arith.constant 3 : index
    %c0_115 = arith.constant 0 : index
    %c0_116 = arith.constant 0 : index
    %182 = vector.load %arg8[%c3_114, %c0_115, %c0_116] : memref<4x32x8xf32, #tpu.memory_space<vmem>>, vector<1x32x8xf32>
    %183 = vector.shape_cast %182 : vector<1x32x8xf32> to vector<32x8xf32>
    %cst_117 = arith.constant dense<0.000000e+00> : vector<16x8xf32>
    %184 = tpu.matmul %1, %183, %cst_117 {dimension_numbers = #tpu.dot_dimension_numbers<[1], [0], [0], [1], [0, 0, 1, 1], [], []>} : vector<16x32xf32>, vector<32x8xf32>, vector<16x8xf32> -> vector<16x8xf32>
    %c3_118 = arith.constant 3 : index
    %c0_119 = arith.constant 0 : index
    %c0_120 = arith.constant 0 : index
    %185 = vector.load %arg9[%c3_118, %c0_119, %c0_120] : memref<4x1x8xf32, #tpu.memory_space<vmem>>, vector<1x1x8xf32>
    %186 = vector.shape_cast %185 : vector<1x1x8xf32> to vector<1x8xf32>
    %187 = vector.broadcast %186 : vector<1x8xf32> to vector<16x8xf32>
    %188 = arith.addf %184, %187 : vector<16x8xf32>
    %c3_121 = arith.constant 3 : index
    %c0_122 = arith.constant 0 : index
    %c0_123 = arith.constant 0 : index
    %189 = vector.load %arg10[%c3_121, %c0_122, %c0_123] : memref<4x32x8xf32, #tpu.memory_space<vmem>>, vector<1x32x8xf32>
    %190 = vector.shape_cast %189 : vector<1x32x8xf32> to vector<32x8xf32>
    %cst_124 = arith.constant dense<0.000000e+00> : vector<16x8xf32>
    %191 = tpu.matmul %1, %190, %cst_124 {dimension_numbers = #tpu.dot_dimension_numbers<[1], [0], [0], [1], [0, 0, 1, 1], [], []>} : vector<16x32xf32>, vector<32x8xf32>, vector<16x8xf32> -> vector<16x8xf32>
    %c3_125 = arith.constant 3 : index
    %c0_126 = arith.constant 0 : index
    %c0_127 = arith.constant 0 : index
    %192 = vector.load %arg11[%c3_125, %c0_126, %c0_127] : memref<4x1x8xf32, #tpu.memory_space<vmem>>, vector<1x1x8xf32>
    %193 = vector.shape_cast %192 : vector<1x1x8xf32> to vector<1x8xf32>
    %194 = vector.broadcast %193 : vector<1x8xf32> to vector<16x8xf32>
    %195 = arith.addf %191, %194 : vector<16x8xf32>
    %cst_128 = arith.constant dense<0.000000e+00> : vector<16x16xf32>
    %196 = tpu.matmul %181, %188, %cst_128 {dimension_numbers = #tpu.dot_dimension_numbers<[1], [1], [0], [0], [0, 0, 1, 0], [], []>} : vector<16x8xf32>, vector<16x8xf32>, vector<16x16xf32> -> vector<16x16xf32>
    %cst_129 = arith.constant 0.353553385 : f32
    %197 = vector.broadcast %cst_129 : f32 to vector<16x16xf32>
    %198 = arith.mulf %196, %197 : vector<16x16xf32>
    %cst_130 = arith.constant dense<0xFF800000> : vector<16xf32>
    %199 = vector.multi_reduction <maximumf>, %198, %cst_130 [1] : vector<16x16xf32> to vector<16xf32>
    %200 = vector.shape_cast %199 : vector<16xf32> to vector<16x1xf32>
    %201 = arith.addf %198, %7 : vector<16x16xf32>
    %202 = vector.broadcast %200 : vector<16x1xf32> to vector<16x16xf32>
    %203 = arith.subf %201, %202 : vector<16x16xf32>
    %204 = math.exp %203 : vector<16x16xf32>
    %cst_131 = arith.constant dense<0.000000e+00> : vector<16xf32>
    %205 = vector.multi_reduction <add>, %204, %cst_131 [1] : vector<16x16xf32> to vector<16xf32>
    %206 = vector.shape_cast %205 : vector<16xf32> to vector<16x1xf32>
    %207 = tpu.reciprocal %206 {approx = true} : vector<16x1xf32> -> vector<16x1xf32>
    %208 = vector.broadcast %207 : vector<16x1xf32> to vector<16x16xf32>
    %209 = arith.mulf %204, %208 : vector<16x16xf32>
    %210 = vector.broadcast %11 : f32 to vector<16x16xf32>
    %211 = arith.mulf %210, %209 : vector<16x16xf32>
    %212 = arith.addf %198, %9 : vector<16x16xf32>
    %213 = vector.broadcast %200 : vector<16x1xf32> to vector<16x16xf32>
    %214 = arith.subf %212, %213 : vector<16x16xf32>
    %215 = math.exp %214 : vector<16x16xf32>
    %cst_132 = arith.constant dense<0.000000e+00> : vector<16xf32>
    %216 = vector.multi_reduction <add>, %215, %cst_132 [1] : vector<16x16xf32> to vector<16xf32>
    %217 = vector.shape_cast %216 : vector<16xf32> to vector<16x1xf32>
    %218 = tpu.reciprocal %217 {approx = true} : vector<16x1xf32> -> vector<16x1xf32>
    %219 = vector.broadcast %218 : vector<16x1xf32> to vector<16x16xf32>
    %220 = arith.mulf %215, %219 : vector<16x16xf32>
    %221 = vector.broadcast %13 : f32 to vector<16x16xf32>
    %222 = arith.mulf %221, %220 : vector<16x16xf32>
    %223 = arith.addf %211, %222 : vector<16x16xf32>
    %cst_133 = arith.constant dense<0.000000e+00> : vector<16x8xf32>
    %224 = tpu.matmul %223, %195, %cst_133 {dimension_numbers = #tpu.dot_dimension_numbers<[1], [0], [0], [1], [0, 0, 1, 1], [], []>} : vector<16x16xf32>, vector<16x8xf32>, vector<16x8xf32> -> vector<16x8xf32>
    %c3_134 = arith.constant 3 : index
    %c0_135 = arith.constant 0 : index
    %c0_136 = arith.constant 0 : index
    %225 = vector.load %arg12[%c3_134, %c0_135, %c0_136] : memref<4x8x32xf32, #tpu.memory_space<vmem>>, vector<1x8x32xf32>
    %226 = vector.shape_cast %225 : vector<1x8x32xf32> to vector<8x32xf32>
    %cst_137 = arith.constant dense<0.000000e+00> : vector<16x32xf32>
    %227 = tpu.matmul %224, %226, %cst_137 {dimension_numbers = #tpu.dot_dimension_numbers<[1], [0], [0], [1], [0, 0, 1, 1], [], []>} : vector<16x8xf32>, vector<8x32xf32>, vector<16x32xf32> -> vector<16x32xf32>
    %228 = arith.addf %174, %227 : vector<16x32xf32>
    %c0_138 = arith.constant 0 : index
    %c0_139 = arith.constant 0 : index
    %229 = vector.load %arg13[%c0_138, %c0_139] : memref<1x32xf32, #tpu.memory_space<vmem>>, vector<1x32xf32>
    %230 = vector.broadcast %229 : vector<1x32xf32> to vector<16x32xf32>
    %231 = arith.addf %228, %230 : vector<16x32xf32>
    %232 = arith.addf %1, %231 : vector<16x32xf32>
    %c0_140 = arith.constant 0 : index
    %c0_141 = arith.constant 0 : index
    %233 = vector.load %arg22[%c0_140, %c0_141] : memref<1x32xf32, #tpu.memory_space<vmem>>, vector<1x32xf32>
    %c0_142 = arith.constant 0 : index
    %c0_143 = arith.constant 0 : index
    %234 = vector.load %arg23[%c0_142, %c0_143] : memref<1x32xf32, #tpu.memory_space<vmem>>, vector<1x32xf32>
    %cst_144 = arith.constant dense<0.000000e+00> : vector<16xf32>
    %235 = vector.multi_reduction <add>, %232, %cst_144 [1] : vector<16x32xf32> to vector<16xf32>
    %236 = vector.shape_cast %235 : vector<16xf32> to vector<16x1xf32>
    %cst_145 = arith.constant 3.200000e+01 : f32
    %237 = vector.broadcast %cst_145 : f32 to vector<16x1xf32>
    %238 = arith.divf %236, %237 : vector<16x1xf32>
    %239 = vector.broadcast %238 : vector<16x1xf32> to vector<16x32xf32>
    %240 = arith.subf %232, %239 : vector<16x32xf32>
    %241 = arith.mulf %240, %240 : vector<16x32xf32>
    %cst_146 = arith.constant dense<0.000000e+00> : vector<16xf32>
    %242 = vector.multi_reduction <add>, %241, %cst_146 [1] : vector<16x32xf32> to vector<16xf32>
    %243 = vector.shape_cast %242 : vector<16xf32> to vector<16x1xf32>
    %cst_147 = arith.constant 3.100000e+01 : f32
    %244 = vector.broadcast %cst_147 : f32 to vector<16x1xf32>
    %245 = arith.divf %243, %244 : vector<16x1xf32>
    %246 = math.sqrt %245 : vector<16x1xf32>
    %247 = vector.broadcast %233 : vector<1x32xf32> to vector<16x32xf32>
    %248 = arith.mulf %247, %240 : vector<16x32xf32>
    %cst_148 = arith.constant 9.99999997E-7 : f32
    %249 = vector.broadcast %cst_148 : f32 to vector<16x1xf32>
    %250 = arith.addf %246, %249 : vector<16x1xf32>
    %251 = vector.broadcast %250 : vector<16x1xf32> to vector<16x32xf32>
    %252 = arith.divf %248, %251 : vector<16x32xf32>
    %253 = vector.broadcast %234 : vector<1x32xf32> to vector<16x32xf32>
    %254 = arith.addf %252, %253 : vector<16x32xf32>
    %c0_149 = arith.constant 0 : index
    %c0_150 = arith.constant 0 : index
    %255 = vector.load %arg21[%c0_149, %c0_150] : memref<1x32xf32, #tpu.memory_space<vmem>>, vector<1x32xf32>
    %c0_151 = arith.constant 0 : index
    %c0_152 = arith.constant 0 : index
    %c0_153 = arith.constant 0 : index
    %256 = vector.load %arg14[%c0_151, %c0_152, %c0_153] : memref<4x32x8xf32, #tpu.memory_space<vmem>>, vector<1x32x8xf32>
    %257 = vector.shape_cast %256 : vector<1x32x8xf32> to vector<32x8xf32>
    %cst_154 = arith.constant dense<0.000000e+00> : vector<16x8xf32>
    %258 = tpu.matmul %254, %257, %cst_154 {dimension_numbers = #tpu.dot_dimension_numbers<[1], [0], [0], [1], [0, 0, 1, 1], [], []>} : vector<16x32xf32>, vector<32x8xf32>, vector<16x8xf32> -> vector<16x8xf32>
    %c0_155 = arith.constant 0 : index
    %c0_156 = arith.constant 0 : index
    %c0_157 = arith.constant 0 : index
    %259 = vector.load %arg15[%c0_155, %c0_156, %c0_157] : memref<4x1x8xf32, #tpu.memory_space<vmem>>, vector<1x1x8xf32>
    %260 = vector.shape_cast %259 : vector<1x1x8xf32> to vector<1x8xf32>
    %261 = vector.broadcast %260 : vector<1x8xf32> to vector<16x8xf32>
    %262 = arith.addf %258, %261 : vector<16x8xf32>
    %c0_158 = arith.constant 0 : index
    %c0_159 = arith.constant 0 : index
    %c0_160 = arith.constant 0 : index
    %263 = vector.load %arg16[%c0_158, %c0_159, %c0_160] : memref<4x32x8xf32, #tpu.memory_space<vmem>>, vector<1x32x8xf32>
    %264 = vector.shape_cast %263 : vector<1x32x8xf32> to vector<32x8xf32>
    %cst_161 = arith.constant dense<0.000000e+00> : vector<8x8xf32>
    %265 = tpu.matmul %3, %264, %cst_161 {dimension_numbers = #tpu.dot_dimension_numbers<[1], [0], [0], [1], [0, 0, 1, 1], [], []>} : vector<8x32xf32>, vector<32x8xf32>, vector<8x8xf32> -> vector<8x8xf32>
    %c0_162 = arith.constant 0 : index
    %c0_163 = arith.constant 0 : index
    %c0_164 = arith.constant 0 : index
    %266 = vector.load %arg17[%c0_162, %c0_163, %c0_164] : memref<4x1x8xf32, #tpu.memory_space<vmem>>, vector<1x1x8xf32>
    %267 = vector.shape_cast %266 : vector<1x1x8xf32> to vector<1x8xf32>
    %268 = vector.broadcast %267 : vector<1x8xf32> to vector<8x8xf32>
    %269 = arith.addf %265, %268 : vector<8x8xf32>
    %c0_165 = arith.constant 0 : index
    %c0_166 = arith.constant 0 : index
    %c0_167 = arith.constant 0 : index
    %270 = vector.load %arg18[%c0_165, %c0_166, %c0_167] : memref<4x32x8xf32, #tpu.memory_space<vmem>>, vector<1x32x8xf32>
    %271 = vector.shape_cast %270 : vector<1x32x8xf32> to vector<32x8xf32>
    %cst_168 = arith.constant dense<0.000000e+00> : vector<8x8xf32>
    %272 = tpu.matmul %3, %271, %cst_168 {dimension_numbers = #tpu.dot_dimension_numbers<[1], [0], [0], [1], [0, 0, 1, 1], [], []>} : vector<8x32xf32>, vector<32x8xf32>, vector<8x8xf32> -> vector<8x8xf32>
    %c0_169 = arith.constant 0 : index
    %c0_170 = arith.constant 0 : index
    %c0_171 = arith.constant 0 : index
    %273 = vector.load %arg19[%c0_169, %c0_170, %c0_171] : memref<4x1x8xf32, #tpu.memory_space<vmem>>, vector<1x1x8xf32>
    %274 = vector.shape_cast %273 : vector<1x1x8xf32> to vector<1x8xf32>
    %275 = vector.broadcast %274 : vector<1x8xf32> to vector<8x8xf32>
    %276 = arith.addf %272, %275 : vector<8x8xf32>
    %cst_172 = arith.constant dense<0.000000e+00> : vector<16x8xf32>
    %277 = tpu.matmul %262, %269, %cst_172 {dimension_numbers = #tpu.dot_dimension_numbers<[1], [1], [0], [0], [0, 0, 1, 0], [], []>} : vector<16x8xf32>, vector<8x8xf32>, vector<16x8xf32> -> vector<16x8xf32>
    %cst_173 = arith.constant 0.353553385 : f32
    %278 = vector.broadcast %cst_173 : f32 to vector<16x8xf32>
    %279 = arith.mulf %277, %278 : vector<16x8xf32>
    %280 = vector.broadcast %5 : vector<1x8xf32> to vector<16x8xf32>
    %281 = arith.addf %279, %280 : vector<16x8xf32>
    %cst_174 = arith.constant dense<0xFF800000> : vector<16xf32>
    %282 = vector.multi_reduction <maximumf>, %281, %cst_174 [1] : vector<16x8xf32> to vector<16xf32>
    %283 = vector.shape_cast %282 : vector<16xf32> to vector<16x1xf32>
    %284 = vector.broadcast %283 : vector<16x1xf32> to vector<16x8xf32>
    %285 = arith.subf %281, %284 : vector<16x8xf32>
    %286 = math.exp %285 : vector<16x8xf32>
    %cst_175 = arith.constant dense<0.000000e+00> : vector<16xf32>
    %287 = vector.multi_reduction <add>, %286, %cst_175 [1] : vector<16x8xf32> to vector<16xf32>
    %288 = vector.shape_cast %287 : vector<16xf32> to vector<16x1xf32>
    %289 = tpu.reciprocal %288 {approx = true} : vector<16x1xf32> -> vector<16x1xf32>
    %290 = vector.broadcast %289 : vector<16x1xf32> to vector<16x8xf32>
    %291 = arith.mulf %286, %290 : vector<16x8xf32>
    %cst_176 = arith.constant dense<0.000000e+00> : vector<16x8xf32>
    %292 = tpu.matmul %291, %276, %cst_176 {dimension_numbers = #tpu.dot_dimension_numbers<[1], [0], [0], [1], [0, 0, 1, 1], [], []>} : vector<16x8xf32>, vector<8x8xf32>, vector<16x8xf32> -> vector<16x8xf32>
    %c0_177 = arith.constant 0 : index
    %c0_178 = arith.constant 0 : index
    %c0_179 = arith.constant 0 : index
    %293 = vector.load %arg20[%c0_177, %c0_178, %c0_179] : memref<4x8x32xf32, #tpu.memory_space<vmem>>, vector<1x8x32xf32>
    %294 = vector.shape_cast %293 : vector<1x8x32xf32> to vector<8x32xf32>
    %cst_180 = arith.constant dense<0.000000e+00> : vector<16x32xf32>
    %295 = tpu.matmul %292, %294, %cst_180 {dimension_numbers = #tpu.dot_dimension_numbers<[1], [0], [0], [1], [0, 0, 1, 1], [], []>} : vector<16x8xf32>, vector<8x32xf32>, vector<16x32xf32> -> vector<16x32xf32>
    %c1_181 = arith.constant 1 : index
    %c0_182 = arith.constant 0 : index
    %c0_183 = arith.constant 0 : index
    %296 = vector.load %arg14[%c1_181, %c0_182, %c0_183] : memref<4x32x8xf32, #tpu.memory_space<vmem>>, vector<1x32x8xf32>
    %297 = vector.shape_cast %296 : vector<1x32x8xf32> to vector<32x8xf32>
    %cst_184 = arith.constant dense<0.000000e+00> : vector<16x8xf32>
    %298 = tpu.matmul %254, %297, %cst_184 {dimension_numbers = #tpu.dot_dimension_numbers<[1], [0], [0], [1], [0, 0, 1, 1], [], []>} : vector<16x32xf32>, vector<32x8xf32>, vector<16x8xf32> -> vector<16x8xf32>
    %c1_185 = arith.constant 1 : index
    %c0_186 = arith.constant 0 : index
    %c0_187 = arith.constant 0 : index
    %299 = vector.load %arg15[%c1_185, %c0_186, %c0_187] : memref<4x1x8xf32, #tpu.memory_space<vmem>>, vector<1x1x8xf32>
    %300 = vector.shape_cast %299 : vector<1x1x8xf32> to vector<1x8xf32>
    %301 = vector.broadcast %300 : vector<1x8xf32> to vector<16x8xf32>
    %302 = arith.addf %298, %301 : vector<16x8xf32>
    %c1_188 = arith.constant 1 : index
    %c0_189 = arith.constant 0 : index
    %c0_190 = arith.constant 0 : index
    %303 = vector.load %arg16[%c1_188, %c0_189, %c0_190] : memref<4x32x8xf32, #tpu.memory_space<vmem>>, vector<1x32x8xf32>
    %304 = vector.shape_cast %303 : vector<1x32x8xf32> to vector<32x8xf32>
    %cst_191 = arith.constant dense<0.000000e+00> : vector<8x8xf32>
    %305 = tpu.matmul %3, %304, %cst_191 {dimension_numbers = #tpu.dot_dimension_numbers<[1], [0], [0], [1], [0, 0, 1, 1], [], []>} : vector<8x32xf32>, vector<32x8xf32>, vector<8x8xf32> -> vector<8x8xf32>
    %c1_192 = arith.constant 1 : index
    %c0_193 = arith.constant 0 : index
    %c0_194 = arith.constant 0 : index
    %306 = vector.load %arg17[%c1_192, %c0_193, %c0_194] : memref<4x1x8xf32, #tpu.memory_space<vmem>>, vector<1x1x8xf32>
    %307 = vector.shape_cast %306 : vector<1x1x8xf32> to vector<1x8xf32>
    %308 = vector.broadcast %307 : vector<1x8xf32> to vector<8x8xf32>
    %309 = arith.addf %305, %308 : vector<8x8xf32>
    %c1_195 = arith.constant 1 : index
    %c0_196 = arith.constant 0 : index
    %c0_197 = arith.constant 0 : index
    %310 = vector.load %arg18[%c1_195, %c0_196, %c0_197] : memref<4x32x8xf32, #tpu.memory_space<vmem>>, vector<1x32x8xf32>
    %311 = vector.shape_cast %310 : vector<1x32x8xf32> to vector<32x8xf32>
    %cst_198 = arith.constant dense<0.000000e+00> : vector<8x8xf32>
    %312 = tpu.matmul %3, %311, %cst_198 {dimension_numbers = #tpu.dot_dimension_numbers<[1], [0], [0], [1], [0, 0, 1, 1], [], []>} : vector<8x32xf32>, vector<32x8xf32>, vector<8x8xf32> -> vector<8x8xf32>
    %c1_199 = arith.constant 1 : index
    %c0_200 = arith.constant 0 : index
    %c0_201 = arith.constant 0 : index
    %313 = vector.load %arg19[%c1_199, %c0_200, %c0_201] : memref<4x1x8xf32, #tpu.memory_space<vmem>>, vector<1x1x8xf32>
    %314 = vector.shape_cast %313 : vector<1x1x8xf32> to vector<1x8xf32>
    %315 = vector.broadcast %314 : vector<1x8xf32> to vector<8x8xf32>
    %316 = arith.addf %312, %315 : vector<8x8xf32>
    %cst_202 = arith.constant dense<0.000000e+00> : vector<16x8xf32>
    %317 = tpu.matmul %302, %309, %cst_202 {dimension_numbers = #tpu.dot_dimension_numbers<[1], [1], [0], [0], [0, 0, 1, 0], [], []>} : vector<16x8xf32>, vector<8x8xf32>, vector<16x8xf32> -> vector<16x8xf32>
    %cst_203 = arith.constant 0.353553385 : f32
    %318 = vector.broadcast %cst_203 : f32 to vector<16x8xf32>
    %319 = arith.mulf %317, %318 : vector<16x8xf32>
    %320 = vector.broadcast %5 : vector<1x8xf32> to vector<16x8xf32>
    %321 = arith.addf %319, %320 : vector<16x8xf32>
    %cst_204 = arith.constant dense<0xFF800000> : vector<16xf32>
    %322 = vector.multi_reduction <maximumf>, %321, %cst_204 [1] : vector<16x8xf32> to vector<16xf32>
    %323 = vector.shape_cast %322 : vector<16xf32> to vector<16x1xf32>
    %324 = vector.broadcast %323 : vector<16x1xf32> to vector<16x8xf32>
    %325 = arith.subf %321, %324 : vector<16x8xf32>
    %326 = math.exp %325 : vector<16x8xf32>
    %cst_205 = arith.constant dense<0.000000e+00> : vector<16xf32>
    %327 = vector.multi_reduction <add>, %326, %cst_205 [1] : vector<16x8xf32> to vector<16xf32>
    %328 = vector.shape_cast %327 : vector<16xf32> to vector<16x1xf32>
    %329 = tpu.reciprocal %328 {approx = true} : vector<16x1xf32> -> vector<16x1xf32>
    %330 = vector.broadcast %329 : vector<16x1xf32> to vector<16x8xf32>
    %331 = arith.mulf %326, %330 : vector<16x8xf32>
    %cst_206 = arith.constant dense<0.000000e+00> : vector<16x8xf32>
    %332 = tpu.matmul %331, %316, %cst_206 {dimension_numbers = #tpu.dot_dimension_numbers<[1], [0], [0], [1], [0, 0, 1, 1], [], []>} : vector<16x8xf32>, vector<8x8xf32>, vector<16x8xf32> -> vector<16x8xf32>
    %c1_207 = arith.constant 1 : index
    %c0_208 = arith.constant 0 : index
    %c0_209 = arith.constant 0 : index
    %333 = vector.load %arg20[%c1_207, %c0_208, %c0_209] : memref<4x8x32xf32, #tpu.memory_space<vmem>>, vector<1x8x32xf32>
    %334 = vector.shape_cast %333 : vector<1x8x32xf32> to vector<8x32xf32>
    %cst_210 = arith.constant dense<0.000000e+00> : vector<16x32xf32>
    %335 = tpu.matmul %332, %334, %cst_210 {dimension_numbers = #tpu.dot_dimension_numbers<[1], [0], [0], [1], [0, 0, 1, 1], [], []>} : vector<16x8xf32>, vector<8x32xf32>, vector<16x32xf32> -> vector<16x32xf32>
    %336 = arith.addf %295, %335 : vector<16x32xf32>
    %c2_211 = arith.constant 2 : index
    %c0_212 = arith.constant 0 : index
    %c0_213 = arith.constant 0 : index
    %337 = vector.load %arg14[%c2_211, %c0_212, %c0_213] : memref<4x32x8xf32, #tpu.memory_space<vmem>>, vector<1x32x8xf32>
    %338 = vector.shape_cast %337 : vector<1x32x8xf32> to vector<32x8xf32>
    %cst_214 = arith.constant dense<0.000000e+00> : vector<16x8xf32>
    %339 = tpu.matmul %254, %338, %cst_214 {dimension_numbers = #tpu.dot_dimension_numbers<[1], [0], [0], [1], [0, 0, 1, 1], [], []>} : vector<16x32xf32>, vector<32x8xf32>, vector<16x8xf32> -> vector<16x8xf32>
    %c2_215 = arith.constant 2 : index
    %c0_216 = arith.constant 0 : index
    %c0_217 = arith.constant 0 : index
    %340 = vector.load %arg15[%c2_215, %c0_216, %c0_217] : memref<4x1x8xf32, #tpu.memory_space<vmem>>, vector<1x1x8xf32>
    %341 = vector.shape_cast %340 : vector<1x1x8xf32> to vector<1x8xf32>
    %342 = vector.broadcast %341 : vector<1x8xf32> to vector<16x8xf32>
    %343 = arith.addf %339, %342 : vector<16x8xf32>
    %c2_218 = arith.constant 2 : index
    %c0_219 = arith.constant 0 : index
    %c0_220 = arith.constant 0 : index
    %344 = vector.load %arg16[%c2_218, %c0_219, %c0_220] : memref<4x32x8xf32, #tpu.memory_space<vmem>>, vector<1x32x8xf32>
    %345 = vector.shape_cast %344 : vector<1x32x8xf32> to vector<32x8xf32>
    %cst_221 = arith.constant dense<0.000000e+00> : vector<8x8xf32>
    %346 = tpu.matmul %3, %345, %cst_221 {dimension_numbers = #tpu.dot_dimension_numbers<[1], [0], [0], [1], [0, 0, 1, 1], [], []>} : vector<8x32xf32>, vector<32x8xf32>, vector<8x8xf32> -> vector<8x8xf32>
    %c2_222 = arith.constant 2 : index
    %c0_223 = arith.constant 0 : index
    %c0_224 = arith.constant 0 : index
    %347 = vector.load %arg17[%c2_222, %c0_223, %c0_224] : memref<4x1x8xf32, #tpu.memory_space<vmem>>, vector<1x1x8xf32>
    %348 = vector.shape_cast %347 : vector<1x1x8xf32> to vector<1x8xf32>
    %349 = vector.broadcast %348 : vector<1x8xf32> to vector<8x8xf32>
    %350 = arith.addf %346, %349 : vector<8x8xf32>
    %c2_225 = arith.constant 2 : index
    %c0_226 = arith.constant 0 : index
    %c0_227 = arith.constant 0 : index
    %351 = vector.load %arg18[%c2_225, %c0_226, %c0_227] : memref<4x32x8xf32, #tpu.memory_space<vmem>>, vector<1x32x8xf32>
    %352 = vector.shape_cast %351 : vector<1x32x8xf32> to vector<32x8xf32>
    %cst_228 = arith.constant dense<0.000000e+00> : vector<8x8xf32>
    %353 = tpu.matmul %3, %352, %cst_228 {dimension_numbers = #tpu.dot_dimension_numbers<[1], [0], [0], [1], [0, 0, 1, 1], [], []>} : vector<8x32xf32>, vector<32x8xf32>, vector<8x8xf32> -> vector<8x8xf32>
    %c2_229 = arith.constant 2 : index
    %c0_230 = arith.constant 0 : index
    %c0_231 = arith.constant 0 : index
    %354 = vector.load %arg19[%c2_229, %c0_230, %c0_231] : memref<4x1x8xf32, #tpu.memory_space<vmem>>, vector<1x1x8xf32>
    %355 = vector.shape_cast %354 : vector<1x1x8xf32> to vector<1x8xf32>
    %356 = vector.broadcast %355 : vector<1x8xf32> to vector<8x8xf32>
    %357 = arith.addf %353, %356 : vector<8x8xf32>
    %cst_232 = arith.constant dense<0.000000e+00> : vector<16x8xf32>
    %358 = tpu.matmul %343, %350, %cst_232 {dimension_numbers = #tpu.dot_dimension_numbers<[1], [1], [0], [0], [0, 0, 1, 0], [], []>} : vector<16x8xf32>, vector<8x8xf32>, vector<16x8xf32> -> vector<16x8xf32>
    %cst_233 = arith.constant 0.353553385 : f32
    %359 = vector.broadcast %cst_233 : f32 to vector<16x8xf32>
    %360 = arith.mulf %358, %359 : vector<16x8xf32>
    %361 = vector.broadcast %5 : vector<1x8xf32> to vector<16x8xf32>
    %362 = arith.addf %360, %361 : vector<16x8xf32>
    %cst_234 = arith.constant dense<0xFF800000> : vector<16xf32>
    %363 = vector.multi_reduction <maximumf>, %362, %cst_234 [1] : vector<16x8xf32> to vector<16xf32>
    %364 = vector.shape_cast %363 : vector<16xf32> to vector<16x1xf32>
    %365 = vector.broadcast %364 : vector<16x1xf32> to vector<16x8xf32>
    %366 = arith.subf %362, %365 : vector<16x8xf32>
    %367 = math.exp %366 : vector<16x8xf32>
    %cst_235 = arith.constant dense<0.000000e+00> : vector<16xf32>
    %368 = vector.multi_reduction <add>, %367, %cst_235 [1] : vector<16x8xf32> to vector<16xf32>
    %369 = vector.shape_cast %368 : vector<16xf32> to vector<16x1xf32>
    %370 = tpu.reciprocal %369 {approx = true} : vector<16x1xf32> -> vector<16x1xf32>
    %371 = vector.broadcast %370 : vector<16x1xf32> to vector<16x8xf32>
    %372 = arith.mulf %367, %371 : vector<16x8xf32>
    %cst_236 = arith.constant dense<0.000000e+00> : vector<16x8xf32>
    %373 = tpu.matmul %372, %357, %cst_236 {dimension_numbers = #tpu.dot_dimension_numbers<[1], [0], [0], [1], [0, 0, 1, 1], [], []>} : vector<16x8xf32>, vector<8x8xf32>, vector<16x8xf32> -> vector<16x8xf32>
    %c2_237 = arith.constant 2 : index
    %c0_238 = arith.constant 0 : index
    %c0_239 = arith.constant 0 : index
    %374 = vector.load %arg20[%c2_237, %c0_238, %c0_239] : memref<4x8x32xf32, #tpu.memory_space<vmem>>, vector<1x8x32xf32>
    %375 = vector.shape_cast %374 : vector<1x8x32xf32> to vector<8x32xf32>
    %cst_240 = arith.constant dense<0.000000e+00> : vector<16x32xf32>
    %376 = tpu.matmul %373, %375, %cst_240 {dimension_numbers = #tpu.dot_dimension_numbers<[1], [0], [0], [1], [0, 0, 1, 1], [], []>} : vector<16x8xf32>, vector<8x32xf32>, vector<16x32xf32> -> vector<16x32xf32>
    %377 = arith.addf %336, %376 : vector<16x32xf32>
    %c3_241 = arith.constant 3 : index
    %c0_242 = arith.constant 0 : index
    %c0_243 = arith.constant 0 : index
    %378 = vector.load %arg14[%c3_241, %c0_242, %c0_243] : memref<4x32x8xf32, #tpu.memory_space<vmem>>, vector<1x32x8xf32>
    %379 = vector.shape_cast %378 : vector<1x32x8xf32> to vector<32x8xf32>
    %cst_244 = arith.constant dense<0.000000e+00> : vector<16x8xf32>
    %380 = tpu.matmul %254, %379, %cst_244 {dimension_numbers = #tpu.dot_dimension_numbers<[1], [0], [0], [1], [0, 0, 1, 1], [], []>} : vector<16x32xf32>, vector<32x8xf32>, vector<16x8xf32> -> vector<16x8xf32>
    %c3_245 = arith.constant 3 : index
    %c0_246 = arith.constant 0 : index
    %c0_247 = arith.constant 0 : index
    %381 = vector.load %arg15[%c3_245, %c0_246, %c0_247] : memref<4x1x8xf32, #tpu.memory_space<vmem>>, vector<1x1x8xf32>
    %382 = vector.shape_cast %381 : vector<1x1x8xf32> to vector<1x8xf32>
    %383 = vector.broadcast %382 : vector<1x8xf32> to vector<16x8xf32>
    %384 = arith.addf %380, %383 : vector<16x8xf32>
    %c3_248 = arith.constant 3 : index
    %c0_249 = arith.constant 0 : index
    %c0_250 = arith.constant 0 : index
    %385 = vector.load %arg16[%c3_248, %c0_249, %c0_250] : memref<4x32x8xf32, #tpu.memory_space<vmem>>, vector<1x32x8xf32>
    %386 = vector.shape_cast %385 : vector<1x32x8xf32> to vector<32x8xf32>
    %cst_251 = arith.constant dense<0.000000e+00> : vector<8x8xf32>
    %387 = tpu.matmul %3, %386, %cst_251 {dimension_numbers = #tpu.dot_dimension_numbers<[1], [0], [0], [1], [0, 0, 1, 1], [], []>} : vector<8x32xf32>, vector<32x8xf32>, vector<8x8xf32> -> vector<8x8xf32>
    %c3_252 = arith.constant 3 : index
    %c0_253 = arith.constant 0 : index
    %c0_254 = arith.constant 0 : index
    %388 = vector.load %arg17[%c3_252, %c0_253, %c0_254] : memref<4x1x8xf32, #tpu.memory_space<vmem>>, vector<1x1x8xf32>
    %389 = vector.shape_cast %388 : vector<1x1x8xf32> to vector<1x8xf32>
    %390 = vector.broadcast %389 : vector<1x8xf32> to vector<8x8xf32>
    %391 = arith.addf %387, %390 : vector<8x8xf32>
    %c3_255 = arith.constant 3 : index
    %c0_256 = arith.constant 0 : index
    %c0_257 = arith.constant 0 : index
    %392 = vector.load %arg18[%c3_255, %c0_256, %c0_257] : memref<4x32x8xf32, #tpu.memory_space<vmem>>, vector<1x32x8xf32>
    %393 = vector.shape_cast %392 : vector<1x32x8xf32> to vector<32x8xf32>
    %cst_258 = arith.constant dense<0.000000e+00> : vector<8x8xf32>
    %394 = tpu.matmul %3, %393, %cst_258 {dimension_numbers = #tpu.dot_dimension_numbers<[1], [0], [0], [1], [0, 0, 1, 1], [], []>} : vector<8x32xf32>, vector<32x8xf32>, vector<8x8xf32> -> vector<8x8xf32>
    %c3_259 = arith.constant 3 : index
    %c0_260 = arith.constant 0 : index
    %c0_261 = arith.constant 0 : index
    %395 = vector.load %arg19[%c3_259, %c0_260, %c0_261] : memref<4x1x8xf32, #tpu.memory_space<vmem>>, vector<1x1x8xf32>
    %396 = vector.shape_cast %395 : vector<1x1x8xf32> to vector<1x8xf32>
    %397 = vector.broadcast %396 : vector<1x8xf32> to vector<8x8xf32>
    %398 = arith.addf %394, %397 : vector<8x8xf32>
    %cst_262 = arith.constant dense<0.000000e+00> : vector<16x8xf32>
    %399 = tpu.matmul %384, %391, %cst_262 {dimension_numbers = #tpu.dot_dimension_numbers<[1], [1], [0], [0], [0, 0, 1, 0], [], []>} : vector<16x8xf32>, vector<8x8xf32>, vector<16x8xf32> -> vector<16x8xf32>
    %cst_263 = arith.constant 0.353553385 : f32
    %400 = vector.broadcast %cst_263 : f32 to vector<16x8xf32>
    %401 = arith.mulf %399, %400 : vector<16x8xf32>
    %402 = vector.broadcast %5 : vector<1x8xf32> to vector<16x8xf32>
    %403 = arith.addf %401, %402 : vector<16x8xf32>
    %cst_264 = arith.constant dense<0xFF800000> : vector<16xf32>
    %404 = vector.multi_reduction <maximumf>, %403, %cst_264 [1] : vector<16x8xf32> to vector<16xf32>
    %405 = vector.shape_cast %404 : vector<16xf32> to vector<16x1xf32>
    %406 = vector.broadcast %405 : vector<16x1xf32> to vector<16x8xf32>
    %407 = arith.subf %403, %406 : vector<16x8xf32>
    %408 = math.exp %407 : vector<16x8xf32>
    %cst_265 = arith.constant dense<0.000000e+00> : vector<16xf32>
    %409 = vector.multi_reduction <add>, %408, %cst_265 [1] : vector<16x8xf32> to vector<16xf32>
    %410 = vector.shape_cast %409 : vector<16xf32> to vector<16x1xf32>
    %411 = tpu.reciprocal %410 {approx = true} : vector<16x1xf32> -> vector<16x1xf32>
    %412 = vector.broadcast %411 : vector<16x1xf32> to vector<16x8xf32>
    %413 = arith.mulf %408, %412 : vector<16x8xf32>
    %cst_266 = arith.constant dense<0.000000e+00> : vector<16x8xf32>
    %414 = tpu.matmul %413, %398, %cst_266 {dimension_numbers = #tpu.dot_dimension_numbers<[1], [0], [0], [1], [0, 0, 1, 1], [], []>} : vector<16x8xf32>, vector<8x8xf32>, vector<16x8xf32> -> vector<16x8xf32>
    %c3_267 = arith.constant 3 : index
    %c0_268 = arith.constant 0 : index
    %c0_269 = arith.constant 0 : index
    %415 = vector.load %arg20[%c3_267, %c0_268, %c0_269] : memref<4x8x32xf32, #tpu.memory_space<vmem>>, vector<1x8x32xf32>
    %416 = vector.shape_cast %415 : vector<1x8x32xf32> to vector<8x32xf32>
    %cst_270 = arith.constant dense<0.000000e+00> : vector<16x32xf32>
    %417 = tpu.matmul %414, %416, %cst_270 {dimension_numbers = #tpu.dot_dimension_numbers<[1], [0], [0], [1], [0, 0, 1, 1], [], []>} : vector<16x8xf32>, vector<8x32xf32>, vector<16x32xf32> -> vector<16x32xf32>
    %418 = arith.addf %377, %417 : vector<16x32xf32>
    %419 = vector.broadcast %255 : vector<1x32xf32> to vector<16x32xf32>
    %420 = arith.addf %418, %419 : vector<16x32xf32>
    %421 = arith.addf %254, %420 : vector<16x32xf32>
    %c0_271 = arith.constant 0 : index
    %c0_272 = arith.constant 0 : index
    %422 = vector.load %arg24[%c0_271, %c0_272] : memref<1x32xf32, #tpu.memory_space<vmem>>, vector<1x32xf32>
    %c0_273 = arith.constant 0 : index
    %c0_274 = arith.constant 0 : index
    %423 = vector.load %arg25[%c0_273, %c0_274] : memref<1x32xf32, #tpu.memory_space<vmem>>, vector<1x32xf32>
    %cst_275 = arith.constant dense<0.000000e+00> : vector<16xf32>
    %424 = vector.multi_reduction <add>, %421, %cst_275 [1] : vector<16x32xf32> to vector<16xf32>
    %425 = vector.shape_cast %424 : vector<16xf32> to vector<16x1xf32>
    %cst_276 = arith.constant 3.200000e+01 : f32
    %426 = vector.broadcast %cst_276 : f32 to vector<16x1xf32>
    %427 = arith.divf %425, %426 : vector<16x1xf32>
    %428 = vector.broadcast %427 : vector<16x1xf32> to vector<16x32xf32>
    %429 = arith.subf %421, %428 : vector<16x32xf32>
    %430 = arith.mulf %429, %429 : vector<16x32xf32>
    %cst_277 = arith.constant dense<0.000000e+00> : vector<16xf32>
    %431 = vector.multi_reduction <add>, %430, %cst_277 [1] : vector<16x32xf32> to vector<16xf32>
    %432 = vector.shape_cast %431 : vector<16xf32> to vector<16x1xf32>
    %cst_278 = arith.constant 3.100000e+01 : f32
    %433 = vector.broadcast %cst_278 : f32 to vector<16x1xf32>
    %434 = arith.divf %432, %433 : vector<16x1xf32>
    %435 = math.sqrt %434 : vector<16x1xf32>
    %436 = vector.broadcast %422 : vector<1x32xf32> to vector<16x32xf32>
    %437 = arith.mulf %436, %429 : vector<16x32xf32>
    %cst_279 = arith.constant 9.99999997E-7 : f32
    %438 = vector.broadcast %cst_279 : f32 to vector<16x1xf32>
    %439 = arith.addf %435, %438 : vector<16x1xf32>
    %440 = vector.broadcast %439 : vector<16x1xf32> to vector<16x32xf32>
    %441 = arith.divf %437, %440 : vector<16x32xf32>
    %442 = vector.broadcast %423 : vector<1x32xf32> to vector<16x32xf32>
    %443 = arith.addf %441, %442 : vector<16x32xf32>
    %c0_280 = arith.constant 0 : index
    %c0_281 = arith.constant 0 : index
    %444 = vector.load %arg26[%c0_280, %c0_281] : memref<32x64xf32, #tpu.memory_space<vmem>>, vector<32x64xf32>
    %cst_282 = arith.constant dense<0.000000e+00> : vector<16x64xf32>
    %445 = tpu.matmul %443, %444, %cst_282 {dimension_numbers = #tpu.dot_dimension_numbers<[1], [0], [0], [1], [0, 0, 1, 1], [], []>} : vector<16x32xf32>, vector<32x64xf32>, vector<16x64xf32> -> vector<16x64xf32>
    %c0_283 = arith.constant 0 : index
    %c0_284 = arith.constant 0 : index
    %446 = vector.load %arg27[%c0_283, %c0_284] : memref<1x64xf32, #tpu.memory_space<vmem>>, vector<1x64xf32>
    %447 = vector.broadcast %446 : vector<1x64xf32> to vector<16x64xf32>
    %448 = arith.addf %445, %447 : vector<16x64xf32>
    %cst_285 = arith.constant 0.000000e+00 : f32
    %449 = vector.broadcast %cst_285 : f32 to vector<16x64xf32>
    %450 = arith.maximumf %448, %449 : vector<16x64xf32>
    %c0_286 = arith.constant 0 : index
    %c0_287 = arith.constant 0 : index
    %451 = vector.load %arg28[%c0_286, %c0_287] : memref<64x32xf32, #tpu.memory_space<vmem>>, vector<64x32xf32>
    %cst_288 = arith.constant dense<0.000000e+00> : vector<16x32xf32>
    %452 = tpu.matmul %450, %451, %cst_288 {dimension_numbers = #tpu.dot_dimension_numbers<[1], [0], [0], [1], [0, 0, 1, 1], [], []>} : vector<16x64xf32>, vector<64x32xf32>, vector<16x32xf32> -> vector<16x32xf32>
    %c0_289 = arith.constant 0 : index
    %c0_290 = arith.constant 0 : index
    %453 = vector.load %arg29[%c0_289, %c0_290] : memref<1x32xf32, #tpu.memory_space<vmem>>, vector<1x32xf32>
    %454 = vector.broadcast %453 : vector<1x32xf32> to vector<16x32xf32>
    %455 = arith.addf %452, %454 : vector<16x32xf32>
    %456 = arith.addf %443, %455 : vector<16x32xf32>
    %c0_291 = arith.constant 0 : index
    %c0_292 = arith.constant 0 : index
    %457 = vector.load %arg30[%c0_291, %c0_292] : memref<1x32xf32, #tpu.memory_space<vmem>>, vector<1x32xf32>
    %c0_293 = arith.constant 0 : index
    %c0_294 = arith.constant 0 : index
    %458 = vector.load %arg31[%c0_293, %c0_294] : memref<1x32xf32, #tpu.memory_space<vmem>>, vector<1x32xf32>
    %cst_295 = arith.constant dense<0.000000e+00> : vector<16xf32>
    %459 = vector.multi_reduction <add>, %456, %cst_295 [1] : vector<16x32xf32> to vector<16xf32>
    %460 = vector.shape_cast %459 : vector<16xf32> to vector<16x1xf32>
    %cst_296 = arith.constant 3.200000e+01 : f32
    %461 = vector.broadcast %cst_296 : f32 to vector<16x1xf32>
    %462 = arith.divf %460, %461 : vector<16x1xf32>
    %463 = vector.broadcast %462 : vector<16x1xf32> to vector<16x32xf32>
    %464 = arith.subf %456, %463 : vector<16x32xf32>
    %465 = arith.mulf %464, %464 : vector<16x32xf32>
    %cst_297 = arith.constant dense<0.000000e+00> : vector<16xf32>
    %466 = vector.multi_reduction <add>, %465, %cst_297 [1] : vector<16x32xf32> to vector<16xf32>
    %467 = vector.shape_cast %466 : vector<16xf32> to vector<16x1xf32>
    %cst_298 = arith.constant 3.100000e+01 : f32
    %468 = vector.broadcast %cst_298 : f32 to vector<16x1xf32>
    %469 = arith.divf %467, %468 : vector<16x1xf32>
    %470 = math.sqrt %469 : vector<16x1xf32>
    %471 = vector.broadcast %457 : vector<1x32xf32> to vector<16x32xf32>
    %472 = arith.mulf %471, %464 : vector<16x32xf32>
    %cst_299 = arith.constant 9.99999997E-7 : f32
    %473 = vector.broadcast %cst_299 : f32 to vector<16x1xf32>
    %474 = arith.addf %470, %473 : vector<16x1xf32>
    %475 = vector.broadcast %474 : vector<16x1xf32> to vector<16x32xf32>
    %476 = arith.divf %472, %475 : vector<16x32xf32>
    %477 = vector.broadcast %458 : vector<1x32xf32> to vector<16x32xf32>
    %478 = arith.addf %476, %477 : vector<16x32xf32>
    %c0_300 = arith.constant 0 : index
    %c0_301 = arith.constant 0 : index
    %c0_302 = arith.constant 0 : index
    %479 = vector.load %arg32[%c0_300, %c0_301, %c0_302] : memref<1x16x32xf32, #tpu.memory_space<vmem>>, vector<1x16x32xf32>
    %480 = vector.shape_cast %479 : vector<1x16x32xf32> to vector<16x32xf32>
    %481 = vector.shape_cast %478 : vector<16x32xf32> to vector<1x16x32xf32>
    tpu.vector_store %arg32[%c0_300, %c0_301, %c0_302], %481 {strides = array<i32>} : memref<1x16x32xf32, #tpu.memory_space<vmem>>, vector<1x16x32xf32>,
    return
  }
  func.func @transform_0(%arg0: i32) -> (i32, i32) {
    %c0_i32 = arith.constant 0 : i32
    %c0_i32_0 = arith.constant 0 : i32
    %c0_i32_1 = arith.constant 0 : i32
    return %c0_i32, %c0_i32_0 : i32, i32
  }
  func.func @transform_1(%arg0: i32) -> (i32, i32, i32) {
    %c0_i32 = arith.constant 0 : i32
    %c0_i32_0 = arith.constant 0 : i32
    %c0_i32_1 = arith.constant 0 : i32
    return %arg0, %c0_i32, %c0_i32_0 : i32, i32, i32
  }
  func.func @transform_2(%arg0: i32) -> (i32, i32, i32) {
    %c0_i32 = arith.constant 0 : i32
    %c0_i32_0 = arith.constant 0 : i32
    %c0_i32_1 = arith.constant 0 : i32
    return %arg0, %c0_i32, %c0_i32_0 : i32, i32, i32
  }
  func.func @transform_3(%arg0: i32) -> (i32, i32, i32, i32) {
    %c0_i32 = arith.constant 0 : i32
    %c0_i32_0 = arith.constant 0 : i32
    %c0_i32_1 = arith.constant 0 : i32
    %c0_i32_2 = arith.constant 0 : i32
    return %arg0, %c0_i32, %c0_i32_0, %c0_i32_1 : i32, i32, i32, i32
  }
  func.func @transform_4(%arg0: i32) -> (i32, i32, i32) {
    %c0_i32 = arith.constant 0 : i32
    %c0_i32_0 = arith.constant 0 : i32
    %c0_i32_1 = arith.constant 0 : i32
    return %arg0, %c0_i32, %c0_i32_0 : i32, i32, i32
  }
  func.func @transform_5(%arg0: i32) -> (i32, i32, i32) {
    %c0_i32 = arith.constant 0 : i32
    %c0_i32_0 = arith.constant 0 : i32
    %c0_i32_1 = arith.constant 0 : i32
    %c0_i32_2 = arith.constant 0 : i32
    return %c0_i32, %c0_i32_0, %c0_i32_1 : i32, i32, i32
  }
  func.func @transform_6(%arg0: i32) -> (i32, i32, i32) {
    %c0_i32 = arith.constant 0 : i32
    %c0_i32_0 = arith.constant 0 : i32
    %c0_i32_1 = arith.constant 0 : i32
    %c0_i32_2 = arith.constant 0 : i32
    return %c0_i32, %c0_i32_0, %c0_i32_1 : i32, i32, i32
  }
  func.func @transform_7(%arg0: i32) -> (i32, i32, i32) {
    %c0_i32 = arith.constant 0 : i32
    %c0_i32_0 = arith.constant 0 : i32
    %c0_i32_1 = arith.constant 0 : i32
    %c0_i32_2 = arith.constant 0 : i32
    return %c0_i32, %c0_i32_0, %c0_i32_1 : i32, i32, i32
  }
  func.func @transform_8(%arg0: i32) -> (i32, i32, i32) {
    %c0_i32 = arith.constant 0 : i32
    %c0_i32_0 = arith.constant 0 : i32
    %c0_i32_1 = arith.constant 0 : i32
    %c0_i32_2 = arith.constant 0 : i32
    return %c0_i32, %c0_i32_0, %c0_i32_1 : i32, i32, i32
  }
  func.func @transform_9(%arg0: i32) -> (i32, i32, i32) {
    %c0_i32 = arith.constant 0 : i32
    %c0_i32_0 = arith.constant 0 : i32
    %c0_i32_1 = arith.constant 0 : i32
    %c0_i32_2 = arith.constant 0 : i32
    return %c0_i32, %c0_i32_0, %c0_i32_1 : i32, i32, i32
  }
  func.func @transform_10(%arg0: i32) -> (i32, i32, i32) {
    %c0_i32 = arith.constant 0 : i32
    %c0_i32_0 = arith.constant 0 : i32
    %c0_i32_1 = arith.constant 0 : i32
    %c0_i32_2 = arith.constant 0 : i32
    return %c0_i32, %c0_i32_0, %c0_i32_1 : i32, i32, i32
  }
  func.func @transform_11(%arg0: i32) -> (i32, i32, i32) {
    %c0_i32 = arith.constant 0 : i32
    %c0_i32_0 = arith.constant 0 : i32
    %c0_i32_1 = arith.constant 0 : i32
    %c0_i32_2 = arith.constant 0 : i32
    return %c0_i32, %c0_i32_0, %c0_i32_1 : i32, i32, i32
  }
  func.func @transform_12(%arg0: i32) -> (i32, i32) {
    %c0_i32 = arith.constant 0 : i32
    %c0_i32_0 = arith.constant 0 : i32
    %c0_i32_1 = arith.constant 0 : i32
    return %c0_i32, %c0_i32_0 : i32, i32
  }
  func.func @transform_13(%arg0: i32) -> (i32, i32, i32) {
    %c0_i32 = arith.constant 0 : i32
    %c0_i32_0 = arith.constant 0 : i32
    %c0_i32_1 = arith.constant 0 : i32
    %c0_i32_2 = arith.constant 0 : i32
    return %c0_i32, %c0_i32_0, %c0_i32_1 : i32, i32, i32
  }
  func.func @transform_14(%arg0: i32) -> (i32, i32, i32) {
    %c0_i32 = arith.constant 0 : i32
    %c0_i32_0 = arith.constant 0 : i32
    %c0_i32_1 = arith.constant 0 : i32
    %c0_i32_2 = arith.constant 0 : i32
    return %c0_i32, %c0_i32_0, %c0_i32_1 : i32, i32, i32
  }
  func.func @transform_15(%arg0: i32) -> (i32, i32, i32) {
    %c0_i32 = arith.constant 0 : i32
    %c0_i32_0 = arith.constant 0 : i32
    %c0_i32_1 = arith.constant 0 : i32
    %c0_i32_2 = arith.constant 0 : i32
    return %c0_i32, %c0_i32_0, %c0_i32_1 : i32, i32, i32
  }
  func.func @transform_16(%arg0: i32) -> (i32, i32, i32) {
    %c0_i32 = arith.constant 0 : i32
    %c0_i32_0 = arith.constant 0 : i32
    %c0_i32_1 = arith.constant 0 : i32
    %c0_i32_2 = arith.constant 0 : i32
    return %c0_i32, %c0_i32_0, %c0_i32_1 : i32, i32, i32
  }
  func.func @transform_17(%arg0: i32) -> (i32, i32, i32) {
    %c0_i32 = arith.constant 0 : i32
    %c0_i32_0 = arith.constant 0 : i32
    %c0_i32_1 = arith.constant 0 : i32
    %c0_i32_2 = arith.constant 0 : i32
    return %c0_i32, %c0_i32_0, %c0_i32_1 : i32, i32, i32
  }
  func.func @transform_18(%arg0: i32) -> (i32, i32, i32) {
    %c0_i32 = arith.constant 0 : i32
    %c0_i32_0 = arith.constant 0 : i32
    %c0_i32_1 = arith.constant 0 : i32
    %c0_i32_2 = arith.constant 0 : i32
    return %c0_i32, %c0_i32_0, %c0_i32_1 : i32, i32, i32
  }
  func.func @transform_19(%arg0: i32) -> (i32, i32, i32) {
    %c0_i32 = arith.constant 0 : i32
    %c0_i32_0 = arith.constant 0 : i32
    %c0_i32_1 = arith.constant 0 : i32
    %c0_i32_2 = arith.constant 0 : i32
    return %c0_i32, %c0_i32_0, %c0_i32_1 : i32, i32, i32
  }
  func.func @transform_20(%arg0: i32) -> (i32, i32) {
    %c0_i32 = arith.constant 0 : i32
    %c0_i32_0 = arith.constant 0 : i32
    %c0_i32_1 = arith.constant 0 : i32
    return %c0_i32, %c0_i32_0 : i32, i32
  }
  func.func @transform_21(%arg0: i32) -> (i32, i32) {
    %c0_i32 = arith.constant 0 : i32
    %c0_i32_0 = arith.constant 0 : i32
    %c0_i32_1 = arith.constant 0 : i32
    return %c0_i32, %c0_i32_0 : i32, i32
  }
  func.func @transform_22(%arg0: i32) -> (i32, i32) {
    %c0_i32 = arith.constant 0 : i32
    %c0_i32_0 = arith.constant 0 : i32
    %c0_i32_1 = arith.constant 0 : i32
    return %c0_i32, %c0_i32_0 : i32, i32
  }
  func.func @transform_23(%arg0: i32) -> (i32, i32) {
    %c0_i32 = arith.constant 0 : i32
    %c0_i32_0 = arith.constant 0 : i32
    %c0_i32_1 = arith.constant 0 : i32
    return %c0_i32, %c0_i32_0 : i32, i32
  }
  func.func @transform_24(%arg0: i32) -> (i32, i32) {
    %c0_i32 = arith.constant 0 : i32
    %c0_i32_0 = arith.constant 0 : i32
    %c0_i32_1 = arith.constant 0 : i32
    return %c0_i32, %c0_i32_0 : i32, i32
  }
  func.func @transform_25(%arg0: i32) -> (i32, i32) {
    %c0_i32 = arith.constant 0 : i32
    %c0_i32_0 = arith.constant 0 : i32
    %c0_i32_1 = arith.constant 0 : i32
    return %c0_i32, %c0_i32_0 : i32, i32
  }
  func.func @transform_26(%arg0: i32) -> (i32, i32) {
    %c0_i32 = arith.constant 0 : i32
    %c0_i32_0 = arith.constant 0 : i32
    %c0_i32_1 = arith.constant 0 : i32
    return %c0_i32, %c0_i32_0 : i32, i32
  }
  func.func @transform_27(%arg0: i32) -> (i32, i32) {
    %c0_i32 = arith.constant 0 : i32
    %c0_i32_0 = arith.constant 0 : i32
    %c0_i32_1 = arith.constant 0 : i32
    return %c0_i32, %c0_i32_0 : i32, i32
  }
  func.func @transform_28(%arg0: i32) -> (i32, i32) {
    %c0_i32 = arith.constant 0 : i32
    %c0_i32_0 = arith.constant 0 : i32
    %c0_i32_1 = arith.constant 0 : i32
    return %c0_i32, %c0_i32_0 : i32, i32
  }
  func.func @transform_29(%arg0: i32) -> (i32, i32) {
    %c0_i32 = arith.constant 0 : i32
    %c0_i32_0 = arith.constant 0 : i32
    %c0_i32_1 = arith.constant 0 : i32
    return %c0_i32, %c0_i32_0 : i32, i32
  }
  func.func @transform_30(%arg0: i32) -> (i32, i32) {
    %c0_i32 = arith.constant 0 : i32
    %c0_i32_0 = arith.constant 0 : i32
    %c0_i32_1 = arith.constant 0 : i32
    return %c0_i32, %c0_i32_0 : i32, i32
  }
  func.func @transform_31(%arg0: i32) -> (i32, i32, i32) {
    %c0_i32 = arith.constant 0 : i32
    %c0_i32_0 = arith.constant 0 : i32
    %c0_i32_1 = arith.constant 0 : i32
    return %arg0, %c0_i32, %c0_i32_0 : i32, i32, i32
  }
}

</mosaic_0001>

<bundles_post_ra>
// kernel: run.4
= control target key start
LH: loop header
LB: loop body
LE: loop exit
PB: predicated region body
PF: predicated region fallthrough
CT: control target
= control target key end

     0   :  { %s3516_s27 = smov 0   ;;  %s3953_s0 = inlined_call_operand.vmem [shape: f32[2,8,32], index: 0, kind: input, shape index: {}]   ;;  %s3954_s1 = inlined_call_operand.vmem [shape: f32[2,1,8], index: 1, kind: input, shape index: {}]   ;;  %s3955_s2 = inlined_call_operand.vmem [shape: f32[4,32,8], index: 2, kind: input, shape index: {}]   ;;  %s3956_s3 = inlined_call_operand.vmem [shape: f32[4,1,8], index: 3, kind: input, shape index: {}]   ;;  %s3957_s4 = inlined_call_operand.vmem [shape: f32[4,32,8], index: 4, kind: input, shape index: {}]   ;;  %s3958_s5 = inlined_call_operand.vmem [shape: f32[4,1,8], index: 5, kind: input, shape index: {}]   ;;  %s3959_s6 = inlined_call_operand.vmem [shape: f32[4,32,8], index: 6, kind: input, shape index: {}]   ;;  %s3960_s7 = inlined_call_operand.vmem [shape: f32[4,1,8], index: 7, kind: input, shape index: {}]   ;;  %s3961_s8 = inlined_call_operand.vmem [shape: f32[4,8,32], index: 8, kind: input, shape index: {}]   ;;  %s3962_s9 = inlined_call_operand.vmem [shape: f32[1,32], index: 9, kind: input, shape index: {}]   ;;  %s3963_s10 = inlined_call_operand.vmem [shape: f32[1,32], index: 10, kind: input, shape index: {}]   ;;  %s3964_s11 = inlined_call_operand.vmem [shape: f32[1,32], index: 11, kind: input, shape index: {}]   ;;  %s3965_s12 = inlined_call_operand.vmem [shape: f32[32,64], index: 12, kind: input, shape index: {}]   ;;  %s3966_s13 = inlined_call_operand.vmem [shape: f32[1,64], index: 13, kind: input, shape index: {}]   ;;  %s3967_s14 = inlined_call_operand.vmem [shape: f32[64,32], index: 14, kind: input, shape index: {}]   ;;  %s3968_s15 = inlined_call_operand.vmem [shape: f32[1,32], index: 15, kind: input, shape index: {}]   ;;  %s3969_s16 = inlined_call_operand.vmem [shape: f32[1,32], index: 16, kind: input, shape index: {}]   ;;  %s3970_s17 = inlined_call_operand.vmem [shape: f32[1,32], index: 17, kind: input, shape index: {}]   ;;  %s3971_s18 = inlined_call_operand.vmem [shape: f32[2,8,32], index: 18, kind: output, shape index: {}]  }
   0x1   :  { %3973 = sst [smem:[#allocation2_spill]] %s3953_s0 }
   0x2   :  { %3974 = sst [smem:[#allocation3_spill]] %s3954_s1 }
   0x3   :  { %3975 = sst [smem:[#allocation4_spill]] %s3955_s2 }
   0x4 LB: > { %s2858_s28 = sadd.s32 4294967295, %s3416_s27   ;;  %p2862_p0 = scmp.ge.s32.totalorder %s3416_s27, 1  ;;  %s3416_s27 = sphi %s3516_s27, %s28_s27  }
   0x5   : > { %p519_p1 = scmp.lt.s32.totalorder %s3416_s27, 3 }
   0x7   : > { %p520_p2 = pnand %p2862_p0, %p519_p1 }
   0x8   : > { %v673_v0 = vld [vmem:[%s3957_s4] sm:$0xff] (!%p520_p2)  ;;  %v674_v1 = vld [vmem:[%s3957_s4 + $0x8] sm:$0xff] (!%p520_p2)  ;;  %s3976_s21 = sld [smem:[#allocation4_spill]] (!%p520_p2)  ;;  %v3418_v3 = vmov (!%p520_p2), 0.0|0.0   ;;  %v675_v6 = vld [vmem:[%s3957_s4 + $0x10] sm:$0xff] (!%p520_p2)  ;;  %p574_p3 = scmp.lt.s32.totalorder (!%p520_p2), %s2858_s28, 1 }
   0x9   : > { %523 = sbr.rel (%p520_p2) target bundleno = 4969 (0x1369), region = 92  ;;  %3291 = vmatprep.subr.bf16.mxu1 (!%p520_p2), %v3418_v3  ;;  %v3292_v4 = vpack.c.bf16 (!%p520_p2), %v674_v1, %v673_v0  ;;  %3285 = vmatprep.subr.bf16.mxu0 (!%p520_p2), %v3418_v3  ;;  %v676_v7 = vld [vmem:[%s3957_s4 + $0x18] sm:$0xff] (!%p520_p2)  ;;  %vm3419_vm0 = vmmov (!%p520_p2), 0   ;;  %v3420_v11 = vmov (!%p520_p2), 0.0   ;;  %v754_v14 = vld [vmem:[%s3959_s6] sm:$0xff] (!%p520_p2)  ;;  %v755_v15 = vld [vmem:[%s3959_s6 + $0x8] sm:$0xff] (!%p520_p2) }
   0xa   : > { %3082 = vmatprep.mubr.msk.f32.mxu1 (!%p520_p2), %vm3419_vm0, %v3420_v11  ;;  %3071 = vmatprep.mubr.msk.f32.mxu0 (!%p520_p2), %vm3419_vm0, %v3420_v11  ;;  %v3295_v12 = vpack.c.bf16 (!%p520_p2), %v676_v7, %v675_v6  ;;  %s3977_s26 = sld [smem:[#allocation2_spill]] (!%p520_p2)  ;;  %vm599_vm1 = vcmask (!%p520_p2), 261120   ;;  %v3298_v17 = vpack.c.bf16 (!%p520_p2), %v755_v15, %v754_v14  ;;  %v756_v18 = vld [vmem:[%s3959_s6 + $0x10] sm:$0xff] (!%p520_p2)  ;;  %v757_v19 = vld [vmem:[%s3959_s6 + $0x18] sm:$0xff] (!%p520_p2)  ;;  %v2867_v21 = vld [vmem:[%s3958_s5] ss:$0 sm:$0xff] (!%p520_p2) }
   0xb   : > { %3293 = vmatpush3.bf16.msra.mxu1 (!%p520_p2), %v3292_v4  ;;  %v3301_v20 = vpack.c.bf16 (!%p520_p2), %v757_v19, %v756_v18  ;;  %v2865_v22 = vld [vmem:[%s3956_s3] ss:$0 sm:$0xff] (!%p520_p2)  ;;  %vm835_vm2 = vcmask (!%p520_p2), 64512   ;;  %s3978_s0 = sld [smem:[#allocation3_spill]] (!%p520_p2)  ;;  %v2883_v52 = vld [vmem:[%s3957_s4 + $0x28] sm:$0xff] (!%p520_p2)  ;;  %v2884_v56 = vld [vmem:[%s3957_s4 + $0x30] sm:$0xff] (!%p520_p2) }
   0xc   : > { %3294 = vmatprep.subr.bf16.mxu1 (!%p520_p2), %v3418_v3  ;;  %v2869_v29 = vld [vmem:[%s3960_s7] ss:$0 sm:$0xff] (!%p520_p2)  ;;  %v2885_v57 = vld [vmem:[%s3957_s4 + $0x38] sm:$0xff] (!%p520_p2)  ;;  %v2887_v63 = vld [vmem:[%s3958_s5 + $0x1] ss:$0 sm:$0xff] (!%p520_p2)  ;;  %vm2684_vm5 = vcmask (!%p520_p2), 523264  }
   0xd   : > { %v2882_v51 = vld [vmem:[%s3957_s4 + $0x20] sm:$0xff] (!%p520_p2)  ;;  %v3313_v58 = vpack.c.bf16 (!%p520_p2), %v2885_v57, %v2884_v56  ;;  %v2890_v7 = vld [vmem:[%s3959_s6 + $0x28] sm:$0xff] (!%p520_p2) }
   0xe   : > { %v588_v2 = vld [vmem:[%s3976_s21] sm:$0xff] (!%p520_p2)  ;;  %v589_v5 = vld [vmem:[%s3976_s21 + $0x8] sm:$0xff] (!%p520_p2)  ;;  %v590_v9 = vld [vmem:[%s3976_s21 + $0x10] sm:$0xff] (!%p520_p2)  ;;  %v3310_v54 = vpack.c.bf16 (!%p520_p2), %v2883_v52, %v2882_v51 }
   0xf   : > { %v3286_v8 = vpack.c.bf16 (!%p520_p2), %v589_v5, %v588_v2  ;;  %v591_v10 = vld [vmem:[%s3976_s21 + $0x18] sm:$0xff] (!%p520_p2)  ;;  %3296 = vmatpush3.bf16.msra.mxu1 (!%p520_p2), %v3295_v12  ;;  %v2875_v44 = vld [vmem:[%s3976_s21 + $0x20] sm:$0xff] (!%p520_p2)  ;;  %v2876_v45 = vld [vmem:[%s3976_s21 + $0x28] sm:$0xff] (!%p520_p2) }
  0x10   : > { %s3980_s28 = smov (!%p574_p3, %s2858_s28), 1  ;;  %v3289_v13 = vpack.c.bf16 %v591_v10, %v590_v9  ;;  %3101 = vmatprep.subr.mxu1 %v3420_v11  ;;  %v3304_v46 = vpack.c.bf16 %v2876_v45, %v2875_v44  ;;  %v2877_v47 = vld [vmem:[%s3976_s21 + $0x30] sm:$0xff]  ;;  %v2878_v48 = vld [vmem:[%s3976_s21 + $0x38] sm:$0xff]  ;;  %v2880_v0 = vld [vmem:[%s3956_s3 + $0x1] ss:$0 sm:$0xff] }
  0x11   : > { %3287 = vmatpush3.bf16.msra.mxu0 %v3286_v8  ;;  %s2863_s1 = sshll.u32 %s3980_s28, 3  ;;  %s580_s19 = scalar_lea.vmem %s3978_s0, %s3980_s28  ;;  %v3307_v49 = vpack.c.bf16 %v2878_v48, %v2877_v47  ;;  %v2889_v6 = vld [vmem:[%s3959_s6 + $0x20] sm:$0xff]  ;;  %v2891_v8 = vld [vmem:[%s3959_s6 + $0x30] sm:$0xff]  ;;  %v2892_v10 = vld [vmem:[%s3959_s6 + $0x38] sm:$0xff] }
  0x12   : > { %3288 = vmatprep.subr.bf16.mxu0 %v3418_v3  ;;  %s577_s29 = scalar_lea.vmem %s3977_s26, %s2863_s1  ;;  %v3613_v34 = vld [vmem:[%s580_s19] ss:$0 sm:$0xff]  ;;  %v3316_v9 = vpack.c.bf16 %v2890_v7, %v2889_v6  ;;  %v3319_v12 = vpack.c.bf16 %v2892_v10, %v2891_v8  ;;  %v2905_v44 = vld [vmem:[%s3976_s21 + $0x58] sm:$0xff]  ;;  %v2907_v57 = vld [vmem:[%s3956_s3 + $0x2] ss:$0 sm:$0xff]  ;;  %s584_s26 = scalar_lea.vmem %s3971_s18, %s2863_s1 }
  0x13   : > { %v3570_v16 = vld [vmem:[%s577_s29] sm:$0xff] }
  0x14   : > { %3083 = vmatmul.mubr.msk.f32.vlgmr.msra.gmra.mrb[0].mxu1 %vm599_vm1, %v3570_v16 }
  0x15   : > { %3290 = vmatpush3.bf16.msra.mxu0 %v3289_v13  ;;  %3103 = vmatprep.mubr.msk.f32.mxu1 %vm3419_vm0, %v3420_v11 }
  0x16   : > { %3297 = vmatprep.subr.bf16.mxu0 %v3418_v3 }
  0x18   : > { %3072 = vmatmul.mubr.msk.f32.vlgmr.msra.gmra.mrb[0].mxu0 %vm599_vm1, %v3570_v16 }
  0x19   : > { %3299 = vmatpush3.bf16.msra.mxu0 %v3298_v17  ;;  %3093 = vmatprep.mubr.msk.f32.mxu0 %vm3419_vm0, %v3420_v11 }
  0x1a   : > { %3300 = vmatprep.subr.bf16.mxu0 %v3418_v3 }
  0x1d   : > { %3302 = vmatpush3.bf16.msra.mxu0 %v3301_v20 }
  0x1e   : > { %3096 = vmatprep.subr.mxu0 %v3420_v11 }
  0x20   : > { %3094 = vmatmul.mubr.msk.f32.vlgmr.msra.gmra.mrb[2].mxu0 %vm599_vm1, %v3570_v16 }
  0x21   : > { %3098 = vmatprep.mubr.msk.f32.mxu0 %vm3419_vm0, %v3420_v11 }
  0xe7   : > { %v750_v23 = vpop.f32.mrb[0].mxu1 }
  0xe8   : > { %v751_v24 = vadd.f32 %v2867_v21, %v750_v23  ;;  %v3084_v25 = vpop.f32.mrb[1].mxu1 }
  0xe9   : > { %v2894_v25 = vld [vmem:[%s3960_s7 + $0x1] ss:$0 sm:$0xff] }
  0xea   : > { %3097 = vmatpush3.xpose.msk.msra.mxu0 %vm835_vm2, %v751_v24 }
  0xeb   : > { %v669_v26 = vpop.f32.mrb[0].mxu0  ;;  %3303 = vmatprep.subr.bf16.mxu0 %v3418_v3 }
  0xec   : > { %v670_v27 = vadd.f32 %v2865_v22, %v669_v26  ;;  %v3073_v28 = vpop.f32.mrb[1].mxu0 }
  0xed   : > { %v2899_v28 = vld [vmem:[%s3961_s8 + $0x8] sm:$0xff] }
  0xee   : > { %3099 = vmatmul.mubr.msk.f32.vlgmr.msra.gmra.mrb[4].mxu0 %vm835_vm2, %v670_v27 }
  0xef   : > { %3114 = vmatprep.mubr.msk.f32.mxu0 %vm3419_vm0, %v3420_v11  ;;  %3305 = vmatpush3.bf16.msra.mxu0 %v3304_v46 }
  0xf0   : > { %3306 = vmatprep.subr.bf16.mxu0 %v3418_v3 }
  0xf3   : > { %v831_v30 = vpop.f32.mrb[2].mxu0  ;;  %3308 = vmatpush3.bf16.msra.mxu0 %v3307_v49 }
  0xf4   : > { %v832_v31 = vadd.f32 %v2869_v29, %v831_v30  ;;  %v3095_v32 = vpop.f32.mrb[3].mxu0  ;;  %3315 = vmatprep.subr.bf16.mxu0 %v3418_v3 }
  0xf5   : > { %v1004_v32 = vld [vmem:[%s3961_s8] sm:$0xff] }
  0xf6   : > { %3102 = vmatpush3.msra.mxu1 %v832_v31  ;;  %3115 = vmatmul.mubr.msk.f32.vlgmr.msra.gmra.mrb[6].mxu0 %vm599_vm1, %v3570_v16 }
  0xf7   : > { %3309 = vmatprep.subr.bf16.mxu1 %v3418_v3  ;;  %3136 = vmatprep.mubr.msk.f32.mxu0 %vm3419_vm0, %v3420_v11 }
  0xf8   : > { %3317 = vmatpush3.bf16.msra.mxu0 %v3316_v9 }
  0xf9   : > { %3318 = vmatprep.subr.bf16.mxu0 %v3418_v3 }
  0xfc   : > { %3320 = vmatpush3.bf16.msra.mxu0 %v3319_v12 }
  0xfd   : > { %3149 = vmatprep.subr.mxu0 %v3420_v11 }
  0xff   : > { %3137 = vmatmul.mubr.msk.f32.vlgmr.msra.gmra.mrb[8].mxu0 %vm599_vm1, %v3570_v16 }
 0x100   : > { %3151 = vmatprep.mubr.msk.f32.mxu0 %vm3419_vm0, %v3420_v11  ;;  %3150 = vmatpush3.msra.mxu0 %v2899_v28  ;;  %v2931_v28 = vld [vmem:[%s3976_s21 + $0x78] sm:$0xff] }
 0x101   : > { %3321 = vmatprep.subr.bf16.mxu0 %v3418_v3 }
 0x1c1   : > { %v908_v33 = vpop.f32.mrb[4].mxu0 }
 0x1c2   : > { %v912_v35 = vmul.f32 0.35355338, %v908_v33  ;;  %v3100_v36 = vpop.f32.mrb[5].mxu0  ;;  %v2909_v33 = vld [vmem:[%s3957_s4 + $0x40] sm:$0xff] }
 0x1c4   : > { %v919_v37 = vadd.f32 %v3613_v34, %v912_v35  ;;  %v2910_v35 = vld [vmem:[%s3957_s4 + $0x48] sm:$0xff] }
 0x1c5   : > { %v3328_v36 = vpack.c.bf16 %v2910_v35, %v2909_v33  ;;  %v2937_v33 = vld [vmem:[%s3957_s4 + $0x70] sm:$0xff]  ;;  %v2938_v35 = vld [vmem:[%s3957_s4 + $0x78] sm:$0xff] }
 0x1c6   : > { %v920_v38 = vsel %vm835_vm2, %v919_v37, -inf }
 0x1c7   : > { %921 = vmax.xlane.f32.xlu0 %v920_v38  ;;  %v2912_v38 = vld [vmem:[%s3957_s4 + $0x58] sm:$0xff] }
 0x1c9   : > { %v1084_v59 = vpop.f32.mrb[6].mxu0 }
 0x1ca   : > { %v3116_v60 = vpop.f32.mrb[7].mxu0  ;;  %v1085_v5 = vadd.f32 %v2880_v0, %v1084_v59 }
 0x1d2   : > { %v1250_v24 = vpop.f32.mrb[8].mxu0 }
 0x1d3   : > { %v3138_v26 = vpop.f32.mrb[9].mxu0  ;;  %v1251_v27 = vadd.f32 %v2894_v25, %v1250_v24  ;;  %v2928_v24 = vld [vmem:[%s3976_s21 + $0x60] sm:$0xff]  ;;  %v2929_v25 = vld [vmem:[%s3976_s21 + $0x68] sm:$0xff] }
 0x1d4   : > { %v3340_v26 = vpack.c.bf16 %v2929_v25, %v2928_v24 }
 0x254   : > { %v922_v39 = vpop.xlane.xlu0 %921 }
 0x255   : > { %v923_v40 = vsub.f32 %v919_v37, %v922_v39  ;;  %v2911_v37 = vld [vmem:[%s3957_s4 + $0x50] sm:$0xff] }
 0x256   : > { %v3331_v39 = vpack.c.bf16 %v2912_v38, %v2911_v37  ;;  %v3349_v38 = vpack.c.bf16 %v2938_v35, %v2937_v33  ;;  %v2672_v35 = vld [vmem:[%s3967_s14 + $0x18] sm:$0xff] }
 0x257   : > { %v924_v41 = vmul.f32 1.442695, %v923_v40  ;;  %v2902_v40 = vld [vmem:[%s3976_s21 + $0x40] sm:$0xff] }
 0x259   : > { %3386 = vpow2.f32 %v924_v41  ;;  %v2903_v41 = vld [vmem:[%s3976_s21 + $0x48] sm:$0xff] }
 0x263   : > { %v3387_v42 = vpop.eup %3386 }
 0x264   : > { %v926_v43 = vsel %vm835_vm2, %v3387_v42, 0.0 }
 0x265   : > { %927 = vadd.xlane.f32.xlu0 %v926_v43  ;;  %v2904_v43 = vld [vmem:[%s3976_s21 + $0x50] sm:$0xff] }
 0x266   : > { %v3325_v47 = vpack.c.bf16 %v2905_v44, %v2904_v43  ;;  %v2940_v44 = vld [vmem:[%s3958_s5 + $0x3] ss:$0 sm:$0xff] }
 0x2f2   : > { %v928_v50 = vpop.xlane.xlu0 %927 }
 0x2f3   : > { %3388 = vrcp.f32 %v928_v50  ;;  %v2914_v50 = vld [vmem:[%s3958_s5 + $0x2] ss:$0 sm:$0xff] }
 0x2fd   : > { %v3389_v53 = vpop.eup %3388 }
 0x2fe   : > { %v930_v55 = vmul.f32 %v3389_v53, %v3387_v42  ;;  %v3322_v42 = vpack.c.bf16 %v2903_v41, %v2902_v40 }
 0x300   : > { %3104 = vmatmul.mubr.msk.f32.vlgmr.msra.gmra.mrb[2].mxu1 %vm835_vm2, %v930_v55 }
 0x301   : > { %3311 = vmatpush3.bf16.msra.mxu1 %v3310_v54  ;;  %3125 = vmatprep.mubr.msk.f32.mxu1 %vm3419_vm0, %v3420_v11 }
 0x302   : > { %3312 = vmatprep.subr.bf16.mxu1 %v3418_v3 }
 0x305   : > { %3314 = vmatpush3.bf16.msra.mxu1 %v3313_v58 }
 0x306   : > { %3139 = vmatprep.subr.mxu1 %v3420_v11 }
 0x308   : > { %3126 = vmatmul.mubr.msk.f32.vlgmr.msra.gmra.mrb[4].mxu1 %vm599_vm1, %v3570_v16 }
 0x309   : > { %3141 = vmatprep.mubr.msk.f32.mxu1 %vm3419_vm0, %v3420_v11 }
 0x3d3   : > { %v1000_v61 = vpop.f32.mrb[2].mxu1 }
 0x3d4   : > { %v3105_v62 = vpop.f32.mrb[3].mxu1 }
 0x3d5   : > { %v2917_v62 = vld [vmem:[%s3959_s6 + $0x48] sm:$0xff] }
 0x3db   : > { %v1167_v1 = vpop.f32.mrb[4].mxu1 }
 0x3dc   : > { %v1168_v2 = vadd.f32 %v2887_v63, %v1167_v1  ;;  %v3127_v4 = vpop.f32.mrb[5].mxu1  ;;  %v2918_v63 = vld [vmem:[%s3959_s6 + $0x50] sm:$0xff]  ;;  %v2919_v1 = vld [vmem:[%s3959_s6 + $0x58] sm:$0xff] }
 0x3de   : > { %3140 = vmatpush3.xpose.msk.msra.mxu1 %vm835_vm2, %v1168_v2  ;;  %v3337_v2 = vpack.c.bf16 %v2919_v1, %v2918_v63 }
 0x3df   : > { %3144 = vmatprep.subr.mxu1 %v3420_v11 }
 0x3e1   : > { %3142 = vmatmul.mubr.msk.f32.vlgmr.msra.gmra.mrb[6].mxu1 %vm835_vm2, %v1085_v5 }
 0x3e2   : > { %3146 = vmatprep.mubr.msk.f32.mxu1 %vm3419_vm0, %v3420_v11  ;;  %3145 = vmatpush3.msra.mxu1 %v1251_v27  ;;  %v2930_v27 = vld [vmem:[%s3976_s21 + $0x70] sm:$0xff] }
 0x3e3   : > { %3154 = vmatprep.subr.mxu1 %v3420_v11 }
 0x4b4   : > { %v1326_v13 = vpop.f32.mrb[6].mxu1 }
 0x4b5   : > { %v1330_v14 = vmul.f32 0.35355338, %v1326_v13  ;;  %v3143_v15 = vpop.f32.mrb[7].mxu1 }
 0x4b7   : > { %v1331_v17 = vadd.f32 %v3613_v34, %v1330_v14 }
 0x4b9   : > { %v1332_v18 = vsel %vm835_vm2, %v1331_v17, -inf }
 0x4ba   : > { %1333 = vmax.xlane.f32.xlu1 %v1332_v18 }
 0x547   : > { %v1334_v19 = vpop.xlane.xlu1 %1333 }
 0x548   : > { %v1335_v20 = vsub.f32 %v1331_v17, %v1334_v19  ;;  %v2921_v17 = vld [vmem:[%s3960_s7 + $0x2] ss:$0 sm:$0xff] }
 0x54a   : > { %v1336_v21 = vmul.f32 1.442695, %v1335_v20  ;;  %v2926_v20 = vld [vmem:[%s3961_s8 + $0x10] sm:$0xff] }
 0x54c   : > { %3390 = vpow2.f32 %v1336_v21 }
 0x556   : > { %v3391_v22 = vpop.eup %3390 }
 0x557   : > { %v1338_v23 = vsel %vm835_vm2, %v3391_v22, 0.0 }
 0x558   : > { %1339 = vadd.xlane.f32.xlu1 %v1338_v23 }
 0x5e5   : > { %v1340_v29 = vpop.xlane.xlu1 %1339 }
 0x5e6   : > { %3392 = vrcp.f32 %v1340_v29  ;;  %v3343_v29 = vpack.c.bf16 %v2931_v28, %v2930_v27  ;;  %v2587_v28 = vld [vmem:[%s3965_s12 + $0x18] sm:$0xff] }
 0x5f0   : > { %v3393_v30 = vpop.eup %3392 }
 0x5f1   : > { %v1342_v31 = vmul.f32 %v3393_v30, %v3391_v22  ;;  %v2935_v30 = vld [vmem:[%s3957_s4 + $0x60] sm:$0xff] }
 0x5f3   : > { %3147 = vmatmul.mubr.msk.f32.vlgmr.msra.gmra.mrb[8].mxu1 %vm835_vm2, %v1342_v31  ;;  %v2936_v31 = vld [vmem:[%s3957_s4 + $0x68] sm:$0xff] }
 0x5f4   : > { %3155 = vmatpush3.msra.mxu1 %v1004_v32  ;;  %3156 = vmatprep.mubr.msk.f32.mxu1 %vm3419_vm0, %v3420_v11  ;;  %v3346_v32 = vpack.c.bf16 %v2936_v31, %v2935_v30  ;;  %v2669_v30 = vld [vmem:[%s3967_s14] sm:$0xff]  ;;  %v2670_v31 = vld [vmem:[%s3967_s14 + $0x8] sm:$0xff] }
 0x5f5   : > { %3327 = vmatprep.subr.bf16.mxu1 %v3418_v3  ;;  %v3364_v33 = vpack.c.bf16 %v2670_v31, %v2669_v30 }
 0x5f7   : > { %3157 = vmatmul.mubr.msk.f32.vlgmr.msra.gmra.mrb[10].mxu1 %vm835_vm2, %v1000_v61  ;;  %v2916_v61 = vld [vmem:[%s3959_s6 + $0x40] sm:$0xff] }
 0x5f8   : > { %3329 = vmatpush3.bf16.msra.mxu1 %v3328_v36  ;;  %3178 = vmatprep.mubr.msk.f32.mxu1 %vm3419_vm0, %v3420_v11  ;;  %v3334_v0 = vpack.c.bf16 %v2917_v62, %v2916_v61 }
 0x5f9   : > { %3330 = vmatprep.subr.bf16.mxu1 %v3418_v3 }
 0x5fc   : > { %3332 = vmatpush3.bf16.msra.mxu1 %v3331_v39 }
 0x5fd   : > { %3192 = vmatprep.subr.mxu1 %v3420_v11 }
 0x5ff   : > { %3179 = vmatmul.mubr.msk.f32.vlgmr.msra.gmra.mrb[12].mxu1 %vm599_vm1, %v3570_v16 }
 0x600   : > { %3194 = vmatprep.mubr.msk.f32.mxu1 %vm3419_vm0, %v3420_v11 }
 0x6c6   : > { %v1412_v45 = vpop.f32.mrb[8].mxu1 }
 0x6c7   : > { %v3148_v46 = vpop.f32.mrb[9].mxu1  ;;  %3152 = vmatmul.mubr.msk.f32.vlgmr.msra.gmra.mrb[10].mxu0 %vm835_vm2, %v1412_v45  ;;  %v2933_v45 = vld [vmem:[%s3956_s3 + $0x3] ss:$0 sm:$0xff] }
 0x6c8   : > { %3323 = vmatpush3.bf16.msra.mxu0 %v3322_v42  ;;  %3167 = vmatprep.mubr.msk.f32.mxu0 %vm3419_vm0, %v3420_v11 }
 0x6c9   : > { %3324 = vmatprep.subr.bf16.mxu0 %v3418_v3 }
 0x6ca   : > { %v1560_v48 = vpop.f32.mrb[10].mxu1 }
 0x6cb   : > { %v3158_v49 = vpop.f32.mrb[11].mxu1 }
 0x6cc   : > { %3326 = vmatpush3.bf16.msra.mxu0 %v3325_v47 }
 0x6cd   : > { %3333 = vmatprep.subr.bf16.mxu0 %v3418_v3 }
 0x6cf   : > { %3168 = vmatmul.mubr.msk.f32.vlgmr.msra.gmra.mrb[12].mxu0 %vm599_vm1, %v3570_v16 }
 0x6d0   : > { %3189 = vmatprep.mubr.msk.f32.mxu0 %vm3419_vm0, %v3420_v11  ;;  %3335 = vmatpush3.bf16.msra.mxu0 %v3334_v0 }
 0x6d1   : > { %3336 = vmatprep.subr.bf16.mxu0 %v3418_v3 }
 0x6d2   : > { %v1726_v51 = vpop.f32.mrb[12].mxu1 }
 0x6d3   : > { %v1727_v52 = vadd.f32 %v2914_v50, %v1726_v51  ;;  %v3180_v53 = vpop.f32.mrb[13].mxu1  ;;  %v2942_v50 = vld [vmem:[%s3959_s6 + $0x60] sm:$0xff]  ;;  %v2943_v51 = vld [vmem:[%s3959_s6 + $0x68] sm:$0xff] }
 0x6d4   : > { %3338 = vmatpush3.bf16.msra.mxu0 %v3337_v2  ;;  %v3352_v53 = vpack.c.bf16 %v2943_v51, %v2942_v50 }
 0x6d5   : > { %3193 = vmatpush3.xpose.msk.msra.mxu1 %vm835_vm2, %v1727_v52  ;;  %3202 = vmatprep.subr.mxu0 %v3420_v11  ;;  %v2944_v52 = vld [vmem:[%s3959_s6 + $0x70] sm:$0xff] }
 0x6d6   : > { %3197 = vmatprep.subr.mxu1 %v3420_v11 }
 0x6d7   : > { %3190 = vmatmul.mubr.msk.f32.vlgmr.msra.gmra.mrb[14].mxu0 %vm599_vm1, %v3570_v16 }
 0x6d8   : > { %3204 = vmatprep.mubr.msk.f32.mxu0 %vm3419_vm0, %v3420_v11  ;;  %3203 = vmatpush3.msra.mxu0 %v2926_v20 }
 0x6d9   : > { %3345 = vmatprep.subr.bf16.mxu0 %v3418_v3 }
 0x79a   : > { %v1487_v54 = vpop.f32.mrb[10].mxu0 }
 0x79b   : > { %v3751_v55 = vadd.f32 %v1560_v48, %v1487_v54  ;;  %v3153_v56 = vpop.f32.mrb[11].mxu0  ;;  %v2945_v54 = vld [vmem:[%s3959_s6 + $0x78] sm:$0xff] }
 0x7a2   : > { %v1643_v58 = vpop.f32.mrb[12].mxu0 }
 0x7a3   : > { %v1644_v59 = vadd.f32 %v2907_v57, %v1643_v58  ;;  %v3169_v60 = vpop.f32.mrb[13].mxu0 }
 0x7a5   : > { %3195 = vmatmul.mubr.msk.f32.vlgmr.msra.gmra.mrb[14].mxu1 %vm835_vm2, %v1644_v59 }
 0x7a6   : > { %3199 = vmatprep.mubr.msk.f32.mxu1 %vm3419_vm0, %v3420_v11 }
 0x7aa   : > { %v1809_v15 = vpop.f32.mrb[14].mxu0 }
 0x7ab   : > { %v3191_v18 = vpop.f32.mrb[15].mxu0  ;;  %v1810_v19 = vadd.f32 %v2921_v17, %v1809_v15 }
 0x7ad   : > { %3198 = vmatpush3.msra.mxu1 %v1810_v19 }
 0x7ae   : > { %3339 = vmatprep.subr.bf16.mxu1 %v3418_v3 }
 0x878   : > { %v1885_v4 = vpop.f32.mrb[14].mxu1 }
 0x879   : > { %v1889_v5 = vmul.f32 0.35355338, %v1885_v4  ;;  %v3196_v6 = vpop.f32.mrb[15].mxu1  ;;  %v2947_v4 = vld [vmem:[%s3960_s7 + $0x3] ss:$0 sm:$0xff] }
 0x87b   : > { %v1890_v7 = vadd.f32 %v3613_v34, %v1889_v5 }
 0x87d   : > { %v1891_v8 = vsel %vm835_vm2, %v1890_v7, -inf }
 0x87e   : > { %1892 = vmax.xlane.f32.xlu0 %v1891_v8 }
 0x90b   : > { %v1893_v9 = vpop.xlane.xlu0 %1892 }
 0x90c   : > { %v1894_v10 = vsub.f32 %v1890_v7, %v1893_v9 }
 0x90e   : > { %v1895_v12 = vmul.f32 1.442695, %v1894_v10 }
 0x910   : > { %3394 = vpow2.f32 %v1895_v12 }
 0x91a   : > { %v3395_v13 = vpop.eup %3394 }
 0x91b   : > { %v1897_v14 = vsel %vm835_vm2, %v3395_v13, 0.0 }
 0x91c   : > { %1898 = vadd.xlane.f32.xlu1 %v1897_v14 }
 0x9a9   : > { %v1899_v21 = vpop.xlane.xlu1 %1898 }
 0x9aa   : > { %3396 = vrcp.f32 %v1899_v21 }
 0x9b4   : > { %v3397_v22 = vpop.eup %3396 }
 0x9b5   : > { %v1901_v23 = vmul.f32 %v3397_v22, %v3395_v13  ;;  %v2954_v13 = vld [vmem:[%s3962_s9] ss:$0 sm:$0xff] }
 0x9b7   : > { %3200 = vmatmul.mubr.msk.f32.vlgmr.msra.gmra.mrb[16].mxu1 %vm835_vm2, %v1901_v23 }
 0x9b8   : > { %3215 = vmatprep.mubr.msk.f32.mxu1 %vm3419_vm0, %v3420_v11  ;;  %3341 = vmatpush3.bf16.msra.mxu1 %v3340_v26  ;;  %v2585_v26 = vld [vmem:[%s3965_s12 + $0x8] sm:$0xff] }
 0x9b9   : > { %3342 = vmatprep.subr.bf16.mxu1 %v3418_v3 }
 0x9bc   : > { %3344 = vmatpush3.bf16.msra.mxu1 %v3343_v29 }
 0x9bd   : > { %3351 = vmatprep.subr.bf16.mxu1 %v3418_v3 }
 0x9bf   : > { %3216 = vmatmul.mubr.msk.f32.vlgmr.msra.gmra.mrb[18].mxu1 %vm599_vm1, %v3570_v16 }
 0x9c0   : > { %3237 = vmatprep.mubr.msk.f32.mxu1 %vm3419_vm0, %v3420_v11  ;;  %3353 = vmatpush3.bf16.msra.mxu1 %v3352_v53  ;;  %v2675_v53 = vld [vmem:[%s3967_s14 + $0x30] sm:$0xff] }
 0x9c1   : > { %3354 = vmatprep.subr.bf16.mxu1 %v3418_v3 }
 0xa8a   : > { %v1971_v36 = vpop.f32.mrb[16].mxu1 }
 0xa8b   : > { %v3201_v37 = vpop.f32.mrb[17].mxu1  ;;  %3205 = vmatmul.mubr.msk.f32.vlgmr.msra.gmra.mrb[16].mxu0 %vm835_vm2, %v1971_v36 }
 0xa8c   : > { %3347 = vmatpush3.bf16.msra.mxu0 %v3346_v32  ;;  %3226 = vmatprep.mubr.msk.f32.mxu0 %vm3419_vm0, %v3420_v11  ;;  %v2671_v32 = vld [vmem:[%s3967_s14 + $0x10] sm:$0xff]  ;;  %v2673_v37 = vld [vmem:[%s3967_s14 + $0x20] sm:$0xff] }
 0xa8d   : > { %3348 = vmatprep.subr.bf16.mxu0 %v3418_v3  ;;  %v3367_v36 = vpack.c.bf16 %v2672_v35, %v2671_v32 }
 0xa90   : > { %3350 = vmatpush3.bf16.msra.mxu0 %v3349_v38  ;;  %v2674_v38 = vld [vmem:[%s3967_s14 + $0x28] sm:$0xff] }
 0xa91   : > { %3240 = vmatprep.subr.mxu0 %v3420_v11 }
 0xa92   : > { %v2130_v39 = vpop.f32.mrb[18].mxu1 }
 0xa93   : > { %3227 = vmatmul.mubr.msk.f32.vlgmr.msra.gmra.mrb[18].mxu0 %vm599_vm1, %v3570_v16  ;;  %v3217_v40 = vpop.f32.mrb[19].mxu1  ;;  %v2131_v49 = vadd.f32 %v2933_v45, %v2130_v39  ;;  %v3370_v39 = vpack.c.bf16 %v2674_v38, %v2673_v37 }
 0xa94   : > { %3242 = vmatprep.mubr.msk.f32.mxu0 %vm3419_vm0, %v3420_v11 }
 0xb5e   : > { %v2046_v41 = vpop.f32.mrb[16].mxu0 }
 0xb5f   : > { %v2050_v42 = vadd.f32 %v2046_v41, %v3751_v55  ;;  %v3206_v43 = vpop.f32.mrb[17].mxu0  ;;  %v3355_v55 = vpack.c.bf16 %v2945_v54, %v2944_v52  ;;  %v2676_v54 = vld [vmem:[%s3967_s14 + $0x38] sm:$0xff] }
 0xb61   : > { %3356 = vmatpush3.bf16.msra.mxu1 %v3355_v55  ;;  %v3373_v55 = vpack.c.bf16 %v2676_v54, %v2675_v53 }
 0xb62   : > { %3250 = vmatprep.subr.mxu1 %v3420_v11 }
 0xb64   : > { %3238 = vmatmul.mubr.msk.f32.vlgmr.msra.gmra.mrb[20].mxu1 %vm599_vm1, %v3570_v16 }
 0xb65   : > { %3252 = vmatprep.mubr.msk.f32.mxu1 %vm3419_vm0, %v3420_v11 }
 0xb66   : > { %v2213_v46 = vpop.f32.mrb[18].mxu0 }
 0xb67   : > { %v2214_v47 = vadd.f32 %v2940_v44, %v2213_v46  ;;  %v3228_v48 = vpop.f32.mrb[19].mxu0 }
 0xb68   : > { %v2955_v48 = vld [vmem:[%s3963_s10] ss:$0 sm:$0xff] }
 0xb69   : > { %3241 = vmatpush3.xpose.msk.msra.mxu0 %vm835_vm2, %v2214_v47 }
 0xb6a   : > { %3245 = vmatprep.subr.mxu0 %v3420_v11 }
 0xb6c   : > { %3243 = vmatmul.mubr.msk.f32.vlgmr.msra.gmra.mrb[20].mxu0 %vm835_vm2, %v2131_v49 }
 0xb6d   : > { %3247 = vmatprep.mubr.msk.f32.mxu0 %vm3419_vm0, %v3420_v11 }
 0xc37   : > { %v2296_v2 = vpop.f32.mrb[20].mxu1 }
 0xc38   : > { %v3239_v5 = vpop.f32.mrb[21].mxu1  ;;  %v2297_v6 = vadd.f32 %v2947_v4, %v2296_v2 }
 0xc3a   : > { %3246 = vmatpush3.msra.mxu0 %v2297_v6 }
 0xc3b   : > { %3357 = vmatprep.subr.bf16.mxu0 %v3418_v3 }
 0xc3f   : > { %v2372_v56 = vpop.f32.mrb[20].mxu0 }
 0xc40   : > { %v2376_v57 = vmul.f32 0.35355338, %v2372_v56  ;;  %v3244_v58 = vpop.f32.mrb[21].mxu0  ;;  %v2957_v56 = vld [vmem:[%s3966_s13] ss:$0 sm:$0xff] }
 0xc42   : > { %v2377_v59 = vadd.f32 %v3613_v34, %v2376_v57  ;;  %v2952_v34 = vld [vmem:[%s3961_s8 + $0x18] sm:$0xff] }
 0xc43   : > { %3251 = vmatpush3.msra.mxu1 %v2952_v34 }
 0xc44   : > { %v2378_v60 = vsel %vm835_vm2, %v2377_v59, -inf  ;;  %3363 = vmatprep.subr.bf16.mxu1 %v3418_v3 }
 0xc45   : > { %2379 = vmax.xlane.f32.xlu0 %v2378_v60 }
 0xcd2   : > { %v2380_v61 = vpop.xlane.xlu0 %2379 }
 0xcd3   : > { %v2381_v62 = vsub.f32 %v2377_v59, %v2380_v61  ;;  %v2959_v61 = vld [vmem:[%s3968_s15] ss:$0 sm:$0xff] }
 0xcd5   : > { %v2382_v63 = vmul.f32 1.442695, %v2381_v62 }
 0xcd7   : > { %3398 = vpow2.f32 %v2382_v63 }
 0xce1   : > { %v3399_v0 = vpop.eup %3398 }
 0xce2   : > { %v2384_v1 = vsel %vm835_vm2, %v3399_v0, 0.0 }
 0xce3   : > { %2385 = vadd.xlane.f32.xlu1 %v2384_v1 }
 0xd70   : > { %v2386_v7 = vpop.xlane.xlu1 %2385 }
 0xd71   : > { %3400 = vrcp.f32 %v2386_v7 }
 0xd7b   : > { %v3401_v8 = vpop.eup %3400 }
 0xd7c   : > { %v2388_v9 = vmul.f32 %v3401_v8, %v3399_v0 }
 0xd7e   : > { %3248 = vmatmul.mubr.msk.f32.vlgmr.msra.gmra.mrb[22].mxu0 %vm835_vm2, %v2388_v9 }
 0xd7f   : > { %3263 = vmatprep.mubr.msk.f32.mxu0 %vm3419_vm0, %v3420_v11 }
 0xe51   : > { %v2458_v10 = vpop.f32.mrb[22].mxu0 }
 0xe52   : > { %v3249_v12 = vpop.f32.mrb[23].mxu0  ;;  %3253 = vmatmul.mubr.msk.f32.vlgmr.msra.gmra.mrb[22].mxu1 %vm835_vm2, %v2458_v10 }
 0xe53   : > { %3282 = vmatprep.mubr.msk.f32.mxu1 %vm3419_vm0, %v3420_v11  ;;  %v2584_v11 = vld [vmem:[%s3965_s12] sm:$0xff]  ;;  %3365 = vmatpush3.bf16.msra.mxu1 %v3364_v33 }
 0xe54   : > { %v3358_v27 = vpack.c.bf16 %v2585_v26, %v2584_v11  ;;  %3366 = vmatprep.subr.bf16.mxu1 %v3418_v3 }
 0xe56   : > { %3359 = vmatpush3.bf16.msra.mxu0 %v3358_v27 }
 0xe57   : > { %3360 = vmatprep.subr.bf16.mxu0 %v3418_v3  ;;  %3368 = vmatpush3.bf16.msra.mxu1 %v3367_v36 }
 0xe58   : > { %3369 = vmatprep.subr.bf16.mxu1 %v3418_v3 }
 0xe5b   : > { %3371 = vmatpush3.bf16.msra.mxu1 %v3370_v39 }
 0xe5c   : > { %3372 = vmatprep.subr.bf16.mxu1 %v3418_v3  ;;  %v2956_v3 = vld [vmem:[%s3964_s11] ss:$0 sm:$0xff] }
 0xe5f   : > { %3374 = vmatpush3.bf16.msra.mxu1 %v3373_v55 }
 0xf25   : > { %v2533_v14 = vpop.f32.mrb[22].mxu1 }
 0xf26   : > { %v2537_v15 = vadd.f32 %v2533_v14, %v2050_v42  ;;  %v3254_v17 = vpop.f32.mrb[23].mxu1 }
 0xf28   : > { %v2544_v18 = vadd.f32 %v2954_v13, %v2537_v15 }
 0xf2a   : > { %v2545_v19 = vadd.f32 %v2544_v18, %v3570_v16  ;;  %v2586_v16 = vld [vmem:[%s3965_s12 + $0x10] sm:$0xff]  ;;  %v2961_v18 = vld [vmem:[%s3969_s16] ss:$0 sm:$0xff] }
 0xf2b   : > { %v3361_v29 = vpack.c.bf16 %v2587_v28, %v2586_v16 }
 0xf2c   : > { %v2548_v20 = vsel %vm599_vm1, %v2545_v19, 0.0 }
 0xf2d   : > { %2549 = vadd.xlane.f32.xlu0 %v2548_v20  ;;  %3362 = vmatpush3.bf16.msra.mxu0 %v3361_v29 }
 0xfba   : > { %v2550_v21 = vpop.xlane.xlu0 %2549 }
 0xfbb   : > { %v2552_v22 = vmul.f32 0.03125, %v2550_v21  ;;  %v2962_v21 = vld [vmem:[%s3970_s17] ss:$0 sm:$0xff] }
 0xfbd   : > { %v2553_v23 = vsub.f32 %v2545_v19, %v2552_v22 }
 0xfbf   : > { %v2554_v24 = vmul.f32 %v2553_v23, %v2553_v23  ;;  %v2573_v49 = vmul.f32 %v2955_v48, %v2553_v23 }
 0xfc1   : > { %v2555_v25 = vsel %vm599_vm1, %v2554_v24, 0.0 }
 0xfc2   : > { %2556 = vadd.xlane.f32.xlu1 %v2555_v25 }
0x104f   : > { %v2557_v40 = vpop.xlane.xlu1 %2556 }
0x1050   : > { %v2559_v41 = vmul.f32 0.032258064, %v2557_v40 }
0x1052   : > { %3402 = vrsqrt.f32 %v2559_v41  ;;  %vm2562_vm3 = vcmp.eq.f32.partialorder %v2559_v41, inf  ;;  %v2565_v44 = vand.u32 2147483648, %v2559_v41  ;;  %vm2564_vm4 = vcmp.eq.f32.partialorder %v2559_v41, 0.0 }
0x105c   : > { %v3403_v42 = vpop.eup %3402 }
0x105d   : > { %v2561_v43 = vmul.f32 %v3403_v42, %v2559_v41 }
0x105f   : > { %v2563_v45 = vsel %vm2562_vm3, %v2559_v41, %v2561_v43 }
0x1060   : > { %v2566_v46 = vsel %vm2564_vm4, %v2565_v44, %v2563_v45 }
0x1061   : > { %v2574_v47 = vadd.f32 1e-06, %v2566_v46 }
0x1063   : > { %3404 = vrcp.f32 %v2574_v47 }
0x106d   : > { %v3405_v50 = vpop.eup %3404 }
0x106e   : > { %v2576_v51 = vmul.f32 %v3405_v50, %v2573_v49 }
0x1070   : > { %v2583_v52 = vadd.f32 %v2956_v3, %v2576_v51 }
0x1072   : > { %3264 = vmatmul.mubr.msk.f32.vlgmr.msra.gmra.mrb[24].mxu0 %vm599_vm1, %v2583_v52 }
0x1145   : > { %v2664_v57 = vpop.f32.mrb[24].mxu0 }
0x1146   : > { %v2665_v58 = vadd.f32 %v2957_v56, %v2664_v57  ;;  %v3265_v59 = vpop.f32.mrb[25].mxu0 }
0x1148   : > { %v2668_v60 = vmax.f32 %v2665_v58, 0.0 }
0x114a   : > { %3283 = vmatmul.mubr.msk.f32.vlgmr.msra.gmra.mrb[24].mxu1 %vm2684_vm5, %v2668_v60 }
0x121d   : > { %v2754_v62 = vpop.f32.mrb[24].mxu1 }
0x121e   : > { %v2755_v63 = vadd.f32 %v2959_v61, %v2754_v62  ;;  %v3284_v0 = vpop.f32.mrb[25].mxu1 }
0x1220   : > { %v2758_v1 = vadd.f32 %v2755_v63, %v2583_v52 }
0x1222   : > { %v2761_v2 = vsel %vm599_vm1, %v2758_v1, 0.0 }
0x1223   : > { %2762 = vadd.xlane.f32.xlu0 %v2761_v2 }
0x12b0   : > { %v2763_v4 = vpop.xlane.xlu0 %2762 }
0x12b1   : > { %v2764_v5 = vmul.f32 0.03125, %v2763_v4 }
0x12b3   : > { %v2765_v6 = vsub.f32 %v2758_v1, %v2764_v5 }
0x12b5   : > { %v2766_v34 = vmul.f32 %v2765_v6, %v2765_v6  ;;  %v2784_v19 = vmul.f32 %v2961_v18, %v2765_v6 }
0x12b7   : > { %v2767_v7 = vsel %vm599_vm1, %v2766_v34, 0.0 }
0x12b8   : > { %2768 = vadd.xlane.f32.xlu1 %v2767_v7 }
0x1345   : > { %v2769_v8 = vpop.xlane.xlu1 %2768 }
0x1346   : > { %v2770_v9 = vmul.f32 0.032258064, %v2769_v8 }
0x1348   : > { %3406 = vrsqrt.f32 %v2770_v9  ;;  %vm2773_vm6 = vcmp.eq.f32.partialorder %v2770_v9, inf  ;;  %v2776_v13 = vand.u32 2147483648, %v2770_v9  ;;  %vm2775_vm7 = vcmp.eq.f32.partialorder %v2770_v9, 0.0 }
0x1352   : > { %v3407_v10 = vpop.eup %3406 }
0x1353   : > { %v2772_v12 = vmul.f32 %v3407_v10, %v2770_v9 }
0x1355   : > { %v2774_v14 = vsel %vm2773_vm6, %v2770_v9, %v2772_v12 }
0x1356   : > { %v2777_v15 = vsel %vm2775_vm7, %v2776_v13, %v2774_v14 }
0x1357   : > { %v2785_v17 = vadd.f32 1e-06, %v2777_v15 }
0x1359   : > { %3408 = vrcp.f32 %v2785_v17 }
0x1363   : > { %v3409_v20 = vpop.eup %3408 }
0x1364   : > { %v2787_v22 = vmul.f32 %v3409_v20, %v2784_v19 }
0x1366   : > { %v2794_v23 = vadd.f32 %v2962_v21, %v2787_v22 }
0x1368   : > { %2795 = vst.msk [vmem:[%s584_s26] sm:$0xff] %vm599_vm1, %v2794_v23 }
0x1369 PF: > { %s28_s27 = sadd.s32 1, %s3416_s27  }
0x136a   : > { %p25_p4 = scmp.ge.s32.totalorder %s28_s27, 4  }
0x136c   :  { %27 = sbr.rel (!%p25_p4) target bundleno = 4 (0x4), region = 146 }

// kernel: run.6
= control target key start
LH: loop header
LB: loop body
LE: loop exit
PB: predicated region body
PF: predicated region fallthrough
CT: control target
= control target key end

     0   :  { %s7326_s6 = smov 1   ;;  %s7327_s10 = smov 2   ;;  %s8058_s0 = inlined_call_operand.smem [shape: u32[32], index: -1, kind: input, shape index: {}] }
   0x1   :  { %s7369_s5 = sld [smem:[%s8058_s0]]   ;;  %s7328_s14 = smov 3  }
   0x2   :  { %s7374_s9 = sld [smem:[%s8058_s0 + %s7326_s6]]   ;;  %s7329_s18 = smov 4  }
   0x3   :  { %s7379_s13 = sld [smem:[%s8058_s0 + %s7327_s10]]   ;;  %s7330_s22 = smov 5  }
   0x4   :  { %s7384_s17 = sld [smem:[%s8058_s0 + %s7328_s14]]   ;;  %s7331_s26 = smov 6  }
   0x5   :  { %s7389_s21 = sld [smem:[%s8058_s0 + %s7329_s18]]   ;;  %s7332_s30 = smov 7  }
   0x6   :  { %s7394_s25 = sld [smem:[%s8058_s0 + %s7330_s22]]   ;;  %s7333_s4 = smov 8  }
   0x7   :  { %s7399_s29 = sld [smem:[%s8058_s0 + %s7331_s26]]   ;;  %s7334_s10 = smov 9  }
   0x8   :  { %s7404_s3 = sld [smem:[%s8058_s0 + %s7332_s30]]   ;;  %s7335_s15 = smov 10  }
   0x9   :  { %s7409_s8 = sld [smem:[%s8058_s0 + %s7333_s4]]   ;;  %s7336_s20 = smov 11  }
   0xa   :  { %s7414_s14 = sld [smem:[%s8058_s0 + %s7334_s10]]   ;;  %s7337_s26 = smov 12  }
   0xb   :  { %8066 = sst [smem:[#allocation5_spill]] %s7389_s21  ;;  %s7338_s1 = smov 13  }
   0xc   :  { %s7419_s19 = sld [smem:[%s8058_s0 + %s7335_s15]]   ;;  %s7339_s7 = smov 14  }
   0xd   :  { %s7424_s24 = sld [smem:[%s8058_s0 + %s7336_s20]]   ;;  %s7340_s15 = smov 15  }
   0xe   :  { %s7429_s30 = sld [smem:[%s8058_s0 + %s7337_s26]]   ;;  %s7341_s22 = smov 16  }
   0xf   :  { %s7434_s6 = sld [smem:[%s8058_s0 + %s7338_s1]]   ;;  %s7342_s28 = smov 17  }
  0x10   :  { %s7439_s12 = sld [smem:[%s8058_s0 + %s7339_s7]]   ;;  %s7343_s7 = smov 18  }
  0x11   :  { %s7444_s20 = sld [smem:[%s8058_s0 + %s7340_s15]]   ;;  %s7344_s15 = smov 19  }
  0x12   :  { %s7449_s27 = sld [smem:[%s8058_s0 + %s7341_s22]]   ;;  %s7345_s22 = smov 20  }
  0x13   :  { %s7454_s4 = sld [smem:[%s8058_s0 + %s7342_s28]]   ;;  %s7346_s28 = smov 21  }
  0x14   :  { %s7459_s21 = sld [smem:[%s8058_s0 + %s7343_s7]]   ;;  %s7347_s7 = smov 22  }
  0x16   :  { %8067 = sst [smem:[#allocation6_spill]] %s7439_s12 }
  0x17   :  { %s7464_s12 = sld [smem:[%s8058_s0 + %s7344_s15]]   ;;  %s7348_s15 = smov 23  }
  0x18   :  { %8068 = sst [smem:[#allocation7_spill]] %s7449_s27 }
  0x19   :  { %8069 = sst [smem:[#allocation8_spill]] %s7454_s4 }
  0x1a   :  { %8070 = sst [smem:[#allocation9_spill]] %s7459_s21 }
  0x1b   :  { %s7469_s27 = sld [smem:[%s8058_s0 + %s7345_s22]]   ;;  %s7349_s22 = smov 24  }
  0x1c   :  { %s7474_s4 = sld [smem:[%s8058_s0 + %s7346_s28]]   ;;  %s7350_s28 = smov 25  }
  0x1d   :  { %8071 = sst [smem:[#allocation10_spill]] %s7464_s12 }
  0x1e   :  { %s7479_s21 = sld [smem:[%s8058_s0 + %s7347_s7]]   ;;  %s7351_s7 = smov 26  }
  0x1f   :  { %s7484_s12 = sld [smem:[%s8058_s0 + %s7348_s15]]   ;;  %s7352_s15 = smov 27  }
  0x21   :  { %8072 = sst [smem:[#allocation11_spill]] %s7469_s27 }
  0x22   :  { %8073 = sst [smem:[#allocation12_spill]] %s7474_s4 }
  0x23   :  { %s7489_s27 = sld [smem:[%s8058_s0 + %s7349_s22]]   ;;  %s7353_s22 = smov 28  }
  0x24   :  { %8074 = sst [smem:[#allocation13_spill]] %s7479_s21 }
  0x25   :  { %8075 = sst [smem:[#allocation14_spill]] %s7484_s12 }
  0x26   :  { %s7494_s4 = sld [smem:[%s8058_s0 + %s7350_s28]]   ;;  %s7354_s28 = smov 29  }
  0x27   :  { %s7499_s21 = sld [smem:[%s8058_s0 + %s7351_s7]]   ;;  %s7355_s7 = smov 30  }
  0x28   :  { %s7504_s12 = sld [smem:[%s8058_s0 + %s7352_s15]]   ;;  %s7356_s15 = smov 31  }
  0x29   :  { %8076 = sst [smem:[#allocation15_spill]] %s7489_s27 }
  0x2a   :  { %s7509_s27 = sld [smem:[%s8058_s0 + %s7353_s22]]  }
  0x2c   :  { %8077 = sst [smem:[#allocation16_spill]] %s7494_s4 }
  0x2d   :  { %8078 = sst [smem:[#allocation17_spill]] %s7499_s21 }
  0x2e   :  { %8079 = sst [smem:[#allocation18_spill]] %s7504_s12 }
  0x2f   :  { %s7514_s4 = sld [smem:[%s8058_s0 + %s7354_s28]]  }
  0x30   :  { %s7519_s21 = sld [smem:[%s8058_s0 + %s7355_s7]]  }
  0x31   :  { %s7524_s12 = sld [smem:[%s8058_s0 + %s7356_s15]]  }
  0x32   :  { %68 = vsyncpa [#allocation3], 0  ;;  %s7526_s22 = smov 0  }
  0x33 LB: > { %s7532_s23 = sadd.s32 4294967295, %s7324_s22   ;;  %p5955_p0 = scmp.ge.s32.totalorder %s7324_s22, 1  ;;  %s7324_s22 = sphi %s7526_s22, %s74_s22  }
  0x34   : > { %p776_p1 = scmp.lt.s32.totalorder %s7324_s22, 3  ;;  %s789_s0 = sshll.u32 %s7369_s5, 4  ;;  %s790_s0 = int_to_ptr.vmem [resolvable:$true] %s789_s0 }
  0x35   : > { %p7132_p3 = scmp.eq.s32.totalorder %s7532_s23, 0  ;;  %s7299_s28 = scalar_lea.vmem %s790_s0, 32 }
  0x36   : > { %p7537_p2 = pnand %p5955_p0, %p776_p1  ;;  %p7300_p6 = scmp.ne.s32.totalorder %s790_s0, %s7299_s28 }
  0x37   : > { %p7307_p10 = scmp.lt.s32.totalorder %s790_s0, %s790_s0  ;;  %p7308_p11 = scmp.lt.s32.totalorder %s7299_s28, %s7299_s28 }
  0x38   : > { %p7128_p4 = pneg %p7537_p2 }
  0x39   : > { %p7309_p12 = por %p7308_p11, %p7307_p10 }
  0x3a   : > { %p7129_p5 = pnand %p7132_p3, %p7128_p4 }
  0x3c   : > { %p7301_p7 = pneg %p7129_p5 }
  0x3e   : > { %p7302_p8 = pnand %p7301_p7, %p7300_p6 }
  0x40   : > { %p7303_p9 = pneg %p7302_p8 }
  0x42   : > { %p7310_p13 = pnand %p7309_p12, %p7303_p9 }
  0x44   : > { %7313 = shalt.err (!%p7310_p13)
}
  0x45   : > { %s7357_s1 = smov [#allocation2]   ;;  %909 = sbr.rel (%p7537_p2) target bundleno = 9349 (0x2485), region = 144 }
  0x46   : > { %7131 = dma.vmem_to_smem (!%p7129_p5), %s790_s0, 32, %s7357_s1, [#allocation3]  }
  0x4c   : > { %7319 = dma.done.wait (%p7132_p3), [#allocation3], 32  }
  0x4d   : > { %7321 = vsyncadd (%p7132_p3), [#allocation3], 4294967264 }
  0x4e   : > { %915 = sfence }
  0x4f   : > { %v1037_v0 = vld [vmem:[%s7394_s25] sm:$0xff]  ;;  %v1038_v1 = vld [vmem:[%s7394_s25 + $0x8] sm:$0xff]  ;;  %v1039_v2 = vld [vmem:[%s7394_s25 + $0x10] sm:$0xff]  ;;  %p1002_p0 = scmp.lt.s32.totalorder %s7532_s23, 1  ;;  %vm1048_vm0 = vcmask 261120   ;;  %vm1302_vm1 = vcmask 64512  }
  0x50   : > { %v6872_v3 = vpack.c.bf16 %v1038_v1, %v1037_v0  ;;  %v1040_v4 = vld [vmem:[%s7394_s25 + $0x18] sm:$0xff]  ;;  %v1130_v6 = vld [vmem:[%s7404_s3] sm:$0xff]  ;;  %v1131_v7 = vld [vmem:[%s7404_s3 + $0x8] sm:$0xff]  ;;  %vm1392_vm3 = vcmask 130048   ;;  %s5969_s16 = sshll.u32 %s7532_s23, 7  ;;  %vm7359_vm4 = vmmov 0  }
  0x51   : > { %v6876_v5 = vpack.c.bf16 %v1040_v4, %v1039_v2  ;;  %s7558_s2 = scalar_select %p1002_p0, %s7532_s23, 1  ;;  %v6880_v8 = vpack.c.bf16 %v1131_v7, %v1130_v6  ;;  %v1132_v10 = vld [vmem:[%s7404_s3 + $0x10] sm:$0xff]  ;;  %v1133_v11 = vld [vmem:[%s7404_s3 + $0x18] sm:$0xff]  ;;  %v5970_v14 = vld [vmem:[%s7399_s29] ss:$0 sm:$0xff]  ;;  %vm5678_vm13 = vcmask 523264  }
  0x52   : > { %6873 = vmatprep.subr.bf16.mxu1 %v6872_v3  ;;  %v6884_v13 = vpack.c.bf16 %v1133_v11, %v1132_v10  ;;  %v5973_v18 = vld [vmem:[%s7409_s8] ss:$0 sm:$0xff]  ;;  %vm7591_vm2 = vmpackc.low %vm1302_vm1, %vm1302_vm1  ;;  %v1217_v27 = vld [vmem:[%s7414_s14 + $0x8] sm:$0xff]  ;;  %s1035_s18 = sadd.s32 1, %s5969_s16  ;;  %s1034_s0 = sld [smem:[#allocation2 + %s5969_s16]] }
  0x53   : > { %6875 = vmatpush3.bf16.msra.mxu1 %v6872_v3  ;;  %s6207_s7 = sshll.u32 %s7558_s2, 4  ;;  %v1216_v26 = vld [vmem:[%s7414_s14] sm:$0xff]  ;;  %v1218_v28 = vld [vmem:[%s7414_s14 + $0x10] sm:$0xff]  ;;  %v1219_v30 = vld [vmem:[%s7414_s14 + $0x18] sm:$0xff]  ;;  %s6208_s11 = sshll.u32 %s7558_s2, 5 }
  0x54   : > { %6877 = vmatprep.subr.bf16.mxu1 %v6876_v5  ;;  %s7566_s10 = scalar_lea.vmem %s7374_s9, %s6207_s7  ;;  %v6888_v29 = vpack.c.bf16 %v1217_v27, %v1216_v26  ;;  %v6892_v31 = vpack.c.bf16 %v1219_v30, %v1218_v28  ;;  %s1015_s15 = scalar_lea.vmem %s7384_s17, %s6208_s11  ;;  %v5976_v1 = vld [vmem:[%s7419_s19] ss:$0 sm:$0xff]  ;;  %v5994_v7 = vld [vmem:[%s7404_s3 + $0x28] sm:$0xff] }
  0x55   : > { %v7569_v9 = vld [vmem:[%s7566_s10] sm:$0xff]  ;;  %v7578_v12 = vld [vmem:[%s7566_s10 + $0x8] sm:$0xff]  ;;  %v7614_v39 = vld [vmem:[%s1015_s15 + $0x10] sm:$0xff]  ;;  %s1036_s26 = sld [smem:[#allocation2 + %s1035_s18]]  ;;  %s5962_s23 = sshll.u32 %s7558_s2, 3 }
  0x56   : > { %6450 = vmatprep.mubr.msk.f32.mxu1 %vm1048_vm0, %v7569_v9  ;;  %6472 = vmatprep.mubr.msk.f32.mxu0 %vm1048_vm0, %v7569_v9  ;;  %v7612_v38 = vld [vmem:[%s1015_s15] sm:$0xff]  ;;  %v7618_v43 = vld [vmem:[%s1015_s15 + $0x8] sm:$0xff]  ;;  %v7620_v44 = vld [vmem:[%s1015_s15 + $0x18] sm:$0xff]  ;;  %s1010_s28 = scalar_lea.vmem %s7379_s13, %s5962_s23  ;;  %s8083_s1 = sld [smem:[#allocation12_spill]] }
  0x57   : > { %6879 = vmatpush3.bf16.msra.mxu1 %v6876_v5  ;;  %6889 = vmatprep.subr.bf16.mxu0 %v6888_v29  ;;  %v5993_v6 = vld [vmem:[%s7404_s3 + $0x20] sm:$0xff]  ;;  %v5986_v11 = vld [vmem:[%s7394_s25 + $0x28] sm:$0xff]  ;;  %s8085_s11 = sld [smem:[#allocation7_spill]]  ;;  %s8086_s15 = sld [smem:[#allocation6_spill]] }
  0x58   : > { %6881 = vmatprep.subr.bf16.mxu1 %v6880_v8  ;;  %6891 = vmatpush3.bf16.msra.mxu0 %v6888_v29  ;;  %v5985_v10 = vld [vmem:[%s7394_s25 + $0x20] sm:$0xff]  ;;  %s8087_s16 = sld [smem:[#allocation8_spill]]  ;;  %s8088_s18 = sld [smem:[#allocation5_spill]] }
  0x59   : > { %6893 = vmatprep.subr.bf16.mxu0 %v6892_v31  ;;  %s8090_s23 = sld [smem:[#allocation10_spill]] }
  0x5a   : > { %6451 = vmatmul.mubr.msk.f32.vlgmr.msra.gmra.mrb[0].mxu1 %vm1048_vm0, %v7578_v12 }
  0x5b   : > { %6883 = vmatpush3.bf16.msra.mxu1 %v6880_v8  ;;  %6461 = vmatprep.mubr.msk.f32.mxu1 %vm1048_vm0, %v7569_v9  ;;  %v6914_v8 = vpack.c.bf16 %v5994_v7, %v5993_v6  ;;  %v7642_v26 = vstv %s1036_s26  ;;  %s8089_s26 = sld [smem:[#allocation9_spill]] }
  0x5c   : > { %6885 = vmatprep.subr.bf16.mxu1 %v6884_v13  ;;  %6895 = vmatpush3.bf16.msra.mxu0 %v6892_v31 }
  0x5f   : > { %6887 = vmatpush3.bf16.msra.mxu1 %v6884_v13  ;;  %6473 = vmatmul.mubr.msk.f32.vlgmr.msra.gmra.mrb[0].mxu0 %vm1048_vm0, %v7578_v12  ;;  %v6906_v13 = vpack.c.bf16 %v5986_v11, %v5985_v10 }
  0x62   : > { %6462 = vmatmul.mubr.msk.f32.vlgmr.msra.gmra.mrb[2].mxu1 %vm1048_vm0, %v7578_v12 }
 0x12d   : > { %v6452_v15 = vpop.f32.mrb[0].mxu1 }
 0x12e   : > { %v1121_v16 = vpop.f32.mrb[1].mxu1  ;;  %v1127_v25 = vadd.f32 %v6452_v15, %v5970_v14  ;;  %v5988_v15 = vld [vmem:[%s7394_s25 + $0x38] sm:$0xff] }
 0x12f   : > { %v1122_v17 = vadd.f32 %v5970_v14, %v1121_v16  ;;  %v5987_v14 = vld [vmem:[%s7394_s25 + $0x30] sm:$0xff] }
 0x130   : > { %v6910_v16 = vpack.c.bf16 %v5988_v15, %v5987_v14 }
 0x131   : > { %6479 = vmatprep.mubr.msk.f32.mxu1 %vm1302_vm1, %v1122_v17 }
 0x132   : > { %v6474_v0 = vpop.f32.mrb[0].mxu0 }
 0x133   : > { %v1293_v2 = vpop.f32.mrb[1].mxu0  ;;  %v1299_v3 = vadd.f32 %v6474_v0, %v5976_v1 }
 0x134   : > { %v1294_v4 = vadd.f32 %v5976_v1, %v1293_v2 }
 0x135   : > { %v6463_v19 = vpop.f32.mrb[2].mxu1 }
 0x136   : > { %v1213_v20 = vadd.f32 %v6463_v19, %v5973_v18  ;;  %v1207_v21 = vpop.f32.mrb[3].mxu1  ;;  %v6902_v5 = vpack.c.bf16 %v1299_v3, %v1294_v4 }
 0x137   : > { %v1208_v22 = vadd.f32 %v5973_v18, %v1207_v21 }
 0x138   : > { %6903 = vmatprep.subr.bf16.mxu0 %v6902_v5 }
 0x139   : > { %v6896_v24 = vpack.c.bf16 %v1213_v20, %v1208_v22  ;;  %6905 = vmatpush3.bf16.msra.mxu0 %v6902_v5 }
 0x13a   : > { %6915 = vmatprep.subr.bf16.mxu0 %v6914_v8 }
 0x13b   : > { %6898 = vmatprep.subr.msk.bf16.mxu1 %vm7591_vm2, %v6896_v24 }
 0x13c   : > { %6901 = vmatpush3.bf16.xpose.msk.msra.mxu1 %vm7591_vm2, %v6896_v24 }
 0x13d   : > { %6907 = vmatprep.subr.bf16.mxu1 %v6906_v13 }
 0x143   : > { %6480 = vmatmul.mubr.msk.f32.vlgmr.msra.gmra.mrb[4].mxu1 %vm1302_vm1, %v1127_v25  ;;  %v7640_v25 = vstv %s1034_s0  ;;  %s1018_s0 = scalar_lea.vmem %s8088_s18, %s7558_s2  ;;  %s8094_s18 = sld [smem:[#allocation14_spill]] }
 0x144   : > { %6497 = vmatprep.mubr.msk.f32.mxu1 %vm1048_vm0, %v7569_v9  ;;  %6909 = vmatpush3.bf16.msra.mxu1 %v6906_v13 }
 0x145   : > { %6911 = vmatprep.subr.bf16.mxu1 %v6910_v16 }
 0x148   : > { %6913 = vmatpush3.bf16.msra.mxu1 %v6910_v16 }
 0x14b   : > { %6498 = vmatmul.mubr.msk.f32.vlgmr.msra.gmra.mrb[6].mxu1 %vm1048_vm0, %v7578_v12 }
 0x14c   : > { %6519 = vmatprep.mubr.msk.f32.mxu1 %vm1048_vm0, %v7569_v9 }
 0x216   : > { %v6481_v32 = vpop.f32.mrb[4].mxu1 }
 0x217   : > { %v1381_v33 = vpop.f32.mrb[5].mxu1  ;;  %v1391_v35 = vmul.f32 0.35355338, %v6481_v32 }
 0x218   : > { %v1390_v34 = vmul.f32 0.35355338, %v1381_v33 }
 0x219   : > { %v1396_v37 = vsel %vm1392_vm3, %v1391_v35, -inf  ;;  %v1400_v49 = vadd.f32 %v1391_v35, %v7618_v43  ;;  %v1421_v50 = vadd.f32 %v7620_v44, %v1391_v35  ;;  %v5995_v35 = vld [vmem:[%s7404_s3 + $0x30] sm:$0xff] }
 0x21a   : > { %v1393_v36 = vsel %vm1392_vm3, %v1390_v34, -inf  ;;  %v1399_v40 = vadd.f32 %v1390_v34, %v7612_v38  ;;  %v1420_v41 = vadd.f32 %v7614_v39, %v1390_v34 }
 0x21b   : > { %1394 = vmax.xlane.f32.xlu0 %v1393_v36  ;;  %v5996_v36 = vld [vmem:[%s7404_s3 + $0x38] sm:$0xff] }
 0x21f   : > { %1397 = vmax.xlane.f32.xlu0 %v1396_v37 }
 0x2a8   : > { %v1395_v42 = vpop.xlane.xlu0 %1394 }
 0x2a9   : > { %v1401_v45 = vsub.f32 %v1399_v40, %v1395_v42  ;;  %v1422_v46 = vsub.f32 %v1420_v41, %v1395_v42  ;;  %v6918_v42 = vpack.c.bf16 %v5996_v36, %v5995_v35 }
 0x2ab   : > { %v1403_v47 = vmul.f32 1.442695, %v1401_v45  ;;  %v1424_v48 = vmul.f32 1.442695, %v1422_v46  ;;  %v5990_v45 = vld [vmem:[%s7399_s29 + $0x1] ss:$0 sm:$0xff] }
 0x2ac   : > { %v1398_v51 = vpop.xlane.xlu0 %1397  ;;  %v6499_v46 = vpop.f32.mrb[6].mxu1 }
 0x2ad   : > { %7177 = vpow2.f32 %v1403_v47  ;;  %v1402_v52 = vsub.f32 %v1400_v49, %v1398_v51  ;;  %v1423_v53 = vsub.f32 %v1421_v50, %v1398_v51  ;;  %v1610_v47 = vadd.f32 %v6499_v46, %v5990_v45 }
 0x2ae   : > { %7179 = vpow2.f32 %v1424_v48  ;;  %v1604_v48 = vpop.f32.mrb[7].mxu1 }
 0x2af   : > { %v1405_v54 = vmul.f32 1.442695, %v1402_v52  ;;  %v1426_v55 = vmul.f32 1.442695, %v1423_v53  ;;  %v1605_v49 = vadd.f32 %v5990_v45, %v1604_v48  ;;  %v5998_v52 = vld [vmem:[%s7409_s8 + $0x1] ss:$0 sm:$0xff] }
 0x2b1   : > { %7181 = vpow2.f32 %v1405_v54 }
 0x2b2   : > { %7183 = vpow2.f32 %v1426_v55 }
 0x2b7   : > { %v7178_v56 = vpop.eup %7177 }
 0x2b8   : > { %v1407_v57 = vsel %vm1392_vm3, %v7178_v56, 0.0  ;;  %v7180_v58 = vpop.eup %7179 }
 0x2b9   : > { %1408 = vadd.xlane.f32.xlu1 %v1407_v57  ;;  %v1428_v60 = vsel %vm1392_vm3, %v7180_v58, 0.0 }
 0x2bb   : > { %v7182_v59 = vpop.eup %7181 }
 0x2bc   : > { %v1410_v61 = vsel %vm1392_vm3, %v7182_v59, 0.0  ;;  %v7184_v62 = vpop.eup %7183 }
 0x2bd   : > { %1429 = vadd.xlane.f32.xlu1 %v1428_v60  ;;  %1411 = vadd.xlane.f32.xlu0 %v1410_v61  ;;  %v1431_v63 = vsel %vm1392_vm3, %v7184_v62, 0.0  ;;  %v6003_v60 = vld [vmem:[%s7414_s14 + $0x30] sm:$0xff] }
 0x2c1   : > { %1432 = vadd.xlane.f32.xlu1 %v1431_v63 }
 0x346   : > { %v1409_v17 = vpop.xlane.xlu1 %1408 }
 0x347   : > { %7185 = vrcp.f32 %v1409_v17 }
 0x34a   : > { %v1430_v18 = vpop.xlane.xlu1 %1429  ;;  %v1412_v19 = vpop.xlane.xlu0 %1411 }
 0x34b   : > { %7187 = vrcp.f32 %v1430_v18 }
 0x34c   : > { %7189 = vrcp.f32 %v1412_v19 }
 0x34e   : > { %v1433_v20 = vpop.xlane.xlu1 %1432 }
 0x34f   : > { %7191 = vrcp.f32 %v1433_v20 }
 0x351   : > { %v7186_v21 = vpop.eup %7185 }
 0x352   : > { %v1415_v22 = vmul.f32 %v7186_v21, %v7178_v56 }
 0x354   : > { %v1418_v30 = vmul.f32 %v7640_v25, %v1415_v22 }
 0x355   : > { %v7188_v24 = vpop.eup %7187 }
 0x356   : > { %v7190_v27 = vpop.eup %7189  ;;  %v1436_v28 = vmul.f32 %v7188_v24, %v7180_v58  ;;  %v6001_v58 = vld [vmem:[%s7414_s14 + $0x20] sm:$0xff] }
 0x357   : > { %v1416_v29 = vmul.f32 %v7190_v27, %v7182_v59  ;;  %v6002_v59 = vld [vmem:[%s7414_s14 + $0x28] sm:$0xff] }
 0x358   : > { %v1439_v31 = vmul.f32 %v7642_v26, %v1436_v28  ;;  %v6922_v61 = vpack.c.bf16 %v6002_v59, %v6001_v58 }
 0x359   : > { %v7192_v32 = vpop.eup %7191  ;;  %v1419_v37 = vmul.f32 %v7640_v25, %v1416_v29 }
 0x35a   : > { %v1437_v33 = vmul.f32 %v7192_v32, %v7184_v62  ;;  %v1441_v34 = vadd.f32 %v1439_v31, %v1418_v30  ;;  %v6004_v62 = vld [vmem:[%s7414_s14 + $0x38] sm:$0xff]  ;;  %6923 = vmatprep.subr.bf16.mxu1 %v6922_v61 }
 0x35b   : > { %v6926_v63 = vpack.c.bf16 %v6004_v62, %v6003_v60  ;;  %6925 = vmatpush3.bf16.msra.mxu1 %v6922_v61 }
 0x35c   : > { %v1440_v40 = vmul.f32 %v7642_v26, %v1437_v33  ;;  %6486 = vmatprep.mubr.msk.f32.mxu0 %vm1392_vm3, %v1441_v34  ;;  %v6006_v34 = vld [vmem:[%s7419_s19 + $0x1] ss:$0 sm:$0xff] }
 0x35d   : > { %6927 = vmatprep.subr.bf16.mxu1 %v6926_v63 }
 0x35e   : > { %v1442_v41 = vadd.f32 %v1440_v40, %v1419_v37 }
 0x35f   : > { %6929 = vmatpush3.bf16.msra.mxu1 %v6926_v63 }
 0x360   : > { %6487 = vmatmul.mubr.msk.f32.vlgmr.msra.gmra.mrb[2].mxu0 %vm1392_vm3, %v1442_v41  ;;  %v6015_v41 = vld [vmem:[%s7424_s24 + $0x8] sm:$0xff] }
 0x361   : > { %6917 = vmatpush3.bf16.msra.mxu0 %v6914_v8  ;;  %6508 = vmatprep.mubr.msk.f32.mxu0 %vm1048_vm0, %v7569_v9 }
 0x362   : > { %6919 = vmatprep.subr.bf16.mxu0 %v6918_v42  ;;  %6520 = vmatmul.mubr.msk.f32.vlgmr.msra.gmra.mrb[8].mxu1 %vm1048_vm0, %v7578_v12 }
 0x365   : > { %6921 = vmatpush3.bf16.msra.mxu0 %v6918_v42 }
 0x368   : > { %6509 = vmatmul.mubr.msk.f32.vlgmr.msra.gmra.mrb[4].mxu0 %vm1048_vm0, %v7578_v12 }
 0x369   : > { %6526 = vmatprep.mubr.msk.f32.mxu0 %vm1302_vm1, %v1605_v49 }
 0x433   : > { %v7658_v50 = vpop.f32.mrb[2].mxu0 }
 0x434   : > { %v7660_v51 = vpop.f32.mrb[3].mxu0 }
 0x435   : > { %v6521_v33 = vpop.f32.mrb[8].mxu1 }
 0x436   : > { %v1780_v35 = vpop.f32.mrb[9].mxu1  ;;  %v1786_v36 = vadd.f32 %v6521_v33, %v6006_v34  ;;  %v6039_v33 = vld [vmem:[%s7414_s14 + $0x58] sm:$0xff] }
 0x437   : > { %v1781_v37 = vadd.f32 %v6006_v34, %v1780_v35 }
 0x439   : > { %v6936_v40 = vpack.c.bf16 %v1786_v36, %v1781_v37 }
 0x43b   : > { %v6510_v53 = vpop.f32.mrb[4].mxu0  ;;  %6937 = vmatprep.subr.bf16.mxu1 %v6936_v40 }
 0x43c   : > { %v1698_v54 = vadd.f32 %v6510_v53, %v5998_v52  ;;  %v1692_v55 = vpop.f32.mrb[5].mxu0  ;;  %6939 = vmatpush3.bf16.msra.mxu1 %v6936_v40 }
 0x43d   : > { %v1693_v56 = vadd.f32 %v5998_v52, %v1692_v55 }
 0x43f   : > { %v6930_v57 = vpack.c.bf16 %v1698_v54, %v1693_v56 }
 0x441   : > { %6932 = vmatprep.subr.msk.bf16.mxu0 %vm7591_vm2, %v6930_v57 }
 0x442   : > { %6935 = vmatpush3.bf16.xpose.msk.msra.mxu0 %vm7591_vm2, %v6930_v57 }
 0x443   : > { %6536 = vmatprep.subr.mxu0 %v6015_v41 }
 0x449   : > { %6527 = vmatmul.mubr.msk.f32.vlgmr.msra.gmra.mrb[6].mxu0 %vm1302_vm1, %v1610_v47 }
 0x44a   : > { %6537 = vmatpush3.msra.mxu0 %v6015_v41 }
 0x51c   : > { %v6528_v0 = vpop.f32.mrb[6].mxu0 }
 0x51d   : > { %v1877_v1 = vmul.f32 0.35355338, %v6528_v0  ;;  %v1867_v2 = vpop.f32.mrb[7].mxu0  ;;  %v1524_v0 = vld [vmem:[%s7424_s24] sm:$0xff] }
 0x51e   : > { %v1876_v3 = vmul.f32 0.35355338, %v1867_v2  ;;  %6541 = vmatprep.subr.mxu0 %v1524_v0  ;;  %v6021_v2 = vld [vmem:[%s7394_s25 + $0x48] sm:$0xff] }
 0x51f   : > { %v1881_v4 = vsel %vm1392_vm3, %v1877_v1, -inf  ;;  %v1885_v6 = vadd.f32 %v1877_v1, %v7618_v43  ;;  %v1905_v7 = vadd.f32 %v7620_v44, %v1877_v1  ;;  %v6020_v1 = vld [vmem:[%s7394_s25 + $0x40] sm:$0xff] }
 0x520   : > { %1882 = vmax.xlane.f32.xlu1 %v1881_v4  ;;  %v1878_v5 = vsel %vm1392_vm3, %v1876_v3, -inf  ;;  %v1884_v10 = vadd.f32 %v1876_v3, %v7612_v38  ;;  %v1904_v11 = vadd.f32 %v7614_v39, %v1876_v3  ;;  %v6940_v3 = vpack.c.bf16 %v6021_v2, %v6020_v1  ;;  %v6022_v4 = vld [vmem:[%s7394_s25 + $0x50] sm:$0xff] }
 0x521   : > { %1879 = vmax.xlane.f32.xlu0 %v1878_v5  ;;  %v6023_v5 = vld [vmem:[%s7394_s25 + $0x58] sm:$0xff] }
 0x522   : > { %6941 = vmatprep.subr.bf16.mxu1 %v6940_v3 }
 0x5ad   : > { %v1883_v8 = vpop.xlane.xlu1 %1882 }
 0x5ae   : > { %v1887_v13 = vsub.f32 %v1885_v6, %v1883_v8  ;;  %v1880_v14 = vpop.xlane.xlu0 %1879  ;;  %v1907_v15 = vsub.f32 %v1905_v7, %v1883_v8  ;;  %v6944_v6 = vpack.c.bf16 %v6023_v5, %v6022_v4  ;;  %v6028_v7 = vld [vmem:[%s7404_s3 + $0x40] sm:$0xff]  ;;  %v6029_v8 = vld [vmem:[%s7404_s3 + $0x48] sm:$0xff] }
 0x5af   : > { %v1886_v16 = vsub.f32 %v1884_v10, %v1880_v14  ;;  %v1906_v17 = vsub.f32 %v1904_v11, %v1880_v14  ;;  %v6030_v14 = vld [vmem:[%s7404_s3 + $0x50] sm:$0xff] }
 0x5b0   : > { %v1890_v20 = vmul.f32 1.442695, %v1887_v13  ;;  %v1910_v21 = vmul.f32 1.442695, %v1907_v15  ;;  %v6948_v13 = vpack.c.bf16 %v6029_v8, %v6028_v7  ;;  %v6031_v15 = vld [vmem:[%s7404_s3 + $0x58] sm:$0xff] }
 0x5b1   : > { %v1888_v18 = vmul.f32 1.442695, %v1886_v16  ;;  %v1908_v19 = vmul.f32 1.442695, %v1906_v17  ;;  %v6952_v16 = vpack.c.bf16 %v6031_v15, %v6030_v14  ;;  %v6025_v17 = vld [vmem:[%s7399_s29 + $0x2] ss:$0 sm:$0xff] }
 0x5b3   : > { %7193 = vpow2.f32 %v1888_v18 }
 0x5b4   : > { %7195 = vpow2.f32 %v1908_v19 }
 0x5b5   : > { %7197 = vpow2.f32 %v1890_v20 }
 0x5b6   : > { %7199 = vpow2.f32 %v1910_v21 }
 0x5bd   : > { %v7194_v22 = vpop.eup %7193 }
 0x5be   : > { %v7196_v24 = vpop.eup %7195  ;;  %v1892_v27 = vsel %vm1392_vm3, %v7194_v22, 0.0 }
 0x5bf   : > { %v7198_v28 = vpop.eup %7197  ;;  %v1912_v29 = vsel %vm1392_vm3, %v7196_v24, 0.0  ;;  %1893 = vadd.xlane.f32.xlu0 %v1892_v27 }
 0x5c0   : > { %v7200_v30 = vpop.eup %7199  ;;  %1913 = vadd.xlane.f32.xlu1 %v1912_v29  ;;  %v1895_v31 = vsel %vm1392_vm3, %v7198_v28, 0.0  ;;  %v6036_v29 = vld [vmem:[%s7414_s14 + $0x40] sm:$0xff] }
 0x5c1   : > { %v1915_v32 = vsel %vm1392_vm3, %v7200_v30, 0.0 }
 0x5c3   : > { %1896 = vadd.xlane.f32.xlu0 %v1895_v31  ;;  %v6038_v31 = vld [vmem:[%s7414_s14 + $0x50] sm:$0xff] }
 0x5c4   : > { %1916 = vadd.xlane.f32.xlu1 %v1915_v32  ;;  %v6960_v34 = vpack.c.bf16 %v6039_v33, %v6038_v31  ;;  %v6061_v33 = vld [vmem:[%s7404_s3 + $0x60] sm:$0xff] }
 0x64c   : > { %v1894_v42 = vpop.xlane.xlu0 %1893 }
 0x64d   : > { %v1914_v45 = vpop.xlane.xlu1 %1913  ;;  %7201 = vrcp.f32 %v1894_v42 }
 0x64e   : > { %7203 = vrcp.f32 %v1914_v45 }
 0x650   : > { %v1897_v46 = vpop.xlane.xlu0 %1896 }
 0x651   : > { %v1917_v47 = vpop.xlane.xlu1 %1916  ;;  %7205 = vrcp.f32 %v1897_v46 }
 0x652   : > { %7207 = vrcp.f32 %v1917_v47 }
 0x657   : > { %v7202_v48 = vpop.eup %7201 }
 0x658   : > { %v7204_v49 = vpop.eup %7203  ;;  %v1900_v52 = vmul.f32 %v7202_v48, %v7194_v22 }
 0x659   : > { %v1920_v53 = vmul.f32 %v7204_v49, %v7196_v24 }
 0x65a   : > { %v1902_v54 = vmul.f32 %v1900_v52, %v7640_v25 }
 0x65b   : > { %v7206_v55 = vpop.eup %7205  ;;  %v1922_v56 = vmul.f32 %v1920_v53, %v7642_v26 }
 0x65c   : > { %v7208_v57 = vpop.eup %7207  ;;  %v1901_v58 = vmul.f32 %v7206_v55, %v7198_v28 }
 0x65d   : > { %v1921_v59 = vmul.f32 %v7208_v57, %v7200_v30  ;;  %v1924_v60 = vadd.f32 %v1922_v56, %v1902_v54  ;;  %v6037_v30 = vld [vmem:[%s7414_s14 + $0x48] sm:$0xff] }
 0x65e   : > { %v1903_v61 = vmul.f32 %v1901_v58, %v7640_v25  ;;  %v6956_v32 = vpack.c.bf16 %v6037_v30, %v6036_v29 }
 0x65f   : > { %v1923_v62 = vmul.f32 %v1921_v59, %v7642_v26  ;;  %6533 = vmatprep.mubr.msk.f32.mxu1 %vm1392_vm3, %v1924_v60 }
 0x661   : > { %v1925_v63 = vadd.f32 %v1923_v62, %v1903_v61 }
 0x663   : > { %6534 = vmatmul.mubr.msk.f32.vlgmr.msra.gmra.mrb[10].mxu1 %vm1392_vm3, %v1925_v63 }
 0x664   : > { %6554 = vmatprep.mubr.msk.f32.mxu1 %vm1048_vm0, %v7569_v9  ;;  %6943 = vmatpush3.bf16.msra.mxu1 %v6940_v3 }
 0x665   : > { %6945 = vmatprep.subr.bf16.mxu1 %v6944_v6 }
 0x668   : > { %6947 = vmatpush3.bf16.msra.mxu1 %v6944_v6  ;;  %v6041_v6 = vld [vmem:[%s7419_s19 + $0x2] ss:$0 sm:$0xff] }
 0x669   : > { %6957 = vmatprep.subr.bf16.mxu1 %v6956_v32 }
 0x66b   : > { %6555 = vmatmul.mubr.msk.f32.vlgmr.msra.gmra.mrb[12].mxu1 %vm1048_vm0, %v7578_v12 }
 0x66c   : > { %6576 = vmatprep.mubr.msk.f32.mxu1 %vm1048_vm0, %v7569_v9  ;;  %6959 = vmatpush3.bf16.msra.mxu1 %v6956_v32 }
 0x66d   : > { %6961 = vmatprep.subr.bf16.mxu1 %v6960_v34 }
 0x670   : > { %6963 = vmatpush3.bf16.msra.mxu1 %v6960_v34  ;;  %v6062_v34 = vld [vmem:[%s7404_s3 + $0x68] sm:$0xff] }
 0x673   : > { %6577 = vmatmul.mubr.msk.f32.vlgmr.msra.gmra.mrb[14].mxu1 %vm1048_vm0, %v7578_v12 }
 0x736   : > { %v6535_v10 = vpop.f32.mrb[10].mxu1 }
 0x737   : > { %v1998_v11 = vpop.f32.mrb[11].mxu1 }
 0x738   : > { %6538 = vmatprep.mubr.msk.f32.mxu0 %vm1302_vm1, %v1998_v11 }
 0x739   : > { %6539 = vmatmul.mubr.msk.f32.vlgmr.msra.gmra.mrb[8].mxu0 %vm1302_vm1, %v6535_v10 }
 0x73a   : > { %6542 = vmatpush3.msra.mxu0 %v1524_v0  ;;  %6543 = vmatprep.mubr.msk.f32.mxu0 %vm1302_vm1, %v7660_v51 }
 0x73b   : > { %6949 = vmatprep.subr.bf16.mxu0 %v6948_v13 }
 0x73e   : > { %v6556_v51 = vpop.f32.mrb[12].mxu1 }
 0x73f   : > { %v2256_v18 = vadd.f32 %v6556_v51, %v6025_v17  ;;  %v2250_v19 = vpop.f32.mrb[13].mxu1 }
 0x740   : > { %v2251_v20 = vadd.f32 %v6025_v17, %v2250_v19 }
 0x741   : > { %6544 = vmatmul.mubr.msk.f32.vlgmr.msra.gmra.mrb[8].mxu0 %vm1302_vm1, %v7658_v50  ;;  %v6033_v50 = vld [vmem:[%s7409_s8 + $0x2] ss:$0 sm:$0xff] }
 0x742   : > { %6951 = vmatpush3.bf16.msra.mxu0 %v6948_v13  ;;  %6565 = vmatprep.mubr.msk.f32.mxu0 %vm1048_vm0, %v7569_v9  ;;  %v6050_v13 = vld [vmem:[%s7424_s24 + $0x10] sm:$0xff] }
 0x743   : > { %6953 = vmatprep.subr.bf16.mxu0 %v6952_v16 }
 0x746   : > { %6955 = vmatpush3.bf16.msra.mxu0 %v6952_v16  ;;  %v6578_v5 = vpop.f32.mrb[14].mxu1 }
 0x747   : > { %v2426_v7 = vpop.f32.mrb[15].mxu1  ;;  %v2432_v8 = vadd.f32 %v6578_v5, %v6041_v6 }
 0x748   : > { %v2427_v10 = vadd.f32 %v6041_v6, %v2426_v7 }
 0x749   : > { %6566 = vmatmul.mubr.msk.f32.vlgmr.msra.gmra.mrb[10].mxu0 %vm1048_vm0, %v7578_v12 }
 0x74a   : > { %6583 = vmatprep.mubr.msk.f32.mxu0 %vm1302_vm1, %v2251_v20  ;;  %v6970_v11 = vpack.c.bf16 %v2432_v8, %v2427_v10 }
 0x74c   : > { %6971 = vmatprep.subr.bf16.mxu1 %v6970_v11 }
 0x74d   : > { %6973 = vmatpush3.bf16.msra.mxu1 %v6970_v11 }
 0x81c   : > { %v6567_v21 = vpop.f32.mrb[10].mxu0 }
 0x81d   : > { %v2344_v22 = vadd.f32 %v6567_v21, %v6033_v50  ;;  %v2338_v24 = vpop.f32.mrb[11].mxu0 }
 0x81e   : > { %v2339_v27 = vadd.f32 %v6033_v50, %v2338_v24 }
 0x820   : > { %v6964_v28 = vpack.c.bf16 %v2344_v22, %v2339_v27 }
 0x822   : > { %6966 = vmatprep.subr.msk.bf16.mxu0 %vm7591_vm2, %v6964_v28 }
 0x823   : > { %6969 = vmatpush3.bf16.xpose.msk.msra.mxu0 %vm7591_vm2, %v6964_v28 }
 0x824   : > { %6593 = vmatprep.subr.mxu0 %v6050_v13 }
 0x82a   : > { %6584 = vmatmul.mubr.msk.f32.vlgmr.msra.gmra.mrb[12].mxu0 %vm1302_vm1, %v2256_v18 }
 0x82b   : > { %6594 = vmatpush3.msra.mxu0 %v6050_v13 }
 0x8fd   : > { %v6585_v35 = vpop.f32.mrb[12].mxu0 }
 0x8fe   : > { %v2523_v36 = vmul.f32 0.35355338, %v6585_v35  ;;  %v2513_v37 = vpop.f32.mrb[13].mxu0  ;;  %v6982_v35 = vpack.c.bf16 %v6062_v34, %v6061_v33 }
 0x8ff   : > { %v2522_v40 = vmul.f32 0.35355338, %v2513_v37  ;;  %v6054_v37 = vld [vmem:[%s7394_s25 + $0x68] sm:$0xff] }
 0x900   : > { %v2527_v41 = vsel %vm1392_vm3, %v2523_v36, -inf  ;;  %v2531_v45 = vadd.f32 %v2523_v36, %v7618_v43  ;;  %v2551_v46 = vadd.f32 %v7620_v44, %v2523_v36  ;;  %6983 = vmatprep.subr.bf16.mxu0 %v6982_v35  ;;  %v6053_v36 = vld [vmem:[%s7394_s25 + $0x60] sm:$0xff] }
 0x901   : > { %2528 = vmax.xlane.f32.xlu1 %v2527_v41  ;;  %v2524_v42 = vsel %vm1392_vm3, %v2522_v40, -inf  ;;  %v2530_v48 = vadd.f32 %v2522_v40, %v7612_v38  ;;  %v2550_v49 = vadd.f32 %v7614_v39, %v2522_v40  ;;  %v6974_v40 = vpack.c.bf16 %v6054_v37, %v6053_v36  ;;  %v6055_v41 = vld [vmem:[%s7394_s25 + $0x70] sm:$0xff]  ;;  %v6083_v36 = vld [vmem:[%s7424_s24 + $0x18] sm:$0xff] }
 0x902   : > { %2525 = vmax.xlane.f32.xlu0 %v2524_v42  ;;  %v6056_v42 = vld [vmem:[%s7394_s25 + $0x78] sm:$0xff] }
 0x903   : > { %6975 = vmatprep.subr.bf16.mxu1 %v6974_v40 }
 0x98e   : > { %v2529_v47 = vpop.xlane.xlu1 %2528 }
 0x98f   : > { %v2533_v52 = vsub.f32 %v2531_v45, %v2529_v47  ;;  %v2526_v53 = vpop.xlane.xlu0 %2525  ;;  %v2553_v54 = vsub.f32 %v2551_v46, %v2529_v47  ;;  %v6978_v45 = vpack.c.bf16 %v6056_v42, %v6055_v41  ;;  %v6063_v46 = vld [vmem:[%s7404_s3 + $0x70] sm:$0xff]  ;;  %v6064_v47 = vld [vmem:[%s7404_s3 + $0x78] sm:$0xff] }
 0x990   : > { %v2532_v55 = vsub.f32 %v2530_v48, %v2526_v53  ;;  %v2552_v56 = vsub.f32 %v2550_v49, %v2526_v53  ;;  %v6058_v53 = vld [vmem:[%s7399_s29 + $0x3] ss:$0 sm:$0xff] }
 0x991   : > { %v2536_v59 = vmul.f32 1.442695, %v2533_v52  ;;  %v2556_v60 = vmul.f32 1.442695, %v2553_v54  ;;  %v6986_v52 = vpack.c.bf16 %v6064_v47, %v6063_v46 }
 0x992   : > { %v2534_v57 = vmul.f32 1.442695, %v2532_v55  ;;  %v2554_v58 = vmul.f32 1.442695, %v2552_v56 }
 0x994   : > { %7209 = vpow2.f32 %v2534_v57 }
 0x995   : > { %7211 = vpow2.f32 %v2554_v58  ;;  %v6066_v58 = vld [vmem:[%s7409_s8 + $0x3] ss:$0 sm:$0xff] }
 0x996   : > { %7213 = vpow2.f32 %v2536_v59 }
 0x997   : > { %7215 = vpow2.f32 %v2556_v60 }
 0x99e   : > { %v7210_v61 = vpop.eup %7209 }
 0x99f   : > { %v7212_v62 = vpop.eup %7211  ;;  %v2538_v63 = vsel %vm1392_vm3, %v7210_v61, 0.0 }
 0x9a0   : > { %v7214_v0 = vpop.eup %7213  ;;  %v2558_v1 = vsel %vm1392_vm3, %v7212_v62, 0.0  ;;  %2539 = vadd.xlane.f32.xlu0 %v2538_v63  ;;  %v6069_v63 = vld [vmem:[%s7414_s14 + $0x60] sm:$0xff] }
 0x9a1   : > { %v7216_v2 = vpop.eup %7215  ;;  %2559 = vadd.xlane.f32.xlu1 %v2558_v1  ;;  %v2541_v3 = vsel %vm1392_vm3, %v7214_v0, 0.0  ;;  %v6071_v1 = vld [vmem:[%s7414_s14 + $0x70] sm:$0xff] }
 0x9a2   : > { %v2561_v4 = vsel %vm1392_vm3, %v7216_v2, 0.0 }
 0x9a4   : > { %2542 = vadd.xlane.f32.xlu0 %v2541_v3  ;;  %v6072_v3 = vld [vmem:[%s7414_s14 + $0x78] sm:$0xff] }
 0x9a5   : > { %2562 = vadd.xlane.f32.xlu1 %v2561_v4  ;;  %v6994_v4 = vpack.c.bf16 %v6072_v3, %v6071_v1 }
 0xa2d   : > { %v2540_v14 = vpop.xlane.xlu0 %2539 }
 0xa2e   : > { %v2560_v15 = vpop.xlane.xlu1 %2559  ;;  %7217 = vrcp.f32 %v2540_v14 }
 0xa2f   : > { %7219 = vrcp.f32 %v2560_v15 }
 0xa31   : > { %v2543_v16 = vpop.xlane.xlu0 %2542 }
 0xa32   : > { %v2563_v17 = vpop.xlane.xlu1 %2562  ;;  %7221 = vrcp.f32 %v2543_v16 }
 0xa33   : > { %7223 = vrcp.f32 %v2563_v17 }
 0xa38   : > { %v7218_v51 = vpop.eup %7217 }
 0xa39   : > { %v7220_v18 = vpop.eup %7219  ;;  %v2546_v19 = vmul.f32 %v7218_v51, %v7210_v61 }
 0xa3a   : > { %v2566_v20 = vmul.f32 %v7220_v18, %v7212_v62 }
 0xa3b   : > { %v2548_v50 = vmul.f32 %v2546_v19, %v7640_v25 }
 0xa3c   : > { %v7222_v21 = vpop.eup %7221  ;;  %v2568_v22 = vmul.f32 %v2566_v20, %v7642_v26 }
 0xa3d   : > { %v7224_v24 = vpop.eup %7223  ;;  %v2547_v27 = vmul.f32 %v7222_v21, %v7214_v0  ;;  %v6070_v0 = vld [vmem:[%s7414_s14 + $0x68] sm:$0xff] }
 0xa3e   : > { %v2567_v28 = vmul.f32 %v7224_v24, %v7216_v2  ;;  %v2570_v29 = vadd.f32 %v2568_v22, %v2548_v50  ;;  %v6990_v2 = vpack.c.bf16 %v6070_v0, %v6069_v63 }
 0xa3f   : > { %v2549_v30 = vmul.f32 %v2547_v27, %v7640_v25 }
 0xa40   : > { %v2569_v31 = vmul.f32 %v2567_v28, %v7642_v26  ;;  %6590 = vmatprep.mubr.msk.f32.mxu1 %vm1392_vm3, %v2570_v29 }
 0xa42   : > { %v2571_v32 = vadd.f32 %v2569_v31, %v2549_v30  ;;  %v6074_v31 = vld [vmem:[%s7419_s19 + $0x3] ss:$0 sm:$0xff] }
 0xa44   : > { %6591 = vmatmul.mubr.msk.f32.vlgmr.msra.gmra.mrb[16].mxu1 %vm1392_vm3, %v2571_v32 }
 0xa45   : > { %6606 = vmatprep.mubr.msk.f32.mxu1 %vm1048_vm0, %v7569_v9  ;;  %6977 = vmatpush3.bf16.msra.mxu1 %v6974_v40 }
 0xa46   : > { %6979 = vmatprep.subr.bf16.mxu1 %v6978_v45 }
 0xa49   : > { %6981 = vmatpush3.bf16.msra.mxu1 %v6978_v45 }
 0xa4a   : > { %6991 = vmatprep.subr.bf16.mxu1 %v6990_v2 }
 0xa4c   : > { %6607 = vmatmul.mubr.msk.f32.vlgmr.msra.gmra.mrb[18].mxu1 %vm1048_vm0, %v7578_v12 }
 0xa4d   : > { %6628 = vmatprep.mubr.msk.f32.mxu1 %vm1048_vm0, %v7569_v9  ;;  %6993 = vmatpush3.bf16.msra.mxu1 %v6990_v2 }
 0xa4e   : > { %6995 = vmatprep.subr.bf16.mxu1 %v6994_v4 }
 0xa51   : > { %6997 = vmatpush3.bf16.msra.mxu1 %v6994_v4  ;;  %v7298_v4 = vld [vmem:[%s7566_s10] sm:$0xff] }
 0xa54   : > { %6629 = vmatmul.mubr.msk.f32.vlgmr.msra.gmra.mrb[20].mxu1 %vm1048_vm0, %v7578_v12 }
 0xb17   : > { %v6592_v48 = vpop.f32.mrb[16].mxu1 }
 0xb18   : > { %v2644_v49 = vpop.f32.mrb[17].mxu1 }
 0xb19   : > { %6595 = vmatprep.mubr.msk.f32.mxu0 %vm1302_vm1, %v2644_v49 }
 0xb1a   : > { %6596 = vmatmul.mubr.msk.f32.vlgmr.msra.gmra.mrb[8].mxu0 %vm1302_vm1, %v6592_v48 }
 0xb1b   : > { %6985 = vmatpush3.bf16.msra.mxu0 %v6982_v35  ;;  %6617 = vmatprep.mubr.msk.f32.mxu0 %vm1048_vm0, %v7569_v9 }
 0xb1c   : > { %6987 = vmatprep.subr.bf16.mxu0 %v6986_v52 }
 0xb1f   : > { %6989 = vmatpush3.bf16.msra.mxu0 %v6986_v52  ;;  %v6608_v54 = vpop.f32.mrb[18].mxu1 }
 0xb20   : > { %v2823_v55 = vadd.f32 %v6608_v54, %v6058_v53  ;;  %v2817_v56 = vpop.f32.mrb[19].mxu1 }
 0xb21   : > { %v2818_v57 = vadd.f32 %v6058_v53, %v2817_v56 }
 0xb22   : > { %6618 = vmatmul.mubr.msk.f32.vlgmr.msra.gmra.mrb[14].mxu0 %vm1048_vm0, %v7578_v12 }
 0xb23   : > { %6635 = vmatprep.mubr.msk.f32.mxu0 %vm1302_vm1, %v2818_v57 }
 0xb27   : > { %v6630_v30 = vpop.f32.mrb[20].mxu1 }
 0xb28   : > { %v2993_v32 = vpop.f32.mrb[21].mxu1  ;;  %v2999_v33 = vadd.f32 %v6630_v30, %v6074_v31 }
 0xb29   : > { %v2994_v34 = vadd.f32 %v6074_v31, %v2993_v32 }
 0xb2b   : > { %v7004_v35 = vpack.c.bf16 %v2999_v33, %v2994_v34 }
 0xb2d   : > { %7005 = vmatprep.subr.bf16.mxu1 %v7004_v35 }
 0xb2e   : > { %7007 = vmatpush3.bf16.msra.mxu1 %v7004_v35 }
 0xbf5   : > { %v6619_v59 = vpop.f32.mrb[14].mxu0 }
 0xbf6   : > { %v2911_v60 = vadd.f32 %v6619_v59, %v6066_v58  ;;  %v2905_v9 = vpop.f32.mrb[15].mxu0 }
 0xbf7   : > { %v2906_v61 = vadd.f32 %v6066_v58, %v2905_v9 }
 0xbf9   : > { %v6998_v62 = vpack.c.bf16 %v2911_v60, %v2906_v61 }
 0xbfb   : > { %7000 = vmatprep.subr.msk.bf16.mxu0 %vm7591_vm2, %v6998_v62 }
 0xbfc   : > { %7003 = vmatpush3.bf16.xpose.msk.msra.mxu0 %vm7591_vm2, %v6998_v62  ;;  %v6086_v62 = vld [vmem:[%s7429_s30] ss:$0 sm:$0xff] }
 0xbfd   : > { %6645 = vmatprep.subr.mxu0 %v6083_v36 }
 0xc03   : > { %6636 = vmatmul.mubr.msk.f32.vlgmr.msra.gmra.mrb[16].mxu0 %vm1302_vm1, %v2823_v55 }
 0xc04   : > { %6646 = vmatpush3.msra.mxu0 %v6083_v36 }
 0xcd6   : > { %v6637_v5 = vpop.f32.mrb[16].mxu0 }
 0xcd7   : > { %v3090_v6 = vmul.f32 0.35355338, %v6637_v5  ;;  %v3080_v7 = vpop.f32.mrb[17].mxu0 }
 0xcd8   : > { %v3089_v23 = vmul.f32 0.35355338, %v3080_v7 }
 0xcd9   : > { %v3094_v8 = vsel %vm1392_vm3, %v3090_v6, -inf  ;;  %v3098_v11 = vadd.f32 %v3090_v6, %v7618_v43  ;;  %v3118_v13 = vadd.f32 %v7620_v44, %v3090_v6 }
 0xcda   : > { %3095 = vmax.xlane.f32.xlu1 %v3094_v8  ;;  %v3091_v10 = vsel %vm1392_vm3, %v3089_v23, -inf  ;;  %v3097_v15 = vadd.f32 %v3089_v23, %v7612_v38  ;;  %v3117_v16 = vadd.f32 %v7614_v39, %v3089_v23 }
 0xcdb   : > { %3092 = vmax.xlane.f32.xlu0 %v3091_v10 }
 0xd67   : > { %v3096_v14 = vpop.xlane.xlu1 %3095 }
 0xd68   : > { %v3100_v12 = vsub.f32 %v3098_v11, %v3096_v14  ;;  %v3093_v17 = vpop.xlane.xlu0 %3092  ;;  %v3120_v51 = vsub.f32 %v3118_v13, %v3096_v14 }
 0xd69   : > { %v3099_v18 = vsub.f32 %v3097_v15, %v3093_v17  ;;  %v3119_v19 = vsub.f32 %v3117_v16, %v3093_v17  ;;  %v3469_v17 = vld [vmem:[%s7444_s20] sm:$0xff] }
 0xd6a   : > { %v3103_v21 = vmul.f32 1.442695, %v3100_v12  ;;  %v3123_v22 = vmul.f32 1.442695, %v3120_v51  ;;  %v3470_v51 = vld [vmem:[%s7444_s20 + $0x8] sm:$0xff] }
 0xd6b   : > { %v3101_v20 = vmul.f32 1.442695, %v3099_v18  ;;  %v3121_v50 = vmul.f32 1.442695, %v3119_v19  ;;  %v3377_v18 = vld [vmem:[%s7434_s6] sm:$0xff]  ;;  %v7358_v19 = vmov 0.0|0.0  }
 0xd6c   : > { %7016 = vmatprep.subr.bf16.mxu0 %v7358_v19 }
 0xd6d   : > { %7225 = vpow2.f32 %v3101_v20  ;;  %v7017_v20 = vpack.c.bf16 %v3470_v51, %v3469_v17 }
 0xd6e   : > { %7227 = vpow2.f32 %v3121_v50  ;;  %v3378_v50 = vld [vmem:[%s7434_s6 + $0x8] sm:$0xff] }
 0xd6f   : > { %7229 = vpow2.f32 %v3103_v21  ;;  %v3471_v21 = vld [vmem:[%s7444_s20 + $0x10] sm:$0xff] }
 0xd70   : > { %7231 = vpow2.f32 %v3123_v22  ;;  %v3472_v22 = vld [vmem:[%s7444_s20 + $0x18] sm:$0xff] }
 0xd77   : > { %v7226_v43 = vpop.eup %7225 }
 0xd78   : > { %v7228_v44 = vpop.eup %7227  ;;  %v3105_v38 = vsel %vm1392_vm3, %v7226_v43, 0.0 }
 0xd79   : > { %v7230_v24 = vpop.eup %7229  ;;  %v3125_v39 = vsel %vm1392_vm3, %v7228_v44, 0.0  ;;  %3106 = vadd.xlane.f32.xlu0 %v3105_v38  ;;  %v3379_v38 = vld [vmem:[%s7434_s6 + $0x10] sm:$0xff] }
 0xd7a   : > { %v7232_v27 = vpop.eup %7231  ;;  %3126 = vadd.xlane.f32.xlu1 %v3125_v39  ;;  %v3108_v28 = vsel %vm1392_vm3, %v7230_v24, 0.0  ;;  %v7020_v39 = vpack.c.bf16 %v3472_v22, %v3471_v21  ;;  %v6107_v22 = vld [vmem:[%s8086_s15 + $0x1] ss:$0 sm:$0xff] }
 0xd7b   : > { %v3128_v29 = vsel %vm1392_vm3, %v7232_v27, 0.0 }
 0xd7d   : > { %3109 = vadd.xlane.f32.xlu0 %v3108_v28  ;;  %v7828_v28 = vld [vmem:[%s1010_s28] sm:$0xff]  ;;  %s8091_s28 = sld [smem:[#allocation11_spill]] }
 0xd7e   : > { %3129 = vadd.xlane.f32.xlu1 %v3128_v29 }
 0xe06   : > { %v3107_v37 = vpop.xlane.xlu0 %3106 }
 0xe07   : > { %v3127_v40 = vpop.xlane.xlu1 %3126  ;;  %7233 = vrcp.f32 %v3107_v37 }
 0xe08   : > { %7235 = vrcp.f32 %v3127_v40 }
 0xe0a   : > { %v3110_v41 = vpop.xlane.xlu0 %3109 }
 0xe0b   : > { %v3130_v42 = vpop.xlane.xlu1 %3129  ;;  %7237 = vrcp.f32 %v3110_v41 }
 0xe0c   : > { %7239 = vrcp.f32 %v3130_v42 }
 0xe11   : > { %v7234_v45 = vpop.eup %7233 }
 0xe12   : > { %v7236_v46 = vpop.eup %7235  ;;  %v3113_v47 = vmul.f32 %v7234_v45, %v7226_v43  ;;  %v7360_v43 = vmov 0.0  }
 0xe13   : > { %v3133_v48 = vmul.f32 %v7236_v46, %v7228_v44  ;;  %v7008_v44 = vpack.c.bf16 %v3378_v50, %v3377_v18 }
 0xe14   : > { %v3115_v49 = vmul.f32 %v3113_v47, %v7640_v25 }
 0xe15   : > { %v7238_v52 = vpop.eup %7237  ;;  %v3135_v53 = vmul.f32 %v3133_v48, %v7642_v26  ;;  %7009 = vmatprep.subr.bf16.mxu1 %v7008_v44 }
 0xe16   : > { %v7240_v54 = vpop.eup %7239  ;;  %v3114_v55 = vmul.f32 %v7238_v52, %v7230_v24  ;;  %v3380_v24 = vld [vmem:[%s7434_s6 + $0x18] sm:$0xff] }
 0xe17   : > { %v3134_v56 = vmul.f32 %v7240_v54, %v7232_v27  ;;  %v3137_v57 = vadd.f32 %v3135_v53, %v3115_v49  ;;  %v7012_v27 = vpack.c.bf16 %v3380_v24, %v3379_v38  ;;  %v6087_v49 = vld [vmem:[%s8083_s1] ss:$0 sm:$0xff]  ;;  %s8092_s1 = sld [smem:[#allocation16_spill]] }
 0xe18   : > { %v3116_v58 = vmul.f32 %v3114_v55, %v7640_v25  ;;  %v7297_v25 = vld [vmem:[%s7566_s10 + $0x8] sm:$0xff]  ;;  %s8084_s10 = sld [smem:[#allocation13_spill]] }
 0xe19   : > { %v3136_v59 = vmul.f32 %v3134_v56, %v7642_v26  ;;  %6642 = vmatprep.mubr.msk.f32.mxu1 %vm1392_vm3, %v3137_v57 }
 0xe1b   : > { %v3138_v60 = vadd.f32 %v3136_v59, %v3116_v58 }
 0xe1d   : > { %6643 = vmatmul.mubr.msk.f32.vlgmr.msra.gmra.mrb[22].mxu1 %vm1392_vm3, %v3138_v60 }
 0xe1e   : > { %7011 = vmatpush3.bf16.msra.mxu1 %v7008_v44  ;;  %v6088_v56 = vld [vmem:[%s8084_s10] ss:$0 sm:$0xff]  ;;  %s8093_s10 = sld [smem:[#allocation18_spill]] }
 0xe1f   : > { %7013 = vmatprep.subr.bf16.mxu1 %v7012_v27 }
 0xe22   : > { %7015 = vmatpush3.bf16.msra.mxu1 %v7012_v27 }
 0xe23   : > { %7022 = vmatprep.subr.bf16.mxu1 %v7358_v19 }
 0xef0   : > { %v6644_v9 = vpop.f32.mrb[22].mxu1 }
 0xef1   : > { %v3211_v61 = vpop.f32.mrb[23].mxu1 }
 0xef2   : > { %6647 = vmatprep.mubr.msk.f32.mxu0 %vm1302_vm1, %v3211_v61 }
 0xef3   : > { %6648 = vmatmul.mubr.msk.f32.vlgmr.msra.gmra.mrb[8].mxu0 %vm1302_vm1, %v6644_v9  ;;  %v6092_v9 = vld [vmem:[%s8085_s11] ss:$0 sm:$0xff] }
 0xef4   : > { %6669 = vmatprep.mubr.msk.f32.mxu0 %vm7359_vm4, %v7360_v43  ;;  %7018 = vmatpush3.bf16.msra.mxu0 %v7017_v20 }
 0xef5   : > { %7019 = vmatprep.subr.bf16.mxu0 %v7358_v19 }
 0xef8   : > { %7021 = vmatpush3.bf16.msra.mxu0 %v7020_v39 }
 0xefb   : > { %6670 = vmatmul.mubr.msk.f32.vlgmr.msra.gmra.mrb[18].mxu0 %vm1048_vm0, %v7828_v28 }
 0xfc6   : > { %v6649_v63 = vpop.f32.mrb[8].mxu0 }
 0xfc7   : > { %v3313_v0 = vadd.f32 %v6649_v63, %v6086_v62  ;;  %v3294_v1 = vpop.f32.mrb[9].mxu0 }
 0xfc8   : > { %v3312_v2 = vadd.f32 %v6086_v62, %v3294_v1  ;;  %v6103_v1 = vld [vmem:[%s7434_s6 + $0x28] sm:$0xff] }
 0xfc9   : > { %v3315_v3 = vadd.f32 %v7297_v25, %v3313_v0  ;;  %v6102_v0 = vld [vmem:[%s7434_s6 + $0x20] sm:$0xff] }
 0xfca   : > { %v3314_v26 = vadd.f32 %v7298_v4, %v3312_v2  ;;  %v7028_v2 = vpack.c.bf16 %v6103_v1, %v6102_v0  ;;  %v6089_v25 = vld [vmem:[%s8086_s15] ss:$0 sm:$0xff]  ;;  %v6104_v4 = vld [vmem:[%s7434_s6 + $0x30] sm:$0xff]  ;;  %v6115_v0 = vld [vmem:[%s8085_s11 + $0x1] ss:$0 sm:$0xff] }
 0xfcb   : > { %v3321_v5 = vsel %vm1048_vm0, %v3315_v3, 0.0 }
 0xfcc   : > { %3322 = vadd.xlane.f32.xlu1 %v3321_v5  ;;  %v3318_v6 = vsel %vm1048_vm0, %v3314_v26, 0.0 }
 0xfcd   : > { %3319 = vadd.xlane.f32.xlu0 %v3318_v6 }
 0xfce   : > { %v3549_v61 = vpop.f32.mrb[18].mxu0 }
 0xfcf   : > { %v3550_v62 = vadd.f32 %v6092_v9, %v3549_v61  ;;  %v6671_v63 = vpop.f32.mrb[19].mxu0 }
 0xfd1   : > { %6683 = vmatprep.subr.msk.mxu0 %vm1302_vm1, %v3550_v62 }
 0xfd2   : > { %6684 = vmatpush3.xpose.msk.msra.mxu0 %vm1302_vm1, %v3550_v62 }
 0xfd3   : > { %7029 = vmatprep.subr.bf16.mxu0 %v7028_v2 }
0x1059   : > { %v3323_v7 = vpop.xlane.xlu1 %3322 }
0x105a   : > { %v3326_v23 = vmul.f32 0.03125, %v3323_v7  ;;  %v3320_v8 = vpop.xlane.xlu0 %3319 }
0x105b   : > { %v3325_v10 = vmul.f32 0.03125, %v3320_v8  ;;  %v3553_v8 = vld [vmem:[%s8087_s16] sm:$0xff] }
0x105c   : > { %v3328_v11 = vsub.f32 %v3315_v3, %v3326_v23 }
0x105d   : > { %v7808_v13 = vsub.f32 %v3314_v26, %v3325_v10  ;;  %v6105_v26 = vld [vmem:[%s7434_s6 + $0x38] sm:$0xff]  ;;  %v3554_v10 = vld [vmem:[%s8087_s16 + $0x8] sm:$0xff] }
0x105e   : > { %v3330_v14 = vmul.f32 %v3328_v11, %v3328_v11  ;;  %v3361_v52 = vmul.f32 %v6087_v49, %v3328_v11  ;;  %v7032_v23 = vpack.c.bf16 %v6105_v26, %v6104_v4  ;;  %v3555_v11 = vld [vmem:[%s8087_s16 + $0x10] sm:$0xff]  ;;  %v6118_v4 = vld [vmem:[%s8087_s16 + $0x28] sm:$0xff] }
0x105f   : > { %v3329_v15 = vmul.f32 %v7808_v13, %v7808_v13  ;;  %v3360_v54 = vmul.f32 %v6087_v49, %v7808_v13  ;;  %v7023_v13 = vpack.c.bf16 %v3554_v10, %v3553_v8  ;;  %v6111_v49 = vld [vmem:[%s7444_s20 + $0x28] sm:$0xff]  ;;  %v6119_v26 = vld [vmem:[%s8087_s16 + $0x30] sm:$0xff] }
0x1060   : > { %v3334_v16 = vsel %vm1048_vm0, %v3330_v14, 0.0  ;;  %v3556_v14 = vld [vmem:[%s8087_s16 + $0x18] sm:$0xff] }
0x1061   : > { %3335 = vadd.xlane.f32.xlu1 %v3334_v16  ;;  %v3331_v12 = vsel %vm1048_vm0, %v3329_v15, 0.0  ;;  %v7026_v15 = vpack.c.bf16 %v3556_v14, %v3555_v11 }
0x1062   : > { %3332 = vadd.xlane.f32.xlu0 %v3331_v12  ;;  %v7872_v12 = vld [vmem:[%s1018_s0] ss:$0 sm:$0xff]  ;;  %s8095_s0 = sld [smem:[#allocation15_spill]] }
0x10ee   : > { %v3336_v29 = vpop.xlane.xlu1 %3335 }
0x10ef   : > { %v3339_v30 = vmul.f32 0.032258064, %v3336_v29  ;;  %v3333_v31 = vpop.xlane.xlu0 %3332 }
0x10f0   : > { %v3338_v32 = vmul.f32 0.032258064, %v3333_v31 }
0x10f1   : > { %7241 = vrsqrt.f32 %v3339_v30  ;;  %vm3349_vm5 = vcmp.eq.f32.partialorder %v3339_v30, inf  ;;  %v3352_v36 = vand.u32 2147483648, %v3339_v30  ;;  %vm3351_vm6 = vcmp.eq.f32.partialorder %v3339_v30, 0.0 }
0x10f2   : > { %7243 = vrsqrt.f32 %v3338_v32  ;;  %vm3342_vm7 = vcmp.eq.f32.partialorder %v3338_v32, inf  ;;  %v3345_v41 = vand.u32 2147483648, %v3338_v32  ;;  %vm3344_vm8 = vcmp.eq.f32.partialorder %v3338_v32, 0.0 }
0x10fb   : > { %v7242_v33 = vpop.eup %7241 }
0x10fc   : > { %v7244_v34 = vpop.eup %7243  ;;  %v3348_v35 = vmul.f32 %v7242_v33, %v3339_v30 }
0x10fd   : > { %v3341_v37 = vmul.f32 %v7244_v34, %v3338_v32 }
0x10fe   : > { %v3350_v40 = vsel %vm3349_vm5, %v3339_v30, %v3348_v35 }
0x10ff   : > { %v3353_v42 = vsel %vm3351_vm6, %v3352_v36, %v3350_v40  ;;  %v3343_v45 = vsel %vm3342_vm7, %v3338_v32, %v3341_v37  ;;  %v6094_v40 = vld [vmem:[%s8089_s26] ss:$0 sm:$0xff] }
0x1100   : > { %v3363_v46 = vadd.f32 1e-06, %v3353_v42  ;;  %v3346_v47 = vsel %vm3344_vm8, %v3345_v41, %v3343_v45 }
0x1101   : > { %v3362_v48 = vadd.f32 1e-06, %v3346_v47 }
0x1102   : > { %7245 = vrcp.f32 %v3363_v46 }
0x1103   : > { %7247 = vrcp.f32 %v3362_v48  ;;  %v6110_v48 = vld [vmem:[%s7444_s20 + $0x20] sm:$0xff] }
0x110c   : > { %v7246_v53 = vpop.eup %7245 }
0x110d   : > { %v7248_v55 = vpop.eup %7247  ;;  %v3367_v57 = vmul.f32 %v7246_v53, %v3361_v52 }
0x110e   : > { %v3365_v58 = vmul.f32 %v7248_v55, %v3360_v54  ;;  %v7037_v55 = vpack.c.bf16 %v6111_v49, %v6110_v48  ;;  %v3831_v48 = vld [vmem:[%s8090_s23] sm:$0xff] }
0x110f   : > { %v7838_v60 = vadd.f32 %v6088_v56, %v3367_v57  ;;  %v6112_v57 = vld [vmem:[%s7444_s20 + $0x30] sm:$0xff] }
0x1110   : > { %v7836_v59 = vadd.f32 %v6088_v56, %v3365_v58  ;;  %v6113_v58 = vld [vmem:[%s7444_s20 + $0x38] sm:$0xff] }
0x1111   : > { %v7040_v9 = vpack.c.bf16 %v6113_v58, %v6112_v57 }
0x1112   : > { %6658 = vmatprep.mubr.msk.f32.mxu1 %vm1048_vm0, %v7836_v59 }
0x1113   : > { %6659 = vmatmul.mubr.msk.f32.vlgmr.msra.gmra.mrb[24].mxu1 %vm1048_vm0, %v7838_v60 }
0x1114   : > { %6680 = vmatprep.mubr.msk.f32.mxu1 %vm7359_vm4, %v7360_v43  ;;  %7024 = vmatpush3.bf16.msra.mxu1 %v7023_v13 }
0x1115   : > { %7025 = vmatprep.subr.bf16.mxu1 %v7358_v19 }
0x1118   : > { %7027 = vmatpush3.bf16.msra.mxu1 %v7026_v15 }
0x111b   : > { %6681 = vmatmul.mubr.msk.f32.vlgmr.msra.gmra.mrb[26].mxu1 %vm1048_vm0, %v7828_v28 }
0x11e6   : > { %v6660_v3 = vpop.f32.mrb[24].mxu1 }
0x11e7   : > { %v3460_v5 = vpop.f32.mrb[25].mxu1  ;;  %v3466_v7 = vadd.f32 %v6660_v3, %v6089_v25  ;;  %v6117_v3 = vld [vmem:[%s8087_s16 + $0x20] sm:$0xff] }
0x11e8   : > { %v3461_v6 = vadd.f32 %v6089_v25, %v3460_v5  ;;  %v7043_v5 = vpack.c.bf16 %v6118_v4, %v6117_v3  ;;  %v6149_v4 = vld [vmem:[%s8087_s16 + $0x40] sm:$0xff] }
0x11ea   : > { %6685 = vmatprep.mubr.msk.f32.mxu0 %vm1302_vm1, %v3461_v6  ;;  %v6120_v6 = vld [vmem:[%s8087_s16 + $0x38] sm:$0xff] }
0x11eb   : > { %6686 = vmatmul.mubr.msk.f32.vlgmr.msra.gmra.mrb[20].mxu0 %vm1302_vm1, %v3466_v7  ;;  %v7046_v7 = vpack.c.bf16 %v6120_v6, %v6119_v26  ;;  %v6150_v26 = vld [vmem:[%s8087_s16 + $0x48] sm:$0xff] }
0x11ec   : > { %7031 = vmatpush3.bf16.msra.mxu0 %v7028_v2  ;;  %6701 = vmatprep.mubr.msk.f32.mxu0 %vm1048_vm0, %v7836_v59  ;;  %v7063_v6 = vpack.c.bf16 %v6150_v26, %v6149_v4  ;;  %v6180_v4 = vld [vmem:[%s8087_s16 + $0x68] sm:$0xff]  ;;  %v6181_v26 = vld [vmem:[%s8087_s16 + $0x70] sm:$0xff] }
0x11ed   : > { %7033 = vmatprep.subr.bf16.mxu0 %v7032_v23 }
0x11ee   : > { %v3630_v41 = vpop.f32.mrb[26].mxu1 }
0x11ef   : > { %v3631_v42 = vadd.f32 %v6094_v40, %v3630_v41  ;;  %v6682_v45 = vpop.f32.mrb[27].mxu1  ;;  %v6136_v40 = vld [vmem:[%s7434_s6 + $0x50] sm:$0xff]  ;;  %v6137_v41 = vld [vmem:[%s7434_s6 + $0x58] sm:$0xff] }
0x11f0   : > { %7035 = vmatpush3.bf16.msra.mxu0 %v7032_v23 }
0x11f1   : > { %7042 = vmatprep.subr.bf16.mxu0 %v7358_v19  ;;  %6688 = vmatprep.subr.mxu1 %v3631_v42 }
0x11f2   : > { %6689 = vmatpush3.msra.mxu1 %v3631_v42 }
0x11f3   : > { %6702 = vmatmul.mubr.msk.f32.vlgmr.msra.gmra.mrb[22].mxu0 %vm1048_vm0, %v7838_v60  ;;  %7036 = vmatprep.subr.bf16.mxu1 %v7358_v19 }
0x11f4   : > { %6723 = vmatprep.mubr.msk.f32.mxu0 %vm7359_vm4, %v7360_v43  ;;  %7044 = vmatpush3.bf16.msra.mxu0 %v7043_v5  ;;  %v6151_v5 = vld [vmem:[%s8087_s16 + $0x50] sm:$0xff] }
0x11f5   : > { %7045 = vmatprep.subr.bf16.mxu0 %v7358_v19 }
0x11f8   : > { %7047 = vmatpush3.bf16.msra.mxu0 %v7046_v7  ;;  %v6152_v7 = vld [vmem:[%s8087_s16 + $0x58] sm:$0xff] }
0x11fb   : > { %6724 = vmatmul.mubr.msk.f32.vlgmr.msra.gmra.mrb[24].mxu0 %vm1048_vm0, %v7828_v28 }
0x12be   : > { %v6687_v16 = vpop.f32.mrb[20].mxu0 }
0x12bf   : > { %v3719_v17 = vmul.f32 0.35355338, %v6687_v16  ;;  %v3709_v51 = vpop.f32.mrb[21].mxu0 }
0x12c0   : > { %v3718_v18 = vmul.f32 0.35355338, %v3709_v51 }
0x12c1   : > { %v3727_v20 = vadd.f32 %v7872_v12, %v3719_v17 }
0x12c2   : > { %v3726_v50 = vadd.f32 %v7872_v12, %v3718_v18 }
0x12c3   : > { %v3731_v21 = vsel %vm1302_vm1, %v3727_v20, -inf }
0x12c4   : > { %3732 = vmax.xlane.f32.xlu1 %v3731_v21  ;;  %v3728_v44 = vsel %vm1302_vm1, %v3726_v50, -inf }
0x12c5   : > { %3729 = vmax.xlane.f32.xlu0 %v3728_v44 }
0x12c6   : > { %v6703_v38 = vpop.f32.mrb[22].mxu0 }
0x12c7   : > { %v3917_v24 = vadd.f32 %v6703_v38, %v6107_v22  ;;  %v3911_v39 = vpop.f32.mrb[23].mxu0 }
0x12c8   : > { %v3912_v61 = vadd.f32 %v6107_v22, %v3911_v39  ;;  %v6122_v39 = vld [vmem:[%s8089_s26 + $0x1] ss:$0 sm:$0xff] }
0x1351   : > { %v3733_v27 = vpop.xlane.xlu1 %3732 }
0x1352   : > { %v3735_v29 = vsub.f32 %v3727_v20, %v3733_v27  ;;  %v3730_v30 = vpop.xlane.xlu0 %3729  ;;  %v4082_v27 = vpop.f32.mrb[24].mxu0 }
0x1353   : > { %v3734_v31 = vsub.f32 %v3726_v50, %v3730_v30  ;;  %v6725_v30 = vpop.f32.mrb[25].mxu0 }
0x1354   : > { %v3738_v32 = vmul.f32 1.442695, %v3735_v29  ;;  %v4083_v29 = vadd.f32 %v6122_v39, %v4082_v27  ;;  %v6154_v27 = vld [vmem:[%s8089_s26 + $0x2] ss:$0 sm:$0xff] }
0x1355   : > { %v3736_v33 = vmul.f32 1.442695, %v3734_v31  ;;  %v6134_v31 = vld [vmem:[%s7434_s6 + $0x40] sm:$0xff] }
0x1356   : > { %7249 = vpow2.f32 %v3738_v32  ;;  %v6135_v32 = vld [vmem:[%s7434_s6 + $0x48] sm:$0xff] }
0x1357   : > { %7251 = vpow2.f32 %v3736_v33  ;;  %v7048_v33 = vpack.c.bf16 %v6135_v32, %v6134_v31  ;;  %v6164_v32 = vld [vmem:[%s7434_s6 + $0x60] sm:$0xff] }
0x1360   : > { %v7250_v34 = vpop.eup %7249 }
0x1361   : > { %v7252_v35 = vpop.eup %7251  ;;  %v3743_v36 = vsel %vm1302_vm1, %v7250_v34, 0.0 }
0x1362   : > { %3744 = vadd.xlane.f32.xlu1 %v3743_v36  ;;  %v3740_v37 = vsel %vm1302_vm1, %v7252_v35, 0.0 }
0x1363   : > { %3741 = vadd.xlane.f32.xlu0 %v3740_v37 }
0x13ef   : > { %v3745_v46 = vpop.xlane.xlu1 %3744 }
0x13f0   : > { %7253 = vrcp.f32 %v3745_v46  ;;  %v3742_v47 = vpop.xlane.xlu0 %3741 }
0x13f1   : > { %7255 = vrcp.f32 %v3742_v47  ;;  %v7052_v47 = vpack.c.bf16 %v6137_v41, %v6136_v40  ;;  %v6166_v41 = vld [vmem:[%s7434_s6 + $0x70] sm:$0xff] }
0x13fa   : > { %v7254_v52 = vpop.eup %7253 }
0x13fb   : > { %v7256_v53 = vpop.eup %7255  ;;  %v3749_v56 = vmul.f32 %v7254_v52, %v7250_v34  ;;  %v6129_v34 = vld [vmem:[%s8090_s23 + $0x8] sm:$0xff] }
0x13fc   : > { %v3748_v54 = vmul.f32 %v7256_v53, %v7252_v35  ;;  %6736 = vmatprep.subr.mxu0 %v6129_v34  ;;  %v6142_v53 = vld [vmem:[%s7444_s20 + $0x40] sm:$0xff] }
0x13fd   : > { %6737 = vmatpush3.msra.mxu0 %v6129_v34 }
0x13fe   : > { %6690 = vmatprep.mubr.msk.f32.mxu1 %vm1302_vm1, %v3748_v54  ;;  %6741 = vmatprep.subr.mxu0 %v3831_v48  ;;  %v6143_v54 = vld [vmem:[%s7444_s20 + $0x48] sm:$0xff] }
0x13ff   : > { %6691 = vmatmul.mubr.msk.f32.vlgmr.msra.gmra.mrb[28].mxu1 %vm1302_vm1, %v3749_v56  ;;  %v7057_v57 = vpack.c.bf16 %v6143_v54, %v6142_v53 }
0x1400   : > { %7038 = vmatpush3.bf16.msra.mxu1 %v7037_v55  ;;  %6712 = vmatprep.mubr.msk.f32.mxu1 %vm7359_vm4, %v7360_v43  ;;  %v6139_v55 = vld [vmem:[%s8086_s15 + $0x2] ss:$0 sm:$0xff] }
0x1401   : > { %7039 = vmatprep.subr.bf16.mxu1 %v7358_v19 }
0x1404   : > { %7041 = vmatpush3.bf16.msra.mxu1 %v7040_v9 }
0x1407   : > { %6713 = vmatmul.mubr.msk.f32.vlgmr.msra.gmra.mrb[30].mxu1 %vm1048_vm0, %v7828_v28 }
0x1408   : > { %6728 = vmatprep.mubr.msk.f32.mxu1 %vm1302_vm1, %v3912_v61  ;;  %v6144_v61 = vld [vmem:[%s7444_s20 + $0x50] sm:$0xff] }
0x14d2   : > { %v7895_v62 = vpop.f32.mrb[28].mxu1 }
0x14d3   : > { %v7897_v63 = vpop.f32.mrb[29].mxu1 }
0x14da   : > { %v3999_v1 = vpop.f32.mrb[30].mxu1 }
0x14db   : > { %v4000_v2 = vadd.f32 %v6115_v0, %v3999_v1  ;;  %v6714_v25 = vpop.f32.mrb[31].mxu1  ;;  %v6145_v0 = vld [vmem:[%s7444_s20 + $0x58] sm:$0xff] }
0x14dc   : > { %v7060_v1 = vpack.c.bf16 %v6145_v0, %v6144_v61 }
0x14dd   : > { %6726 = vmatprep.subr.msk.mxu1 %vm1302_vm1, %v4000_v2 }
0x14de   : > { %6727 = vmatpush3.xpose.msk.msra.mxu1 %vm1302_vm1, %v4000_v2  ;;  %v6147_v2 = vld [vmem:[%s8085_s11 + $0x2] ss:$0 sm:$0xff] }
0x14df   : > { %6731 = vmatprep.subr.mxu1 %v4083_v29 }
0x14e1   : > { %6729 = vmatmul.mubr.msk.f32.vlgmr.msra.gmra.mrb[32].mxu1 %vm1302_vm1, %v3917_v24 }
0x14e2   : > { %6732 = vmatpush3.msra.mxu1 %v4083_v29 }
0x14e3   : > { %7049 = vmatprep.subr.bf16.mxu1 %v7048_v33 }
0x15b4   : > { %v6730_v23 = vpop.f32.mrb[32].mxu1 }
0x15b5   : > { %v4171_v8 = vmul.f32 0.35355338, %v6730_v23  ;;  %v4161_v10 = vpop.f32.mrb[33].mxu1  ;;  %v7066_v23 = vpack.c.bf16 %v6152_v7, %v6151_v5 }
0x15b6   : > { %v4170_v11 = vmul.f32 0.35355338, %v4161_v10 }
0x15b7   : > { %v4173_v13 = vadd.f32 %v7872_v12, %v4171_v8 }
0x15b8   : > { %v4172_v14 = vadd.f32 %v7872_v12, %v4170_v11 }
0x15b9   : > { %v4177_v15 = vsel %vm1302_vm1, %v4173_v13, -inf }
0x15ba   : > { %4178 = vmax.xlane.f32.xlu1 %v4177_v15  ;;  %v4174_v16 = vsel %vm1302_vm1, %v4172_v14, -inf }
0x15bb   : > { %4175 = vmax.xlane.f32.xlu0 %v4174_v16 }
0x1647   : > { %v4179_v17 = vpop.xlane.xlu1 %4178 }
0x1648   : > { %v4181_v51 = vsub.f32 %v4173_v13, %v4179_v17  ;;  %v4176_v18 = vpop.xlane.xlu0 %4175 }
0x1649   : > { %v4180_v20 = vsub.f32 %v4172_v14, %v4176_v18 }
0x164a   : > { %v4184_v50 = vmul.f32 1.442695, %v4181_v51 }
0x164b   : > { %v4182_v21 = vmul.f32 1.442695, %v4180_v20 }
0x164c   : > { %7257 = vpow2.f32 %v4184_v50 }
0x164d   : > { %7259 = vpow2.f32 %v4182_v21 }
0x1656   : > { %v7258_v22 = vpop.eup %7257 }
0x1657   : > { %v7260_v44 = vpop.eup %7259  ;;  %v4189_v38 = vsel %vm1302_vm1, %v7258_v22, 0.0 }
0x1658   : > { %4190 = vadd.xlane.f32.xlu1 %v4189_v38  ;;  %v4186_v24 = vsel %vm1302_vm1, %v7260_v44, 0.0 }
0x1659   : > { %4187 = vadd.xlane.f32.xlu0 %v4186_v24 }
0x16e5   : > { %v4191_v35 = vpop.xlane.xlu1 %4190 }
0x16e6   : > { %7261 = vrcp.f32 %v4191_v35  ;;  %v4188_v36 = vpop.xlane.xlu0 %4187  ;;  %v6161_v35 = vld [vmem:[%s8090_s23 + $0x10] sm:$0xff] }
0x16e7   : > { %7263 = vrcp.f32 %v4188_v36 }
0x16f0   : > { %v7262_v37 = vpop.eup %7261 }
0x16f1   : > { %v7264_v42 = vpop.eup %7263  ;;  %v4195_v46 = vmul.f32 %v7262_v37, %v7258_v22 }
0x16f2   : > { %v4194_v45 = vmul.f32 %v7264_v42, %v7260_v44  ;;  %v6167_v42 = vld [vmem:[%s7434_s6 + $0x78] sm:$0xff] }
0x16f4   : > { %6733 = vmatprep.mubr.msk.f32.mxu1 %vm1302_vm1, %v4194_v45 }
0x16f5   : > { %6734 = vmatmul.mubr.msk.f32.vlgmr.msra.gmra.mrb[34].mxu1 %vm1302_vm1, %v4195_v46 }
0x16f6   : > { %7051 = vmatpush3.bf16.msra.mxu1 %v7048_v33  ;;  %6754 = vmatprep.mubr.msk.f32.mxu1 %vm1048_vm0, %v7836_v59  ;;  %v6165_v33 = vld [vmem:[%s7434_s6 + $0x68] sm:$0xff] }
0x16f7   : > { %7053 = vmatprep.subr.bf16.mxu1 %v7052_v47  ;;  %v7068_v34 = vpack.c.bf16 %v6165_v33, %v6164_v32 }
0x16fa   : > { %7055 = vmatpush3.bf16.msra.mxu1 %v7052_v47 }
0x16fb   : > { %7062 = vmatprep.subr.bf16.mxu1 %v7358_v19 }
0x16fd   : > { %6755 = vmatmul.mubr.msk.f32.vlgmr.msra.gmra.mrb[36].mxu1 %vm1048_vm0, %v7838_v60 }
0x16fe   : > { %6776 = vmatprep.mubr.msk.f32.mxu1 %vm7359_vm4, %v7360_v43  ;;  %7064 = vmatpush3.bf16.msra.mxu1 %v7063_v6  ;;  %v6182_v6 = vld [vmem:[%s8087_s16 + $0x78] sm:$0xff] }
0x16ff   : > { %7065 = vmatprep.subr.bf16.mxu1 %v7358_v19  ;;  %v7086_v7 = vpack.c.bf16 %v6182_v6, %v6181_v26  ;;  %v5666_v26 = vld [vmem:[%s8093_s10 + $0x18] sm:$0xff]  ;;  %v5667_v6 = vld [vmem:[%s8093_s10 + $0x20] sm:$0xff] }
0x1702   : > { %7067 = vmatpush3.bf16.msra.mxu1 %v7066_v23 }
0x1705   : > { %6777 = vmatmul.mubr.msk.f32.vlgmr.msra.gmra.mrb[38].mxu1 %vm1048_vm0, %v7828_v28 }
0x17c8   : > { %v6735_v49 = vpop.f32.mrb[34].mxu1 }
0x17c9   : > { %v4268_v52 = vpop.f32.mrb[35].mxu1 }
0x17ca   : > { %6738 = vmatprep.mubr.msk.f32.mxu0 %vm1302_vm1, %v4268_v52  ;;  %v6173_v52 = vld [vmem:[%s7444_s20 + $0x68] sm:$0xff] }
0x17cb   : > { %6739 = vmatmul.mubr.msk.f32.vlgmr.msra.gmra.mrb[26].mxu0 %vm1302_vm1, %v6735_v49  ;;  %v6172_v49 = vld [vmem:[%s7444_s20 + $0x60] sm:$0xff] }
0x17cc   : > { %6742 = vmatpush3.msra.mxu0 %v3831_v48  ;;  %6743 = vmatprep.mubr.msk.f32.mxu0 %vm1302_vm1, %v7897_v63  ;;  %v7072_v48 = vpack.c.bf16 %v6167_v42, %v6166_v41  ;;  %v7077_v54 = vpack.c.bf16 %v6173_v52, %v6172_v49 }
0x17cd   : > { %7056 = vmatprep.subr.bf16.mxu0 %v7358_v19 }
0x17d0   : > { %v6756_v56 = vpop.f32.mrb[36].mxu1 }
0x17d1   : > { %v4526_v58 = vadd.f32 %v6756_v56, %v6139_v55  ;;  %v4520_v9 = vpop.f32.mrb[37].mxu1  ;;  %v6174_v56 = vld [vmem:[%s7444_s20 + $0x70] sm:$0xff] }
0x17d2   : > { %v4521_v63 = vadd.f32 %v6139_v55, %v4520_v9  ;;  %v6169_v9 = vld [vmem:[%s8086_s15 + $0x3] ss:$0 sm:$0xff] }
0x17d3   : > { %6744 = vmatmul.mubr.msk.f32.vlgmr.msra.gmra.mrb[26].mxu0 %vm1302_vm1, %v7895_v62 }
0x17d4   : > { %7058 = vmatpush3.bf16.msra.mxu0 %v7057_v57  ;;  %6765 = vmatprep.mubr.msk.f32.mxu0 %vm7359_vm4, %v7360_v43  ;;  %v6175_v57 = vld [vmem:[%s7444_s20 + $0x78] sm:$0xff] }
0x17d5   : > { %7059 = vmatprep.subr.bf16.mxu0 %v7358_v19 }
0x17d8   : > { %7061 = vmatpush3.bf16.msra.mxu0 %v7060_v1  ;;  %v4691_v29 = vpop.f32.mrb[38].mxu1 }
0x17d9   : > { %v4692_v30 = vadd.f32 %v6154_v27, %v4691_v29  ;;  %v6778_v31 = vpop.f32.mrb[39].mxu1  ;;  %v6191_v27 = vld [vmem:[%s8090_s23 + $0x18] sm:$0xff] }
0x17db   : > { %6766 = vmatmul.mubr.msk.f32.vlgmr.msra.gmra.mrb[28].mxu0 %vm1048_vm0, %v7828_v28  ;;  %6784 = vmatprep.subr.mxu1 %v4692_v30 }
0x17dc   : > { %6781 = vmatprep.mubr.msk.f32.mxu0 %vm1302_vm1, %v4521_v63  ;;  %6785 = vmatpush3.msra.mxu1 %v4692_v30 }
0x17dd   : > { %7069 = vmatprep.subr.bf16.mxu1 %v7068_v34 }
0x18ae   : > { %v4608_v62 = vpop.f32.mrb[28].mxu0 }
0x18af   : > { %v4609_v25 = vadd.f32 %v6147_v2, %v4608_v62  ;;  %v6767_v3 = vpop.f32.mrb[29].mxu0  ;;  %v6177_v2 = vld [vmem:[%s8085_s11 + $0x3] ss:$0 sm:$0xff] }
0x18b0   : > { %v6179_v3 = vld [vmem:[%s8087_s16 + $0x60] sm:$0xff] }
0x18b1   : > { %6779 = vmatprep.subr.msk.mxu0 %vm1302_vm1, %v4609_v25  ;;  %v7083_v5 = vpack.c.bf16 %v6180_v4, %v6179_v3  ;;  %v5665_v3 = vld [vmem:[%s8093_s10 + $0x10] sm:$0xff] }
0x18b2   : > { %6780 = vmatpush3.xpose.msk.msra.mxu0 %vm1302_vm1, %v4609_v25 }
0x18b3   : > { %6789 = vmatprep.subr.mxu0 %v6161_v35 }
0x18b5   : > { %6782 = vmatmul.mubr.msk.f32.vlgmr.msra.gmra.mrb[30].mxu0 %vm1302_vm1, %v4526_v58  ;;  %v7080_v58 = vpack.c.bf16 %v6175_v57, %v6174_v56 }
0x18b6   : > { %6790 = vmatpush3.msra.mxu0 %v6161_v35 }
0x18b7   : > { %7076 = vmatprep.subr.bf16.mxu0 %v7358_v19 }
0x1988   : > { %v6783_v8 = vpop.f32.mrb[30].mxu0 }
0x1989   : > { %v4780_v10 = vmul.f32 0.35355338, %v6783_v8  ;;  %v4770_v11 = vpop.f32.mrb[31].mxu0 }
0x198a   : > { %v4779_v13 = vmul.f32 0.35355338, %v4770_v11 }
0x198b   : > { %v4782_v14 = vadd.f32 %v7872_v12, %v4780_v10 }
0x198c   : > { %v4781_v15 = vadd.f32 %v7872_v12, %v4779_v13 }
0x198d   : > { %v4786_v16 = vsel %vm1302_vm1, %v4782_v14, -inf }
0x198e   : > { %4787 = vmax.xlane.f32.xlu1 %v4786_v16  ;;  %v4783_v17 = vsel %vm1302_vm1, %v4781_v15, -inf }
0x198f   : > { %4784 = vmax.xlane.f32.xlu0 %v4783_v17 }
0x1a1b   : > { %v4788_v51 = vpop.xlane.xlu1 %4787 }
0x1a1c   : > { %v4790_v18 = vsub.f32 %v4782_v14, %v4788_v51  ;;  %v4785_v20 = vpop.xlane.xlu0 %4784 }
0x1a1d   : > { %v4789_v50 = vsub.f32 %v4781_v15, %v4785_v20 }
0x1a1e   : > { %v4793_v21 = vmul.f32 1.442695, %v4790_v18 }
0x1a1f   : > { %v4791_v22 = vmul.f32 1.442695, %v4789_v50 }
0x1a20   : > { %7265 = vpow2.f32 %v4793_v21 }
0x1a21   : > { %7267 = vpow2.f32 %v4791_v22 }
0x1a2a   : > { %v7266_v44 = vpop.eup %7265 }
0x1a2b   : > { %v7268_v38 = vpop.eup %7267  ;;  %v4798_v24 = vsel %vm1302_vm1, %v7266_v44, 0.0 }
0x1a2c   : > { %4799 = vadd.xlane.f32.xlu1 %v4798_v24  ;;  %v4795_v39 = vsel %vm1302_vm1, %v7268_v38, 0.0 }
0x1a2d   : > { %4796 = vadd.xlane.f32.xlu0 %v4795_v39 }
0x1ab9   : > { %v4800_v36 = vpop.xlane.xlu1 %4799 }
0x1aba   : > { %7269 = vrcp.f32 %v4800_v36  ;;  %v4797_v37 = vpop.xlane.xlu0 %4796 }
0x1abb   : > { %7271 = vrcp.f32 %v4797_v37  ;;  %v6194_v37 = vld [vmem:[%s8091_s28] ss:$0 sm:$0xff]  ;;  %s8096_s28 = sld [smem:[#allocation17_spill]] }
0x1ac4   : > { %v7270_v40 = vpop.eup %7269 }
0x1ac5   : > { %v7272_v45 = vpop.eup %7271  ;;  %v4804_v47 = vmul.f32 %v7270_v40, %v7266_v44  ;;  %v6184_v44 = vld [vmem:[%s8089_s26 + $0x3] ss:$0 sm:$0xff] }
0x1ac6   : > { %v4803_v46 = vmul.f32 %v7272_v45, %v7268_v38 }
0x1ac8   : > { %6786 = vmatprep.mubr.msk.f32.mxu1 %vm1302_vm1, %v4803_v46 }
0x1ac9   : > { %6787 = vmatmul.mubr.msk.f32.vlgmr.msra.gmra.mrb[40].mxu1 %vm1302_vm1, %v4804_v47 }
0x1aca   : > { %7071 = vmatpush3.bf16.msra.mxu1 %v7068_v34  ;;  %6802 = vmatprep.mubr.msk.f32.mxu1 %vm1048_vm0, %v7836_v59 }
0x1acb   : > { %7073 = vmatprep.subr.bf16.mxu1 %v7072_v48 }
0x1ace   : > { %7075 = vmatpush3.bf16.msra.mxu1 %v7072_v48 }
0x1acf   : > { %7082 = vmatprep.subr.bf16.mxu1 %v7358_v19 }
0x1ad1   : > { %6803 = vmatmul.mubr.msk.f32.vlgmr.msra.gmra.mrb[42].mxu1 %vm1048_vm0, %v7838_v60 }
0x1ad2   : > { %6824 = vmatprep.mubr.msk.f32.mxu1 %vm7359_vm4, %v7360_v43  ;;  %7084 = vmatpush3.bf16.msra.mxu1 %v7083_v5  ;;  %v7100_v5 = vpack.c.bf16 %v5666_v26, %v5665_v3 }
0x1ad3   : > { %7085 = vmatprep.subr.bf16.mxu1 %v7358_v19 }
0x1ad6   : > { %7087 = vmatpush3.bf16.msra.mxu1 %v7086_v7  ;;  %v5668_v7 = vld [vmem:[%s8093_s10 + $0x28] sm:$0xff] }
0x1ad9   : > { %6825 = vmatmul.mubr.msk.f32.vlgmr.msra.gmra.mrb[44].mxu1 %vm1048_vm0, %v7828_v28 }
0x1b9c   : > { %v6788_v53 = vpop.f32.mrb[40].mxu1 }
0x1b9d   : > { %v4877_v55 = vpop.f32.mrb[41].mxu1 }
0x1b9e   : > { %6791 = vmatprep.mubr.msk.f32.mxu0 %vm1302_vm1, %v4877_v55 }
0x1b9f   : > { %6792 = vmatmul.mubr.msk.f32.vlgmr.msra.gmra.mrb[26].mxu0 %vm1302_vm1, %v6788_v53 }
0x1ba0   : > { %7078 = vmatpush3.bf16.msra.mxu0 %v7077_v54  ;;  %6813 = vmatprep.mubr.msk.f32.mxu0 %vm7359_vm4, %v7360_v43 }
0x1ba1   : > { %7079 = vmatprep.subr.bf16.mxu0 %v7358_v19 }
0x1ba4   : > { %v6804_v61 = vpop.f32.mrb[42].mxu1  ;;  %7081 = vmatpush3.bf16.msra.mxu0 %v7080_v58 }
0x1ba5   : > { %v5056_v0 = vadd.f32 %v6804_v61, %v6169_v9  ;;  %v5050_v1 = vpop.f32.mrb[43].mxu1  ;;  %v5569_v61 = vld [vmem:[%s8092_s1] sm:$0xff] }
0x1ba6   : > { %v5051_v63 = vadd.f32 %v6169_v9, %v5050_v1  ;;  %v5571_v1 = vld [vmem:[%s8092_s1 + $0x10] sm:$0xff] }
0x1ba7   : > { %6814 = vmatmul.mubr.msk.f32.vlgmr.msra.gmra.mrb[32].mxu0 %vm1048_vm0, %v7828_v28 }
0x1ba8   : > { %6829 = vmatprep.mubr.msk.f32.mxu0 %vm1302_vm1, %v5051_v63 }
0x1bac   : > { %v5221_v38 = vpop.f32.mrb[44].mxu1 }
0x1bad   : > { %v5222_v24 = vadd.f32 %v6184_v44, %v5221_v38  ;;  %v6826_v39 = vpop.f32.mrb[45].mxu1 }
0x1c7a   : > { %v5138_v62 = vpop.f32.mrb[32].mxu0 }
0x1c7b   : > { %v5139_v43 = vadd.f32 %v6177_v2, %v5138_v62  ;;  %v6815_v25 = vpop.f32.mrb[33].mxu0  ;;  %v5572_v2 = vld [vmem:[%s8092_s1 + $0x18] sm:$0xff] }
0x1c7c   : > { %v7092_v62 = vpack.c.bf16 %v5572_v2, %v5571_v1  ;;  %v5664_v25 = vld [vmem:[%s8093_s10 + $0x8] sm:$0xff] }
0x1c7d   : > { %6827 = vmatprep.subr.msk.mxu0 %vm1302_vm1, %v5139_v43 }
0x1c7e   : > { %6828 = vmatpush3.xpose.msk.msra.mxu0 %vm1302_vm1, %v5139_v43  ;;  %v5663_v43 = vld [vmem:[%s8093_s10] sm:$0xff] }
0x1c7f   : > { %6832 = vmatprep.subr.mxu0 %v5222_v24  ;;  %v7096_v4 = vpack.c.bf16 %v5664_v25, %v5663_v43 }
0x1c81   : > { %6830 = vmatmul.mubr.msk.f32.vlgmr.msra.gmra.mrb[34].mxu0 %vm1302_vm1, %v5056_v0  ;;  %v5570_v0 = vld [vmem:[%s8092_s1 + $0x8] sm:$0xff] }
0x1c82   : > { %6833 = vmatpush3.msra.mxu0 %v5222_v24  ;;  %v7088_v63 = vpack.c.bf16 %v5570_v0, %v5569_v61 }
0x1c83   : > { %6837 = vmatprep.subr.mxu0 %v6191_v27 }
0x1c84   : > { %7089 = vmatprep.subr.bf16.mxu1 %v7088_v63 }
0x1c85   : > { %7091 = vmatpush3.bf16.msra.mxu1 %v7088_v63 }
0x1c86   : > { %7093 = vmatprep.subr.bf16.mxu1 %v7092_v62 }
0x1c89   : > { %7095 = vmatpush3.bf16.msra.mxu1 %v7092_v62 }
0x1d54   : > { %v6831_v23 = vpop.f32.mrb[34].mxu0 }
0x1d55   : > { %v5310_v8 = vmul.f32 0.35355338, %v6831_v23  ;;  %v5300_v10 = vpop.f32.mrb[35].mxu0  ;;  %v7104_v23 = vpack.c.bf16 %v5668_v7, %v5667_v6 }
0x1d56   : > { %v5309_v11 = vmul.f32 0.35355338, %v5300_v10 }
0x1d57   : > { %v5312_v13 = vadd.f32 %v7872_v12, %v5310_v8 }
0x1d58   : > { %v5311_v14 = vadd.f32 %v7872_v12, %v5309_v11 }
0x1d59   : > { %v5316_v15 = vsel %vm1302_vm1, %v5312_v13, -inf }
0x1d5a   : > { %5317 = vmax.xlane.f32.xlu1 %v5316_v15  ;;  %v5313_v16 = vsel %vm1302_vm1, %v5311_v14, -inf }
0x1d5b   : > { %5314 = vmax.xlane.f32.xlu0 %v5313_v16 }
0x1de7   : > { %v5318_v19 = vpop.xlane.xlu1 %5317 }
0x1de8   : > { %v5320_v17 = vsub.f32 %v5312_v13, %v5318_v19  ;;  %v5315_v51 = vpop.xlane.xlu0 %5314 }
0x1de9   : > { %v5319_v18 = vsub.f32 %v5311_v14, %v5315_v51 }
0x1dea   : > { %v5323_v28 = vmul.f32 1.442695, %v5320_v17 }
0x1deb   : > { %v5321_v20 = vmul.f32 1.442695, %v5319_v18 }
0x1dec   : > { %7273 = vpow2.f32 %v5323_v28 }
0x1ded   : > { %7275 = vpow2.f32 %v5321_v20 }
0x1df6   : > { %v7274_v50 = vpop.eup %7273 }
0x1df7   : > { %v7276_v21 = vpop.eup %7275  ;;  %v5328_v12 = vsel %vm1302_vm1, %v7274_v50, 0.0 }
0x1df8   : > { %5329 = vadd.xlane.f32.xlu1 %v5328_v12  ;;  %v5325_v22 = vsel %vm1302_vm1, %v7276_v21, 0.0 }
0x1df9   : > { %5326 = vadd.xlane.f32.xlu0 %v5325_v22  ;;  %v6195_v22 = vld [vmem:[%s8094_s18] ss:$0 sm:$0xff]  ;;  %s1023_s18 = scalar_lea.vmem %s7524_s12, %s6207_s7 }
0x1e85   : > { %v5330_v29 = vpop.xlane.xlu1 %5329 }
0x1e86   : > { %7277 = vrcp.f32 %v5330_v29  ;;  %v5327_v30 = vpop.xlane.xlu0 %5326 }
0x1e87   : > { %7279 = vrcp.f32 %v5327_v30 }
0x1e90   : > { %v7278_v31 = vpop.eup %7277 }
0x1e91   : > { %v7280_v32 = vpop.eup %7279  ;;  %v5334_v34 = vmul.f32 %v7278_v31, %v7274_v50 }
0x1e92   : > { %v5333_v33 = vmul.f32 %v7280_v32, %v7276_v21 }
0x1e94   : > { %6834 = vmatprep.mubr.msk.f32.mxu0 %vm1302_vm1, %v5333_v33  ;;  %v5669_v33 = vld [vmem:[%s8093_s10 + $0x30] sm:$0xff] }
0x1e95   : > { %6835 = vmatmul.mubr.msk.f32.vlgmr.msra.gmra.mrb[36].mxu0 %vm1302_vm1, %v5334_v34  ;;  %v5670_v34 = vld [vmem:[%s8093_s10 + $0x38] sm:$0xff] }
0x1e96   : > { %6838 = vmatpush3.msra.mxu0 %v6191_v27  ;;  %v6196_v27 = vld [vmem:[%s8095_s0] ss:$0 sm:$0xff] }
0x1e97   : > { %7097 = vmatprep.subr.bf16.mxu0 %v7096_v4 }
0x1f68   : > { %v6836_v35 = vpop.f32.mrb[36].mxu0 }
0x1f69   : > { %v5407_v36 = vpop.f32.mrb[37].mxu0 }
0x1f6a   : > { %6839 = vmatprep.mubr.msk.f32.mxu0 %vm1302_vm1, %v5407_v36  ;;  %v6197_v36 = vld [vmem:[%s8096_s28] ss:$0 sm:$0xff] }
0x1f6b   : > { %6840 = vmatmul.mubr.msk.f32.vlgmr.msra.gmra.mrb[26].mxu0 %vm1302_vm1, %v6836_v35  ;;  %v7108_v35 = vpack.c.bf16 %v5670_v34, %v5669_v33 }
0x1f6c   : > { %7099 = vmatpush3.bf16.msra.mxu0 %v7096_v4 }
0x1f6d   : > { %7101 = vmatprep.subr.bf16.mxu0 %v7100_v5 }
0x1f70   : > { %7103 = vmatpush3.bf16.msra.mxu0 %v7100_v5 }
0x1f71   : > { %7105 = vmatprep.subr.bf16.mxu0 %v7104_v23 }
0x1f74   : > { %7107 = vmatpush3.bf16.msra.mxu0 %v7104_v23 }
0x1f75   : > { %7109 = vmatprep.subr.bf16.mxu0 %v7108_v35 }
0x1f78   : > { %7111 = vmatpush3.bf16.msra.mxu0 %v7108_v35 }
0x203e   : > { %v6841_v40 = vpop.f32.mrb[26].mxu0 }
0x203f   : > { %v5508_v41 = vadd.f32 %v6841_v40, %v6194_v37  ;;  %v5490_v42 = vpop.f32.mrb[27].mxu0 }
0x2040   : > { %v5507_v45 = vadd.f32 %v6194_v37, %v5490_v42 }
0x2041   : > { %v5510_v46 = vadd.f32 %v5508_v41, %v7838_v60 }
0x2042   : > { %v5509_v47 = vadd.f32 %v5507_v45, %v7836_v59 }
0x2043   : > { %v5516_v48 = vsel %vm1048_vm0, %v5510_v46, 0.0 }
0x2044   : > { %5517 = vadd.xlane.f32.xlu1 %v5516_v48  ;;  %v5513_v49 = vsel %vm1048_vm0, %v5509_v47, 0.0 }
0x2045   : > { %5514 = vadd.xlane.f32.xlu0 %v5513_v49 }
0x20d1   : > { %v5518_v52 = vpop.xlane.xlu1 %5517 }
0x20d2   : > { %v5520_v53 = vmul.f32 0.03125, %v5518_v52  ;;  %v5515_v54 = vpop.xlane.xlu0 %5514 }
0x20d3   : > { %v5519_v55 = vmul.f32 0.03125, %v5515_v54 }
0x20d4   : > { %v5522_v56 = vsub.f32 %v5510_v46, %v5520_v53 }
0x20d5   : > { %v5521_v57 = vsub.f32 %v5509_v47, %v5519_v55  ;;  %v6200_v47 = vld [vmem:[%s7509_s27] ss:$0 sm:$0xff] }
0x20d6   : > { %v5524_v58 = vmul.f32 %v5522_v56, %v5522_v56  ;;  %v5554_v44 = vmul.f32 %v6195_v22, %v5522_v56 }
0x20d7   : > { %v5523_v60 = vmul.f32 %v5521_v57, %v5521_v57  ;;  %v5553_v24 = vmul.f32 %v6195_v22, %v5521_v57 }
0x20d8   : > { %v5528_v59 = vsel %vm1048_vm0, %v5524_v58, 0.0 }
0x20d9   : > { %5529 = vadd.xlane.f32.xlu1 %v5528_v59  ;;  %v5525_v9 = vsel %vm1048_vm0, %v5523_v60, 0.0 }
0x20da   : > { %5526 = vadd.xlane.f32.xlu0 %v5525_v9 }
0x2166   : > { %v5530_v8 = vpop.xlane.xlu1 %5529 }
0x2167   : > { %v5532_v10 = vmul.f32 0.032258064, %v5530_v8  ;;  %v5527_v11 = vpop.xlane.xlu0 %5526 }
0x2168   : > { %v5531_v13 = vmul.f32 0.032258064, %v5527_v11 }
0x2169   : > { %7281 = vrsqrt.f32 %v5532_v10  ;;  %vm5542_vm9 = vcmp.eq.f32.partialorder %v5532_v10, inf  ;;  %v5545_v19 = vand.u32 2147483648, %v5532_v10  ;;  %vm5544_vm10 = vcmp.eq.f32.partialorder %v5532_v10, 0.0 }
0x216a   : > { %7283 = vrsqrt.f32 %v5531_v13  ;;  %vm5535_vm11 = vcmp.eq.f32.partialorder %v5531_v13, inf  ;;  %v5538_v18 = vand.u32 2147483648, %v5531_v13  ;;  %vm5537_vm12 = vcmp.eq.f32.partialorder %v5531_v13, 0.0 }
0x2173   : > { %v7282_v14 = vpop.eup %7281 }
0x2174   : > { %v7284_v15 = vpop.eup %7283  ;;  %v5541_v16 = vmul.f32 %v7282_v14, %v5532_v10 }
0x2175   : > { %v5534_v17 = vmul.f32 %v7284_v15, %v5531_v13 }
0x2176   : > { %v5543_v51 = vsel %vm5542_vm9, %v5532_v10, %v5541_v16 }
0x2177   : > { %v5546_v28 = vsel %vm5544_vm10, %v5545_v19, %v5543_v51  ;;  %v5536_v20 = vsel %vm5535_vm11, %v5531_v13, %v5534_v17  ;;  %v6203_v19 = vld [vmem:[%s7514_s4] ss:$0 sm:$0xff] }
0x2178   : > { %v5556_v50 = vadd.f32 1e-06, %v5546_v28  ;;  %v5539_v21 = vsel %vm5537_vm12, %v5538_v18, %v5536_v20  ;;  %v6204_v28 = vld [vmem:[%s7519_s21] ss:$0 sm:$0xff] }
0x2179   : > { %v5555_v12 = vadd.f32 1e-06, %v5539_v21 }
0x217a   : > { %7285 = vrcp.f32 %v5556_v50 }
0x217b   : > { %7287 = vrcp.f32 %v5555_v12 }
0x2184   : > { %v7286_v38 = vpop.eup %7285 }
0x2185   : > { %v7288_v39 = vpop.eup %7287  ;;  %v5560_v29 = vmul.f32 %v7286_v38, %v5554_v44 }
0x2186   : > { %v5558_v30 = vmul.f32 %v7288_v39, %v5553_v24 }
0x2187   : > { %v5568_v32 = vadd.f32 %v6196_v27, %v5560_v29 }
0x2188   : > { %v5567_v31 = vadd.f32 %v6196_v27, %v5558_v30 }
0x218a   : > { %6850 = vmatprep.mubr.msk.f32.mxu1 %vm1048_vm0, %v5567_v31 }
0x218b   : > { %6851 = vmatmul.mubr.msk.f32.vlgmr.msra.gmra.mrb[46].mxu1 %vm1048_vm0, %v5568_v32 }
0x225e   : > { %v6852_v37 = vpop.f32.mrb[46].mxu1 }
0x225f   : > { %v5658_v40 = vadd.f32 %v6852_v37, %v6197_v36  ;;  %v5652_v41 = vpop.f32.mrb[47].mxu1 }
0x2260   : > { %v5653_v42 = vadd.f32 %v6197_v36, %v5652_v41 }
0x2261   : > { %v5662_v46 = vmax.f32 %v5658_v40, 0.0 }
0x2262   : > { %v5661_v45 = vmax.f32 %v5653_v42, 0.0 }
0x2264   : > { %6869 = vmatprep.mubr.msk.f32.mxu0 %vm5678_vm13, %v5661_v45 }
0x2265   : > { %6870 = vmatmul.mubr.msk.f32.vlgmr.msra.gmra.mrb[38].mxu0 %vm5678_vm13, %v5662_v46 }
0x2338   : > { %v6871_v48 = vpop.f32.mrb[38].mxu0 }
0x2339   : > { %v5757_v49 = vadd.f32 %v6871_v48, %v6200_v47  ;;  %v5751_v52 = vpop.f32.mrb[39].mxu0 }
0x233a   : > { %v5752_v53 = vadd.f32 %v6200_v47, %v5751_v52 }
0x233b   : > { %v5761_v54 = vadd.f32 %v5757_v49, %v5568_v32 }
0x233c   : > { %v5760_v55 = vadd.f32 %v5752_v53, %v5567_v31 }
0x233d   : > { %v5767_v56 = vsel %vm1048_vm0, %v5761_v54, 0.0 }
0x233e   : > { %5768 = vadd.xlane.f32.xlu1 %v5767_v56  ;;  %v5764_v57 = vsel %vm1048_vm0, %v5760_v55, 0.0 }
0x233f   : > { %5765 = vadd.xlane.f32.xlu0 %v5764_v57 }
0x23cb   : > { %v5769_v58 = vpop.xlane.xlu1 %5768 }
0x23cc   : > { %v5771_v60 = vmul.f32 0.03125, %v5769_v58  ;;  %v5766_v59 = vpop.xlane.xlu0 %5765 }
0x23cd   : > { %v5770_v9 = vmul.f32 0.03125, %v5766_v59 }
0x23ce   : > { %v5773_v61 = vsub.f32 %v5761_v54, %v5771_v60 }
0x23cf   : > { %v5772_v0 = vsub.f32 %v5760_v55, %v5770_v9 }
0x23d0   : > { %v5775_v1 = vmul.f32 %v5773_v61, %v5773_v61  ;;  %v5805_v17 = vmul.f32 %v6203_v19, %v5773_v61 }
0x23d1   : > { %v5774_v63 = vmul.f32 %v5772_v0, %v5772_v0  ;;  %v5804_v18 = vmul.f32 %v6203_v19, %v5772_v0 }
0x23d2   : > { %v5779_v2 = vsel %vm1048_vm0, %v5775_v1, 0.0 }
0x23d3   : > { %5780 = vadd.xlane.f32.xlu1 %v5779_v2  ;;  %v5776_v62 = vsel %vm1048_vm0, %v5774_v63, 0.0 }
0x23d4   : > { %5777 = vadd.xlane.f32.xlu0 %v5776_v62 }
0x2460   : > { %v5781_v43 = vpop.xlane.xlu1 %5780 }
0x2461   : > { %v5783_v25 = vmul.f32 0.032258064, %v5781_v43  ;;  %v5778_v3 = vpop.xlane.xlu0 %5777 }
0x2462   : > { %v5782_v4 = vmul.f32 0.032258064, %v5778_v3 }
0x2463   : > { %7289 = vrsqrt.f32 %v5783_v25  ;;  %vm5793_vm14 = vcmp.eq.f32.partialorder %v5783_v25, inf  ;;  %v5796_v7 = vand.u32 2147483648, %v5783_v25  ;;  %vm5795_vm15 = vcmp.eq.f32.partialorder %v5783_v25, 0.0 }
0x2464   : > { %7291 = vrsqrt.f32 %v5782_v4  ;;  %vm5786_vm1 = vcmp.eq.f32.partialorder %v5782_v4, inf  ;;  %v5789_v10 = vand.u32 2147483648, %v5782_v4  ;;  %vm5788_vm2 = vcmp.eq.f32.partialorder %v5782_v4, 0.0 }
0x246d   : > { %v7290_v26 = vpop.eup %7289 }
0x246e   : > { %v7292_v5 = vpop.eup %7291  ;;  %v5792_v6 = vmul.f32 %v7290_v26, %v5783_v25 }
0x246f   : > { %v5785_v23 = vmul.f32 %v7292_v5, %v5782_v4 }
0x2470   : > { %v5794_v8 = vsel %vm5793_vm14, %v5783_v25, %v5792_v6 }
0x2471   : > { %v5797_v11 = vsel %vm5795_vm15, %v5796_v7, %v5794_v8  ;;  %v5787_v13 = vsel %vm5786_vm1, %v5782_v4, %v5785_v23 }
0x2472   : > { %v5807_v14 = vadd.f32 1e-06, %v5797_v11  ;;  %v5790_v15 = vsel %vm5788_vm2, %v5789_v10, %v5787_v13 }
0x2473   : > { %v5806_v16 = vadd.f32 1e-06, %v5790_v15 }
0x2474   : > { %7293 = vrcp.f32 %v5807_v14 }
0x2475   : > { %7295 = vrcp.f32 %v5806_v16 }
0x247e   : > { %v7294_v51 = vpop.eup %7293 }
0x247f   : > { %v7296_v20 = vpop.eup %7295  ;;  %v5811_v50 = vmul.f32 %v7294_v51, %v5805_v17 }
0x2480   : > { %v5809_v21 = vmul.f32 %v7296_v20, %v5804_v18 }
0x2481   : > { %v5819_v12 = vadd.f32 %v6204_v28, %v5811_v50 }
0x2482   : > { %v5818_v22 = vadd.f32 %v6204_v28, %v5809_v21 }
0x2483   : > { %5821 = vst.msk [vmem:[%s1023_s18 + $0x8] sm:$0xff] %vm1048_vm0, %v5819_v12 }
0x2484   : > { %5820 = vst.msk [vmem:[%s1023_s18] sm:$0xff] %vm1048_vm0, %v5818_v22 }
0x2485 PF: > { %s74_s22 = sadd.s32 1, %s7324_s22  }
0x2486   : > { %p71_p1 = scmp.ge.s32.totalorder %s74_s22, 4  }
0x2488   :  { %73 = sbr.rel (!%p71_p1) target bundleno = 51 (0x33), region = 262 }
0x248f   :  { %5843 = vsyncpa [#allocation3], 1 }
0x2490   :  { %5845 = vsyncpa [#allocation3 + $0x1], 1 }

// kernel: run.7
= control target key start
LH: loop header
LB: loop body
LE: loop exit
PB: predicated region body
PF: predicated region fallthrough
CT: control target
= control target key end

     0   :  { %s7435_s6 = smov 1   ;;  %s7436_s10 = smov 2   ;;  %s8244_s0 = inlined_call_operand.smem [shape: u32[32], index: -1, kind: input, shape index: {}] }
   0x1   :  { %s7481_s5 = sld [smem:[%s8244_s0]]   ;;  %s7437_s14 = smov 3  }
   0x2   :  { %s7486_s9 = sld [smem:[%s8244_s0 + %s7435_s6]]   ;;  %s7438_s18 = smov 4  }
   0x3   :  { %s7491_s13 = sld [smem:[%s8244_s0 + %s7436_s10]]   ;;  %s7439_s22 = smov 5  }
   0x4   :  { %s7496_s17 = sld [smem:[%s8244_s0 + %s7437_s14]]   ;;  %s7440_s26 = smov 6  }
   0x5   :  { %s7501_s21 = sld [smem:[%s8244_s0 + %s7438_s18]]   ;;  %s7441_s30 = smov 7  }
   0x6   :  { %s7506_s25 = sld [smem:[%s8244_s0 + %s7439_s22]]   ;;  %s7442_s4 = smov 8  }
   0x7   :  { %8261 = sst [smem:[#allocation8_spill]] %s7481_s5  ;;  %s7443_s10 = smov 9  }
   0x8   :  { %8262 = sst [smem:[#allocation9_spill]] %s7486_s9  ;;  %s7444_s15 = smov 10  }
   0x9   :  { %s7511_s29 = sld [smem:[%s8244_s0 + %s7440_s26]]   ;;  %s7445_s20 = smov 11  }
   0xa   :  { %s7516_s3 = sld [smem:[%s8244_s0 + %s7441_s30]]   ;;  %s7446_s26 = smov 12  }
   0xb   :  { %8263 = sst [smem:[#allocation10_spill]] %s7501_s21  ;;  %s7447_s1 = smov 13  }
   0xc   :  { %s7521_s8 = sld [smem:[%s8244_s0 + %s7442_s4]]   ;;  %s7448_s7 = smov 14  }
   0xd   :  { %s7526_s14 = sld [smem:[%s8244_s0 + %s7443_s10]]   ;;  %s7450_s22 = smov 16  }
   0xe   :  { %s7531_s19 = sld [smem:[%s8244_s0 + %s7444_s15]]   ;;  %s7449_s15 = smov 15  }
   0xf   :  { %s7536_s24 = sld [smem:[%s8244_s0 + %s7445_s20]]   ;;  %s7451_s28 = smov 17  }
  0x10   :  { %8264 = sst [smem:[#allocation11_spill]] %s7516_s3 }
  0x11   :  { %s7541_s30 = sld [smem:[%s8244_s0 + %s7446_s26]]  }
  0x12   :  { %8265 = sst [smem:[#allocation12_spill]] %s7521_s8 }
  0x13   :  { %s7546_s6 = sld [smem:[%s8244_s0 + %s7447_s1]]  }
  0x14   :  { %s7551_s12 = sld [smem:[%s8244_s0 + %s7448_s7]]   ;;  %s7452_s7 = smov 18  }
  0x15   :  { %s7556_s20 = sld [smem:[%s8244_s0 + %s7449_s15]]   ;;  %s7453_s15 = smov 19  }
  0x16   :  { %s7561_s27 = sld [smem:[%s8244_s0 + %s7450_s22]]   ;;  %s7454_s22 = smov 20  }
  0x17   :  { %s7566_s4 = sld [smem:[%s8244_s0 + %s7451_s28]]   ;;  %s7455_s28 = smov 21  }
  0x18   :  { %s7571_s21 = sld [smem:[%s8244_s0 + %s7452_s7]]   ;;  %s7456_s7 = smov 22  }
  0x19   :  { %8266 = sst [smem:[#allocation13_spill]] %s7546_s6 }
  0x1a   :  { %8267 = sst [smem:[#allocation14_spill]] %s7551_s12 }
  0x1b   :  { %s7576_s12 = sld [smem:[%s8244_s0 + %s7453_s15]]   ;;  %s7457_s15 = smov 23  }
  0x1c   :  { %8268 = sst [smem:[#allocation15_spill]] %s7561_s27 }
  0x1d   :  { %8269 = sst [smem:[#allocation16_spill]] %s7566_s4 }
  0x1e   :  { %8270 = sst [smem:[#allocation17_spill]] %s7571_s21 }
  0x1f   :  { %s7581_s27 = sld [smem:[%s8244_s0 + %s7454_s22]]   ;;  %s7458_s22 = smov 24  }
  0x20   :  { %s7586_s4 = sld [smem:[%s8244_s0 + %s7455_s28]]   ;;  %s7459_s28 = smov 25  }
  0x21   :  { %8271 = sst [smem:[#allocation18_spill]] %s7576_s12 }
  0x22   :  { %s7591_s21 = sld [smem:[%s8244_s0 + %s7456_s7]]   ;;  %s7460_s7 = smov 26  }
  0x23   :  { %s7596_s12 = sld [smem:[%s8244_s0 + %s7457_s15]]   ;;  %s7461_s15 = smov 27  }
  0x25   :  { %8272 = sst [smem:[#allocation19_spill]] %s7581_s27 }
  0x26   :  { %8273 = sst [smem:[#allocation20_spill]] %s7586_s4 }
  0x27   :  { %s7601_s27 = sld [smem:[%s8244_s0 + %s7458_s22]]   ;;  %s7462_s22 = smov 28  }
  0x28   :  { %8274 = sst [smem:[#allocation21_spill]] %s7591_s21 }
  0x29   :  { %8275 = sst [smem:[#allocation22_spill]] %s7596_s12 }
  0x2a   :  { %s7606_s4 = sld [smem:[%s8244_s0 + %s7459_s28]]   ;;  %s7463_s28 = smov 29  }
  0x2b   :  { %s7611_s21 = sld [smem:[%s8244_s0 + %s7460_s7]]   ;;  %s7464_s7 = smov 30  }
  0x2c   :  { %s7616_s12 = sld [smem:[%s8244_s0 + %s7461_s15]]   ;;  %s7465_s15 = smov 31  }
  0x2d   :  { %8276 = sst [smem:[#allocation23_spill]] %s7601_s27 }
  0x2e   :  { %s7621_s27 = sld [smem:[%s8244_s0 + %s7462_s22]]  }
  0x30   :  { %8277 = sst [smem:[#allocation24_spill]] %s7606_s4 }
  0x31   :  { %8278 = sst [smem:[#allocation25_spill]] %s7611_s21 }
  0x32   :  { %8279 = sst [smem:[#allocation26_spill]] %s7616_s12 }
  0x33   :  { %s7626_s4 = sld [smem:[%s8244_s0 + %s7463_s28]]  }
  0x34   :  { %s7631_s21 = sld [smem:[%s8244_s0 + %s7464_s7]]  }
  0x35   :  { %s7636_s12 = sld [smem:[%s8244_s0 + %s7465_s15]]  }
  0x39   :  { %8280 = sst [smem:[#allocation27_spill]] %s7626_s4 }
  0x3a   :  { %68 = vsyncpa [#allocation4], 0 }
  0x3b   :  { %69 = vsyncpa [#allocation3], 0 }
  0x3c   :  { %71 = vsyncpa [#allocation3 + $0x1], 0  ;;  %s7638_s22 = smov 0   ;;  %s7640_s23 = smov 0  }
  0x3d   :  { %s7642_s26 = smov 0   ;;  %s7644_s28 = smov 0  }
  0x3e LB: > { %s8281_s8 = sld [smem:[#allocation12_spill]]  ;;  %s8282_s6 = sld [smem:[#allocation13_spill]]  ;;  %s7429_s26 = sphi %s7642_s26, %s8310_s26   ;;  %s7425_s23 = sphi %s7640_s23, %s8309_s23   ;;  %s7421_s22 = sphi %s7638_s22, %s8308_s22   ;;  %s7433_s28 = sphi %s7644_s28, %s8311_s28  }
  0x3f   : > { %s8283_s3 = sld [smem:[#allocation11_spill]]  ;;  %s7659_s0 = sadd.s32 4294967295, %s7433_s28  }
  0x40   : > { %s5972_s1 = sadd.s32 4294967294, %s7433_s28   ;;  %s8284_s5 = sld [smem:[#allocation8_spill]] }
  0x41   : > { %s7663_s2 = sadd.s32 1, %s7433_s28   ;;  %s755_s7 = sadd.s32 1, %s7429_s26 }
  0x42   : > { %s752_s10 = ssub.s32 %s7433_s28, %s7663_s2  ;;  %p765_p0 = scmp.ne.s32.totalorder %s7429_s26, %s7425_s23 }
  0x43   : > { %p753_p1 = scmp.eq.s32.totalorder %s752_s10, 0  ;;  %p766_p2 = scmp.eq.s32.totalorder %s7659_s0, 1 }
  0x44   : > { %p771_p3 = scmp.ne.s32.totalorder %s7425_s23, %s7421_s22  ;;  %p772_p4 = scmp.eq.s32.totalorder %s5972_s1, 1 }
  0x45   : > { %s7674_s11 = scalar_select %p753_p1, %s7429_s26, %s755_s7  }
  0x46   : > { %p7676_p5 = por %p766_p2, %p765_p0  ;;  %p7680_p6 = por %p772_p4, %p771_p3 }
  0x47   : > { %p5973_p7 = scmp.ge.s32.totalorder %s7433_s28, 1  ;;  %p779_p8 = scmp.lt.s32.totalorder %s7433_s28, 3 }
  0x48   : > { %s8285_s15 = scalar_select %p7676_p5, 1, 0 }
  0x49   : > { %s8286_s16 = scalar_select %p7680_p6, 1, 0 }
  0x4a   : > { %p7158_p9 = scmp.eq.s32.totalorder %s7659_s0, 0  ;;  %p7687_p10 = pnand %p5973_p7, %p779_p8 }
  0x4b   : > { %s792_s10 = sshll.u32 %s8284_s5, 4  ;;  %s793_s10 = int_to_ptr.vmem [resolvable:$true] %s792_s10 }
  0x4c   : > { %p7150_p11 = pneg %p7687_p10  ;;  %s7352_s1 = scalar_lea.vmem %s793_s10, 32 }
  0x4d   : > { %p7353_p13 = scmp.ne.s32.totalorder %s793_s10, %s7352_s1  ;;  %p7360_p3 = scmp.lt.s32.totalorder %s793_s10, %s793_s10 }
  0x4e   : > { %p7151_p12 = pnand %p7158_p9, %p7150_p11  ;;  %p7361_p4 = scmp.lt.s32.totalorder %s7352_s1, %s7352_s1 }
  0x50   : > { %p7354_p0 = pneg %p7151_p12  ;;  %p7362_p6 = por %p7361_p4, %p7360_p3 }
  0x52   : > { %p7355_p1 = pnand %p7354_p0, %p7353_p13 }
  0x54   : > { %p7356_p2 = pneg %p7355_p1 }
  0x56   : > { %p7363_p5 = pnand %p7362_p6, %p7356_p2 }
  0x58   : > { %7366 = shalt.err (!%p7363_p5)
}
  0x59   : > { %s7466_s7 = smov [#allocation2]   ;;  %912 = sbr.rel (%p7687_p10) target bundleno = 9384 (0x24a8), region = 144 }
  0x5a   : > { %7153 = dma.vmem_to_smem (!%p7151_p12), %s793_s10, 32, %s7466_s7, [#allocation4]  }
  0x60   : > { %7412 = dma.done.wait (%p7158_p9), [#allocation4], 32  }
  0x61   : > { %7414 = vsyncadd (%p7158_p9), [#allocation4], 4294967264 }
  0x62   : > { %918 = sfence }
  0x63   : > { %s8288_s9 = sld [smem:[#allocation9_spill]]  ;;  %v1035_v0 = vld [vmem:[%s7506_s25] sm:$0xff]  ;;  %v1036_v1 = vld [vmem:[%s7506_s25 + $0x8] sm:$0xff]  ;;  %v1037_v2 = vld [vmem:[%s7506_s25 + $0x10] sm:$0xff]  ;;  %p1005_p5 = scmp.lt.s32.totalorder %s7659_s0, 1  ;;  %vm1046_vm0 = vcmask 261120  }
  0x64   : > { %v6892_v3 = vpack.c.bf16 %v1036_v1, %v1035_v0  ;;  %v1038_v4 = vld [vmem:[%s7506_s25 + $0x18] sm:$0xff]  ;;  %v1128_v6 = vld [vmem:[%s8283_s3] sm:$0xff]  ;;  %v1129_v7 = vld [vmem:[%s8283_s3 + $0x8] sm:$0xff]  ;;  %vm1300_vm1 = vcmask 64512   ;;  %vm1390_vm3 = vcmask 130048   ;;  %vm7468_vm4 = vmmov 0  }
  0x65   : > { %v6896_v5 = vpack.c.bf16 %v1038_v4, %v1037_v2  ;;  %s7708_s18 = scalar_select %p1005_p5, %s7659_s0, 1  ;;  %v6900_v8 = vpack.c.bf16 %v1129_v7, %v1128_v6  ;;  %v1130_v10 = vld [vmem:[%s8283_s3 + $0x10] sm:$0xff]  ;;  %v1131_v11 = vld [vmem:[%s8283_s3 + $0x18] sm:$0xff]  ;;  %v5987_v14 = vld [vmem:[%s7511_s29] ss:$0 sm:$0xff]  ;;  %vm5676_vm13 = vcmask 523264  }
  0x66   : > { %6893 = vmatprep.subr.bf16.mxu1 %v6892_v3  ;;  %v6904_v13 = vpack.c.bf16 %v1131_v11, %v1130_v10  ;;  %v5990_v18 = vld [vmem:[%s8281_s8] ss:$0 sm:$0xff]  ;;  %vm7739_vm2 = vmpackc.low %vm1300_vm1, %vm1300_vm1  ;;  %v1215_v27 = vld [vmem:[%s7526_s14 + $0x8] sm:$0xff]  ;;  %s8305_s4 = sld [smem:[#allocation27_spill]]  ;;  %p8306_p7 = scmp.ne.s32.totalorder %s8285_s15, 0 }
  0x67   : > { %6895 = vmatpush3.bf16.msra.mxu1 %v6892_v3  ;;  %s6227_s10 = sshll.u32 %s7708_s18, 4  ;;  %v1214_v26 = vld [vmem:[%s7526_s14] sm:$0xff]  ;;  %v1216_v28 = vld [vmem:[%s7526_s14 + $0x10] sm:$0xff]  ;;  %v1217_v30 = vld [vmem:[%s7526_s14 + $0x18] sm:$0xff]  ;;  %s6228_s7 = sshll.u32 %s7708_s18, 5 }
  0x68   : > { %6897 = vmatprep.subr.bf16.mxu1 %v6896_v5  ;;  %v6908_v29 = vpack.c.bf16 %v1215_v27, %v1214_v26  ;;  %v6912_v31 = vpack.c.bf16 %v1217_v30, %v1216_v28  ;;  %v5993_v1 = vld [vmem:[%s7531_s19] ss:$0 sm:$0xff]  ;;  %v6011_v7 = vld [vmem:[%s8283_s3 + $0x28] sm:$0xff] }
  0x69   : > { %s7714_s1 = scalar_lea.vmem %s8288_s9, %s6227_s10  ;;  %s1018_s10 = scalar_lea.vmem %s7496_s17, %s6228_s7  ;;  %v6010_v6 = vld [vmem:[%s8283_s3 + $0x20] sm:$0xff]  ;;  %v6003_v11 = vld [vmem:[%s7506_s25 + $0x28] sm:$0xff] }
  0x6a   : > { %v7717_v9 = vld [vmem:[%s7714_s1] sm:$0xff]  ;;  %v7726_v12 = vld [vmem:[%s7714_s1 + $0x8] sm:$0xff]  ;;  %6909 = vmatprep.subr.bf16.mxu0 %v6908_v29  ;;  %v7762_v39 = vld [vmem:[%s1018_s10 + $0x10] sm:$0xff]  ;;  %s5986_s7 = sshll.u32 %s7659_s0, 7 }
  0x6b   : > { %6470 = vmatprep.mubr.msk.f32.mxu1 %vm1046_vm0, %v7717_v9  ;;  %6492 = vmatprep.mubr.msk.f32.mxu0 %vm1046_vm0, %v7717_v9  ;;  %v7760_v38 = vld [vmem:[%s1018_s10] sm:$0xff]  ;;  %v7766_v43 = vld [vmem:[%s1018_s10 + $0x8] sm:$0xff]  ;;  %v7768_v44 = vld [vmem:[%s1018_s10 + $0x18] sm:$0xff]  ;;  %s1033_s10 = sadd.s32 1, %s5986_s7  ;;  %s1032_s5 = sld [smem:[#allocation2 + %s5986_s7]] }
  0x6c   : > { %6899 = vmatpush3.bf16.msra.mxu1 %v6896_v5  ;;  %6911 = vmatpush3.bf16.msra.mxu0 %v6908_v29  ;;  %v6002_v10 = vld [vmem:[%s7506_s25 + $0x20] sm:$0xff]  ;;  %s1034_s9 = sld [smem:[#allocation2 + %s1033_s10]] }
  0x6d   : > { %6901 = vmatprep.subr.bf16.mxu1 %v6900_v8  ;;  %6913 = vmatprep.subr.bf16.mxu0 %v6912_v31  ;;  %s8292_s7 = sld [smem:[#allocation21_spill]]  ;;  %s8293_s10 = sld [smem:[#allocation15_spill]] }
  0x6f   : > { %6471 = vmatmul.mubr.msk.f32.vlgmr.msra.gmra.mrb[0].mxu1 %vm1046_vm0, %v7726_v12 }
  0x70   : > { %6903 = vmatpush3.bf16.msra.mxu1 %v6900_v8  ;;  %6481 = vmatprep.mubr.msk.f32.mxu1 %vm1046_vm0, %v7717_v9  ;;  %v6934_v8 = vpack.c.bf16 %v6011_v7, %v6010_v6 }
  0x71   : > { %6905 = vmatprep.subr.bf16.mxu1 %v6904_v13  ;;  %6915 = vmatpush3.bf16.msra.mxu0 %v6912_v31 }
  0x72   : > { %v7790_v26 = vstv %s1034_s9 }
  0x74   : > { %6907 = vmatpush3.bf16.msra.mxu1 %v6904_v13  ;;  %6493 = vmatmul.mubr.msk.f32.vlgmr.msra.gmra.mrb[0].mxu0 %vm1046_vm0, %v7726_v12  ;;  %v6926_v13 = vpack.c.bf16 %v6003_v11, %v6002_v10 }
  0x77   : > { %6482 = vmatmul.mubr.msk.f32.vlgmr.msra.gmra.mrb[2].mxu1 %vm1046_vm0, %v7726_v12 }
 0x142   : > { %v6472_v15 = vpop.f32.mrb[0].mxu1 }
 0x143   : > { %v1119_v16 = vpop.f32.mrb[1].mxu1  ;;  %v1125_v25 = vadd.f32 %v6472_v15, %v5987_v14  ;;  %v6005_v15 = vld [vmem:[%s7506_s25 + $0x38] sm:$0xff] }
 0x144   : > { %v1120_v17 = vadd.f32 %v5987_v14, %v1119_v16  ;;  %v6004_v14 = vld [vmem:[%s7506_s25 + $0x30] sm:$0xff] }
 0x145   : > { %v6930_v16 = vpack.c.bf16 %v6005_v15, %v6004_v14 }
 0x146   : > { %6499 = vmatprep.mubr.msk.f32.mxu1 %vm1300_vm1, %v1120_v17 }
 0x147   : > { %v6494_v0 = vpop.f32.mrb[0].mxu0 }
 0x148   : > { %v1291_v2 = vpop.f32.mrb[1].mxu0  ;;  %v1297_v3 = vadd.f32 %v6494_v0, %v5993_v1 }
 0x149   : > { %v1292_v4 = vadd.f32 %v5993_v1, %v1291_v2 }
 0x14a   : > { %v6483_v19 = vpop.f32.mrb[2].mxu1 }
 0x14b   : > { %v1211_v20 = vadd.f32 %v6483_v19, %v5990_v18  ;;  %v1205_v21 = vpop.f32.mrb[3].mxu1  ;;  %v6922_v5 = vpack.c.bf16 %v1297_v3, %v1292_v4 }
 0x14c   : > { %v1206_v22 = vadd.f32 %v5990_v18, %v1205_v21 }
 0x14d   : > { %6923 = vmatprep.subr.bf16.mxu0 %v6922_v5 }
 0x14e   : > { %v6916_v24 = vpack.c.bf16 %v1211_v20, %v1206_v22  ;;  %6925 = vmatpush3.bf16.msra.mxu0 %v6922_v5 }
 0x14f   : > { %6935 = vmatprep.subr.bf16.mxu0 %v6934_v8 }
 0x150   : > { %6918 = vmatprep.subr.msk.bf16.mxu1 %vm7739_vm2, %v6916_v24 }
 0x151   : > { %6921 = vmatpush3.bf16.xpose.msk.msra.mxu1 %vm7739_vm2, %v6916_v24 }
 0x152   : > { %6927 = vmatprep.subr.bf16.mxu1 %v6926_v13 }
 0x158   : > { %6500 = vmatmul.mubr.msk.f32.vlgmr.msra.gmra.mrb[4].mxu1 %vm1300_vm1, %v1125_v25  ;;  %v7788_v25 = vstv %s1032_s5  ;;  %s5981_s5 = sshll.u32 %s7708_s18, 3 }
 0x159   : > { %6517 = vmatprep.mubr.msk.f32.mxu1 %vm1046_vm0, %v7717_v9  ;;  %6929 = vmatpush3.bf16.msra.mxu1 %v6926_v13  ;;  %s1013_s9 = scalar_lea.vmem %s7491_s13, %s5981_s5  ;;  %s8294_s5 = sld [smem:[#allocation14_spill]] }
 0x15a   : > { %6931 = vmatprep.subr.bf16.mxu1 %v6930_v16 }
 0x15d   : > { %6933 = vmatpush3.bf16.msra.mxu1 %v6930_v16 }
 0x160   : > { %6518 = vmatmul.mubr.msk.f32.vlgmr.msra.gmra.mrb[6].mxu1 %vm1046_vm0, %v7726_v12 }
 0x161   : > { %6539 = vmatprep.mubr.msk.f32.mxu1 %vm1046_vm0, %v7717_v9 }
 0x22b   : > { %v6501_v32 = vpop.f32.mrb[4].mxu1 }
 0x22c   : > { %v1379_v33 = vpop.f32.mrb[5].mxu1  ;;  %v1389_v35 = vmul.f32 0.35355338, %v6501_v32 }
 0x22d   : > { %v1388_v34 = vmul.f32 0.35355338, %v1379_v33 }
 0x22e   : > { %v1394_v37 = vsel %vm1390_vm3, %v1389_v35, -inf  ;;  %v1398_v49 = vadd.f32 %v1389_v35, %v7766_v43  ;;  %v1419_v50 = vadd.f32 %v7768_v44, %v1389_v35  ;;  %v6012_v35 = vld [vmem:[%s8283_s3 + $0x30] sm:$0xff] }
 0x22f   : > { %v1391_v36 = vsel %vm1390_vm3, %v1388_v34, -inf  ;;  %v1397_v40 = vadd.f32 %v1388_v34, %v7760_v38  ;;  %v1418_v41 = vadd.f32 %v7762_v39, %v1388_v34 }
 0x230   : > { %1392 = vmax.xlane.f32.xlu0 %v1391_v36  ;;  %v6013_v36 = vld [vmem:[%s8283_s3 + $0x38] sm:$0xff] }
 0x234   : > { %1395 = vmax.xlane.f32.xlu0 %v1394_v37 }
 0x2bd   : > { %v1393_v42 = vpop.xlane.xlu0 %1392 }
 0x2be   : > { %v1399_v45 = vsub.f32 %v1397_v40, %v1393_v42  ;;  %v1420_v46 = vsub.f32 %v1418_v41, %v1393_v42  ;;  %v6938_v42 = vpack.c.bf16 %v6013_v36, %v6012_v35 }
 0x2c0   : > { %v1401_v47 = vmul.f32 1.442695, %v1399_v45  ;;  %v1422_v48 = vmul.f32 1.442695, %v1420_v46  ;;  %v6007_v45 = vld [vmem:[%s7511_s29 + $0x1] ss:$0 sm:$0xff] }
 0x2c1   : > { %v1396_v51 = vpop.xlane.xlu0 %1395  ;;  %v6519_v46 = vpop.f32.mrb[6].mxu1 }
 0x2c2   : > { %7230 = vpow2.f32 %v1401_v47  ;;  %v1400_v52 = vsub.f32 %v1398_v49, %v1396_v51  ;;  %v1421_v53 = vsub.f32 %v1419_v50, %v1396_v51  ;;  %v1608_v47 = vadd.f32 %v6519_v46, %v6007_v45 }
 0x2c3   : > { %7232 = vpow2.f32 %v1422_v48  ;;  %v1602_v48 = vpop.f32.mrb[7].mxu1 }
 0x2c4   : > { %v1403_v54 = vmul.f32 1.442695, %v1400_v52  ;;  %v1424_v55 = vmul.f32 1.442695, %v1421_v53  ;;  %v1603_v49 = vadd.f32 %v6007_v45, %v1602_v48  ;;  %v6015_v52 = vld [vmem:[%s8281_s8 + $0x1] ss:$0 sm:$0xff] }
 0x2c6   : > { %7234 = vpow2.f32 %v1403_v54 }
 0x2c7   : > { %7236 = vpow2.f32 %v1424_v55 }
 0x2cc   : > { %v7231_v56 = vpop.eup %7230 }
 0x2cd   : > { %v1405_v57 = vsel %vm1390_vm3, %v7231_v56, 0.0  ;;  %v7233_v58 = vpop.eup %7232 }
 0x2ce   : > { %1406 = vadd.xlane.f32.xlu1 %v1405_v57  ;;  %v1426_v60 = vsel %vm1390_vm3, %v7233_v58, 0.0 }
 0x2d0   : > { %v7235_v59 = vpop.eup %7234 }
 0x2d1   : > { %v1408_v61 = vsel %vm1390_vm3, %v7235_v59, 0.0  ;;  %v7237_v62 = vpop.eup %7236 }
 0x2d2   : > { %1427 = vadd.xlane.f32.xlu1 %v1426_v60  ;;  %1409 = vadd.xlane.f32.xlu0 %v1408_v61  ;;  %v1429_v63 = vsel %vm1390_vm3, %v7237_v62, 0.0  ;;  %v6020_v60 = vld [vmem:[%s7526_s14 + $0x30] sm:$0xff] }
 0x2d6   : > { %1430 = vadd.xlane.f32.xlu1 %v1429_v63 }
 0x35b   : > { %v1407_v17 = vpop.xlane.xlu1 %1406 }
 0x35c   : > { %7238 = vrcp.f32 %v1407_v17 }
 0x35f   : > { %v1428_v18 = vpop.xlane.xlu1 %1427  ;;  %v1410_v19 = vpop.xlane.xlu0 %1409 }
 0x360   : > { %7240 = vrcp.f32 %v1428_v18 }
 0x361   : > { %7242 = vrcp.f32 %v1410_v19 }
 0x363   : > { %v1431_v20 = vpop.xlane.xlu1 %1430 }
 0x364   : > { %7244 = vrcp.f32 %v1431_v20 }
 0x366   : > { %v7239_v21 = vpop.eup %7238 }
 0x367   : > { %v1413_v22 = vmul.f32 %v7239_v21, %v7231_v56 }
 0x369   : > { %v1416_v30 = vmul.f32 %v7788_v25, %v1413_v22 }
 0x36a   : > { %v7241_v24 = vpop.eup %7240 }
 0x36b   : > { %v7243_v27 = vpop.eup %7242  ;;  %v1434_v28 = vmul.f32 %v7241_v24, %v7233_v58  ;;  %v6018_v58 = vld [vmem:[%s7526_s14 + $0x20] sm:$0xff] }
 0x36c   : > { %v1414_v29 = vmul.f32 %v7243_v27, %v7235_v59  ;;  %v6019_v59 = vld [vmem:[%s7526_s14 + $0x28] sm:$0xff] }
 0x36d   : > { %v1437_v31 = vmul.f32 %v7790_v26, %v1434_v28  ;;  %v6942_v61 = vpack.c.bf16 %v6019_v59, %v6018_v58 }
 0x36e   : > { %v7245_v32 = vpop.eup %7244  ;;  %v1417_v37 = vmul.f32 %v7788_v25, %v1414_v29 }
 0x36f   : > { %v1435_v33 = vmul.f32 %v7245_v32, %v7237_v62  ;;  %v1439_v34 = vadd.f32 %v1437_v31, %v1416_v30  ;;  %v6021_v62 = vld [vmem:[%s7526_s14 + $0x38] sm:$0xff]  ;;  %6943 = vmatprep.subr.bf16.mxu1 %v6942_v61 }
 0x370   : > { %v6946_v63 = vpack.c.bf16 %v6021_v62, %v6020_v60  ;;  %6945 = vmatpush3.bf16.msra.mxu1 %v6942_v61 }
 0x371   : > { %v1438_v40 = vmul.f32 %v7790_v26, %v1435_v33  ;;  %6506 = vmatprep.mubr.msk.f32.mxu0 %vm1390_vm3, %v1439_v34  ;;  %v6023_v34 = vld [vmem:[%s7531_s19 + $0x1] ss:$0 sm:$0xff] }
 0x372   : > { %6947 = vmatprep.subr.bf16.mxu1 %v6946_v63 }
 0x373   : > { %v1440_v41 = vadd.f32 %v1438_v40, %v1417_v37 }
 0x374   : > { %6949 = vmatpush3.bf16.msra.mxu1 %v6946_v63 }
 0x375   : > { %6507 = vmatmul.mubr.msk.f32.vlgmr.msra.gmra.mrb[2].mxu0 %vm1390_vm3, %v1440_v41  ;;  %v6032_v41 = vld [vmem:[%s7536_s24 + $0x8] sm:$0xff] }
 0x376   : > { %6937 = vmatpush3.bf16.msra.mxu0 %v6934_v8  ;;  %6528 = vmatprep.mubr.msk.f32.mxu0 %vm1046_vm0, %v7717_v9 }
 0x377   : > { %6939 = vmatprep.subr.bf16.mxu0 %v6938_v42  ;;  %6540 = vmatmul.mubr.msk.f32.vlgmr.msra.gmra.mrb[8].mxu1 %vm1046_vm0, %v7726_v12 }
 0x37a   : > { %6941 = vmatpush3.bf16.msra.mxu0 %v6938_v42 }
 0x37d   : > { %6529 = vmatmul.mubr.msk.f32.vlgmr.msra.gmra.mrb[4].mxu0 %vm1046_vm0, %v7726_v12 }
 0x37e   : > { %6546 = vmatprep.mubr.msk.f32.mxu0 %vm1300_vm1, %v1603_v49 }
 0x448   : > { %v7806_v50 = vpop.f32.mrb[2].mxu0 }
 0x449   : > { %v7808_v51 = vpop.f32.mrb[3].mxu0 }
 0x44a   : > { %v6541_v33 = vpop.f32.mrb[8].mxu1 }
 0x44b   : > { %v1778_v35 = vpop.f32.mrb[9].mxu1  ;;  %v1784_v36 = vadd.f32 %v6541_v33, %v6023_v34  ;;  %v6056_v33 = vld [vmem:[%s7526_s14 + $0x58] sm:$0xff] }
 0x44c   : > { %v1779_v37 = vadd.f32 %v6023_v34, %v1778_v35 }
 0x44e   : > { %v6956_v40 = vpack.c.bf16 %v1784_v36, %v1779_v37 }
 0x450   : > { %v6530_v53 = vpop.f32.mrb[4].mxu0  ;;  %6957 = vmatprep.subr.bf16.mxu1 %v6956_v40 }
 0x451   : > { %v1696_v54 = vadd.f32 %v6530_v53, %v6015_v52  ;;  %v1690_v55 = vpop.f32.mrb[5].mxu0  ;;  %6959 = vmatpush3.bf16.msra.mxu1 %v6956_v40 }
 0x452   : > { %v1691_v56 = vadd.f32 %v6015_v52, %v1690_v55 }
 0x454   : > { %v6950_v57 = vpack.c.bf16 %v1696_v54, %v1691_v56 }
 0x456   : > { %6952 = vmatprep.subr.msk.bf16.mxu0 %vm7739_vm2, %v6950_v57 }
 0x457   : > { %6955 = vmatpush3.bf16.xpose.msk.msra.mxu0 %vm7739_vm2, %v6950_v57 }
 0x458   : > { %6556 = vmatprep.subr.mxu0 %v6032_v41 }
 0x45e   : > { %6547 = vmatmul.mubr.msk.f32.vlgmr.msra.gmra.mrb[6].mxu0 %vm1300_vm1, %v1608_v47 }
 0x45f   : > { %6557 = vmatpush3.msra.mxu0 %v6032_v41 }
 0x531   : > { %v6548_v0 = vpop.f32.mrb[6].mxu0 }
 0x532   : > { %v1875_v1 = vmul.f32 0.35355338, %v6548_v0  ;;  %v1865_v2 = vpop.f32.mrb[7].mxu0  ;;  %v1522_v0 = vld [vmem:[%s7536_s24] sm:$0xff] }
 0x533   : > { %v1874_v3 = vmul.f32 0.35355338, %v1865_v2  ;;  %6561 = vmatprep.subr.mxu0 %v1522_v0  ;;  %v6038_v2 = vld [vmem:[%s7506_s25 + $0x48] sm:$0xff] }
 0x534   : > { %v1879_v4 = vsel %vm1390_vm3, %v1875_v1, -inf  ;;  %v1883_v6 = vadd.f32 %v1875_v1, %v7766_v43  ;;  %v1903_v7 = vadd.f32 %v7768_v44, %v1875_v1  ;;  %v6037_v1 = vld [vmem:[%s7506_s25 + $0x40] sm:$0xff] }
 0x535   : > { %1880 = vmax.xlane.f32.xlu1 %v1879_v4  ;;  %v1876_v5 = vsel %vm1390_vm3, %v1874_v3, -inf  ;;  %v1882_v10 = vadd.f32 %v1874_v3, %v7760_v38  ;;  %v1902_v11 = vadd.f32 %v7762_v39, %v1874_v3  ;;  %v6960_v3 = vpack.c.bf16 %v6038_v2, %v6037_v1  ;;  %v6039_v4 = vld [vmem:[%s7506_s25 + $0x50] sm:$0xff] }
 0x536   : > { %1877 = vmax.xlane.f32.xlu0 %v1876_v5  ;;  %v6040_v5 = vld [vmem:[%s7506_s25 + $0x58] sm:$0xff] }
 0x537   : > { %6961 = vmatprep.subr.bf16.mxu1 %v6960_v3 }
 0x5c2   : > { %v1881_v8 = vpop.xlane.xlu1 %1880 }
 0x5c3   : > { %v1885_v13 = vsub.f32 %v1883_v6, %v1881_v8  ;;  %v1878_v14 = vpop.xlane.xlu0 %1877  ;;  %v1905_v15 = vsub.f32 %v1903_v7, %v1881_v8  ;;  %v6964_v6 = vpack.c.bf16 %v6040_v5, %v6039_v4  ;;  %v6045_v7 = vld [vmem:[%s8283_s3 + $0x40] sm:$0xff]  ;;  %v6046_v8 = vld [vmem:[%s8283_s3 + $0x48] sm:$0xff] }
 0x5c4   : > { %v1884_v16 = vsub.f32 %v1882_v10, %v1878_v14  ;;  %v1904_v17 = vsub.f32 %v1902_v11, %v1878_v14  ;;  %v6047_v14 = vld [vmem:[%s8283_s3 + $0x50] sm:$0xff] }
 0x5c5   : > { %v1888_v20 = vmul.f32 1.442695, %v1885_v13  ;;  %v1908_v21 = vmul.f32 1.442695, %v1905_v15  ;;  %v6968_v13 = vpack.c.bf16 %v6046_v8, %v6045_v7  ;;  %v6048_v15 = vld [vmem:[%s8283_s3 + $0x58] sm:$0xff] }
 0x5c6   : > { %v1886_v18 = vmul.f32 1.442695, %v1884_v16  ;;  %v1906_v19 = vmul.f32 1.442695, %v1904_v17  ;;  %v6972_v16 = vpack.c.bf16 %v6048_v15, %v6047_v14  ;;  %v6042_v17 = vld [vmem:[%s7511_s29 + $0x2] ss:$0 sm:$0xff] }
 0x5c8   : > { %7246 = vpow2.f32 %v1886_v18 }
 0x5c9   : > { %7248 = vpow2.f32 %v1906_v19 }
 0x5ca   : > { %7250 = vpow2.f32 %v1888_v20 }
 0x5cb   : > { %7252 = vpow2.f32 %v1908_v21 }
 0x5d2   : > { %v7247_v22 = vpop.eup %7246 }
 0x5d3   : > { %v7249_v24 = vpop.eup %7248  ;;  %v1890_v27 = vsel %vm1390_vm3, %v7247_v22, 0.0 }
 0x5d4   : > { %v7251_v28 = vpop.eup %7250  ;;  %v1910_v29 = vsel %vm1390_vm3, %v7249_v24, 0.0  ;;  %1891 = vadd.xlane.f32.xlu0 %v1890_v27 }
 0x5d5   : > { %v7253_v30 = vpop.eup %7252  ;;  %1911 = vadd.xlane.f32.xlu1 %v1910_v29  ;;  %v1893_v31 = vsel %vm1390_vm3, %v7251_v28, 0.0  ;;  %v6053_v29 = vld [vmem:[%s7526_s14 + $0x40] sm:$0xff] }
 0x5d6   : > { %v1913_v32 = vsel %vm1390_vm3, %v7253_v30, 0.0 }
 0x5d8   : > { %1894 = vadd.xlane.f32.xlu0 %v1893_v31  ;;  %v6055_v31 = vld [vmem:[%s7526_s14 + $0x50] sm:$0xff] }
 0x5d9   : > { %1914 = vadd.xlane.f32.xlu1 %v1913_v32  ;;  %v6980_v34 = vpack.c.bf16 %v6056_v33, %v6055_v31  ;;  %v6078_v33 = vld [vmem:[%s8283_s3 + $0x60] sm:$0xff] }
 0x661   : > { %v1892_v42 = vpop.xlane.xlu0 %1891 }
 0x662   : > { %v1912_v45 = vpop.xlane.xlu1 %1911  ;;  %7254 = vrcp.f32 %v1892_v42 }
 0x663   : > { %7256 = vrcp.f32 %v1912_v45 }
 0x665   : > { %v1895_v46 = vpop.xlane.xlu0 %1894 }
 0x666   : > { %v1915_v47 = vpop.xlane.xlu1 %1914  ;;  %7258 = vrcp.f32 %v1895_v46 }
 0x667   : > { %7260 = vrcp.f32 %v1915_v47 }
 0x66c   : > { %v7255_v48 = vpop.eup %7254 }
 0x66d   : > { %v7257_v49 = vpop.eup %7256  ;;  %v1898_v52 = vmul.f32 %v7255_v48, %v7247_v22 }
 0x66e   : > { %v1918_v53 = vmul.f32 %v7257_v49, %v7249_v24 }
 0x66f   : > { %v1900_v54 = vmul.f32 %v1898_v52, %v7788_v25 }
 0x670   : > { %v7259_v55 = vpop.eup %7258  ;;  %v1920_v56 = vmul.f32 %v1918_v53, %v7790_v26 }
 0x671   : > { %v7261_v57 = vpop.eup %7260  ;;  %v1899_v58 = vmul.f32 %v7259_v55, %v7251_v28 }
 0x672   : > { %v1919_v59 = vmul.f32 %v7261_v57, %v7253_v30  ;;  %v1922_v60 = vadd.f32 %v1920_v56, %v1900_v54  ;;  %v6054_v30 = vld [vmem:[%s7526_s14 + $0x48] sm:$0xff] }
 0x673   : > { %v1901_v61 = vmul.f32 %v1899_v58, %v7788_v25  ;;  %v6976_v32 = vpack.c.bf16 %v6054_v30, %v6053_v29 }
 0x674   : > { %v1921_v62 = vmul.f32 %v1919_v59, %v7790_v26  ;;  %6553 = vmatprep.mubr.msk.f32.mxu1 %vm1390_vm3, %v1922_v60 }
 0x676   : > { %v1923_v63 = vadd.f32 %v1921_v62, %v1901_v61 }
 0x678   : > { %6554 = vmatmul.mubr.msk.f32.vlgmr.msra.gmra.mrb[10].mxu1 %vm1390_vm3, %v1923_v63 }
 0x679   : > { %6574 = vmatprep.mubr.msk.f32.mxu1 %vm1046_vm0, %v7717_v9  ;;  %6963 = vmatpush3.bf16.msra.mxu1 %v6960_v3 }
 0x67a   : > { %6965 = vmatprep.subr.bf16.mxu1 %v6964_v6 }
 0x67d   : > { %6967 = vmatpush3.bf16.msra.mxu1 %v6964_v6  ;;  %v6058_v6 = vld [vmem:[%s7531_s19 + $0x2] ss:$0 sm:$0xff] }
 0x67e   : > { %6977 = vmatprep.subr.bf16.mxu1 %v6976_v32 }
 0x680   : > { %6575 = vmatmul.mubr.msk.f32.vlgmr.msra.gmra.mrb[12].mxu1 %vm1046_vm0, %v7726_v12 }
 0x681   : > { %6596 = vmatprep.mubr.msk.f32.mxu1 %vm1046_vm0, %v7717_v9  ;;  %6979 = vmatpush3.bf16.msra.mxu1 %v6976_v32 }
 0x682   : > { %6981 = vmatprep.subr.bf16.mxu1 %v6980_v34 }
 0x685   : > { %6983 = vmatpush3.bf16.msra.mxu1 %v6980_v34  ;;  %v6079_v34 = vld [vmem:[%s8283_s3 + $0x68] sm:$0xff] }
 0x688   : > { %6597 = vmatmul.mubr.msk.f32.vlgmr.msra.gmra.mrb[14].mxu1 %vm1046_vm0, %v7726_v12 }
 0x74b   : > { %v6555_v10 = vpop.f32.mrb[10].mxu1 }
 0x74c   : > { %v1996_v11 = vpop.f32.mrb[11].mxu1 }
 0x74d   : > { %6558 = vmatprep.mubr.msk.f32.mxu0 %vm1300_vm1, %v1996_v11 }
 0x74e   : > { %6559 = vmatmul.mubr.msk.f32.vlgmr.msra.gmra.mrb[8].mxu0 %vm1300_vm1, %v6555_v10 }
 0x74f   : > { %6562 = vmatpush3.msra.mxu0 %v1522_v0  ;;  %6563 = vmatprep.mubr.msk.f32.mxu0 %vm1300_vm1, %v7808_v51 }
 0x750   : > { %6969 = vmatprep.subr.bf16.mxu0 %v6968_v13 }
 0x753   : > { %v6576_v51 = vpop.f32.mrb[12].mxu1 }
 0x754   : > { %v2254_v18 = vadd.f32 %v6576_v51, %v6042_v17  ;;  %v2248_v19 = vpop.f32.mrb[13].mxu1 }
 0x755   : > { %v2249_v20 = vadd.f32 %v6042_v17, %v2248_v19 }
 0x756   : > { %6564 = vmatmul.mubr.msk.f32.vlgmr.msra.gmra.mrb[8].mxu0 %vm1300_vm1, %v7806_v50  ;;  %v6050_v50 = vld [vmem:[%s8281_s8 + $0x2] ss:$0 sm:$0xff] }
 0x757   : > { %6971 = vmatpush3.bf16.msra.mxu0 %v6968_v13  ;;  %6585 = vmatprep.mubr.msk.f32.mxu0 %vm1046_vm0, %v7717_v9  ;;  %v6067_v13 = vld [vmem:[%s7536_s24 + $0x10] sm:$0xff] }
 0x758   : > { %6973 = vmatprep.subr.bf16.mxu0 %v6972_v16 }
 0x75b   : > { %6975 = vmatpush3.bf16.msra.mxu0 %v6972_v16  ;;  %v6598_v5 = vpop.f32.mrb[14].mxu1 }
 0x75c   : > { %v2424_v7 = vpop.f32.mrb[15].mxu1  ;;  %v2430_v8 = vadd.f32 %v6598_v5, %v6058_v6 }
 0x75d   : > { %v2425_v10 = vadd.f32 %v6058_v6, %v2424_v7 }
 0x75e   : > { %6586 = vmatmul.mubr.msk.f32.vlgmr.msra.gmra.mrb[10].mxu0 %vm1046_vm0, %v7726_v12 }
 0x75f   : > { %6603 = vmatprep.mubr.msk.f32.mxu0 %vm1300_vm1, %v2249_v20  ;;  %v6990_v11 = vpack.c.bf16 %v2430_v8, %v2425_v10 }
 0x761   : > { %6991 = vmatprep.subr.bf16.mxu1 %v6990_v11 }
 0x762   : > { %6993 = vmatpush3.bf16.msra.mxu1 %v6990_v11 }
 0x831   : > { %v6587_v21 = vpop.f32.mrb[10].mxu0 }
 0x832   : > { %v2342_v22 = vadd.f32 %v6587_v21, %v6050_v50  ;;  %v2336_v24 = vpop.f32.mrb[11].mxu0 }
 0x833   : > { %v2337_v27 = vadd.f32 %v6050_v50, %v2336_v24 }
 0x835   : > { %v6984_v28 = vpack.c.bf16 %v2342_v22, %v2337_v27 }
 0x837   : > { %6986 = vmatprep.subr.msk.bf16.mxu0 %vm7739_vm2, %v6984_v28 }
 0x838   : > { %6989 = vmatpush3.bf16.xpose.msk.msra.mxu0 %vm7739_vm2, %v6984_v28 }
 0x839   : > { %6613 = vmatprep.subr.mxu0 %v6067_v13 }
 0x83f   : > { %6604 = vmatmul.mubr.msk.f32.vlgmr.msra.gmra.mrb[12].mxu0 %vm1300_vm1, %v2254_v18 }
 0x840   : > { %6614 = vmatpush3.msra.mxu0 %v6067_v13 }
 0x912   : > { %v6605_v35 = vpop.f32.mrb[12].mxu0 }
 0x913   : > { %v2521_v36 = vmul.f32 0.35355338, %v6605_v35  ;;  %v2511_v37 = vpop.f32.mrb[13].mxu0  ;;  %v7002_v35 = vpack.c.bf16 %v6079_v34, %v6078_v33 }
 0x914   : > { %v2520_v40 = vmul.f32 0.35355338, %v2511_v37  ;;  %v6071_v37 = vld [vmem:[%s7506_s25 + $0x68] sm:$0xff] }
 0x915   : > { %v2525_v41 = vsel %vm1390_vm3, %v2521_v36, -inf  ;;  %v2529_v45 = vadd.f32 %v2521_v36, %v7766_v43  ;;  %v2549_v46 = vadd.f32 %v7768_v44, %v2521_v36  ;;  %7003 = vmatprep.subr.bf16.mxu0 %v7002_v35  ;;  %v6070_v36 = vld [vmem:[%s7506_s25 + $0x60] sm:$0xff] }
 0x916   : > { %2526 = vmax.xlane.f32.xlu1 %v2525_v41  ;;  %v2522_v42 = vsel %vm1390_vm3, %v2520_v40, -inf  ;;  %v2528_v48 = vadd.f32 %v2520_v40, %v7760_v38  ;;  %v2548_v49 = vadd.f32 %v7762_v39, %v2520_v40  ;;  %v6994_v40 = vpack.c.bf16 %v6071_v37, %v6070_v36  ;;  %v6072_v41 = vld [vmem:[%s7506_s25 + $0x70] sm:$0xff]  ;;  %v6100_v36 = vld [vmem:[%s7536_s24 + $0x18] sm:$0xff] }
 0x917   : > { %2523 = vmax.xlane.f32.xlu0 %v2522_v42  ;;  %v6073_v42 = vld [vmem:[%s7506_s25 + $0x78] sm:$0xff] }
 0x918   : > { %6995 = vmatprep.subr.bf16.mxu1 %v6994_v40 }
 0x9a3   : > { %v2527_v47 = vpop.xlane.xlu1 %2526 }
 0x9a4   : > { %v2531_v52 = vsub.f32 %v2529_v45, %v2527_v47  ;;  %v2524_v53 = vpop.xlane.xlu0 %2523  ;;  %v2551_v54 = vsub.f32 %v2549_v46, %v2527_v47  ;;  %v6998_v45 = vpack.c.bf16 %v6073_v42, %v6072_v41  ;;  %v6080_v46 = vld [vmem:[%s8283_s3 + $0x70] sm:$0xff]  ;;  %v6081_v47 = vld [vmem:[%s8283_s3 + $0x78] sm:$0xff]  ;;  %s8303_s3 = sld [smem:[#allocation23_spill]] }
 0x9a5   : > { %v2530_v55 = vsub.f32 %v2528_v48, %v2524_v53  ;;  %v2550_v56 = vsub.f32 %v2548_v49, %v2524_v53  ;;  %v6075_v53 = vld [vmem:[%s7511_s29 + $0x3] ss:$0 sm:$0xff] }
 0x9a6   : > { %v2534_v59 = vmul.f32 1.442695, %v2531_v52  ;;  %v2554_v60 = vmul.f32 1.442695, %v2551_v54  ;;  %v7006_v52 = vpack.c.bf16 %v6081_v47, %v6080_v46 }
 0x9a7   : > { %v2532_v57 = vmul.f32 1.442695, %v2530_v55  ;;  %v2552_v58 = vmul.f32 1.442695, %v2550_v56 }
 0x9a9   : > { %7262 = vpow2.f32 %v2532_v57 }
 0x9aa   : > { %7264 = vpow2.f32 %v2552_v58  ;;  %v6083_v58 = vld [vmem:[%s8281_s8 + $0x3] ss:$0 sm:$0xff] }
 0x9ab   : > { %7266 = vpow2.f32 %v2534_v59 }
 0x9ac   : > { %7268 = vpow2.f32 %v2554_v60 }
 0x9b3   : > { %v7263_v61 = vpop.eup %7262 }
 0x9b4   : > { %v7265_v62 = vpop.eup %7264  ;;  %v2536_v63 = vsel %vm1390_vm3, %v7263_v61, 0.0 }
 0x9b5   : > { %v7267_v0 = vpop.eup %7266  ;;  %v2556_v1 = vsel %vm1390_vm3, %v7265_v62, 0.0  ;;  %2537 = vadd.xlane.f32.xlu0 %v2536_v63  ;;  %v6086_v63 = vld [vmem:[%s7526_s14 + $0x60] sm:$0xff] }
 0x9b6   : > { %v7269_v2 = vpop.eup %7268  ;;  %2557 = vadd.xlane.f32.xlu1 %v2556_v1  ;;  %v2539_v3 = vsel %vm1390_vm3, %v7267_v0, 0.0  ;;  %v6088_v1 = vld [vmem:[%s7526_s14 + $0x70] sm:$0xff] }
 0x9b7   : > { %v2559_v4 = vsel %vm1390_vm3, %v7269_v2, 0.0 }
 0x9b9   : > { %2540 = vadd.xlane.f32.xlu0 %v2539_v3  ;;  %v6089_v3 = vld [vmem:[%s7526_s14 + $0x78] sm:$0xff] }
 0x9ba   : > { %2560 = vadd.xlane.f32.xlu1 %v2559_v4  ;;  %v7014_v4 = vpack.c.bf16 %v6089_v3, %v6088_v1 }
 0xa42   : > { %v2538_v14 = vpop.xlane.xlu0 %2537 }
 0xa43   : > { %v2558_v15 = vpop.xlane.xlu1 %2557  ;;  %7270 = vrcp.f32 %v2538_v14 }
 0xa44   : > { %7272 = vrcp.f32 %v2558_v15 }
 0xa46   : > { %v2541_v16 = vpop.xlane.xlu0 %2540 }
 0xa47   : > { %v2561_v17 = vpop.xlane.xlu1 %2560  ;;  %7274 = vrcp.f32 %v2541_v16 }
 0xa48   : > { %7276 = vrcp.f32 %v2561_v17 }
 0xa4d   : > { %v7271_v51 = vpop.eup %7270 }
 0xa4e   : > { %v7273_v18 = vpop.eup %7272  ;;  %v2544_v19 = vmul.f32 %v7271_v51, %v7263_v61 }
 0xa4f   : > { %v2564_v20 = vmul.f32 %v7273_v18, %v7265_v62 }
 0xa50   : > { %v2546_v50 = vmul.f32 %v2544_v19, %v7788_v25 }
 0xa51   : > { %v7275_v21 = vpop.eup %7274  ;;  %v2566_v22 = vmul.f32 %v2564_v20, %v7790_v26 }
 0xa52   : > { %v7277_v24 = vpop.eup %7276  ;;  %v2545_v27 = vmul.f32 %v7275_v21, %v7267_v0  ;;  %v6087_v0 = vld [vmem:[%s7526_s14 + $0x68] sm:$0xff] }
 0xa53   : > { %v2565_v28 = vmul.f32 %v7277_v24, %v7269_v2  ;;  %v2568_v29 = vadd.f32 %v2566_v22, %v2546_v50  ;;  %v7010_v2 = vpack.c.bf16 %v6087_v0, %v6086_v63 }
 0xa54   : > { %v2547_v30 = vmul.f32 %v2545_v27, %v7788_v25 }
 0xa55   : > { %v2567_v31 = vmul.f32 %v2565_v28, %v7790_v26  ;;  %6610 = vmatprep.mubr.msk.f32.mxu1 %vm1390_vm3, %v2568_v29 }
 0xa57   : > { %v2569_v32 = vadd.f32 %v2567_v31, %v2547_v30  ;;  %v6091_v31 = vld [vmem:[%s7531_s19 + $0x3] ss:$0 sm:$0xff] }
 0xa59   : > { %6611 = vmatmul.mubr.msk.f32.vlgmr.msra.gmra.mrb[16].mxu1 %vm1390_vm3, %v2569_v32 }
 0xa5a   : > { %6626 = vmatprep.mubr.msk.f32.mxu1 %vm1046_vm0, %v7717_v9  ;;  %6997 = vmatpush3.bf16.msra.mxu1 %v6994_v40 }
 0xa5b   : > { %6999 = vmatprep.subr.bf16.mxu1 %v6998_v45 }
 0xa5e   : > { %7001 = vmatpush3.bf16.msra.mxu1 %v6998_v45 }
 0xa5f   : > { %7011 = vmatprep.subr.bf16.mxu1 %v7010_v2 }
 0xa61   : > { %6627 = vmatmul.mubr.msk.f32.vlgmr.msra.gmra.mrb[18].mxu1 %vm1046_vm0, %v7726_v12 }
 0xa62   : > { %6648 = vmatprep.mubr.msk.f32.mxu1 %vm1046_vm0, %v7717_v9  ;;  %7013 = vmatpush3.bf16.msra.mxu1 %v7010_v2 }
 0xa63   : > { %7015 = vmatprep.subr.bf16.mxu1 %v7014_v4 }
 0xa66   : > { %7017 = vmatpush3.bf16.msra.mxu1 %v7014_v4  ;;  %v7351_v4 = vld [vmem:[%s7714_s1] sm:$0xff] }
 0xa69   : > { %6649 = vmatmul.mubr.msk.f32.vlgmr.msra.gmra.mrb[20].mxu1 %vm1046_vm0, %v7726_v12 }
 0xb2c   : > { %v6612_v48 = vpop.f32.mrb[16].mxu1 }
 0xb2d   : > { %v2642_v49 = vpop.f32.mrb[17].mxu1 }
 0xb2e   : > { %6615 = vmatprep.mubr.msk.f32.mxu0 %vm1300_vm1, %v2642_v49 }
 0xb2f   : > { %6616 = vmatmul.mubr.msk.f32.vlgmr.msra.gmra.mrb[8].mxu0 %vm1300_vm1, %v6612_v48 }
 0xb30   : > { %7005 = vmatpush3.bf16.msra.mxu0 %v7002_v35  ;;  %6637 = vmatprep.mubr.msk.f32.mxu0 %vm1046_vm0, %v7717_v9 }
 0xb31   : > { %7007 = vmatprep.subr.bf16.mxu0 %v7006_v52 }
 0xb34   : > { %7009 = vmatpush3.bf16.msra.mxu0 %v7006_v52  ;;  %v6628_v54 = vpop.f32.mrb[18].mxu1 }
 0xb35   : > { %v2821_v55 = vadd.f32 %v6628_v54, %v6075_v53  ;;  %v2815_v56 = vpop.f32.mrb[19].mxu1 }
 0xb36   : > { %v2816_v57 = vadd.f32 %v6075_v53, %v2815_v56 }
 0xb37   : > { %6638 = vmatmul.mubr.msk.f32.vlgmr.msra.gmra.mrb[14].mxu0 %vm1046_vm0, %v7726_v12 }
 0xb38   : > { %6655 = vmatprep.mubr.msk.f32.mxu0 %vm1300_vm1, %v2816_v57 }
 0xb3c   : > { %v6650_v30 = vpop.f32.mrb[20].mxu1 }
 0xb3d   : > { %v2991_v32 = vpop.f32.mrb[21].mxu1  ;;  %v2997_v33 = vadd.f32 %v6650_v30, %v6091_v31 }
 0xb3e   : > { %v2992_v34 = vadd.f32 %v6091_v31, %v2991_v32 }
 0xb40   : > { %v7024_v35 = vpack.c.bf16 %v2997_v33, %v2992_v34 }
 0xb42   : > { %7025 = vmatprep.subr.bf16.mxu1 %v7024_v35 }
 0xb43   : > { %7027 = vmatpush3.bf16.msra.mxu1 %v7024_v35 }
 0xc0a   : > { %v6639_v59 = vpop.f32.mrb[14].mxu0 }
 0xc0b   : > { %v2909_v60 = vadd.f32 %v6639_v59, %v6083_v58  ;;  %v2903_v9 = vpop.f32.mrb[15].mxu0 }
 0xc0c   : > { %v2904_v61 = vadd.f32 %v6083_v58, %v2903_v9 }
 0xc0e   : > { %v7018_v62 = vpack.c.bf16 %v2909_v60, %v2904_v61 }
 0xc10   : > { %7020 = vmatprep.subr.msk.bf16.mxu0 %vm7739_vm2, %v7018_v62 }
 0xc11   : > { %7023 = vmatpush3.bf16.xpose.msk.msra.mxu0 %vm7739_vm2, %v7018_v62  ;;  %v6103_v62 = vld [vmem:[%s7541_s30] ss:$0 sm:$0xff] }
 0xc12   : > { %6665 = vmatprep.subr.mxu0 %v6100_v36 }
 0xc18   : > { %6656 = vmatmul.mubr.msk.f32.vlgmr.msra.gmra.mrb[16].mxu0 %vm1300_vm1, %v2821_v55 }
 0xc19   : > { %6666 = vmatpush3.msra.mxu0 %v6100_v36 }
 0xceb   : > { %v6657_v5 = vpop.f32.mrb[16].mxu0 }
 0xcec   : > { %v3088_v6 = vmul.f32 0.35355338, %v6657_v5  ;;  %v3078_v7 = vpop.f32.mrb[17].mxu0 }
 0xced   : > { %v3087_v23 = vmul.f32 0.35355338, %v3078_v7 }
 0xcee   : > { %v3092_v8 = vsel %vm1390_vm3, %v3088_v6, -inf  ;;  %v3096_v11 = vadd.f32 %v3088_v6, %v7766_v43  ;;  %v3116_v13 = vadd.f32 %v7768_v44, %v3088_v6 }
 0xcef   : > { %3093 = vmax.xlane.f32.xlu1 %v3092_v8  ;;  %v3089_v10 = vsel %vm1390_vm3, %v3087_v23, -inf  ;;  %v3095_v15 = vadd.f32 %v3087_v23, %v7760_v38  ;;  %v3115_v16 = vadd.f32 %v7762_v39, %v3087_v23 }
 0xcf0   : > { %3090 = vmax.xlane.f32.xlu0 %v3089_v10 }
 0xd7c   : > { %v3094_v14 = vpop.xlane.xlu1 %3093 }
 0xd7d   : > { %v3098_v12 = vsub.f32 %v3096_v11, %v3094_v14  ;;  %v3091_v17 = vpop.xlane.xlu0 %3090  ;;  %v3118_v51 = vsub.f32 %v3116_v13, %v3094_v14 }
 0xd7e   : > { %v3097_v18 = vsub.f32 %v3095_v15, %v3091_v17  ;;  %v3117_v19 = vsub.f32 %v3115_v16, %v3091_v17  ;;  %v3467_v17 = vld [vmem:[%s7556_s20] sm:$0xff] }
 0xd7f   : > { %v3101_v21 = vmul.f32 1.442695, %v3098_v12  ;;  %v3121_v22 = vmul.f32 1.442695, %v3118_v51  ;;  %v3468_v51 = vld [vmem:[%s7556_s20 + $0x8] sm:$0xff] }
 0xd80   : > { %v3099_v20 = vmul.f32 1.442695, %v3097_v18  ;;  %v3119_v50 = vmul.f32 1.442695, %v3117_v19  ;;  %v3375_v18 = vld [vmem:[%s8282_s6] sm:$0xff]  ;;  %v7467_v19 = vmov 0.0|0.0  }
 0xd81   : > { %7036 = vmatprep.subr.bf16.mxu0 %v7467_v19 }
 0xd82   : > { %7278 = vpow2.f32 %v3099_v20  ;;  %v7037_v20 = vpack.c.bf16 %v3468_v51, %v3467_v17 }
 0xd83   : > { %7280 = vpow2.f32 %v3119_v50  ;;  %v3376_v50 = vld [vmem:[%s8282_s6 + $0x8] sm:$0xff] }
 0xd84   : > { %7282 = vpow2.f32 %v3101_v21  ;;  %v3469_v21 = vld [vmem:[%s7556_s20 + $0x10] sm:$0xff] }
 0xd85   : > { %7284 = vpow2.f32 %v3121_v22  ;;  %v3470_v22 = vld [vmem:[%s7556_s20 + $0x18] sm:$0xff] }
 0xd8c   : > { %v7279_v43 = vpop.eup %7278 }
 0xd8d   : > { %v7281_v44 = vpop.eup %7280  ;;  %v3103_v38 = vsel %vm1390_vm3, %v7279_v43, 0.0 }
 0xd8e   : > { %v7283_v24 = vpop.eup %7282  ;;  %v3123_v39 = vsel %vm1390_vm3, %v7281_v44, 0.0  ;;  %3104 = vadd.xlane.f32.xlu0 %v3103_v38  ;;  %v3377_v38 = vld [vmem:[%s8282_s6 + $0x10] sm:$0xff] }
 0xd8f   : > { %v7285_v27 = vpop.eup %7284  ;;  %3124 = vadd.xlane.f32.xlu1 %v3123_v39  ;;  %v3106_v28 = vsel %vm1390_vm3, %v7283_v24, 0.0  ;;  %v7040_v39 = vpack.c.bf16 %v3470_v22, %v3469_v21  ;;  %v6124_v22 = vld [vmem:[%s8294_s5 + $0x1] ss:$0 sm:$0xff] }
 0xd90   : > { %v3126_v29 = vsel %vm1390_vm3, %v7285_v27, 0.0 }
 0xd92   : > { %3107 = vadd.xlane.f32.xlu0 %v3106_v28  ;;  %v7976_v28 = vld [vmem:[%s1013_s9] sm:$0xff]  ;;  %s8295_s9 = sld [smem:[#allocation16_spill]] }
 0xd93   : > { %3127 = vadd.xlane.f32.xlu1 %v3126_v29 }
 0xe1b   : > { %v3105_v37 = vpop.xlane.xlu0 %3104 }
 0xe1c   : > { %v3125_v40 = vpop.xlane.xlu1 %3124  ;;  %7286 = vrcp.f32 %v3105_v37 }
 0xe1d   : > { %7288 = vrcp.f32 %v3125_v40 }
 0xe1f   : > { %v3108_v41 = vpop.xlane.xlu0 %3107 }
 0xe20   : > { %v3128_v42 = vpop.xlane.xlu1 %3127  ;;  %7290 = vrcp.f32 %v3108_v41 }
 0xe21   : > { %7292 = vrcp.f32 %v3128_v42 }
 0xe26   : > { %v7287_v45 = vpop.eup %7286 }
 0xe27   : > { %v7289_v46 = vpop.eup %7288  ;;  %v3111_v47 = vmul.f32 %v7287_v45, %v7279_v43  ;;  %v7469_v43 = vmov 0.0  }
 0xe28   : > { %v3131_v48 = vmul.f32 %v7289_v46, %v7281_v44  ;;  %v7028_v44 = vpack.c.bf16 %v3376_v50, %v3375_v18 }
 0xe29   : > { %v3113_v49 = vmul.f32 %v3111_v47, %v7788_v25 }
 0xe2a   : > { %v7291_v52 = vpop.eup %7290  ;;  %v3133_v53 = vmul.f32 %v3131_v48, %v7790_v26  ;;  %7029 = vmatprep.subr.bf16.mxu1 %v7028_v44 }
 0xe2b   : > { %v7293_v54 = vpop.eup %7292  ;;  %v3112_v55 = vmul.f32 %v7291_v52, %v7283_v24  ;;  %v3378_v24 = vld [vmem:[%s8282_s6 + $0x18] sm:$0xff] }
 0xe2c   : > { %v3132_v56 = vmul.f32 %v7293_v54, %v7285_v27  ;;  %v3135_v57 = vadd.f32 %v3133_v53, %v3113_v49  ;;  %v7032_v27 = vpack.c.bf16 %v3378_v24, %v3377_v38 }
 0xe2d   : > { %v3114_v58 = vmul.f32 %v3112_v55, %v7788_v25  ;;  %v7350_v25 = vld [vmem:[%s7714_s1 + $0x8] sm:$0xff]  ;;  %s8291_s1 = sld [smem:[#allocation20_spill]] }
 0xe2e   : > { %v3134_v59 = vmul.f32 %v3132_v56, %v7790_v26  ;;  %6662 = vmatprep.mubr.msk.f32.mxu1 %vm1390_vm3, %v3135_v57  ;;  %v6105_v56 = vld [vmem:[%s8292_s7] ss:$0 sm:$0xff] }
 0xe30   : > { %v3136_v60 = vadd.f32 %v3134_v59, %v3114_v58 }
 0xe32   : > { %6663 = vmatmul.mubr.msk.f32.vlgmr.msra.gmra.mrb[22].mxu1 %vm1390_vm3, %v3136_v60 }
 0xe33   : > { %7031 = vmatpush3.bf16.msra.mxu1 %v7028_v44  ;;  %v6104_v49 = vld [vmem:[%s8291_s1] ss:$0 sm:$0xff]  ;;  %s8296_s1 = sld [smem:[#allocation10_spill]] }
 0xe34   : > { %7033 = vmatprep.subr.bf16.mxu1 %v7032_v27 }
 0xe37   : > { %7035 = vmatpush3.bf16.msra.mxu1 %v7032_v27 }
 0xe38   : > { %7042 = vmatprep.subr.bf16.mxu1 %v7467_v19 }
 0xe39   : > { %s1021_s7 = scalar_lea.vmem %s8296_s1, %s7708_s18  ;;  %s8297_s18 = sld [smem:[#allocation17_spill]] }
 0xe3a   : > { %s8298_s1 = sld [smem:[#allocation18_spill]] }
 0xf05   : > { %v6664_v9 = vpop.f32.mrb[22].mxu1 }
 0xf06   : > { %v3209_v61 = vpop.f32.mrb[23].mxu1 }
 0xf07   : > { %6667 = vmatprep.mubr.msk.f32.mxu0 %vm1300_vm1, %v3209_v61 }
 0xf08   : > { %6668 = vmatmul.mubr.msk.f32.vlgmr.msra.gmra.mrb[8].mxu0 %vm1300_vm1, %v6664_v9  ;;  %v6109_v9 = vld [vmem:[%s8293_s10] ss:$0 sm:$0xff] }
 0xf09   : > { %6689 = vmatprep.mubr.msk.f32.mxu0 %vm7468_vm4, %v7469_v43  ;;  %7038 = vmatpush3.bf16.msra.mxu0 %v7037_v20 }
 0xf0a   : > { %7039 = vmatprep.subr.bf16.mxu0 %v7467_v19 }
 0xf0d   : > { %7041 = vmatpush3.bf16.msra.mxu0 %v7040_v39 }
 0xf10   : > { %6690 = vmatmul.mubr.msk.f32.vlgmr.msra.gmra.mrb[18].mxu0 %vm1046_vm0, %v7976_v28 }
 0xfdb   : > { %v6669_v63 = vpop.f32.mrb[8].mxu0 }
 0xfdc   : > { %v3311_v0 = vadd.f32 %v6669_v63, %v6103_v62  ;;  %v3292_v1 = vpop.f32.mrb[9].mxu0 }
 0xfdd   : > { %v3310_v2 = vadd.f32 %v6103_v62, %v3292_v1  ;;  %v6120_v1 = vld [vmem:[%s8282_s6 + $0x28] sm:$0xff] }
 0xfde   : > { %v3313_v3 = vadd.f32 %v7350_v25, %v3311_v0  ;;  %v6119_v0 = vld [vmem:[%s8282_s6 + $0x20] sm:$0xff] }
 0xfdf   : > { %v3312_v26 = vadd.f32 %v7351_v4, %v3310_v2  ;;  %v7048_v2 = vpack.c.bf16 %v6120_v1, %v6119_v0  ;;  %v6106_v25 = vld [vmem:[%s8294_s5] ss:$0 sm:$0xff]  ;;  %v6121_v4 = vld [vmem:[%s8282_s6 + $0x30] sm:$0xff]  ;;  %v6132_v0 = vld [vmem:[%s8293_s10 + $0x1] ss:$0 sm:$0xff] }
 0xfe0   : > { %v3319_v5 = vsel %vm1046_vm0, %v3313_v3, 0.0 }
 0xfe1   : > { %3320 = vadd.xlane.f32.xlu1 %v3319_v5  ;;  %v3316_v6 = vsel %vm1046_vm0, %v3312_v26, 0.0 }
 0xfe2   : > { %3317 = vadd.xlane.f32.xlu0 %v3316_v6 }
 0xfe3   : > { %v3547_v61 = vpop.f32.mrb[18].mxu0 }
 0xfe4   : > { %v3548_v62 = vadd.f32 %v6109_v9, %v3547_v61  ;;  %v6691_v63 = vpop.f32.mrb[19].mxu0 }
 0xfe6   : > { %6703 = vmatprep.subr.msk.mxu0 %vm1300_vm1, %v3548_v62 }
 0xfe7   : > { %6704 = vmatpush3.xpose.msk.msra.mxu0 %vm1300_vm1, %v3548_v62 }
 0xfe8   : > { %7049 = vmatprep.subr.bf16.mxu0 %v7048_v2 }
0x106e   : > { %v3321_v7 = vpop.xlane.xlu1 %3320 }
0x106f   : > { %v3324_v23 = vmul.f32 0.03125, %v3321_v7  ;;  %v3318_v8 = vpop.xlane.xlu0 %3317 }
0x1070   : > { %v3323_v10 = vmul.f32 0.03125, %v3318_v8  ;;  %v3551_v8 = vld [vmem:[%s8295_s9] sm:$0xff] }
0x1071   : > { %v3326_v11 = vsub.f32 %v3313_v3, %v3324_v23 }
0x1072   : > { %v7956_v13 = vsub.f32 %v3312_v26, %v3323_v10  ;;  %v6122_v26 = vld [vmem:[%s8282_s6 + $0x38] sm:$0xff]  ;;  %v3552_v10 = vld [vmem:[%s8295_s9 + $0x8] sm:$0xff] }
0x1073   : > { %v3328_v14 = vmul.f32 %v3326_v11, %v3326_v11  ;;  %v3359_v52 = vmul.f32 %v6104_v49, %v3326_v11  ;;  %v7052_v23 = vpack.c.bf16 %v6122_v26, %v6121_v4  ;;  %v3553_v11 = vld [vmem:[%s8295_s9 + $0x10] sm:$0xff]  ;;  %v6135_v4 = vld [vmem:[%s8295_s9 + $0x28] sm:$0xff] }
0x1074   : > { %v3327_v15 = vmul.f32 %v7956_v13, %v7956_v13  ;;  %v3358_v54 = vmul.f32 %v6104_v49, %v7956_v13  ;;  %v7043_v13 = vpack.c.bf16 %v3552_v10, %v3551_v8  ;;  %v6128_v49 = vld [vmem:[%s7556_s20 + $0x28] sm:$0xff]  ;;  %v6136_v26 = vld [vmem:[%s8295_s9 + $0x30] sm:$0xff] }
0x1075   : > { %v3332_v16 = vsel %vm1046_vm0, %v3328_v14, 0.0  ;;  %v3554_v14 = vld [vmem:[%s8295_s9 + $0x18] sm:$0xff] }
0x1076   : > { %3333 = vadd.xlane.f32.xlu1 %v3332_v16  ;;  %v3329_v12 = vsel %vm1046_vm0, %v3327_v15, 0.0  ;;  %v7046_v15 = vpack.c.bf16 %v3554_v14, %v3553_v11 }
0x1077   : > { %3330 = vadd.xlane.f32.xlu0 %v3329_v12  ;;  %v8020_v12 = vld [vmem:[%s1021_s7] ss:$0 sm:$0xff]  ;;  %s8299_s7 = sld [smem:[#allocation19_spill]] }
0x1103   : > { %v3334_v29 = vpop.xlane.xlu1 %3333 }
0x1104   : > { %v3337_v30 = vmul.f32 0.032258064, %v3334_v29  ;;  %v3331_v31 = vpop.xlane.xlu0 %3330 }
0x1105   : > { %v3336_v32 = vmul.f32 0.032258064, %v3331_v31 }
0x1106   : > { %7294 = vrsqrt.f32 %v3337_v30  ;;  %vm3347_vm5 = vcmp.eq.f32.partialorder %v3337_v30, inf  ;;  %v3350_v36 = vand.u32 2147483648, %v3337_v30  ;;  %vm3349_vm6 = vcmp.eq.f32.partialorder %v3337_v30, 0.0 }
0x1107   : > { %7296 = vrsqrt.f32 %v3336_v32  ;;  %vm3340_vm7 = vcmp.eq.f32.partialorder %v3336_v32, inf  ;;  %v3343_v41 = vand.u32 2147483648, %v3336_v32  ;;  %vm3342_vm8 = vcmp.eq.f32.partialorder %v3336_v32, 0.0 }
0x1110   : > { %v7295_v33 = vpop.eup %7294 }
0x1111   : > { %v7297_v34 = vpop.eup %7296  ;;  %v3346_v35 = vmul.f32 %v7295_v33, %v3337_v30 }
0x1112   : > { %v3339_v37 = vmul.f32 %v7297_v34, %v3336_v32 }
0x1113   : > { %v3348_v40 = vsel %vm3347_vm5, %v3337_v30, %v3346_v35 }
0x1114   : > { %v3351_v42 = vsel %vm3349_vm6, %v3350_v36, %v3348_v40  ;;  %v3341_v45 = vsel %vm3340_vm7, %v3336_v32, %v3339_v37  ;;  %v6111_v40 = vld [vmem:[%s8297_s18] ss:$0 sm:$0xff] }
0x1115   : > { %v3361_v46 = vadd.f32 1e-06, %v3351_v42  ;;  %v3344_v47 = vsel %vm3342_vm8, %v3343_v41, %v3341_v45 }
0x1116   : > { %v3360_v48 = vadd.f32 1e-06, %v3344_v47 }
0x1117   : > { %7298 = vrcp.f32 %v3361_v46 }
0x1118   : > { %7300 = vrcp.f32 %v3360_v48  ;;  %v6127_v48 = vld [vmem:[%s7556_s20 + $0x20] sm:$0xff] }
0x1121   : > { %v7299_v53 = vpop.eup %7298 }
0x1122   : > { %v7301_v55 = vpop.eup %7300  ;;  %v3365_v57 = vmul.f32 %v7299_v53, %v3359_v52 }
0x1123   : > { %v3363_v58 = vmul.f32 %v7301_v55, %v3358_v54  ;;  %v7057_v55 = vpack.c.bf16 %v6128_v49, %v6127_v48  ;;  %v3829_v48 = vld [vmem:[%s8298_s1] sm:$0xff] }
0x1124   : > { %v7986_v60 = vadd.f32 %v6105_v56, %v3365_v57  ;;  %v6129_v57 = vld [vmem:[%s7556_s20 + $0x30] sm:$0xff] }
0x1125   : > { %v7984_v59 = vadd.f32 %v6105_v56, %v3363_v58  ;;  %v6130_v58 = vld [vmem:[%s7556_s20 + $0x38] sm:$0xff] }
0x1126   : > { %v7060_v9 = vpack.c.bf16 %v6130_v58, %v6129_v57 }
0x1127   : > { %6678 = vmatprep.mubr.msk.f32.mxu1 %vm1046_vm0, %v7984_v59 }
0x1128   : > { %6679 = vmatmul.mubr.msk.f32.vlgmr.msra.gmra.mrb[24].mxu1 %vm1046_vm0, %v7986_v60 }
0x1129   : > { %6700 = vmatprep.mubr.msk.f32.mxu1 %vm7468_vm4, %v7469_v43  ;;  %7044 = vmatpush3.bf16.msra.mxu1 %v7043_v13 }
0x112a   : > { %7045 = vmatprep.subr.bf16.mxu1 %v7467_v19 }
0x112d   : > { %7047 = vmatpush3.bf16.msra.mxu1 %v7046_v15 }
0x1130   : > { %6701 = vmatmul.mubr.msk.f32.vlgmr.msra.gmra.mrb[26].mxu1 %vm1046_vm0, %v7976_v28 }
0x11fb   : > { %v6680_v3 = vpop.f32.mrb[24].mxu1 }
0x11fc   : > { %v3458_v5 = vpop.f32.mrb[25].mxu1  ;;  %v3464_v7 = vadd.f32 %v6680_v3, %v6106_v25  ;;  %v6134_v3 = vld [vmem:[%s8295_s9 + $0x20] sm:$0xff] }
0x11fd   : > { %v3459_v6 = vadd.f32 %v6106_v25, %v3458_v5  ;;  %v7063_v5 = vpack.c.bf16 %v6135_v4, %v6134_v3  ;;  %v6166_v4 = vld [vmem:[%s8295_s9 + $0x40] sm:$0xff] }
0x11ff   : > { %6705 = vmatprep.mubr.msk.f32.mxu0 %vm1300_vm1, %v3459_v6  ;;  %v6137_v6 = vld [vmem:[%s8295_s9 + $0x38] sm:$0xff] }
0x1200   : > { %6706 = vmatmul.mubr.msk.f32.vlgmr.msra.gmra.mrb[20].mxu0 %vm1300_vm1, %v3464_v7  ;;  %v7066_v7 = vpack.c.bf16 %v6137_v6, %v6136_v26  ;;  %v6167_v26 = vld [vmem:[%s8295_s9 + $0x48] sm:$0xff] }
0x1201   : > { %7051 = vmatpush3.bf16.msra.mxu0 %v7048_v2  ;;  %6721 = vmatprep.mubr.msk.f32.mxu0 %vm1046_vm0, %v7984_v59  ;;  %v7083_v6 = vpack.c.bf16 %v6167_v26, %v6166_v4  ;;  %v6197_v4 = vld [vmem:[%s8295_s9 + $0x68] sm:$0xff]  ;;  %v6198_v26 = vld [vmem:[%s8295_s9 + $0x70] sm:$0xff] }
0x1202   : > { %7053 = vmatprep.subr.bf16.mxu0 %v7052_v23 }
0x1203   : > { %v3628_v41 = vpop.f32.mrb[26].mxu1 }
0x1204   : > { %v3629_v42 = vadd.f32 %v6111_v40, %v3628_v41  ;;  %v6702_v45 = vpop.f32.mrb[27].mxu1  ;;  %v6153_v40 = vld [vmem:[%s8282_s6 + $0x50] sm:$0xff]  ;;  %v6154_v41 = vld [vmem:[%s8282_s6 + $0x58] sm:$0xff] }
0x1205   : > { %7055 = vmatpush3.bf16.msra.mxu0 %v7052_v23 }
0x1206   : > { %7062 = vmatprep.subr.bf16.mxu0 %v7467_v19  ;;  %6708 = vmatprep.subr.mxu1 %v3629_v42 }
0x1207   : > { %6709 = vmatpush3.msra.mxu1 %v3629_v42 }
0x1208   : > { %6722 = vmatmul.mubr.msk.f32.vlgmr.msra.gmra.mrb[22].mxu0 %vm1046_vm0, %v7986_v60  ;;  %7056 = vmatprep.subr.bf16.mxu1 %v7467_v19 }
0x1209   : > { %6743 = vmatprep.mubr.msk.f32.mxu0 %vm7468_vm4, %v7469_v43  ;;  %7064 = vmatpush3.bf16.msra.mxu0 %v7063_v5  ;;  %v6168_v5 = vld [vmem:[%s8295_s9 + $0x50] sm:$0xff] }
0x120a   : > { %7065 = vmatprep.subr.bf16.mxu0 %v7467_v19 }
0x120d   : > { %7067 = vmatpush3.bf16.msra.mxu0 %v7066_v7  ;;  %v6169_v7 = vld [vmem:[%s8295_s9 + $0x58] sm:$0xff] }
0x1210   : > { %6744 = vmatmul.mubr.msk.f32.vlgmr.msra.gmra.mrb[24].mxu0 %vm1046_vm0, %v7976_v28 }
0x12d3   : > { %v6707_v16 = vpop.f32.mrb[20].mxu0 }
0x12d4   : > { %v3717_v17 = vmul.f32 0.35355338, %v6707_v16  ;;  %v3707_v51 = vpop.f32.mrb[21].mxu0 }
0x12d5   : > { %v3716_v18 = vmul.f32 0.35355338, %v3707_v51 }
0x12d6   : > { %v3725_v20 = vadd.f32 %v8020_v12, %v3717_v17 }
0x12d7   : > { %v3724_v50 = vadd.f32 %v8020_v12, %v3716_v18 }
0x12d8   : > { %v3729_v21 = vsel %vm1300_vm1, %v3725_v20, -inf }
0x12d9   : > { %3730 = vmax.xlane.f32.xlu1 %v3729_v21  ;;  %v3726_v44 = vsel %vm1300_vm1, %v3724_v50, -inf }
0x12da   : > { %3727 = vmax.xlane.f32.xlu0 %v3726_v44 }
0x12db   : > { %v6723_v38 = vpop.f32.mrb[22].mxu0 }
0x12dc   : > { %v3915_v24 = vadd.f32 %v6723_v38, %v6124_v22  ;;  %v3909_v39 = vpop.f32.mrb[23].mxu0 }
0x12dd   : > { %v3910_v61 = vadd.f32 %v6124_v22, %v3909_v39  ;;  %v6139_v39 = vld [vmem:[%s8297_s18 + $0x1] ss:$0 sm:$0xff] }
0x1366   : > { %v3731_v27 = vpop.xlane.xlu1 %3730 }
0x1367   : > { %v3733_v29 = vsub.f32 %v3725_v20, %v3731_v27  ;;  %v3728_v30 = vpop.xlane.xlu0 %3727  ;;  %v4080_v27 = vpop.f32.mrb[24].mxu0 }
0x1368   : > { %v3732_v31 = vsub.f32 %v3724_v50, %v3728_v30  ;;  %v6745_v30 = vpop.f32.mrb[25].mxu0 }
0x1369   : > { %v3736_v32 = vmul.f32 1.442695, %v3733_v29  ;;  %v4081_v29 = vadd.f32 %v6139_v39, %v4080_v27  ;;  %v6171_v27 = vld [vmem:[%s8297_s18 + $0x2] ss:$0 sm:$0xff] }
0x136a   : > { %v3734_v33 = vmul.f32 1.442695, %v3732_v31  ;;  %v6151_v31 = vld [vmem:[%s8282_s6 + $0x40] sm:$0xff] }
0x136b   : > { %7302 = vpow2.f32 %v3736_v32  ;;  %v6152_v32 = vld [vmem:[%s8282_s6 + $0x48] sm:$0xff] }
0x136c   : > { %7304 = vpow2.f32 %v3734_v33  ;;  %v7068_v33 = vpack.c.bf16 %v6152_v32, %v6151_v31  ;;  %v6181_v32 = vld [vmem:[%s8282_s6 + $0x60] sm:$0xff] }
0x1375   : > { %v7303_v34 = vpop.eup %7302 }
0x1376   : > { %v7305_v35 = vpop.eup %7304  ;;  %v3741_v36 = vsel %vm1300_vm1, %v7303_v34, 0.0 }
0x1377   : > { %3742 = vadd.xlane.f32.xlu1 %v3741_v36  ;;  %v3738_v37 = vsel %vm1300_vm1, %v7305_v35, 0.0 }
0x1378   : > { %3739 = vadd.xlane.f32.xlu0 %v3738_v37 }
0x1404   : > { %v3743_v46 = vpop.xlane.xlu1 %3742 }
0x1405   : > { %7306 = vrcp.f32 %v3743_v46  ;;  %v3740_v47 = vpop.xlane.xlu0 %3739 }
0x1406   : > { %7308 = vrcp.f32 %v3740_v47  ;;  %v7072_v47 = vpack.c.bf16 %v6154_v41, %v6153_v40  ;;  %v6183_v41 = vld [vmem:[%s8282_s6 + $0x70] sm:$0xff] }
0x140f   : > { %v7307_v52 = vpop.eup %7306 }
0x1410   : > { %v7309_v53 = vpop.eup %7308  ;;  %v3747_v56 = vmul.f32 %v7307_v52, %v7303_v34  ;;  %v6146_v34 = vld [vmem:[%s8298_s1 + $0x8] sm:$0xff] }
0x1411   : > { %v3746_v54 = vmul.f32 %v7309_v53, %v7305_v35  ;;  %6756 = vmatprep.subr.mxu0 %v6146_v34  ;;  %v6159_v53 = vld [vmem:[%s7556_s20 + $0x40] sm:$0xff] }
0x1412   : > { %6757 = vmatpush3.msra.mxu0 %v6146_v34 }
0x1413   : > { %6710 = vmatprep.mubr.msk.f32.mxu1 %vm1300_vm1, %v3746_v54  ;;  %6761 = vmatprep.subr.mxu0 %v3829_v48  ;;  %v6160_v54 = vld [vmem:[%s7556_s20 + $0x48] sm:$0xff] }
0x1414   : > { %6711 = vmatmul.mubr.msk.f32.vlgmr.msra.gmra.mrb[28].mxu1 %vm1300_vm1, %v3747_v56  ;;  %v7077_v57 = vpack.c.bf16 %v6160_v54, %v6159_v53 }
0x1415   : > { %7058 = vmatpush3.bf16.msra.mxu1 %v7057_v55  ;;  %6732 = vmatprep.mubr.msk.f32.mxu1 %vm7468_vm4, %v7469_v43  ;;  %v6156_v55 = vld [vmem:[%s8294_s5 + $0x2] ss:$0 sm:$0xff] }
0x1416   : > { %7059 = vmatprep.subr.bf16.mxu1 %v7467_v19 }
0x1419   : > { %7061 = vmatpush3.bf16.msra.mxu1 %v7060_v9 }
0x141c   : > { %6733 = vmatmul.mubr.msk.f32.vlgmr.msra.gmra.mrb[30].mxu1 %vm1046_vm0, %v7976_v28 }
0x141d   : > { %6748 = vmatprep.mubr.msk.f32.mxu1 %vm1300_vm1, %v3910_v61  ;;  %v6161_v61 = vld [vmem:[%s7556_s20 + $0x50] sm:$0xff] }
0x14e7   : > { %v8043_v62 = vpop.f32.mrb[28].mxu1 }
0x14e8   : > { %v8045_v63 = vpop.f32.mrb[29].mxu1 }
0x14ef   : > { %v3997_v1 = vpop.f32.mrb[30].mxu1 }
0x14f0   : > { %v3998_v2 = vadd.f32 %v6132_v0, %v3997_v1  ;;  %v6734_v25 = vpop.f32.mrb[31].mxu1  ;;  %v6162_v0 = vld [vmem:[%s7556_s20 + $0x58] sm:$0xff] }
0x14f1   : > { %v7080_v1 = vpack.c.bf16 %v6162_v0, %v6161_v61 }
0x14f2   : > { %6746 = vmatprep.subr.msk.mxu1 %vm1300_vm1, %v3998_v2 }
0x14f3   : > { %6747 = vmatpush3.xpose.msk.msra.mxu1 %vm1300_vm1, %v3998_v2  ;;  %v6164_v2 = vld [vmem:[%s8293_s10 + $0x2] ss:$0 sm:$0xff] }
0x14f4   : > { %6751 = vmatprep.subr.mxu1 %v4081_v29 }
0x14f6   : > { %6749 = vmatmul.mubr.msk.f32.vlgmr.msra.gmra.mrb[32].mxu1 %vm1300_vm1, %v3915_v24 }
0x14f7   : > { %6752 = vmatpush3.msra.mxu1 %v4081_v29 }
0x14f8   : > { %7069 = vmatprep.subr.bf16.mxu1 %v7068_v33 }
0x15c9   : > { %v6750_v23 = vpop.f32.mrb[32].mxu1 }
0x15ca   : > { %v4169_v8 = vmul.f32 0.35355338, %v6750_v23  ;;  %v4159_v10 = vpop.f32.mrb[33].mxu1  ;;  %v7086_v23 = vpack.c.bf16 %v6169_v7, %v6168_v5 }
0x15cb   : > { %v4168_v11 = vmul.f32 0.35355338, %v4159_v10 }
0x15cc   : > { %v4171_v13 = vadd.f32 %v8020_v12, %v4169_v8 }
0x15cd   : > { %v4170_v14 = vadd.f32 %v8020_v12, %v4168_v11 }
0x15ce   : > { %v4175_v15 = vsel %vm1300_vm1, %v4171_v13, -inf }
0x15cf   : > { %4176 = vmax.xlane.f32.xlu1 %v4175_v15  ;;  %v4172_v16 = vsel %vm1300_vm1, %v4170_v14, -inf }
0x15d0   : > { %4173 = vmax.xlane.f32.xlu0 %v4172_v16 }
0x165c   : > { %v4177_v17 = vpop.xlane.xlu1 %4176 }
0x165d   : > { %v4179_v51 = vsub.f32 %v4171_v13, %v4177_v17  ;;  %v4174_v18 = vpop.xlane.xlu0 %4173 }
0x165e   : > { %v4178_v20 = vsub.f32 %v4170_v14, %v4174_v18 }
0x165f   : > { %v4182_v50 = vmul.f32 1.442695, %v4179_v51 }
0x1660   : > { %v4180_v21 = vmul.f32 1.442695, %v4178_v20 }
0x1661   : > { %7310 = vpow2.f32 %v4182_v50 }
0x1662   : > { %7312 = vpow2.f32 %v4180_v21 }
0x166b   : > { %v7311_v22 = vpop.eup %7310 }
0x166c   : > { %v7313_v44 = vpop.eup %7312  ;;  %v4187_v38 = vsel %vm1300_vm1, %v7311_v22, 0.0 }
0x166d   : > { %4188 = vadd.xlane.f32.xlu1 %v4187_v38  ;;  %v4184_v24 = vsel %vm1300_vm1, %v7313_v44, 0.0 }
0x166e   : > { %4185 = vadd.xlane.f32.xlu0 %v4184_v24 }
0x16fa   : > { %v4189_v35 = vpop.xlane.xlu1 %4188 }
0x16fb   : > { %7314 = vrcp.f32 %v4189_v35  ;;  %v4186_v36 = vpop.xlane.xlu0 %4185  ;;  %v6178_v35 = vld [vmem:[%s8298_s1 + $0x10] sm:$0xff] }
0x16fc   : > { %7316 = vrcp.f32 %v4186_v36 }
0x1705   : > { %v7315_v37 = vpop.eup %7314 }
0x1706   : > { %v7317_v42 = vpop.eup %7316  ;;  %v4193_v46 = vmul.f32 %v7315_v37, %v7311_v22 }
0x1707   : > { %v4192_v45 = vmul.f32 %v7317_v42, %v7313_v44  ;;  %v6184_v42 = vld [vmem:[%s8282_s6 + $0x78] sm:$0xff] }
0x1709   : > { %6753 = vmatprep.mubr.msk.f32.mxu1 %vm1300_vm1, %v4192_v45 }
0x170a   : > { %6754 = vmatmul.mubr.msk.f32.vlgmr.msra.gmra.mrb[34].mxu1 %vm1300_vm1, %v4193_v46 }
0x170b   : > { %7071 = vmatpush3.bf16.msra.mxu1 %v7068_v33  ;;  %6774 = vmatprep.mubr.msk.f32.mxu1 %vm1046_vm0, %v7984_v59  ;;  %v6182_v33 = vld [vmem:[%s8282_s6 + $0x68] sm:$0xff] }
0x170c   : > { %7073 = vmatprep.subr.bf16.mxu1 %v7072_v47  ;;  %v7088_v34 = vpack.c.bf16 %v6182_v33, %v6181_v32 }
0x170f   : > { %7075 = vmatpush3.bf16.msra.mxu1 %v7072_v47 }
0x1710   : > { %7082 = vmatprep.subr.bf16.mxu1 %v7467_v19 }
0x1712   : > { %6775 = vmatmul.mubr.msk.f32.vlgmr.msra.gmra.mrb[36].mxu1 %vm1046_vm0, %v7986_v60 }
0x1713   : > { %6796 = vmatprep.mubr.msk.f32.mxu1 %vm7468_vm4, %v7469_v43  ;;  %7084 = vmatpush3.bf16.msra.mxu1 %v7083_v6  ;;  %v6199_v6 = vld [vmem:[%s8295_s9 + $0x78] sm:$0xff] }
0x1714   : > { %7085 = vmatprep.subr.bf16.mxu1 %v7467_v19  ;;  %v7106_v7 = vpack.c.bf16 %v6199_v6, %v6198_v26 }
0x1717   : > { %7087 = vmatpush3.bf16.msra.mxu1 %v7086_v23 }
0x171a   : > { %6797 = vmatmul.mubr.msk.f32.vlgmr.msra.gmra.mrb[38].mxu1 %vm1046_vm0, %v7976_v28 }
0x17dd   : > { %v6755_v49 = vpop.f32.mrb[34].mxu1 }
0x17de   : > { %v4266_v52 = vpop.f32.mrb[35].mxu1 }
0x17df   : > { %6758 = vmatprep.mubr.msk.f32.mxu0 %vm1300_vm1, %v4266_v52  ;;  %v6190_v52 = vld [vmem:[%s7556_s20 + $0x68] sm:$0xff] }
0x17e0   : > { %6759 = vmatmul.mubr.msk.f32.vlgmr.msra.gmra.mrb[26].mxu0 %vm1300_vm1, %v6755_v49  ;;  %v6189_v49 = vld [vmem:[%s7556_s20 + $0x60] sm:$0xff] }
0x17e1   : > { %6762 = vmatpush3.msra.mxu0 %v3829_v48  ;;  %6763 = vmatprep.mubr.msk.f32.mxu0 %vm1300_vm1, %v8045_v63  ;;  %v7092_v48 = vpack.c.bf16 %v6184_v42, %v6183_v41  ;;  %v7097_v54 = vpack.c.bf16 %v6190_v52, %v6189_v49 }
0x17e2   : > { %7076 = vmatprep.subr.bf16.mxu0 %v7467_v19 }
0x17e5   : > { %v6776_v56 = vpop.f32.mrb[36].mxu1 }
0x17e6   : > { %v4524_v58 = vadd.f32 %v6776_v56, %v6156_v55  ;;  %v4518_v9 = vpop.f32.mrb[37].mxu1  ;;  %v6191_v56 = vld [vmem:[%s7556_s20 + $0x70] sm:$0xff] }
0x17e7   : > { %v4519_v63 = vadd.f32 %v6156_v55, %v4518_v9  ;;  %v6186_v9 = vld [vmem:[%s8294_s5 + $0x3] ss:$0 sm:$0xff]  ;;  %s8304_s5 = sld [smem:[#allocation25_spill]] }
0x17e8   : > { %6764 = vmatmul.mubr.msk.f32.vlgmr.msra.gmra.mrb[26].mxu0 %vm1300_vm1, %v8043_v62 }
0x17e9   : > { %7078 = vmatpush3.bf16.msra.mxu0 %v7077_v57  ;;  %6785 = vmatprep.mubr.msk.f32.mxu0 %vm7468_vm4, %v7469_v43  ;;  %v6192_v57 = vld [vmem:[%s7556_s20 + $0x78] sm:$0xff] }
0x17ea   : > { %7079 = vmatprep.subr.bf16.mxu0 %v7467_v19 }
0x17ed   : > { %7081 = vmatpush3.bf16.msra.mxu0 %v7080_v1  ;;  %v4689_v29 = vpop.f32.mrb[38].mxu1 }
0x17ee   : > { %v4690_v30 = vadd.f32 %v6171_v27, %v4689_v29  ;;  %v6798_v31 = vpop.f32.mrb[39].mxu1  ;;  %v6208_v27 = vld [vmem:[%s8298_s1 + $0x18] sm:$0xff]  ;;  %s8300_s1 = sld [smem:[#allocation24_spill]] }
0x17f0   : > { %6786 = vmatmul.mubr.msk.f32.vlgmr.msra.gmra.mrb[28].mxu0 %vm1046_vm0, %v7976_v28  ;;  %6804 = vmatprep.subr.mxu1 %v4690_v30 }
0x17f1   : > { %6801 = vmatprep.mubr.msk.f32.mxu0 %vm1300_vm1, %v4519_v63  ;;  %6805 = vmatpush3.msra.mxu1 %v4690_v30 }
0x17f2   : > { %7089 = vmatprep.subr.bf16.mxu1 %v7088_v34 }
0x18c3   : > { %v4606_v62 = vpop.f32.mrb[28].mxu0 }
0x18c4   : > { %v4607_v25 = vadd.f32 %v6164_v2, %v4606_v62  ;;  %v6787_v3 = vpop.f32.mrb[29].mxu0  ;;  %v6194_v2 = vld [vmem:[%s8293_s10 + $0x3] ss:$0 sm:$0xff] }
0x18c5   : > { %v6196_v3 = vld [vmem:[%s8295_s9 + $0x60] sm:$0xff] }
0x18c6   : > { %6799 = vmatprep.subr.msk.mxu0 %vm1300_vm1, %v4607_v25  ;;  %v7103_v5 = vpack.c.bf16 %v6197_v4, %v6196_v3 }
0x18c7   : > { %6800 = vmatpush3.xpose.msk.msra.mxu0 %vm1300_vm1, %v4607_v25 }
0x18c8   : > { %6809 = vmatprep.subr.mxu0 %v6178_v35 }
0x18ca   : > { %6802 = vmatmul.mubr.msk.f32.vlgmr.msra.gmra.mrb[30].mxu0 %vm1300_vm1, %v4524_v58  ;;  %v7100_v58 = vpack.c.bf16 %v6192_v57, %v6191_v56 }
0x18cb   : > { %6810 = vmatpush3.msra.mxu0 %v6178_v35 }
0x18cc   : > { %7096 = vmatprep.subr.bf16.mxu0 %v7467_v19 }
0x199d   : > { %v6803_v8 = vpop.f32.mrb[30].mxu0 }
0x199e   : > { %v4778_v10 = vmul.f32 0.35355338, %v6803_v8  ;;  %v4768_v11 = vpop.f32.mrb[31].mxu0 }
0x199f   : > { %v4777_v13 = vmul.f32 0.35355338, %v4768_v11 }
0x19a0   : > { %v4780_v14 = vadd.f32 %v8020_v12, %v4778_v10 }
0x19a1   : > { %v4779_v15 = vadd.f32 %v8020_v12, %v4777_v13 }
0x19a2   : > { %v4784_v16 = vsel %vm1300_vm1, %v4780_v14, -inf }
0x19a3   : > { %4785 = vmax.xlane.f32.xlu1 %v4784_v16  ;;  %v4781_v17 = vsel %vm1300_vm1, %v4779_v15, -inf }
0x19a4   : > { %4782 = vmax.xlane.f32.xlu0 %v4781_v17 }
0x1a30   : > { %v4786_v51 = vpop.xlane.xlu1 %4785 }
0x1a31   : > { %v4788_v18 = vsub.f32 %v4780_v14, %v4786_v51  ;;  %v4783_v20 = vpop.xlane.xlu0 %4782 }
0x1a32   : > { %v4787_v50 = vsub.f32 %v4779_v15, %v4783_v20 }
0x1a33   : > { %v4791_v21 = vmul.f32 1.442695, %v4788_v18 }
0x1a34   : > { %v4789_v22 = vmul.f32 1.442695, %v4787_v50 }
0x1a35   : > { %7318 = vpow2.f32 %v4791_v21 }
0x1a36   : > { %7320 = vpow2.f32 %v4789_v22 }
0x1a3f   : > { %v7319_v44 = vpop.eup %7318 }
0x1a40   : > { %v7321_v38 = vpop.eup %7320  ;;  %v4796_v24 = vsel %vm1300_vm1, %v7319_v44, 0.0 }
0x1a41   : > { %4797 = vadd.xlane.f32.xlu1 %v4796_v24  ;;  %v4793_v39 = vsel %vm1300_vm1, %v7321_v38, 0.0 }
0x1a42   : > { %4794 = vadd.xlane.f32.xlu0 %v4793_v39 }
0x1ace   : > { %v4798_v36 = vpop.xlane.xlu1 %4797 }
0x1acf   : > { %7322 = vrcp.f32 %v4798_v36  ;;  %v4795_v37 = vpop.xlane.xlu0 %4794 }
0x1ad0   : > { %7324 = vrcp.f32 %v4795_v37  ;;  %v6211_v37 = vld [vmem:[%s8299_s7] ss:$0 sm:$0xff]  ;;  %s8301_s7 = sld [smem:[#allocation26_spill]] }
0x1ad6   : > { %v5663_v3 = vld [vmem:[%s8301_s7 + $0x10] sm:$0xff]  ;;  %v5664_v26 = vld [vmem:[%s8301_s7 + $0x18] sm:$0xff]  ;;  %v5665_v6 = vld [vmem:[%s8301_s7 + $0x20] sm:$0xff] }
0x1ad9   : > { %v7323_v40 = vpop.eup %7322 }
0x1ada   : > { %v7325_v45 = vpop.eup %7324  ;;  %v4802_v47 = vmul.f32 %v7323_v40, %v7319_v44  ;;  %v6201_v44 = vld [vmem:[%s8297_s18 + $0x3] ss:$0 sm:$0xff] }
0x1adb   : > { %v4801_v46 = vmul.f32 %v7325_v45, %v7321_v38 }
0x1add   : > { %6806 = vmatprep.mubr.msk.f32.mxu1 %vm1300_vm1, %v4801_v46 }
0x1ade   : > { %6807 = vmatmul.mubr.msk.f32.vlgmr.msra.gmra.mrb[40].mxu1 %vm1300_vm1, %v4802_v47 }
0x1adf   : > { %7091 = vmatpush3.bf16.msra.mxu1 %v7088_v34  ;;  %6822 = vmatprep.mubr.msk.f32.mxu1 %vm1046_vm0, %v7984_v59 }
0x1ae0   : > { %7093 = vmatprep.subr.bf16.mxu1 %v7092_v48 }
0x1ae3   : > { %7095 = vmatpush3.bf16.msra.mxu1 %v7092_v48 }
0x1ae4   : > { %7102 = vmatprep.subr.bf16.mxu1 %v7467_v19 }
0x1ae6   : > { %6823 = vmatmul.mubr.msk.f32.vlgmr.msra.gmra.mrb[42].mxu1 %vm1046_vm0, %v7986_v60 }
0x1ae7   : > { %6844 = vmatprep.mubr.msk.f32.mxu1 %vm7468_vm4, %v7469_v43  ;;  %7104 = vmatpush3.bf16.msra.mxu1 %v7103_v5  ;;  %v7120_v5 = vpack.c.bf16 %v5664_v26, %v5663_v3 }
0x1ae8   : > { %7105 = vmatprep.subr.bf16.mxu1 %v7467_v19 }
0x1aeb   : > { %7107 = vmatpush3.bf16.msra.mxu1 %v7106_v7  ;;  %v5666_v7 = vld [vmem:[%s8301_s7 + $0x28] sm:$0xff] }
0x1aee   : > { %6845 = vmatmul.mubr.msk.f32.vlgmr.msra.gmra.mrb[44].mxu1 %vm1046_vm0, %v7976_v28 }
0x1bb1   : > { %v6808_v53 = vpop.f32.mrb[40].mxu1 }
0x1bb2   : > { %v4875_v55 = vpop.f32.mrb[41].mxu1 }
0x1bb3   : > { %6811 = vmatprep.mubr.msk.f32.mxu0 %vm1300_vm1, %v4875_v55 }
0x1bb4   : > { %6812 = vmatmul.mubr.msk.f32.vlgmr.msra.gmra.mrb[26].mxu0 %vm1300_vm1, %v6808_v53 }
0x1bb5   : > { %7098 = vmatpush3.bf16.msra.mxu0 %v7097_v54  ;;  %6833 = vmatprep.mubr.msk.f32.mxu0 %vm7468_vm4, %v7469_v43 }
0x1bb6   : > { %7099 = vmatprep.subr.bf16.mxu0 %v7467_v19 }
0x1bb9   : > { %v6824_v61 = vpop.f32.mrb[42].mxu1  ;;  %7101 = vmatpush3.bf16.msra.mxu0 %v7100_v58 }
0x1bba   : > { %v5054_v0 = vadd.f32 %v6824_v61, %v6186_v9  ;;  %v5048_v1 = vpop.f32.mrb[43].mxu1  ;;  %v5567_v61 = vld [vmem:[%s8300_s1] sm:$0xff] }
0x1bbb   : > { %v5049_v63 = vadd.f32 %v6186_v9, %v5048_v1  ;;  %v5569_v1 = vld [vmem:[%s8300_s1 + $0x10] sm:$0xff] }
0x1bbc   : > { %6834 = vmatmul.mubr.msk.f32.vlgmr.msra.gmra.mrb[32].mxu0 %vm1046_vm0, %v7976_v28 }
0x1bbd   : > { %6849 = vmatprep.mubr.msk.f32.mxu0 %vm1300_vm1, %v5049_v63 }
0x1bc1   : > { %v5219_v38 = vpop.f32.mrb[44].mxu1 }
0x1bc2   : > { %v5220_v24 = vadd.f32 %v6201_v44, %v5219_v38  ;;  %v6846_v39 = vpop.f32.mrb[45].mxu1 }
0x1c8f   : > { %v5136_v62 = vpop.f32.mrb[32].mxu0 }
0x1c90   : > { %v5137_v43 = vadd.f32 %v6194_v2, %v5136_v62  ;;  %v6835_v25 = vpop.f32.mrb[33].mxu0  ;;  %v5570_v2 = vld [vmem:[%s8300_s1 + $0x18] sm:$0xff] }
0x1c91   : > { %v7112_v62 = vpack.c.bf16 %v5570_v2, %v5569_v1  ;;  %v5662_v25 = vld [vmem:[%s8301_s7 + $0x8] sm:$0xff] }
0x1c92   : > { %6847 = vmatprep.subr.msk.mxu0 %vm1300_vm1, %v5137_v43 }
0x1c93   : > { %6848 = vmatpush3.xpose.msk.msra.mxu0 %vm1300_vm1, %v5137_v43  ;;  %v5661_v43 = vld [vmem:[%s8301_s7] sm:$0xff] }
0x1c94   : > { %6852 = vmatprep.subr.mxu0 %v5220_v24  ;;  %v7116_v4 = vpack.c.bf16 %v5662_v25, %v5661_v43 }
0x1c96   : > { %6850 = vmatmul.mubr.msk.f32.vlgmr.msra.gmra.mrb[34].mxu0 %vm1300_vm1, %v5054_v0  ;;  %v5568_v0 = vld [vmem:[%s8300_s1 + $0x8] sm:$0xff]  ;;  %s8302_s1 = sld [smem:[#allocation22_spill]] }
0x1c97   : > { %6853 = vmatpush3.msra.mxu0 %v5220_v24  ;;  %v7108_v63 = vpack.c.bf16 %v5568_v0, %v5567_v61 }
0x1c98   : > { %6857 = vmatprep.subr.mxu0 %v6208_v27 }
0x1c99   : > { %7109 = vmatprep.subr.bf16.mxu1 %v7108_v63 }
0x1c9a   : > { %7111 = vmatpush3.bf16.msra.mxu1 %v7108_v63 }
0x1c9b   : > { %7113 = vmatprep.subr.bf16.mxu1 %v7112_v62 }
0x1c9e   : > { %7115 = vmatpush3.bf16.msra.mxu1 %v7112_v62 }
0x1d69   : > { %v6851_v23 = vpop.f32.mrb[34].mxu0 }
0x1d6a   : > { %v5308_v8 = vmul.f32 0.35355338, %v6851_v23  ;;  %v5298_v10 = vpop.f32.mrb[35].mxu0  ;;  %v7124_v23 = vpack.c.bf16 %v5666_v7, %v5665_v6 }
0x1d6b   : > { %v5307_v11 = vmul.f32 0.35355338, %v5298_v10 }
0x1d6c   : > { %v5310_v13 = vadd.f32 %v8020_v12, %v5308_v8 }
0x1d6d   : > { %v5309_v14 = vadd.f32 %v8020_v12, %v5307_v11 }
0x1d6e   : > { %v5314_v15 = vsel %vm1300_vm1, %v5310_v13, -inf }
0x1d6f   : > { %5315 = vmax.xlane.f32.xlu1 %v5314_v15  ;;  %v5311_v16 = vsel %vm1300_vm1, %v5309_v14, -inf }
0x1d70   : > { %5312 = vmax.xlane.f32.xlu0 %v5311_v16 }
0x1dfc   : > { %v5316_v19 = vpop.xlane.xlu1 %5315 }
0x1dfd   : > { %v5318_v17 = vsub.f32 %v5310_v13, %v5316_v19  ;;  %v5313_v51 = vpop.xlane.xlu0 %5312 }
0x1dfe   : > { %v5317_v18 = vsub.f32 %v5309_v14, %v5313_v51 }
0x1dff   : > { %v5321_v28 = vmul.f32 1.442695, %v5318_v17 }
0x1e00   : > { %v5319_v20 = vmul.f32 1.442695, %v5317_v18 }
0x1e01   : > { %7326 = vpow2.f32 %v5321_v28 }
0x1e02   : > { %7328 = vpow2.f32 %v5319_v20 }
0x1e0b   : > { %v7327_v50 = vpop.eup %7326 }
0x1e0c   : > { %v7329_v21 = vpop.eup %7328  ;;  %v5326_v12 = vsel %vm1300_vm1, %v7327_v50, 0.0 }
0x1e0d   : > { %5327 = vadd.xlane.f32.xlu1 %v5326_v12  ;;  %v5323_v22 = vsel %vm1300_vm1, %v7329_v21, 0.0 }
0x1e0e   : > { %5324 = vadd.xlane.f32.xlu0 %v5323_v22  ;;  %v6212_v22 = vld [vmem:[%s8302_s1] ss:$0 sm:$0xff]  ;;  %s6229_s1 = sshll.u32 %s7659_s0, 8 }
0x1e0f   : > { %s8201_s8 = scalar_lea.hbm %s7636_s12, %s6229_s1 }
0x1e9a   : > { %v5328_v29 = vpop.xlane.xlu1 %5327 }
0x1e9b   : > { %7330 = vrcp.f32 %v5328_v29  ;;  %v5325_v30 = vpop.xlane.xlu0 %5324 }
0x1e9c   : > { %7332 = vrcp.f32 %v5325_v30 }
0x1ea5   : > { %v7331_v31 = vpop.eup %7330 }
0x1ea6   : > { %v7333_v32 = vpop.eup %7332  ;;  %v5332_v34 = vmul.f32 %v7331_v31, %v7327_v50 }
0x1ea7   : > { %v5331_v33 = vmul.f32 %v7333_v32, %v7329_v21 }
0x1ea9   : > { %6854 = vmatprep.mubr.msk.f32.mxu0 %vm1300_vm1, %v5331_v33  ;;  %v5667_v33 = vld [vmem:[%s8301_s7 + $0x30] sm:$0xff] }
0x1eaa   : > { %6855 = vmatmul.mubr.msk.f32.vlgmr.msra.gmra.mrb[36].mxu0 %vm1300_vm1, %v5332_v34  ;;  %v5668_v34 = vld [vmem:[%s8301_s7 + $0x38] sm:$0xff] }
0x1eab   : > { %6858 = vmatpush3.msra.mxu0 %v6208_v27  ;;  %v6213_v27 = vld [vmem:[%s8303_s3] ss:$0 sm:$0xff]  ;;  %s1002_s3 = sand.u32 1, %s7425_s23  }
0x1eac   : > { %7117 = vmatprep.subr.bf16.mxu0 %v7116_v4 }
0x1f7d   : > { %v6856_v35 = vpop.f32.mrb[36].mxu0 }
0x1f7e   : > { %v5405_v36 = vpop.f32.mrb[37].mxu0 }
0x1f7f   : > { %6859 = vmatprep.mubr.msk.f32.mxu0 %vm1300_vm1, %v5405_v36  ;;  %v6214_v36 = vld [vmem:[%s8304_s5] ss:$0 sm:$0xff]  ;;  %s5978_s5 = sshll.u32 %s1002_s3, 4 }
0x1f80   : > { %6860 = vmatmul.mubr.msk.f32.vlgmr.msra.gmra.mrb[26].mxu0 %vm1300_vm1, %v6856_v35  ;;  %v7128_v35 = vpack.c.bf16 %v5668_v34, %v5667_v33  ;;  %s1004_s6 = scalar_lea.vmem [#allocation5], %s5978_s5  ;;  %s7470_s5 = smov [#allocation5]  }
0x1f81   : > { %7119 = vmatpush3.bf16.msra.mxu0 %v7116_v4  ;;  %s5834_s7 = sshll.u32 %s1004_s6, 4  ;;  %s7371_s1 = sshll.u32 %s7470_s5, 4  ;;  %s8203_s7 = int_to_ptr.vmem [resolvable:$true] %s5834_s7  ;;  %s7372_s1 = int_to_ptr.vmem [resolvable:$false] %s7371_s1 }
0x1f82   : > { %7121 = vmatprep.subr.bf16.mxu0 %v7120_v5  ;;  %s7367_s0 = scalar_lea.vmem %s8203_s7, 256  ;;  %s7373_s9 = scalar_lea.vmem %s7372_s1, 512 }
0x1f83   : > { %p7368_p6 = scmp.ne.s32.totalorder %s8203_s7, %s7367_s0  ;;  %p7374_p10 = scmp.lt.s32.totalorder %s8203_s7, %s7372_s1 }
0x1f84   : > { %p7375_p11 = scmp.lt.s32.totalorder %s7373_s9, %s7367_s0 }
0x1f85   : > { %7123 = vmatpush3.bf16.msra.mxu0 %v7120_v5  ;;  %p7369_p8 = pnand %p7368_p6, %p8306_p7 }
0x1f86   : > { %7125 = vmatprep.subr.bf16.mxu0 %v7124_v23  ;;  %p7376_p12 = por %p7375_p11, %p7374_p10 }
0x1f87   : > { %p7370_p9 = pneg %p7369_p8 }
0x1f89   : > { %7127 = vmatpush3.bf16.msra.mxu0 %v7124_v23  ;;  %p7377_p13 = pnand %p7376_p12, %p7370_p9 }
0x1f8a   : > { %7129 = vmatprep.subr.bf16.mxu0 %v7128_v35 }
0x1f8d   : > { %7131 = vmatpush3.bf16.msra.mxu0 %v7128_v35 }
0x2053   : > { %v6861_v40 = vpop.f32.mrb[26].mxu0 }
0x2054   : > { %v5506_v41 = vadd.f32 %v6861_v40, %v6211_v37  ;;  %v5488_v42 = vpop.f32.mrb[27].mxu0 }
0x2055   : > { %v5505_v45 = vadd.f32 %v6211_v37, %v5488_v42 }
0x2056   : > { %v5508_v46 = vadd.f32 %v5506_v41, %v7986_v60 }
0x2057   : > { %v5507_v47 = vadd.f32 %v5505_v45, %v7984_v59 }
0x2058   : > { %v5514_v48 = vsel %vm1046_vm0, %v5508_v46, 0.0 }
0x2059   : > { %5515 = vadd.xlane.f32.xlu1 %v5514_v48  ;;  %v5511_v49 = vsel %vm1046_vm0, %v5507_v47, 0.0 }
0x205a   : > { %5512 = vadd.xlane.f32.xlu0 %v5511_v49 }
0x20e6   : > { %v5516_v52 = vpop.xlane.xlu1 %5515 }
0x20e7   : > { %v5518_v53 = vmul.f32 0.03125, %v5516_v52  ;;  %v5513_v54 = vpop.xlane.xlu0 %5512 }
0x20e8   : > { %v5517_v55 = vmul.f32 0.03125, %v5513_v54 }
0x20e9   : > { %v5520_v56 = vsub.f32 %v5508_v46, %v5518_v53 }
0x20ea   : > { %v5519_v57 = vsub.f32 %v5507_v47, %v5517_v55  ;;  %v6217_v47 = vld [vmem:[%s7621_s27] ss:$0 sm:$0xff] }
0x20eb   : > { %v5522_v58 = vmul.f32 %v5520_v56, %v5520_v56  ;;  %v5552_v44 = vmul.f32 %v6212_v22, %v5520_v56 }
0x20ec   : > { %v5521_v60 = vmul.f32 %v5519_v57, %v5519_v57  ;;  %v5551_v24 = vmul.f32 %v6212_v22, %v5519_v57 }
0x20ed   : > { %v5526_v59 = vsel %vm1046_vm0, %v5522_v58, 0.0 }
0x20ee   : > { %5527 = vadd.xlane.f32.xlu1 %v5526_v59  ;;  %v5523_v9 = vsel %vm1046_vm0, %v5521_v60, 0.0 }
0x20ef   : > { %5524 = vadd.xlane.f32.xlu0 %v5523_v9 }
0x217b   : > { %v5528_v8 = vpop.xlane.xlu1 %5527 }
0x217c   : > { %v5530_v10 = vmul.f32 0.032258064, %v5528_v8  ;;  %v5525_v11 = vpop.xlane.xlu0 %5524 }
0x217d   : > { %v5529_v13 = vmul.f32 0.032258064, %v5525_v11 }
0x217e   : > { %7334 = vrsqrt.f32 %v5530_v10  ;;  %vm5540_vm9 = vcmp.eq.f32.partialorder %v5530_v10, inf  ;;  %v5543_v19 = vand.u32 2147483648, %v5530_v10  ;;  %vm5542_vm10 = vcmp.eq.f32.partialorder %v5530_v10, 0.0 }
0x217f   : > { %7336 = vrsqrt.f32 %v5529_v13  ;;  %vm5533_vm11 = vcmp.eq.f32.partialorder %v5529_v13, inf  ;;  %v5536_v18 = vand.u32 2147483648, %v5529_v13  ;;  %vm5535_vm12 = vcmp.eq.f32.partialorder %v5529_v13, 0.0 }
0x2188   : > { %v7335_v14 = vpop.eup %7334 }
0x2189   : > { %v7337_v15 = vpop.eup %7336  ;;  %v5539_v16 = vmul.f32 %v7335_v14, %v5530_v10 }
0x218a   : > { %v5532_v17 = vmul.f32 %v7337_v15, %v5529_v13 }
0x218b   : > { %v5541_v51 = vsel %vm5540_vm9, %v5530_v10, %v5539_v16 }
0x218c   : > { %v5544_v28 = vsel %vm5542_vm10, %v5543_v19, %v5541_v51  ;;  %v5534_v20 = vsel %vm5533_vm11, %v5529_v13, %v5532_v17  ;;  %v6220_v19 = vld [vmem:[%s8305_s4] ss:$0 sm:$0xff]  ;;  %s8207_s4 = scalar_lea.sflag [#allocation3], %s1002_s3 }
0x218d   : > { %v5554_v50 = vadd.f32 1e-06, %v5544_v28  ;;  %v5537_v21 = vsel %vm5535_vm12, %v5536_v18, %v5534_v20  ;;  %v6221_v28 = vld [vmem:[%s7631_s21] ss:$0 sm:$0xff] }
0x218e   : > { %v5553_v12 = vadd.f32 1e-06, %v5537_v21 }
0x218f   : > { %7338 = vrcp.f32 %v5554_v50 }
0x2190   : > { %7340 = vrcp.f32 %v5553_v12 }
0x2199   : > { %v7339_v38 = vpop.eup %7338 }
0x219a   : > { %v7341_v39 = vpop.eup %7340  ;;  %v5558_v29 = vmul.f32 %v7339_v38, %v5552_v44 }
0x219b   : > { %v5556_v30 = vmul.f32 %v7341_v39, %v5551_v24 }
0x219c   : > { %v5566_v32 = vadd.f32 %v6213_v27, %v5558_v29 }
0x219d   : > { %v5565_v31 = vadd.f32 %v6213_v27, %v5556_v30 }
0x219f   : > { %6870 = vmatprep.mubr.msk.f32.mxu1 %vm1046_vm0, %v5565_v31 }
0x21a0   : > { %6871 = vmatmul.mubr.msk.f32.vlgmr.msra.gmra.mrb[46].mxu1 %vm1046_vm0, %v5566_v32 }
0x2273   : > { %v6872_v37 = vpop.f32.mrb[46].mxu1 }
0x2274   : > { %v5656_v40 = vadd.f32 %v6872_v37, %v6214_v36  ;;  %v5650_v41 = vpop.f32.mrb[47].mxu1 }
0x2275   : > { %v5651_v42 = vadd.f32 %v6214_v36, %v5650_v41 }
0x2276   : > { %v5660_v46 = vmax.f32 %v5656_v40, 0.0 }
0x2277   : > { %v5659_v45 = vmax.f32 %v5651_v42, 0.0 }
0x2279   : > { %6889 = vmatprep.mubr.msk.f32.mxu0 %vm5676_vm13, %v5659_v45 }
0x227a   : > { %6890 = vmatmul.mubr.msk.f32.vlgmr.msra.gmra.mrb[38].mxu0 %vm5676_vm13, %v5660_v46 }
0x234d   : > { %v6891_v48 = vpop.f32.mrb[38].mxu0 }
0x234e   : > { %v5755_v49 = vadd.f32 %v6891_v48, %v6217_v47  ;;  %v5749_v52 = vpop.f32.mrb[39].mxu0 }
0x234f   : > { %v5750_v53 = vadd.f32 %v6217_v47, %v5749_v52 }
0x2350   : > { %v5759_v54 = vadd.f32 %v5755_v49, %v5566_v32 }
0x2351   : > { %v5758_v55 = vadd.f32 %v5750_v53, %v5565_v31 }
0x2352   : > { %v5765_v56 = vsel %vm1046_vm0, %v5759_v54, 0.0 }
0x2353   : > { %5766 = vadd.xlane.f32.xlu1 %v5765_v56  ;;  %v5762_v57 = vsel %vm1046_vm0, %v5758_v55, 0.0 }
0x2354   : > { %5763 = vadd.xlane.f32.xlu0 %v5762_v57 }
0x23e0   : > { %v5767_v58 = vpop.xlane.xlu1 %5766 }
0x23e1   : > { %v5769_v60 = vmul.f32 0.03125, %v5767_v58  ;;  %v5764_v59 = vpop.xlane.xlu0 %5763 }
0x23e2   : > { %v5768_v9 = vmul.f32 0.03125, %v5764_v59 }
0x23e3   : > { %v5771_v61 = vsub.f32 %v5759_v54, %v5769_v60 }
0x23e4   : > { %v5770_v0 = vsub.f32 %v5758_v55, %v5768_v9 }
0x23e5   : > { %v5773_v1 = vmul.f32 %v5771_v61, %v5771_v61  ;;  %v5803_v17 = vmul.f32 %v6220_v19, %v5771_v61 }
0x23e6   : > { %v5772_v63 = vmul.f32 %v5770_v0, %v5770_v0  ;;  %v5802_v18 = vmul.f32 %v6220_v19, %v5770_v0 }
0x23e7   : > { %v5777_v2 = vsel %vm1046_vm0, %v5773_v1, 0.0 }
0x23e8   : > { %5778 = vadd.xlane.f32.xlu1 %v5777_v2  ;;  %v5774_v62 = vsel %vm1046_vm0, %v5772_v63, 0.0 }
0x23e9   : > { %5775 = vadd.xlane.f32.xlu0 %v5774_v62 }
0x2475   : > { %v5779_v43 = vpop.xlane.xlu1 %5778 }
0x2476   : > { %v5781_v25 = vmul.f32 0.032258064, %v5779_v43  ;;  %v5776_v3 = vpop.xlane.xlu0 %5775 }
0x2477   : > { %v5780_v4 = vmul.f32 0.032258064, %v5776_v3 }
0x2478   : > { %7342 = vrsqrt.f32 %v5781_v25  ;;  %vm5791_vm14 = vcmp.eq.f32.partialorder %v5781_v25, inf  ;;  %v5794_v7 = vand.u32 2147483648, %v5781_v25  ;;  %vm5793_vm15 = vcmp.eq.f32.partialorder %v5781_v25, 0.0 }
0x2479   : > { %7344 = vrsqrt.f32 %v5780_v4  ;;  %vm5784_vm1 = vcmp.eq.f32.partialorder %v5780_v4, inf  ;;  %v5787_v10 = vand.u32 2147483648, %v5780_v4  ;;  %vm5786_vm2 = vcmp.eq.f32.partialorder %v5780_v4, 0.0 }
0x2482   : > { %v7343_v26 = vpop.eup %7342 }
0x2483   : > { %v7345_v5 = vpop.eup %7344  ;;  %v5790_v6 = vmul.f32 %v7343_v26, %v5781_v25 }
0x2484   : > { %v5783_v23 = vmul.f32 %v7345_v5, %v5780_v4 }
0x2485   : > { %v5792_v8 = vsel %vm5791_vm14, %v5781_v25, %v5790_v6 }
0x2486   : > { %v5795_v11 = vsel %vm5793_vm15, %v5794_v7, %v5792_v8  ;;  %v5785_v13 = vsel %vm5784_vm1, %v5780_v4, %v5783_v23 }
0x2487   : > { %v5805_v14 = vadd.f32 1e-06, %v5795_v11  ;;  %v5788_v15 = vsel %vm5786_vm2, %v5787_v10, %v5785_v13 }
0x2488   : > { %v5804_v16 = vadd.f32 1e-06, %v5788_v15 }
0x2489   : > { %7346 = vrcp.f32 %v5805_v14 }
0x248a   : > { %7348 = vrcp.f32 %v5804_v16 }
0x2493   : > { %v7347_v51 = vpop.eup %7346 }
0x2494   : > { %v7349_v20 = vpop.eup %7348  ;;  %v5809_v50 = vmul.f32 %v7347_v51, %v5803_v17 }
0x2495   : > { %v5807_v21 = vmul.f32 %v7349_v20, %v5802_v18 }
0x2496   : > { %v5817_v12 = vadd.f32 %v6221_v28, %v5809_v50 }
0x2497   : > { %v5816_v22 = vadd.f32 %v6221_v28, %v5807_v21 }
0x2498   : > { %5819 = vst.msk [vmem:[%s1004_s6 + $0x8] sm:$0xff] %vm1046_vm0, %v5817_v12 }
0x2499   : > { %5818 = vst.msk [vmem:[%s1004_s6] sm:$0xff] %vm1046_vm0, %v5816_v22 }
0x249a   : > { %7380 = shalt.err (!%p7377_p13)
}
0x249b   : > { %s7381_s6 = scalar_lea.hbm %s8201_s8, 256  ;;  %s7385_s3 = scalar_lea.hbm %s7636_s12, 512 }
0x249c   : > { %p7382_p0 = scmp.ne.s32.totalorder %s8201_s8, %s7381_s6  ;;  %p7386_p3 = scmp.lt.u32.totalorder %s8201_s8, %s7636_s12 }
0x249d   : > { %p7387_p4 = scmp.lt.u32.totalorder %s7385_s3, %s7381_s6  ;;  %p7389_p6 = scmp.lt.u32.totalorder %s7381_s6, %s8201_s8 }
0x249e   : > { %p7383_p1 = pnand %p7382_p0, %p8306_p7 }
0x249f   : > { %p7388_p5 = por %p7387_p4, %p7386_p3 }
0x24a0   : > { %p7384_p2 = pneg %p7383_p1 }
0x24a1   : > { %p7390_p8 = por %p7389_p6, %p7388_p5 }
0x24a3   : > { %p7391_p9 = pnand %p7390_p8, %p7384_p2 }
0x24a5   : > { %7394 = shalt.err (!%p7391_p9)
}
0x24a6   : > { %s7471_s9 = smov 128   ;;  %s7472_s0 = smov 8  }
0x24a7   : > { %7148 = dma.vmem_to_hbm [thread:$0]  (%p8306_p7), %s8203_s7, 256, %s8201_s8, %s8207_s4, %s7471_s9, %s7471_s9, %s7472_s0  }
0x24a8 PF: > { %p7160_p10 = scmp.ge.s32.totalorder %s7433_s28, 2  ;;  %s5849_s5 = sand.u32 1, %s7421_s22  }
0x24a9   : > { %p8307_p11 = scmp.ne.s32.totalorder %s8286_s16, 0  ;;  %s5850_s1 = scalar_lea.sflag [#allocation3], %s5849_s5 }
0x24ab   : > { %p7155_p12 = pnand %p7160_p10, %p8307_p11 }
0x24ad   : > { %7416 = dma.done.wait (!%p7155_p12), %s5850_s1, 256  }
0x24ae   : > { %7418 = vsyncadd (!%p7155_p12), %s5850_s1, 4294967040  ;;  %p74_p13 = scmp.ge.s32.totalorder %s7663_s2, 4   ;;  %s8308_s22 = smov %s7425_s23 }
0x24af   : > { %s8309_s23 = smov %s7429_s26  ;;  %s8310_s26 = smov %s7674_s11 }
0x24b0   : > { %s8311_s28 = smov %s7663_s2  ;;  %76 = sbr.rel (!%p74_p13) target bundleno = 62 (0x3e), region = 267 }
0x24b7   :  { %5855 = vsyncpa [#allocation3], 1 }
0x24b8   :  { %5857 = vsyncpa [#allocation3 + $0x1], 1 }
0x24b9   :  { %5858 = vsyncpa [#allocation4], 1 }
0x24ba   :  { %5860 = vsyncpa [#allocation4 + $0x1], 1 }

</bundles_post_ra>
